<compile_context>
chip_gen: v5e
topology: v5e:2x2
jax: 0.10.0
libtpu: 0.0.40
codegen_flags: <defaults>
</compile_context>

<pallas_src>
import numpy as np
import jax
import jax.numpy as jnp
from jax.experimental import pallas as pl
from jax.experimental.pallas import tpu as pltpu

C_BASE = 16
CHANNELS = (C_BASE, 2 * C_BASE, 4 * C_BASE, 8 * C_BASE)   # (16, 32, 64, 128)


# ----------------------------------------------------------------------------
# Host-side weight preparation: block-Toeplitz conv matrices (built once).
# ----------------------------------------------------------------------------
def _effective_cin(width, cin):
    c = cin
    while (width * c) % 128 != 0:
        c += 1
    return c


def _toeplitz(w_hwio, w_in, stride):
    """Fold 3x3 taps + column pad(1) + column stride into (3*w_in*cin, w_out*cout)."""
    w = np.asarray(w_hwio, dtype=np.float32)          # (3, 3, cin, cout)
    _, _, cin, cout = w.shape
    w_out = (w_in - 1) // stride + 1
    t = np.zeros((3, w_in, cin, w_out, cout), np.float32)
    for jo in range(w_out):
        for kx in range(3):
            j = stride * jo + kx - 1                  # unpadded input column
            if 0 <= j < w_in:
                t[:, j, :, jo, :] = w[:, kx, :, :]
    return jnp.asarray(t.reshape(3 * w_in * cin, w_out * cout))


def make_img_pyramid_params(key, H=32, cin=3):
    """Deterministic synthetic params in kernel-ready layout (+ raw for reference)."""
    cin_eff = _effective_cin(H, cin)
    params, raw = [], []
    c_in, c_in_eff, w_in = cin, cin_eff, H
    for cout in CHANNELS:
        key, kw1, kb1, kw2, kb2 = jax.random.split(key, 5)
        w1 = jax.random.normal(kw1, (3, 3, c_in, cout), jnp.float32) * (1.0 / (9 * c_in)) ** 0.5
        b1 = jax.random.normal(kb1, (cout,), jnp.float32) * 0.01
        w2 = jax.random.normal(kw2, (3, 3, cout, cout), jnp.float32) * (1.0 / (9 * cout)) ** 0.5
        b2 = jax.random.normal(kb2, (cout,), jnp.float32) * 0.01
        a1 = jnp.full((cout,), 0.25, jnp.float32)      # PReLU(out_planes) init
        a2 = jnp.full((cout,), 0.25, jnp.float32)
        # Round 3x3 weights to bf16 once (MXU operand precision).
        w1q = w1.astype(jnp.bfloat16).astype(jnp.float32)
        w2q = w2.astype(jnp.bfloat16).astype(jnp.float32)
        s = w_in // 2
        w1q_k = w1q
        if c_in_eff != c_in:                           # zero weights for padded channels
            w1q_k = jnp.concatenate(
                [w1q, jnp.zeros((3, 3, c_in_eff - c_in, cout), jnp.float32)], axis=2)
        params.append({
            "wt1": _toeplitz(w1q_k, w_in, 2).astype(jnp.bfloat16),   # (3*w_in*cin_eff, s*cout)
            "b1": jnp.tile(b1, (s,)).reshape(1, s * cout),
            "a1": jnp.tile(a1, (s,)).reshape(1, s * cout),
            "wt2": _toeplitz(w2q, s, 1).astype(jnp.bfloat16),        # (3*s*cout, s*cout)
            "b2": jnp.tile(b2, (s,)).reshape(1, s * cout),
            "a2": jnp.tile(a2, (s,)).reshape(1, s * cout),
        })
        raw.append({"w1": w1q, "b1": b1, "a1": a1, "w2": w2q, "b2": b2, "a2": a2})
        c_in, c_in_eff, w_in = cout, cout, s
    return params, raw


# ----------------------------------------------------------------------------
# Fused 4-level pyramid kernel (one grid step = one image, all levels).
# ----------------------------------------------------------------------------
def _make_pyramid_kernel(H, cin0, chans):
    nlev = len(chans)

    def kernel(*refs):
        x_ref = refs[0]
        prm = refs[1:1 + 6 * nlev]
        outs = refs[1 + 6 * nlev:]
        act = x_ref[0]                                  # (H, H*cin0) f32, flattened rows
        h, cin = H, cin0
        for lvl in range(nlev):
            wt1, b1, a1, wt2, b2, a2 = prm[6 * lvl: 6 * lvl + 6]
            cout = chans[lvl]
            s = h // 2
            wrow = h * cin                              # lane width of `act` rows
            # ---- conv1: 3x3, stride 2, pad 1, + PReLU : ONE MXU dot ----
            zr = jnp.zeros((1, wrow), jnp.float32)
            pad = jnp.concatenate([zr, act, zr], axis=0)            # row-padded (h+2, wrow)
            slabs = []
            for ky in range(3):                          # static row gather (rows 2r+ky)
                rows = [pad[2 * r + ky: 2 * r + ky + 1, :] for r in range(s)]
                slabs.append(jnp.concatenate(rows, axis=0))          # (s, wrow)
            col1 = jnp.concatenate(slabs, axis=1).astype(jnp.bfloat16)   # (s, 3*wrow)
            y = jnp.dot(col1, wt1[...], preferred_element_type=jnp.float32)
            y = y + b1[...]
            y = jnp.where(y >= 0.0, y, a1[...] * y)                  # (s, s*cout) f32
            # ---- conv2: 3x3, stride 1, pad 1, + PReLU : ONE MXU dot ----
            orow = s * cout
            zr2 = jnp.zeros((1, orow), jnp.float32)
            pad2 = jnp.concatenate([zr2, y, zr2], axis=0)            # (s+2, orow)
            col2 = jnp.concatenate(
                [pad2[0:s, :], pad2[1:s + 1, :], pad2[2:s + 2, :]],
                axis=1).astype(jnp.bfloat16)                          # (s, 3*orow)
            z = jnp.dot(col2, wt2[...], preferred_element_type=jnp.float32)
            z = z + b2[...]
            z = jnp.where(z >= 0.0, z, a2[...] * z)                   # (s, orow) f32
            outs[lvl][0] = z                      # lane-dense (256-wide) full-block store
            act = z                               # next level consumes the on-chip value
            h, cin = s, cout

    return kernel


def _img_pyramid_forward(x_nchw, params):
    N, cin, H, W = x_nchw.shape
    assert H == W and H % (2 ** len(CHANNELS)) == 0, "square input, divisible by 16"
    cin_eff = _effective_cin(W, cin)

    # NCHW -> flattened-row layout (N, H, W*cin_eff); channel-pad to lane-align rows.
    x = jnp.transpose(x_nchw, (0, 2, 3, 1))
    if cin_eff != cin:
        x = jnp.pad(x, ((0, 0), (0, 0), (0, 0), (0, cin_eff - cin)))
    x2d = x.reshape(N, H, W * cin_eff).astype(jnp.float32)

    flat = [x2d]
    in_specs = [pl.BlockSpec((1, H, W * cin_eff), lambda n: (n, 0, 0))]
    for p in params:
        for name in ("wt1", "b1", "a1", "wt2", "b2", "a2"):
            a = p[name]
            flat.append(a)
            in_specs.append(pl.BlockSpec(a.shape, lambda n: (0, 0)))  # resident weights

    sizes = [(H // (2 ** (l + 1)), CHANNELS[l]) for l in range(len(CHANNELS))]
    out_shape = tuple(jax.ShapeDtypeStruct((N, s, s * c), jnp.float32) for s, c in sizes)
    out_specs = [pl.BlockSpec((1, s, s * c), lambda n: (n, 0, 0)) for s, c in sizes]

    kernel = _make_pyramid_kernel(H, cin_eff, CHANNELS)
    outs = pl.pallas_call(
        kernel,
        out_shape=out_shape,
        grid_spec=pltpu.PrefetchScalarGridSpec(
            num_scalar_prefetch=0,
            grid=(N,),                                  # one image per grid step
            in_specs=in_specs,
            out_specs=out_specs,
        ),
        compiler_params=pltpu.CompilerParams(dimension_semantics=("parallel",)),
    )(*flat)

    # Lane-dense (N, s, s*C) -> NCHW pyramid view (API boundary only).
    return [jnp.transpose(o.reshape(N, s, s, c), (0, 3, 1, 2))
            for (s, c), o in zip(sizes, outs)]


img_pyramid_forward = jax.jit(_img_pyramid_forward)


# ----------------------------------------------------------------------------
# Pure-JAX reference (same bf16 operand rounding scheme as the kernel).
# ----------------------------------------------------------------------------
def ref_forward(x_nchw, raw):
    dn = ("NHWC", "HWIO", "NHWC")
    x = jnp.transpose(x_nchw, (0, 2, 3, 1)).astype(jnp.bfloat16).astype(jnp.float32)
    outs = []
    for p in raw:
        y = jax.lax.conv_general_dilated(x, p["w1"], (2, 2), ((1, 1), (1, 1)),
                                         dimension_numbers=dn)
        y = y + p["b1"]
        y = jnp.where(y >= 0, y, p["a1"] * y)
        y = y.astype(jnp.bfloat16).astype(jnp.float32)
        z = jax.lax.conv_general_dilated(y, p["w2"], (1, 1), ((1, 1), (1, 1)),
                                         dimension_numbers=dn)
        z = z + p["b2"]
        z = jnp.where(z >= 0, z, p["a2"] * z)
        outs.append(jnp.transpose(z, (0, 3, 1, 2)))
        x = z.astype(jnp.bfloat16).astype(jnp.float32)
    return outs


if __name__ == "__main__":
    root = jax.random.PRNGKey(0)
    kx, kp = jax.random.split(root)

    # NCHW input consistent with Conv2d(3, ...) and four stride-2 stages.
    x = jax.random.normal(kx, (2, 3, 32, 32), jnp.float32)
    params, raw = make_img_pyramid_params(kp, H=32, cin=3)

    outs = img_pyramid_forward(x, params)
    outs = [jax.block_until_ready(o) for o in outs]

    expected = [(2, 16, 16, 16), (2, 32, 8, 8), (2, 64, 4, 4), (2, 128, 2, 2)]
    assert [tuple(o.shape) for o in outs] == expected, [o.shape for o in outs]

    refs = ref_forward(x, raw)
    for o, r in zip(outs, refs):
        assert bool(jnp.all(jnp.isfinite(o)))
        err = float(jnp.max(jnp.abs(o - r)))
        assert err < 1e-2, f"max abs err {err}"
    print("KERNEL_OK")
</pallas_src>

<mosaic_0001>
module attributes {stable_mosaic.version = 11 : i64} {
  func.func @kernel(%arg0: i32, %arg1: memref<1x32x128xf32, #tpu.memory_space<vmem>>, %arg2: memref<384x256xbf16, #tpu.memory_space<vmem>>, %arg3: memref<1x256xf32, #tpu.memory_space<vmem>>, %arg4: memref<1x256xf32, #tpu.memory_space<vmem>>, %arg5: memref<768x256xbf16, #tpu.memory_space<vmem>>, %arg6: memref<1x256xf32, #tpu.memory_space<vmem>>, %arg7: memref<1x256xf32, #tpu.memory_space<vmem>>, %arg8: memref<768x256xbf16, #tpu.memory_space<vmem>>, %arg9: memref<1x256xf32, #tpu.memory_space<vmem>>, %arg10: memref<1x256xf32, #tpu.memory_space<vmem>>, %arg11: memref<768x256xbf16, #tpu.memory_space<vmem>>, %arg12: memref<1x256xf32, #tpu.memory_space<vmem>>, %arg13: memref<1x256xf32, #tpu.memory_space<vmem>>, %arg14: memref<768x256xbf16, #tpu.memory_space<vmem>>, %arg15: memref<1x256xf32, #tpu.memory_space<vmem>>, %arg16: memref<1x256xf32, #tpu.memory_space<vmem>>, %arg17: memref<768x256xbf16, #tpu.memory_space<vmem>>, %arg18: memref<1x256xf32, #tpu.memory_space<vmem>>, %arg19: memref<1x256xf32, #tpu.memory_space<vmem>>, %arg20: memref<768x256xbf16, #tpu.memory_space<vmem>>, %arg21: memref<1x256xf32, #tpu.memory_space<vmem>>, %arg22: memref<1x256xf32, #tpu.memory_space<vmem>>, %arg23: memref<768x256xbf16, #tpu.memory_space<vmem>>, %arg24: memref<1x256xf32, #tpu.memory_space<vmem>>, %arg25: memref<1x256xf32, #tpu.memory_space<vmem>>, %arg26: memref<1x16x256xf32, #tpu.memory_space<vmem>>, %arg27: memref<1x8x256xf32, #tpu.memory_space<vmem>>, %arg28: memref<1x4x256xf32, #tpu.memory_space<vmem>>, %arg29: memref<1x2x256xf32, #tpu.memory_space<vmem>>) attributes {dimension_semantics = [#tpu.dimension_semantics<parallel>], iteration_bounds = array<i64: 2>, scalar_prefetch = 0 : i64, scratch_operands = 0 : i64, tpu.core_type = #tpu.core_type<tc>, window_params = [{transform_indices = @transform_0, window_bounds = array<i64: 1, 32, 128>}, {pipeline_mode = #tpu.pipeline_mode<synchronous>, transform_indices = @transform_1, window_bounds = array<i64: 384, 256>}, {pipeline_mode = #tpu.pipeline_mode<synchronous>, transform_indices = @transform_2, window_bounds = array<i64: 1, 256>}, {pipeline_mode = #tpu.pipeline_mode<synchronous>, transform_indices = @transform_3, window_bounds = array<i64: 1, 256>}, {pipeline_mode = #tpu.pipeline_mode<synchronous>, transform_indices = @transform_4, window_bounds = array<i64: 768, 256>}, {pipeline_mode = #tpu.pipeline_mode<synchronous>, transform_indices = @transform_5, window_bounds = array<i64: 1, 256>}, {pipeline_mode = #tpu.pipeline_mode<synchronous>, transform_indices = @transform_6, window_bounds = array<i64: 1, 256>}, {pipeline_mode = #tpu.pipeline_mode<synchronous>, transform_indices = @transform_7, window_bounds = array<i64: 768, 256>}, {pipeline_mode = #tpu.pipeline_mode<synchronous>, transform_indices = @transform_8, window_bounds = array<i64: 1, 256>}, {pipeline_mode = #tpu.pipeline_mode<synchronous>, transform_indices = @transform_9, window_bounds = array<i64: 1, 256>}, {pipeline_mode = #tpu.pipeline_mode<synchronous>, transform_indices = @transform_10, window_bounds = array<i64: 768, 256>}, {pipeline_mode = #tpu.pipeline_mode<synchronous>, transform_indices = @transform_11, window_bounds = array<i64: 1, 256>}, {pipeline_mode = #tpu.pipeline_mode<synchronous>, transform_indices = @transform_12, window_bounds = array<i64: 1, 256>}, {pipeline_mode = #tpu.pipeline_mode<synchronous>, transform_indices = @transform_13, window_bounds = array<i64: 768, 256>}, {pipeline_mode = #tpu.pipeline_mode<synchronous>, transform_indices = @transform_14, window_bounds = array<i64: 1, 256>}, {pipeline_mode = #tpu.pipeline_mode<synchronous>, transform_indices = @transform_15, window_bounds = array<i64: 1, 256>}, {pipeline_mode = #tpu.pipeline_mode<synchronous>, transform_indices = @transform_16, window_bounds = array<i64: 768, 256>}, {pipeline_mode = #tpu.pipeline_mode<synchronous>, transform_indices = @transform_17, window_bounds = array<i64: 1, 256>}, {pipeline_mode = #tpu.pipeline_mode<synchronous>, transform_indices = @transform_18, window_bounds = array<i64: 1, 256>}, {pipeline_mode = #tpu.pipeline_mode<synchronous>, transform_indices = @transform_19, window_bounds = array<i64: 768, 256>}, {pipeline_mode = #tpu.pipeline_mode<synchronous>, transform_indices = @transform_20, window_bounds = array<i64: 1, 256>}, {pipeline_mode = #tpu.pipeline_mode<synchronous>, transform_indices = @transform_21, window_bounds = array<i64: 1, 256>}, {pipeline_mode = #tpu.pipeline_mode<synchronous>, transform_indices = @transform_22, window_bounds = array<i64: 768, 256>}, {pipeline_mode = #tpu.pipeline_mode<synchronous>, transform_indices = @transform_23, window_bounds = array<i64: 1, 256>}, {pipeline_mode = #tpu.pipeline_mode<synchronous>, transform_indices = @transform_24, window_bounds = array<i64: 1, 256>}, {transform_indices = @transform_25, window_bounds = array<i64: 1, 16, 256>}, {transform_indices = @transform_26, window_bounds = array<i64: 1, 8, 256>}, {transform_indices = @transform_27, window_bounds = array<i64: 1, 4, 256>}, {transform_indices = @transform_28, window_bounds = array<i64: 1, 2, 256>}]} {
    %c0 = arith.constant 0 : index
    %c0_0 = arith.constant 0 : index
    %c0_1 = arith.constant 0 : index
    %0 = vector.load %arg1[%c0, %c0_0, %c0_1] : memref<1x32x128xf32, #tpu.memory_space<vmem>>, vector<1x32x128xf32>
    %1 = vector.shape_cast %0 : vector<1x32x128xf32> to vector<32x128xf32>
    %cst = arith.constant 0.000000e+00 : f32
    %2 = vector.broadcast %cst : f32 to vector<1x128xf32>
    %3 = tpu.concatenate %2, %1, %2 in 0 : vector<1x128xf32>, vector<32x128xf32>, vector<1x128xf32> -> vector<34x128xf32>
    %4 = vector.extract_strided_slice %3 {offsets = [0, 0], sizes = [1, 128], strides = [1, 1]} : vector<34x128xf32> to vector<1x128xf32>
    %5 = vector.extract_strided_slice %3 {offsets = [2, 0], sizes = [1, 128], strides = [1, 1]} : vector<34x128xf32> to vector<1x128xf32>
    %6 = vector.extract_strided_slice %3 {offsets = [4, 0], sizes = [1, 128], strides = [1, 1]} : vector<34x128xf32> to vector<1x128xf32>
    %7 = vector.extract_strided_slice %3 {offsets = [6, 0], sizes = [1, 128], strides = [1, 1]} : vector<34x128xf32> to vector<1x128xf32>
    %8 = vector.extract_strided_slice %3 {offsets = [8, 0], sizes = [1, 128], strides = [1, 1]} : vector<34x128xf32> to vector<1x128xf32>
    %9 = vector.extract_strided_slice %3 {offsets = [10, 0], sizes = [1, 128], strides = [1, 1]} : vector<34x128xf32> to vector<1x128xf32>
    %10 = vector.extract_strided_slice %3 {offsets = [12, 0], sizes = [1, 128], strides = [1, 1]} : vector<34x128xf32> to vector<1x128xf32>
    %11 = vector.extract_strided_slice %3 {offsets = [14, 0], sizes = [1, 128], strides = [1, 1]} : vector<34x128xf32> to vector<1x128xf32>
    %12 = vector.extract_strided_slice %3 {offsets = [16, 0], sizes = [1, 128], strides = [1, 1]} : vector<34x128xf32> to vector<1x128xf32>
    %13 = vector.extract_strided_slice %3 {offsets = [18, 0], sizes = [1, 128], strides = [1, 1]} : vector<34x128xf32> to vector<1x128xf32>
    %14 = vector.extract_strided_slice %3 {offsets = [20, 0], sizes = [1, 128], strides = [1, 1]} : vector<34x128xf32> to vector<1x128xf32>
    %15 = vector.extract_strided_slice %3 {offsets = [22, 0], sizes = [1, 128], strides = [1, 1]} : vector<34x128xf32> to vector<1x128xf32>
    %16 = vector.extract_strided_slice %3 {offsets = [24, 0], sizes = [1, 128], strides = [1, 1]} : vector<34x128xf32> to vector<1x128xf32>
    %17 = vector.extract_strided_slice %3 {offsets = [26, 0], sizes = [1, 128], strides = [1, 1]} : vector<34x128xf32> to vector<1x128xf32>
    %18 = vector.extract_strided_slice %3 {offsets = [28, 0], sizes = [1, 128], strides = [1, 1]} : vector<34x128xf32> to vector<1x128xf32>
    %19 = vector.extract_strided_slice %3 {offsets = [30, 0], sizes = [1, 128], strides = [1, 1]} : vector<34x128xf32> to vector<1x128xf32>
    %20 = tpu.concatenate %4, %5, %6, %7, %8, %9, %10, %11, %12, %13, %14, %15, %16, %17, %18, %19 in 0 : vector<1x128xf32>, vector<1x128xf32>, vector<1x128xf32>, vector<1x128xf32>, vector<1x128xf32>, vector<1x128xf32>, vector<1x128xf32>, vector<1x128xf32>, vector<1x128xf32>, vector<1x128xf32>, vector<1x128xf32>, vector<1x128xf32>, vector<1x128xf32>, vector<1x128xf32>, vector<1x128xf32>, vector<1x128xf32> -> vector<16x128xf32>
    %21 = vector.extract_strided_slice %3 {offsets = [1, 0], sizes = [1, 128], strides = [1, 1]} : vector<34x128xf32> to vector<1x128xf32>
    %22 = vector.extract_strided_slice %3 {offsets = [3, 0], sizes = [1, 128], strides = [1, 1]} : vector<34x128xf32> to vector<1x128xf32>
    %23 = vector.extract_strided_slice %3 {offsets = [5, 0], sizes = [1, 128], strides = [1, 1]} : vector<34x128xf32> to vector<1x128xf32>
    %24 = vector.extract_strided_slice %3 {offsets = [7, 0], sizes = [1, 128], strides = [1, 1]} : vector<34x128xf32> to vector<1x128xf32>
    %25 = vector.extract_strided_slice %3 {offsets = [9, 0], sizes = [1, 128], strides = [1, 1]} : vector<34x128xf32> to vector<1x128xf32>
    %26 = vector.extract_strided_slice %3 {offsets = [11, 0], sizes = [1, 128], strides = [1, 1]} : vector<34x128xf32> to vector<1x128xf32>
    %27 = vector.extract_strided_slice %3 {offsets = [13, 0], sizes = [1, 128], strides = [1, 1]} : vector<34x128xf32> to vector<1x128xf32>
    %28 = vector.extract_strided_slice %3 {offsets = [15, 0], sizes = [1, 128], strides = [1, 1]} : vector<34x128xf32> to vector<1x128xf32>
    %29 = vector.extract_strided_slice %3 {offsets = [17, 0], sizes = [1, 128], strides = [1, 1]} : vector<34x128xf32> to vector<1x128xf32>
    %30 = vector.extract_strided_slice %3 {offsets = [19, 0], sizes = [1, 128], strides = [1, 1]} : vector<34x128xf32> to vector<1x128xf32>
    %31 = vector.extract_strided_slice %3 {offsets = [21, 0], sizes = [1, 128], strides = [1, 1]} : vector<34x128xf32> to vector<1x128xf32>
    %32 = vector.extract_strided_slice %3 {offsets = [23, 0], sizes = [1, 128], strides = [1, 1]} : vector<34x128xf32> to vector<1x128xf32>
    %33 = vector.extract_strided_slice %3 {offsets = [25, 0], sizes = [1, 128], strides = [1, 1]} : vector<34x128xf32> to vector<1x128xf32>
    %34 = vector.extract_strided_slice %3 {offsets = [27, 0], sizes = [1, 128], strides = [1, 1]} : vector<34x128xf32> to vector<1x128xf32>
    %35 = vector.extract_strided_slice %3 {offsets = [29, 0], sizes = [1, 128], strides = [1, 1]} : vector<34x128xf32> to vector<1x128xf32>
    %36 = vector.extract_strided_slice %3 {offsets = [31, 0], sizes = [1, 128], strides = [1, 1]} : vector<34x128xf32> to vector<1x128xf32>
    %37 = tpu.concatenate %21, %22, %23, %24, %25, %26, %27, %28, %29, %30, %31, %32, %33, %34, %35, %36 in 0 : vector<1x128xf32>, vector<1x128xf32>, vector<1x128xf32>, vector<1x128xf32>, vector<1x128xf32>, vector<1x128xf32>, vector<1x128xf32>, vector<1x128xf32>, vector<1x128xf32>, vector<1x128xf32>, vector<1x128xf32>, vector<1x128xf32>, vector<1x128xf32>, vector<1x128xf32>, vector<1x128xf32>, vector<1x128xf32> -> vector<16x128xf32>
    %38 = vector.extract_strided_slice %3 {offsets = [2, 0], sizes = [1, 128], strides = [1, 1]} : vector<34x128xf32> to vector<1x128xf32>
    %39 = vector.extract_strided_slice %3 {offsets = [4, 0], sizes = [1, 128], strides = [1, 1]} : vector<34x128xf32> to vector<1x128xf32>
    %40 = vector.extract_strided_slice %3 {offsets = [6, 0], sizes = [1, 128], strides = [1, 1]} : vector<34x128xf32> to vector<1x128xf32>
    %41 = vector.extract_strided_slice %3 {offsets = [8, 0], sizes = [1, 128], strides = [1, 1]} : vector<34x128xf32> to vector<1x128xf32>
    %42 = vector.extract_strided_slice %3 {offsets = [10, 0], sizes = [1, 128], strides = [1, 1]} : vector<34x128xf32> to vector<1x128xf32>
    %43 = vector.extract_strided_slice %3 {offsets = [12, 0], sizes = [1, 128], strides = [1, 1]} : vector<34x128xf32> to vector<1x128xf32>
    %44 = vector.extract_strided_slice %3 {offsets = [14, 0], sizes = [1, 128], strides = [1, 1]} : vector<34x128xf32> to vector<1x128xf32>
    %45 = vector.extract_strided_slice %3 {offsets = [16, 0], sizes = [1, 128], strides = [1, 1]} : vector<34x128xf32> to vector<1x128xf32>
    %46 = vector.extract_strided_slice %3 {offsets = [18, 0], sizes = [1, 128], strides = [1, 1]} : vector<34x128xf32> to vector<1x128xf32>
    %47 = vector.extract_strided_slice %3 {offsets = [20, 0], sizes = [1, 128], strides = [1, 1]} : vector<34x128xf32> to vector<1x128xf32>
    %48 = vector.extract_strided_slice %3 {offsets = [22, 0], sizes = [1, 128], strides = [1, 1]} : vector<34x128xf32> to vector<1x128xf32>
    %49 = vector.extract_strided_slice %3 {offsets = [24, 0], sizes = [1, 128], strides = [1, 1]} : vector<34x128xf32> to vector<1x128xf32>
    %50 = vector.extract_strided_slice %3 {offsets = [26, 0], sizes = [1, 128], strides = [1, 1]} : vector<34x128xf32> to vector<1x128xf32>
    %51 = vector.extract_strided_slice %3 {offsets = [28, 0], sizes = [1, 128], strides = [1, 1]} : vector<34x128xf32> to vector<1x128xf32>
    %52 = vector.extract_strided_slice %3 {offsets = [30, 0], sizes = [1, 128], strides = [1, 1]} : vector<34x128xf32> to vector<1x128xf32>
    %53 = vector.extract_strided_slice %3 {offsets = [32, 0], sizes = [1, 128], strides = [1, 1]} : vector<34x128xf32> to vector<1x128xf32>
    %54 = tpu.concatenate %38, %39, %40, %41, %42, %43, %44, %45, %46, %47, %48, %49, %50, %51, %52, %53 in 0 : vector<1x128xf32>, vector<1x128xf32>, vector<1x128xf32>, vector<1x128xf32>, vector<1x128xf32>, vector<1x128xf32>, vector<1x128xf32>, vector<1x128xf32>, vector<1x128xf32>, vector<1x128xf32>, vector<1x128xf32>, vector<1x128xf32>, vector<1x128xf32>, vector<1x128xf32>, vector<1x128xf32>, vector<1x128xf32> -> vector<16x128xf32>
    %55 = tpu.concatenate %20, %37, %54 in 1 : vector<16x128xf32>, vector<16x128xf32>, vector<16x128xf32> -> vector<16x384xf32>
    %56 = arith.truncf %55 : vector<16x384xf32> to vector<16x384xbf16>
    %c0_2 = arith.constant 0 : index
    %c0_3 = arith.constant 0 : index
    %57 = vector.load %arg2[%c0_2, %c0_3] : memref<384x256xbf16, #tpu.memory_space<vmem>>, vector<384x256xbf16>
    %cst_4 = arith.constant dense<0.000000e+00> : vector<16x256xf32>
    %58 = tpu.matmul %56, %57, %cst_4 {dimension_numbers = #tpu.dot_dimension_numbers<[1], [0], [0], [1], [0, 0, 1, 1], [], []>} : vector<16x384xbf16>, vector<384x256xbf16>, vector<16x256xf32> -> vector<16x256xf32>
    %c0_5 = arith.constant 0 : index
    %c0_6 = arith.constant 0 : index
    %59 = vector.load %arg3[%c0_5, %c0_6] : memref<1x256xf32, #tpu.memory_space<vmem>>, vector<1x256xf32>
    %60 = vector.broadcast %59 : vector<1x256xf32> to vector<16x256xf32>
    %61 = arith.addf %58, %60 : vector<16x256xf32>
    %cst_7 = arith.constant 0.000000e+00 : f32
    %62 = vector.broadcast %cst_7 : f32 to vector<16x256xf32>
    %63 = arith.cmpf oge, %61, %62 : vector<16x256xf32>
    %c0_8 = arith.constant 0 : index
    %c0_9 = arith.constant 0 : index
    %64 = vector.load %arg4[%c0_8, %c0_9] : memref<1x256xf32, #tpu.memory_space<vmem>>, vector<1x256xf32>
    %65 = vector.broadcast %64 : vector<1x256xf32> to vector<16x256xf32>
    %66 = arith.mulf %65, %61 : vector<16x256xf32>
    %67 = arith.select %63, %61, %66 : vector<16x256xi1>, vector<16x256xf32>
    %cst_10 = arith.constant 0.000000e+00 : f32
    %68 = vector.broadcast %cst_10 : f32 to vector<1x256xf32>
    %69 = tpu.concatenate %68, %67, %68 in 0 : vector<1x256xf32>, vector<16x256xf32>, vector<1x256xf32> -> vector<18x256xf32>
    %70 = vector.extract_strided_slice %69 {offsets = [0, 0], sizes = [16, 256], strides = [1, 1]} : vector<18x256xf32> to vector<16x256xf32>
    %71 = vector.extract_strided_slice %69 {offsets = [1, 0], sizes = [16, 256], strides = [1, 1]} : vector<18x256xf32> to vector<16x256xf32>
    %72 = vector.extract_strided_slice %69 {offsets = [2, 0], sizes = [16, 256], strides = [1, 1]} : vector<18x256xf32> to vector<16x256xf32>
    %73 = tpu.concatenate %70, %71, %72 in 1 : vector<16x256xf32>, vector<16x256xf32>, vector<16x256xf32> -> vector<16x768xf32>
    %74 = arith.truncf %73 : vector<16x768xf32> to vector<16x768xbf16>
    %c0_11 = arith.constant 0 : index
    %c0_12 = arith.constant 0 : index
    %75 = vector.load %arg5[%c0_11, %c0_12] : memref<768x256xbf16, #tpu.memory_space<vmem>>, vector<768x256xbf16>
    %cst_13 = arith.constant dense<0.000000e+00> : vector<16x256xf32>
    %76 = tpu.matmul %74, %75, %cst_13 {dimension_numbers = #tpu.dot_dimension_numbers<[1], [0], [0], [1], [0, 0, 1, 1], [], []>} : vector<16x768xbf16>, vector<768x256xbf16>, vector<16x256xf32> -> vector<16x256xf32>
    %c0_14 = arith.constant 0 : index
    %c0_15 = arith.constant 0 : index
    %77 = vector.load %arg6[%c0_14, %c0_15] : memref<1x256xf32, #tpu.memory_space<vmem>>, vector<1x256xf32>
    %78 = vector.broadcast %77 : vector<1x256xf32> to vector<16x256xf32>
    %79 = arith.addf %76, %78 : vector<16x256xf32>
    %cst_16 = arith.constant 0.000000e+00 : f32
    %80 = vector.broadcast %cst_16 : f32 to vector<16x256xf32>
    %81 = arith.cmpf oge, %79, %80 : vector<16x256xf32>
    %c0_17 = arith.constant 0 : index
    %c0_18 = arith.constant 0 : index
    %82 = vector.load %arg7[%c0_17, %c0_18] : memref<1x256xf32, #tpu.memory_space<vmem>>, vector<1x256xf32>
    %83 = vector.broadcast %82 : vector<1x256xf32> to vector<16x256xf32>
    %84 = arith.mulf %83, %79 : vector<16x256xf32>
    %85 = arith.select %81, %79, %84 : vector<16x256xi1>, vector<16x256xf32>
    %c0_19 = arith.constant 0 : index
    %c0_20 = arith.constant 0 : index
    %c0_21 = arith.constant 0 : index
    %86 = vector.load %arg26[%c0_19, %c0_20, %c0_21] : memref<1x16x256xf32, #tpu.memory_space<vmem>>, vector<1x16x256xf32>
    %87 = vector.shape_cast %86 : vector<1x16x256xf32> to vector<16x256xf32>
    %88 = vector.shape_cast %85 : vector<16x256xf32> to vector<1x16x256xf32>
    tpu.vector_store %arg26[%c0_19, %c0_20, %c0_21], %88 {strides = array<i32>} : memref<1x16x256xf32, #tpu.memory_space<vmem>>, vector<1x16x256xf32>,
    %cst_22 = arith.constant 0.000000e+00 : f32
    %89 = vector.broadcast %cst_22 : f32 to vector<1x256xf32>
    %90 = tpu.concatenate %89, %85, %89 in 0 : vector<1x256xf32>, vector<16x256xf32>, vector<1x256xf32> -> vector<18x256xf32>
    %91 = vector.extract_strided_slice %90 {offsets = [0, 0], sizes = [1, 256], strides = [1, 1]} : vector<18x256xf32> to vector<1x256xf32>
    %92 = vector.extract_strided_slice %90 {offsets = [2, 0], sizes = [1, 256], strides = [1, 1]} : vector<18x256xf32> to vector<1x256xf32>
    %93 = vector.extract_strided_slice %90 {offsets = [4, 0], sizes = [1, 256], strides = [1, 1]} : vector<18x256xf32> to vector<1x256xf32>
    %94 = vector.extract_strided_slice %90 {offsets = [6, 0], sizes = [1, 256], strides = [1, 1]} : vector<18x256xf32> to vector<1x256xf32>
    %95 = vector.extract_strided_slice %90 {offsets = [8, 0], sizes = [1, 256], strides = [1, 1]} : vector<18x256xf32> to vector<1x256xf32>
    %96 = vector.extract_strided_slice %90 {offsets = [10, 0], sizes = [1, 256], strides = [1, 1]} : vector<18x256xf32> to vector<1x256xf32>
    %97 = vector.extract_strided_slice %90 {offsets = [12, 0], sizes = [1, 256], strides = [1, 1]} : vector<18x256xf32> to vector<1x256xf32>
    %98 = vector.extract_strided_slice %90 {offsets = [14, 0], sizes = [1, 256], strides = [1, 1]} : vector<18x256xf32> to vector<1x256xf32>
    %99 = tpu.concatenate %91, %92, %93, %94, %95, %96, %97, %98 in 0 : vector<1x256xf32>, vector<1x256xf32>, vector<1x256xf32>, vector<1x256xf32>, vector<1x256xf32>, vector<1x256xf32>, vector<1x256xf32>, vector<1x256xf32> -> vector<8x256xf32>
    %100 = vector.extract_strided_slice %90 {offsets = [1, 0], sizes = [1, 256], strides = [1, 1]} : vector<18x256xf32> to vector<1x256xf32>
    %101 = vector.extract_strided_slice %90 {offsets = [3, 0], sizes = [1, 256], strides = [1, 1]} : vector<18x256xf32> to vector<1x256xf32>
    %102 = vector.extract_strided_slice %90 {offsets = [5, 0], sizes = [1, 256], strides = [1, 1]} : vector<18x256xf32> to vector<1x256xf32>
    %103 = vector.extract_strided_slice %90 {offsets = [7, 0], sizes = [1, 256], strides = [1, 1]} : vector<18x256xf32> to vector<1x256xf32>
    %104 = vector.extract_strided_slice %90 {offsets = [9, 0], sizes = [1, 256], strides = [1, 1]} : vector<18x256xf32> to vector<1x256xf32>
    %105 = vector.extract_strided_slice %90 {offsets = [11, 0], sizes = [1, 256], strides = [1, 1]} : vector<18x256xf32> to vector<1x256xf32>
    %106 = vector.extract_strided_slice %90 {offsets = [13, 0], sizes = [1, 256], strides = [1, 1]} : vector<18x256xf32> to vector<1x256xf32>
    %107 = vector.extract_strided_slice %90 {offsets = [15, 0], sizes = [1, 256], strides = [1, 1]} : vector<18x256xf32> to vector<1x256xf32>
    %108 = tpu.concatenate %100, %101, %102, %103, %104, %105, %106, %107 in 0 : vector<1x256xf32>, vector<1x256xf32>, vector<1x256xf32>, vector<1x256xf32>, vector<1x256xf32>, vector<1x256xf32>, vector<1x256xf32>, vector<1x256xf32> -> vector<8x256xf32>
    %109 = vector.extract_strided_slice %90 {offsets = [2, 0], sizes = [1, 256], strides = [1, 1]} : vector<18x256xf32> to vector<1x256xf32>
    %110 = vector.extract_strided_slice %90 {offsets = [4, 0], sizes = [1, 256], strides = [1, 1]} : vector<18x256xf32> to vector<1x256xf32>
    %111 = vector.extract_strided_slice %90 {offsets = [6, 0], sizes = [1, 256], strides = [1, 1]} : vector<18x256xf32> to vector<1x256xf32>
    %112 = vector.extract_strided_slice %90 {offsets = [8, 0], sizes = [1, 256], strides = [1, 1]} : vector<18x256xf32> to vector<1x256xf32>
    %113 = vector.extract_strided_slice %90 {offsets = [10, 0], sizes = [1, 256], strides = [1, 1]} : vector<18x256xf32> to vector<1x256xf32>
    %114 = vector.extract_strided_slice %90 {offsets = [12, 0], sizes = [1, 256], strides = [1, 1]} : vector<18x256xf32> to vector<1x256xf32>
    %115 = vector.extract_strided_slice %90 {offsets = [14, 0], sizes = [1, 256], strides = [1, 1]} : vector<18x256xf32> to vector<1x256xf32>
    %116 = vector.extract_strided_slice %90 {offsets = [16, 0], sizes = [1, 256], strides = [1, 1]} : vector<18x256xf32> to vector<1x256xf32>
    %117 = tpu.concatenate %109, %110, %111, %112, %113, %114, %115, %116 in 0 : vector<1x256xf32>, vector<1x256xf32>, vector<1x256xf32>, vector<1x256xf32>, vector<1x256xf32>, vector<1x256xf32>, vector<1x256xf32>, vector<1x256xf32> -> vector<8x256xf32>
    %118 = tpu.concatenate %99, %108, %117 in 1 : vector<8x256xf32>, vector<8x256xf32>, vector<8x256xf32> -> vector<8x768xf32>
    %119 = arith.truncf %118 : vector<8x768xf32> to vector<8x768xbf16>
    %c0_23 = arith.constant 0 : index
    %c0_24 = arith.constant 0 : index
    %120 = vector.load %arg8[%c0_23, %c0_24] : memref<768x256xbf16, #tpu.memory_space<vmem>>, vector<768x256xbf16>
    %cst_25 = arith.constant dense<0.000000e+00> : vector<8x256xf32>
    %121 = tpu.matmul %119, %120, %cst_25 {dimension_numbers = #tpu.dot_dimension_numbers<[1], [0], [0], [1], [0, 0, 1, 1], [], []>} : vector<8x768xbf16>, vector<768x256xbf16>, vector<8x256xf32> -> vector<8x256xf32>
    %c0_26 = arith.constant 0 : index
    %c0_27 = arith.constant 0 : index
    %122 = vector.load %arg9[%c0_26, %c0_27] : memref<1x256xf32, #tpu.memory_space<vmem>>, vector<1x256xf32>
    %123 = vector.broadcast %122 : vector<1x256xf32> to vector<8x256xf32>
    %124 = arith.addf %121, %123 : vector<8x256xf32>
    %cst_28 = arith.constant 0.000000e+00 : f32
    %125 = vector.broadcast %cst_28 : f32 to vector<8x256xf32>
    %126 = arith.cmpf oge, %124, %125 : vector<8x256xf32>
    %c0_29 = arith.constant 0 : index
    %c0_30 = arith.constant 0 : index
    %127 = vector.load %arg10[%c0_29, %c0_30] : memref<1x256xf32, #tpu.memory_space<vmem>>, vector<1x256xf32>
    %128 = vector.broadcast %127 : vector<1x256xf32> to vector<8x256xf32>
    %129 = arith.mulf %128, %124 : vector<8x256xf32>
    %130 = arith.select %126, %124, %129 : vector<8x256xi1>, vector<8x256xf32>
    %cst_31 = arith.constant 0.000000e+00 : f32
    %131 = vector.broadcast %cst_31 : f32 to vector<1x256xf32>
    %132 = tpu.concatenate %131, %130, %131 in 0 : vector<1x256xf32>, vector<8x256xf32>, vector<1x256xf32> -> vector<10x256xf32>
    %133 = vector.extract_strided_slice %132 {offsets = [0, 0], sizes = [8, 256], strides = [1, 1]} : vector<10x256xf32> to vector<8x256xf32>
    %134 = vector.extract_strided_slice %132 {offsets = [1, 0], sizes = [8, 256], strides = [1, 1]} : vector<10x256xf32> to vector<8x256xf32>
    %135 = vector.extract_strided_slice %132 {offsets = [2, 0], sizes = [8, 256], strides = [1, 1]} : vector<10x256xf32> to vector<8x256xf32>
    %136 = tpu.concatenate %133, %134, %135 in 1 : vector<8x256xf32>, vector<8x256xf32>, vector<8x256xf32> -> vector<8x768xf32>
    %137 = arith.truncf %136 : vector<8x768xf32> to vector<8x768xbf16>
    %c0_32 = arith.constant 0 : index
    %c0_33 = arith.constant 0 : index
    %138 = vector.load %arg11[%c0_32, %c0_33] : memref<768x256xbf16, #tpu.memory_space<vmem>>, vector<768x256xbf16>
    %cst_34 = arith.constant dense<0.000000e+00> : vector<8x256xf32>
    %139 = tpu.matmul %137, %138, %cst_34 {dimension_numbers = #tpu.dot_dimension_numbers<[1], [0], [0], [1], [0, 0, 1, 1], [], []>} : vector<8x768xbf16>, vector<768x256xbf16>, vector<8x256xf32> -> vector<8x256xf32>
    %c0_35 = arith.constant 0 : index
    %c0_36 = arith.constant 0 : index
    %140 = vector.load %arg12[%c0_35, %c0_36] : memref<1x256xf32, #tpu.memory_space<vmem>>, vector<1x256xf32>
    %141 = vector.broadcast %140 : vector<1x256xf32> to vector<8x256xf32>
    %142 = arith.addf %139, %141 : vector<8x256xf32>
    %cst_37 = arith.constant 0.000000e+00 : f32
    %143 = vector.broadcast %cst_37 : f32 to vector<8x256xf32>
    %144 = arith.cmpf oge, %142, %143 : vector<8x256xf32>
    %c0_38 = arith.constant 0 : index
    %c0_39 = arith.constant 0 : index
    %145 = vector.load %arg13[%c0_38, %c0_39] : memref<1x256xf32, #tpu.memory_space<vmem>>, vector<1x256xf32>
    %146 = vector.broadcast %145 : vector<1x256xf32> to vector<8x256xf32>
    %147 = arith.mulf %146, %142 : vector<8x256xf32>
    %148 = arith.select %144, %142, %147 : vector<8x256xi1>, vector<8x256xf32>
    %c0_40 = arith.constant 0 : index
    %c0_41 = arith.constant 0 : index
    %c0_42 = arith.constant 0 : index
    %149 = vector.load %arg27[%c0_40, %c0_41, %c0_42] : memref<1x8x256xf32, #tpu.memory_space<vmem>>, vector<1x8x256xf32>
    %150 = vector.shape_cast %149 : vector<1x8x256xf32> to vector<8x256xf32>
    %151 = vector.shape_cast %148 : vector<8x256xf32> to vector<1x8x256xf32>
    tpu.vector_store %arg27[%c0_40, %c0_41, %c0_42], %151 {strides = array<i32>} : memref<1x8x256xf32, #tpu.memory_space<vmem>>, vector<1x8x256xf32>,
    %cst_43 = arith.constant 0.000000e+00 : f32
    %152 = vector.broadcast %cst_43 : f32 to vector<1x256xf32>
    %153 = tpu.concatenate %152, %148, %152 in 0 : vector<1x256xf32>, vector<8x256xf32>, vector<1x256xf32> -> vector<10x256xf32>
    %154 = vector.extract_strided_slice %153 {offsets = [0, 0], sizes = [1, 256], strides = [1, 1]} : vector<10x256xf32> to vector<1x256xf32>
    %155 = vector.extract_strided_slice %153 {offsets = [2, 0], sizes = [1, 256], strides = [1, 1]} : vector<10x256xf32> to vector<1x256xf32>
    %156 = vector.extract_strided_slice %153 {offsets = [4, 0], sizes = [1, 256], strides = [1, 1]} : vector<10x256xf32> to vector<1x256xf32>
    %157 = vector.extract_strided_slice %153 {offsets = [6, 0], sizes = [1, 256], strides = [1, 1]} : vector<10x256xf32> to vector<1x256xf32>
    %158 = tpu.concatenate %154, %155, %156, %157 in 0 : vector<1x256xf32>, vector<1x256xf32>, vector<1x256xf32>, vector<1x256xf32> -> vector<4x256xf32>
    %159 = vector.extract_strided_slice %153 {offsets = [1, 0], sizes = [1, 256], strides = [1, 1]} : vector<10x256xf32> to vector<1x256xf32>
    %160 = vector.extract_strided_slice %153 {offsets = [3, 0], sizes = [1, 256], strides = [1, 1]} : vector<10x256xf32> to vector<1x256xf32>
    %161 = vector.extract_strided_slice %153 {offsets = [5, 0], sizes = [1, 256], strides = [1, 1]} : vector<10x256xf32> to vector<1x256xf32>
    %162 = vector.extract_strided_slice %153 {offsets = [7, 0], sizes = [1, 256], strides = [1, 1]} : vector<10x256xf32> to vector<1x256xf32>
    %163 = tpu.concatenate %159, %160, %161, %162 in 0 : vector<1x256xf32>, vector<1x256xf32>, vector<1x256xf32>, vector<1x256xf32> -> vector<4x256xf32>
    %164 = vector.extract_strided_slice %153 {offsets = [2, 0], sizes = [1, 256], strides = [1, 1]} : vector<10x256xf32> to vector<1x256xf32>
    %165 = vector.extract_strided_slice %153 {offsets = [4, 0], sizes = [1, 256], strides = [1, 1]} : vector<10x256xf32> to vector<1x256xf32>
    %166 = vector.extract_strided_slice %153 {offsets = [6, 0], sizes = [1, 256], strides = [1, 1]} : vector<10x256xf32> to vector<1x256xf32>
    %167 = vector.extract_strided_slice %153 {offsets = [8, 0], sizes = [1, 256], strides = [1, 1]} : vector<10x256xf32> to vector<1x256xf32>
    %168 = tpu.concatenate %164, %165, %166, %167 in 0 : vector<1x256xf32>, vector<1x256xf32>, vector<1x256xf32>, vector<1x256xf32> -> vector<4x256xf32>
    %169 = tpu.concatenate %158, %163, %168 in 1 : vector<4x256xf32>, vector<4x256xf32>, vector<4x256xf32> -> vector<4x768xf32>
    %170 = arith.truncf %169 : vector<4x768xf32> to vector<4x768xbf16>
    %c0_44 = arith.constant 0 : index
    %c0_45 = arith.constant 0 : index
    %171 = vector.load %arg14[%c0_44, %c0_45] : memref<768x256xbf16, #tpu.memory_space<vmem>>, vector<768x256xbf16>
    %cst_46 = arith.constant dense<0.000000e+00> : vector<4x256xf32>
    %172 = tpu.matmul %170, %171, %cst_46 {dimension_numbers = #tpu.dot_dimension_numbers<[1], [0], [0], [1], [0, 0, 1, 1], [], []>} : vector<4x768xbf16>, vector<768x256xbf16>, vector<4x256xf32> -> vector<4x256xf32>
    %c0_47 = arith.constant 0 : index
    %c0_48 = arith.constant 0 : index
    %173 = vector.load %arg15[%c0_47, %c0_48] : memref<1x256xf32, #tpu.memory_space<vmem>>, vector<1x256xf32>
    %174 = vector.broadcast %173 : vector<1x256xf32> to vector<4x256xf32>
    %175 = arith.addf %172, %174 : vector<4x256xf32>
    %cst_49 = arith.constant 0.000000e+00 : f32
    %176 = vector.broadcast %cst_49 : f32 to vector<4x256xf32>
    %177 = arith.cmpf oge, %175, %176 : vector<4x256xf32>
    %c0_50 = arith.constant 0 : index
    %c0_51 = arith.constant 0 : index
    %178 = vector.load %arg16[%c0_50, %c0_51] : memref<1x256xf32, #tpu.memory_space<vmem>>, vector<1x256xf32>
    %179 = vector.broadcast %178 : vector<1x256xf32> to vector<4x256xf32>
    %180 = arith.mulf %179, %175 : vector<4x256xf32>
    %181 = arith.select %177, %175, %180 : vector<4x256xi1>, vector<4x256xf32>
    %cst_52 = arith.constant 0.000000e+00 : f32
    %182 = vector.broadcast %cst_52 : f32 to vector<1x256xf32>
    %183 = tpu.concatenate %182, %181, %182 in 0 : vector<1x256xf32>, vector<4x256xf32>, vector<1x256xf32> -> vector<6x256xf32>
    %184 = vector.extract_strided_slice %183 {offsets = [0, 0], sizes = [4, 256], strides = [1, 1]} : vector<6x256xf32> to vector<4x256xf32>
    %185 = vector.extract_strided_slice %183 {offsets = [1, 0], sizes = [4, 256], strides = [1, 1]} : vector<6x256xf32> to vector<4x256xf32>
    %186 = vector.extract_strided_slice %183 {offsets = [2, 0], sizes = [4, 256], strides = [1, 1]} : vector<6x256xf32> to vector<4x256xf32>
    %187 = tpu.concatenate %184, %185, %186 in 1 : vector<4x256xf32>, vector<4x256xf32>, vector<4x256xf32> -> vector<4x768xf32>
    %188 = arith.truncf %187 : vector<4x768xf32> to vector<4x768xbf16>
    %c0_53 = arith.constant 0 : index
    %c0_54 = arith.constant 0 : index
    %189 = vector.load %arg17[%c0_53, %c0_54] : memref<768x256xbf16, #tpu.memory_space<vmem>>, vector<768x256xbf16>
    %cst_55 = arith.constant dense<0.000000e+00> : vector<4x256xf32>
    %190 = tpu.matmul %188, %189, %cst_55 {dimension_numbers = #tpu.dot_dimension_numbers<[1], [0], [0], [1], [0, 0, 1, 1], [], []>} : vector<4x768xbf16>, vector<768x256xbf16>, vector<4x256xf32> -> vector<4x256xf32>
    %c0_56 = arith.constant 0 : index
    %c0_57 = arith.constant 0 : index
    %191 = vector.load %arg18[%c0_56, %c0_57] : memref<1x256xf32, #tpu.memory_space<vmem>>, vector<1x256xf32>
    %192 = vector.broadcast %191 : vector<1x256xf32> to vector<4x256xf32>
    %193 = arith.addf %190, %192 : vector<4x256xf32>
    %cst_58 = arith.constant 0.000000e+00 : f32
    %194 = vector.broadcast %cst_58 : f32 to vector<4x256xf32>
    %195 = arith.cmpf oge, %193, %194 : vector<4x256xf32>
    %c0_59 = arith.constant 0 : index
    %c0_60 = arith.constant 0 : index
    %196 = vector.load %arg19[%c0_59, %c0_60] : memref<1x256xf32, #tpu.memory_space<vmem>>, vector<1x256xf32>
    %197 = vector.broadcast %196 : vector<1x256xf32> to vector<4x256xf32>
    %198 = arith.mulf %197, %193 : vector<4x256xf32>
    %199 = arith.select %195, %193, %198 : vector<4x256xi1>, vector<4x256xf32>
    %c0_61 = arith.constant 0 : index
    %c0_62 = arith.constant 0 : index
    %c0_63 = arith.constant 0 : index
    %200 = vector.load %arg28[%c0_61, %c0_62, %c0_63] : memref<1x4x256xf32, #tpu.memory_space<vmem>>, vector<1x4x256xf32>
    %201 = vector.shape_cast %200 : vector<1x4x256xf32> to vector<4x256xf32>
    %202 = vector.shape_cast %199 : vector<4x256xf32> to vector<1x4x256xf32>
    tpu.vector_store %arg28[%c0_61, %c0_62, %c0_63], %202 {strides = array<i32>} : memref<1x4x256xf32, #tpu.memory_space<vmem>>, vector<1x4x256xf32>,
    %cst_64 = arith.constant 0.000000e+00 : f32
    %203 = vector.broadcast %cst_64 : f32 to vector<1x256xf32>
    %204 = tpu.concatenate %203, %199, %203 in 0 : vector<1x256xf32>, vector<4x256xf32>, vector<1x256xf32> -> vector<6x256xf32>
    %205 = vector.extract_strided_slice %204 {offsets = [0, 0], sizes = [1, 256], strides = [1, 1]} : vector<6x256xf32> to vector<1x256xf32>
    %206 = vector.extract_strided_slice %204 {offsets = [2, 0], sizes = [1, 256], strides = [1, 1]} : vector<6x256xf32> to vector<1x256xf32>
    %207 = tpu.concatenate %205, %206 in 0 : vector<1x256xf32>, vector<1x256xf32> -> vector<2x256xf32>
    %208 = vector.extract_strided_slice %204 {offsets = [1, 0], sizes = [1, 256], strides = [1, 1]} : vector<6x256xf32> to vector<1x256xf32>
    %209 = vector.extract_strided_slice %204 {offsets = [3, 0], sizes = [1, 256], strides = [1, 1]} : vector<6x256xf32> to vector<1x256xf32>
    %210 = tpu.concatenate %208, %209 in 0 : vector<1x256xf32>, vector<1x256xf32> -> vector<2x256xf32>
    %211 = vector.extract_strided_slice %204 {offsets = [2, 0], sizes = [1, 256], strides = [1, 1]} : vector<6x256xf32> to vector<1x256xf32>
    %212 = vector.extract_strided_slice %204 {offsets = [4, 0], sizes = [1, 256], strides = [1, 1]} : vector<6x256xf32> to vector<1x256xf32>
    %213 = tpu.concatenate %211, %212 in 0 : vector<1x256xf32>, vector<1x256xf32> -> vector<2x256xf32>
    %214 = tpu.concatenate %207, %210, %213 in 1 : vector<2x256xf32>, vector<2x256xf32>, vector<2x256xf32> -> vector<2x768xf32>
    %215 = arith.truncf %214 : vector<2x768xf32> to vector<2x768xbf16>
    %c0_65 = arith.constant 0 : index
    %c0_66 = arith.constant 0 : index
    %216 = vector.load %arg20[%c0_65, %c0_66] : memref<768x256xbf16, #tpu.memory_space<vmem>>, vector<768x256xbf16>
    %cst_67 = arith.constant dense<0.000000e+00> : vector<2x256xf32>
    %217 = tpu.matmul %215, %216, %cst_67 {dimension_numbers = #tpu.dot_dimension_numbers<[1], [0], [0], [1], [0, 0, 1, 1], [], []>} : vector<2x768xbf16>, vector<768x256xbf16>, vector<2x256xf32> -> vector<2x256xf32>
    %c0_68 = arith.constant 0 : index
    %c0_69 = arith.constant 0 : index
    %218 = vector.load %arg21[%c0_68, %c0_69] : memref<1x256xf32, #tpu.memory_space<vmem>>, vector<1x256xf32>
    %219 = vector.broadcast %218 : vector<1x256xf32> to vector<2x256xf32>
    %220 = arith.addf %217, %219 : vector<2x256xf32>
    %cst_70 = arith.constant 0.000000e+00 : f32
    %221 = vector.broadcast %cst_70 : f32 to vector<2x256xf32>
    %222 = arith.cmpf oge, %220, %221 : vector<2x256xf32>
    %c0_71 = arith.constant 0 : index
    %c0_72 = arith.constant 0 : index
    %223 = vector.load %arg22[%c0_71, %c0_72] : memref<1x256xf32, #tpu.memory_space<vmem>>, vector<1x256xf32>
    %224 = vector.broadcast %223 : vector<1x256xf32> to vector<2x256xf32>
    %225 = arith.mulf %224, %220 : vector<2x256xf32>
    %226 = arith.select %222, %220, %225 : vector<2x256xi1>, vector<2x256xf32>
    %cst_73 = arith.constant 0.000000e+00 : f32
    %227 = vector.broadcast %cst_73 : f32 to vector<1x256xf32>
    %228 = tpu.concatenate %227, %226, %227 in 0 : vector<1x256xf32>, vector<2x256xf32>, vector<1x256xf32> -> vector<4x256xf32>
    %229 = vector.extract_strided_slice %228 {offsets = [0, 0], sizes = [2, 256], strides = [1, 1]} : vector<4x256xf32> to vector<2x256xf32>
    %230 = vector.extract_strided_slice %228 {offsets = [1, 0], sizes = [2, 256], strides = [1, 1]} : vector<4x256xf32> to vector<2x256xf32>
    %231 = vector.extract_strided_slice %228 {offsets = [2, 0], sizes = [2, 256], strides = [1, 1]} : vector<4x256xf32> to vector<2x256xf32>
    %232 = tpu.concatenate %229, %230, %231 in 1 : vector<2x256xf32>, vector<2x256xf32>, vector<2x256xf32> -> vector<2x768xf32>
    %233 = arith.truncf %232 : vector<2x768xf32> to vector<2x768xbf16>
    %c0_74 = arith.constant 0 : index
    %c0_75 = arith.constant 0 : index
    %234 = vector.load %arg23[%c0_74, %c0_75] : memref<768x256xbf16, #tpu.memory_space<vmem>>, vector<768x256xbf16>
    %cst_76 = arith.constant dense<0.000000e+00> : vector<2x256xf32>
    %235 = tpu.matmul %233, %234, %cst_76 {dimension_numbers = #tpu.dot_dimension_numbers<[1], [0], [0], [1], [0, 0, 1, 1], [], []>} : vector<2x768xbf16>, vector<768x256xbf16>, vector<2x256xf32> -> vector<2x256xf32>
    %c0_77 = arith.constant 0 : index
    %c0_78 = arith.constant 0 : index
    %236 = vector.load %arg24[%c0_77, %c0_78] : memref<1x256xf32, #tpu.memory_space<vmem>>, vector<1x256xf32>
    %237 = vector.broadcast %236 : vector<1x256xf32> to vector<2x256xf32>
    %238 = arith.addf %235, %237 : vector<2x256xf32>
    %cst_79 = arith.constant 0.000000e+00 : f32
    %239 = vector.broadcast %cst_79 : f32 to vector<2x256xf32>
    %240 = arith.cmpf oge, %238, %239 : vector<2x256xf32>
    %c0_80 = arith.constant 0 : index
    %c0_81 = arith.constant 0 : index
    %241 = vector.load %arg25[%c0_80, %c0_81] : memref<1x256xf32, #tpu.memory_space<vmem>>, vector<1x256xf32>
    %242 = vector.broadcast %241 : vector<1x256xf32> to vector<2x256xf32>
    %243 = arith.mulf %242, %238 : vector<2x256xf32>
    %244 = arith.select %240, %238, %243 : vector<2x256xi1>, vector<2x256xf32>
    %c0_82 = arith.constant 0 : index
    %c0_83 = arith.constant 0 : index
    %c0_84 = arith.constant 0 : index
    %245 = vector.load %arg29[%c0_82, %c0_83, %c0_84] : memref<1x2x256xf32, #tpu.memory_space<vmem>>, vector<1x2x256xf32>
    %246 = vector.shape_cast %245 : vector<1x2x256xf32> to vector<2x256xf32>
    %247 = vector.shape_cast %244 : vector<2x256xf32> to vector<1x2x256xf32>
    tpu.vector_store %arg29[%c0_82, %c0_83, %c0_84], %247 {strides = array<i32>} : memref<1x2x256xf32, #tpu.memory_space<vmem>>, vector<1x2x256xf32>,
    return
  }
  func.func @transform_0(%arg0: i32) -> (i32, i32, i32) {
    %c0_i32 = arith.constant 0 : i32
    %c0_i32_0 = arith.constant 0 : i32
    %c0_i32_1 = arith.constant 0 : i32
    return %arg0, %c0_i32, %c0_i32_0 : i32, i32, i32
  }
  func.func @transform_1(%arg0: i32) -> (i32, i32) {
    %c0_i32 = arith.constant 0 : i32
    %c0_i32_0 = arith.constant 0 : i32
    %c0_i32_1 = arith.constant 0 : i32
    return %c0_i32, %c0_i32_0 : i32, i32
  }
  func.func @transform_2(%arg0: i32) -> (i32, i32) {
    %c0_i32 = arith.constant 0 : i32
    %c0_i32_0 = arith.constant 0 : i32
    %c0_i32_1 = arith.constant 0 : i32
    return %c0_i32, %c0_i32_0 : i32, i32
  }
  func.func @transform_3(%arg0: i32) -> (i32, i32) {
    %c0_i32 = arith.constant 0 : i32
    %c0_i32_0 = arith.constant 0 : i32
    %c0_i32_1 = arith.constant 0 : i32
    return %c0_i32, %c0_i32_0 : i32, i32
  }
  func.func @transform_4(%arg0: i32) -> (i32, i32) {
    %c0_i32 = arith.constant 0 : i32
    %c0_i32_0 = arith.constant 0 : i32
    %c0_i32_1 = arith.constant 0 : i32
    return %c0_i32, %c0_i32_0 : i32, i32
  }
  func.func @transform_5(%arg0: i32) -> (i32, i32) {
    %c0_i32 = arith.constant 0 : i32
    %c0_i32_0 = arith.constant 0 : i32
    %c0_i32_1 = arith.constant 0 : i32
    return %c0_i32, %c0_i32_0 : i32, i32
  }
  func.func @transform_6(%arg0: i32) -> (i32, i32) {
    %c0_i32 = arith.constant 0 : i32
    %c0_i32_0 = arith.constant 0 : i32
    %c0_i32_1 = arith.constant 0 : i32
    return %c0_i32, %c0_i32_0 : i32, i32
  }
  func.func @transform_7(%arg0: i32) -> (i32, i32) {
    %c0_i32 = arith.constant 0 : i32
    %c0_i32_0 = arith.constant 0 : i32
    %c0_i32_1 = arith.constant 0 : i32
    return %c0_i32, %c0_i32_0 : i32, i32
  }
  func.func @transform_8(%arg0: i32) -> (i32, i32) {
    %c0_i32 = arith.constant 0 : i32
    %c0_i32_0 = arith.constant 0 : i32
    %c0_i32_1 = arith.constant 0 : i32
    return %c0_i32, %c0_i32_0 : i32, i32
  }
  func.func @transform_9(%arg0: i32) -> (i32, i32) {
    %c0_i32 = arith.constant 0 : i32
    %c0_i32_0 = arith.constant 0 : i32
    %c0_i32_1 = arith.constant 0 : i32
    return %c0_i32, %c0_i32_0 : i32, i32
  }
  func.func @transform_10(%arg0: i32) -> (i32, i32) {
    %c0_i32 = arith.constant 0 : i32
    %c0_i32_0 = arith.constant 0 : i32
    %c0_i32_1 = arith.constant 0 : i32
    return %c0_i32, %c0_i32_0 : i32, i32
  }
  func.func @transform_11(%arg0: i32) -> (i32, i32) {
    %c0_i32 = arith.constant 0 : i32
    %c0_i32_0 = arith.constant 0 : i32
    %c0_i32_1 = arith.constant 0 : i32
    return %c0_i32, %c0_i32_0 : i32, i32
  }
  func.func @transform_12(%arg0: i32) -> (i32, i32) {
    %c0_i32 = arith.constant 0 : i32
    %c0_i32_0 = arith.constant 0 : i32
    %c0_i32_1 = arith.constant 0 : i32
    return %c0_i32, %c0_i32_0 : i32, i32
  }
  func.func @transform_13(%arg0: i32) -> (i32, i32) {
    %c0_i32 = arith.constant 0 : i32
    %c0_i32_0 = arith.constant 0 : i32
    %c0_i32_1 = arith.constant 0 : i32
    return %c0_i32, %c0_i32_0 : i32, i32
  }
  func.func @transform_14(%arg0: i32) -> (i32, i32) {
    %c0_i32 = arith.constant 0 : i32
    %c0_i32_0 = arith.constant 0 : i32
    %c0_i32_1 = arith.constant 0 : i32
    return %c0_i32, %c0_i32_0 : i32, i32
  }
  func.func @transform_15(%arg0: i32) -> (i32, i32) {
    %c0_i32 = arith.constant 0 : i32
    %c0_i32_0 = arith.constant 0 : i32
    %c0_i32_1 = arith.constant 0 : i32
    return %c0_i32, %c0_i32_0 : i32, i32
  }
  func.func @transform_16(%arg0: i32) -> (i32, i32) {
    %c0_i32 = arith.constant 0 : i32
    %c0_i32_0 = arith.constant 0 : i32
    %c0_i32_1 = arith.constant 0 : i32
    return %c0_i32, %c0_i32_0 : i32, i32
  }
  func.func @transform_17(%arg0: i32) -> (i32, i32) {
    %c0_i32 = arith.constant 0 : i32
    %c0_i32_0 = arith.constant 0 : i32
    %c0_i32_1 = arith.constant 0 : i32
    return %c0_i32, %c0_i32_0 : i32, i32
  }
  func.func @transform_18(%arg0: i32) -> (i32, i32) {
    %c0_i32 = arith.constant 0 : i32
    %c0_i32_0 = arith.constant 0 : i32
    %c0_i32_1 = arith.constant 0 : i32
    return %c0_i32, %c0_i32_0 : i32, i32
  }
  func.func @transform_19(%arg0: i32) -> (i32, i32) {
    %c0_i32 = arith.constant 0 : i32
    %c0_i32_0 = arith.constant 0 : i32
    %c0_i32_1 = arith.constant 0 : i32
    return %c0_i32, %c0_i32_0 : i32, i32
  }
  func.func @transform_20(%arg0: i32) -> (i32, i32) {
    %c0_i32 = arith.constant 0 : i32
    %c0_i32_0 = arith.constant 0 : i32
    %c0_i32_1 = arith.constant 0 : i32
    return %c0_i32, %c0_i32_0 : i32, i32
  }
  func.func @transform_21(%arg0: i32) -> (i32, i32) {
    %c0_i32 = arith.constant 0 : i32
    %c0_i32_0 = arith.constant 0 : i32
    %c0_i32_1 = arith.constant 0 : i32
    return %c0_i32, %c0_i32_0 : i32, i32
  }
  func.func @transform_22(%arg0: i32) -> (i32, i32) {
    %c0_i32 = arith.constant 0 : i32
    %c0_i32_0 = arith.constant 0 : i32
    %c0_i32_1 = arith.constant 0 : i32
    return %c0_i32, %c0_i32_0 : i32, i32
  }
  func.func @transform_23(%arg0: i32) -> (i32, i32) {
    %c0_i32 = arith.constant 0 : i32
    %c0_i32_0 = arith.constant 0 : i32
    %c0_i32_1 = arith.constant 0 : i32
    return %c0_i32, %c0_i32_0 : i32, i32
  }
  func.func @transform_24(%arg0: i32) -> (i32, i32) {
    %c0_i32 = arith.constant 0 : i32
    %c0_i32_0 = arith.constant 0 : i32
    %c0_i32_1 = arith.constant 0 : i32
    return %c0_i32, %c0_i32_0 : i32, i32
  }
  func.func @transform_25(%arg0: i32) -> (i32, i32, i32) {
    %c0_i32 = arith.constant 0 : i32
    %c0_i32_0 = arith.constant 0 : i32
    %c0_i32_1 = arith.constant 0 : i32
    return %arg0, %c0_i32, %c0_i32_0 : i32, i32, i32
  }
  func.func @transform_26(%arg0: i32) -> (i32, i32, i32) {
    %c0_i32 = arith.constant 0 : i32
    %c0_i32_0 = arith.constant 0 : i32
    %c0_i32_1 = arith.constant 0 : i32
    return %arg0, %c0_i32, %c0_i32_0 : i32, i32, i32
  }
  func.func @transform_27(%arg0: i32) -> (i32, i32, i32) {
    %c0_i32 = arith.constant 0 : i32
    %c0_i32_0 = arith.constant 0 : i32
    %c0_i32_1 = arith.constant 0 : i32
    return %arg0, %c0_i32, %c0_i32_0 : i32, i32, i32
  }
  func.func @transform_28(%arg0: i32) -> (i32, i32, i32) {
    %c0_i32 = arith.constant 0 : i32
    %c0_i32_0 = arith.constant 0 : i32
    %c0_i32_1 = arith.constant 0 : i32
    return %arg0, %c0_i32, %c0_i32_0 : i32, i32, i32
  }
}

</mosaic_0001>

<bundles_post_ra>
// kernel: _img_pyramid_forward.1
= control target key start
LH: loop header
LB: loop body
LE: loop exit
PB: predicated region body
PF: predicated region fallthrough
CT: control target
= control target key end

     0   :  { %s13281_s0 = inlined_call_operand.vmem [shape: f32[2,32,128], index: 0, kind: input, shape index: {}]   ;;  %s13282_s1 = inlined_call_operand.vmem [shape: bf16[384,256], index: 1, kind: input, shape index: {}]   ;;  %s13283_s2 = inlined_call_operand.vmem [shape: f32[1,256], index: 2, kind: input, shape index: {}]   ;;  %s13284_s3 = inlined_call_operand.vmem [shape: f32[1,256], index: 3, kind: input, shape index: {}]   ;;  %s13285_s4 = inlined_call_operand.vmem [shape: bf16[768,256], index: 4, kind: input, shape index: {}]   ;;  %s13286_s5 = inlined_call_operand.vmem [shape: f32[1,256], index: 5, kind: input, shape index: {}]   ;;  %s13287_s6 = inlined_call_operand.vmem [shape: f32[1,256], index: 6, kind: input, shape index: {}]   ;;  %s13288_s7 = inlined_call_operand.hbm [shape: bf16[768,256], index: 7, kind: input, shape index: {}]   ;;  %s13289_s8 = inlined_call_operand.vmem [shape: f32[1,256], index: 8, kind: input, shape index: {}]   ;;  %s13290_s9 = inlined_call_operand.vmem [shape: f32[1,256], index: 9, kind: input, shape index: {}]   ;;  %s13291_s10 = inlined_call_operand.hbm [shape: bf16[768,256], index: 10, kind: input, shape index: {}]   ;;  %s13292_s11 = inlined_call_operand.vmem [shape: f32[1,256], index: 11, kind: input, shape index: {}]   ;;  %s13293_s12 = inlined_call_operand.vmem [shape: f32[1,256], index: 12, kind: input, shape index: {}]   ;;  %s13294_s13 = inlined_call_operand.hbm [shape: bf16[768,256], index: 13, kind: input, shape index: {}]   ;;  %s13295_s14 = inlined_call_operand.vmem [shape: f32[1,256], index: 14, kind: input, shape index: {}]   ;;  %s13296_s15 = inlined_call_operand.vmem [shape: f32[1,256], index: 15, kind: input, shape index: {}]   ;;  %s13297_s16 = inlined_call_operand.hbm [shape: bf16[768,256], index: 16, kind: input, shape index: {}]   ;;  %s13298_s17 = inlined_call_operand.vmem [shape: f32[1,256], index: 17, kind: input, shape index: {}]   ;;  %s13299_s18 = inlined_call_operand.vmem [shape: f32[1,256], index: 18, kind: input, shape index: {}]   ;;  %s13300_s19 = inlined_call_operand.hbm [shape: bf16[768,256], index: 19, kind: input, shape index: {}]   ;;  %s13301_s20 = inlined_call_operand.vmem [shape: f32[1,256], index: 20, kind: input, shape index: {}]   ;;  %s13302_s21 = inlined_call_operand.vmem [shape: f32[1,256], index: 21, kind: input, shape index: {}]   ;;  %s13303_s22 = inlined_call_operand.hbm [shape: bf16[768,256], index: 22, kind: input, shape index: {}]   ;;  %s13304_s23 = inlined_call_operand.vmem [shape: f32[1,256], index: 23, kind: input, shape index: {}]   ;;  %s13305_s24 = inlined_call_operand.vmem [shape: f32[1,256], index: 24, kind: input, shape index: {}]   ;;  %s13306_s25 = inlined_call_operand.vmem [shape: f32[2,16,256], index: 25, kind: output, shape index: {0}]   ;;  %s13307_s26 = inlined_call_operand.vmem [shape: f32[2,8,256], index: 26, kind: output, shape index: {1}]   ;;  %s13308_s27 = inlined_call_operand.vmem [shape: f32[2,4,256], index: 27, kind: output, shape index: {2}]   ;;  %s13309_s28 = inlined_call_operand.vmem [shape: f32[2,2,256], index: 28, kind: output, shape index: {3}]  }
   0x1   :  { %13313 = sst [smem:[#allocation17_spill]] %s13281_s0 }
   0x2   :  { %13314 = sst [smem:[#allocation18_spill]] %s13282_s1 }
   0x3   :  { %13315 = sst [smem:[#allocation19_spill]] %s13283_s2 }
   0x4   :  { %13316 = sst [smem:[#allocation20_spill]] %s13284_s3 }
   0x5   :  { %13317 = sst [smem:[#allocation21_spill]] %s13285_s4 }
   0x6   :  { %13318 = sst [smem:[#allocation22_spill]] %s13286_s5 }
   0x7   :  { %13319 = sst [smem:[#allocation23_spill]] %s13287_s6 }
   0x8   :  { %13320 = sst [smem:[#allocation24_spill]] %s13288_s7 }
   0x9   :  { %13321 = sst [smem:[#allocation25_spill]] %s13289_s8 }
   0xa   :  { %13322 = sst [smem:[#allocation26_spill]] %s13290_s9 }
   0xb   :  { %13323 = sst [smem:[#allocation27_spill]] %s13291_s10 }
   0xc   :  { %13324 = sst [smem:[#allocation28_spill]] %s13292_s11 }
   0xd   :  { %13325 = sst [smem:[#allocation29_spill]] %s13293_s12 }
   0xe   :  { %13326 = sst [smem:[#allocation30_spill]] %s13297_s16 }
   0xf   :  { %13327 = sst [smem:[#allocation31_spill]] %s13305_s24 }
  0x10   :  { %13328 = sst [smem:[#allocation32_spill]] %s13309_s28 }
  0x11   :  { %34 = vsyncpa [#allocation3], 0 }
  0x12   :  { %35 = vsyncpa [#allocation5], 0 }
  0x13   :  { %36 = vsyncpa [#allocation8], 0 }
  0x14   :  { %37 = vsyncpa [#allocation11], 0  ;;  %s11459_s8 = smov 0  }
  0x15 LB: > { %13329 = sst [smem:[#allocation16_spill]] %s11303_s8  ;;  %s11465_s5 = sadd.s32 4294967295, %s11303_s8   ;;  %s11303_s8 = sphi %s11459_s8, %s43_s8  }
  0x16   : > { %p7337_p0 = scmp.ge.s32.totalorder %s11303_s8, 1  ;;  %p682_p1 = scmp.lt.s32.totalorder %s11303_s8, 3 }
  0x17   : > { %p11072_p2 = scmp.eq.s32.totalorder %s11465_s5, 0  ;;  %s13330_s3 = sld [smem:[#allocation27_spill]] }
  0x18   : > { %p11473_p3 = pnand %p7337_p0, %p682_p1  ;;  %s13332_s16 = sld [smem:[#allocation30_spill]] }
  0x19   : > { %s11305_s2 = smov [#allocation4]   ;;  %s11306_s1 = smov [#allocation7]  }
  0x1a   : > { %p11053_p4 = pneg %p11473_p3  ;;  %s733_s7 = sshll.u32 %s11305_s2, 4  ;;  %s734_s7 = int_to_ptr.vmem [resolvable:$true] %s733_s7 }
  0x1b   : > { %s773_s4 = sshll.u32 %s11306_s1, 4  ;;  %s11307_s11 = smov 128   ;;  %s774_s4 = int_to_ptr.vmem [resolvable:$true] %s773_s4 }
  0x1c   : > { %p11484_p5 = pnand %p11072_p2, %p11053_p4  ;;  %s11308_s2 = smov 8  }
  0x1d   : > { %s731_s6 = sshll.u32 %s13330_s3, 4  ;;  %s13334_s3 = sld [smem:[#allocation24_spill]]  ;;  %s732_s6 = int_to_ptr.hbm [resolvable:$true] %s731_s6 }
  0x1e   : > { %s771_s29 = sshll.u32 %s13332_s16, 4  ;;  %s11309_s16 = smov [#allocation2]   ;;  %s772_s29 = int_to_ptr.hbm [resolvable:$true] %s771_s29 }
  0x1f   : > { %11059 = dma.hbm_to_vmem [thread:$0]  (!%p11484_p5), %s732_s6, 12288, %s734_s7, [#allocation5], %s11307_s11, %s11307_s11, %s11308_s2  }
  0x20   : > { %11065 = dma.hbm_to_vmem [thread:$0]  (!%p11484_p5), %s772_s29, 12288, %s774_s4, [#allocation8], %s11307_s11, %s11307_s11, %s11308_s2  }
  0x21   : > { %s713_s8 = sshll.u32 %s11309_s16, 4  ;;  %s751_s1 = sshll.u32 %s13294_s13, 4  ;;  %s714_s8 = int_to_ptr.vmem [resolvable:$true] %s713_s8  ;;  %s752_s1 = int_to_ptr.hbm [resolvable:$true] %s751_s1 }
  0x22   : > { %s11310_s6 = smov [#allocation6]   ;;  %s11311_s16 = smov [#allocation9]  }
  0x23   : > { %s711_s0 = sshll.u32 %s13334_s3, 4  ;;  %s791_s3 = sshll.u32 %s13300_s19, 4  ;;  %s712_s0 = int_to_ptr.hbm [resolvable:$true] %s711_s0  ;;  %s792_s3 = int_to_ptr.hbm [resolvable:$true] %s791_s3 }
  0x24   : > { %11056 = dma.hbm_to_vmem [thread:$0]  (!%p11484_p5), %s712_s0, 12288, %s714_s8, [#allocation3], %s11307_s11, %s11307_s11, %s11308_s2  }
  0x25   : > { %s753_s7 = sshll.u32 %s11310_s6, 4  ;;  %s793_s29 = sshll.u32 %s11311_s16, 4  ;;  %s754_s7 = int_to_ptr.vmem [resolvable:$true] %s753_s7  ;;  %s794_s29 = int_to_ptr.vmem [resolvable:$true] %s793_s29 }
  0x26   : > { %11062 = dma.hbm_to_vmem [thread:$0]  (!%p11484_p5), %s752_s1, 12288, %s754_s7, [#allocation5], %s11307_s11, %s11307_s11, %s11308_s2  }
  0x27   : > { %s811_s28 = sshll.u32 %s13303_s22, 4  ;;  %s11312_s8 = smov [#allocation10]   ;;  %s812_s28 = int_to_ptr.hbm [resolvable:$true] %s811_s28 }
  0x28   : > { %11068 = dma.hbm_to_vmem [thread:$0]  (!%p11484_p5), %s792_s3, 12288, %s794_s29, [#allocation8], %s11307_s11, %s11307_s11, %s11308_s2  }
  0x29   : > { %s813_s0 = sshll.u32 %s11312_s8, 4  ;;  %843 = sbr.rel (%p11473_p3) target bundleno = 1542 (0x606), region = 120  ;;  %s814_s0 = int_to_ptr.vmem [resolvable:$true] %s813_s0 }
  0x2a   : > { %11071 = dma.hbm_to_vmem [thread:$0]  (!%p11484_p5), %s812_s28, 12288, %s814_s0, [#allocation11], %s11307_s11, %s11307_s11, %s11308_s2  }
  0x2e   : > { %11286 = dma.done.wait (%p11072_p2), [#allocation3], 12288  }
  0x2f   : > { %11288 = vsyncadd (%p11072_p2), [#allocation3], 4294955008 }
  0x30   : > { %11290 = dma.done.wait (%p11072_p2), [#allocation5], 24576  }
  0x31   : > { %11292 = vsyncadd (%p11072_p2), [#allocation5], 4294942720 }
  0x32   : > { %11294 = dma.done.wait (%p11072_p2), [#allocation8], 24576  }
  0x33   : > { %11296 = vsyncadd (%p11072_p2), [#allocation8], 4294942720 }
  0x34   : > { %11298 = dma.done.wait (%p11072_p2), [#allocation11], 12288  }
  0x35   : > { %11300 = vsyncadd (%p11072_p2), [#allocation11], 4294955008  ;;  %p958_p6 = scmp.lt.s32.totalorder %s11465_s5, 1  ;;  %s13335_s11 = sld [smem:[#allocation18_spill]]  ;;  %vm991_vm0 = vcmask 1040384   ;;  %vm1036_vm1 = vcmask 1041408  }
  0x36   : > { %s13336_s2 = sld [smem:[#allocation17_spill]]  ;;  %vm1038_vm2 = vcmask 1042432   ;;  %vm1040_vm3 = vcmask 1043456   ;;  %vm1042_vm4 = vcmask 1044480   ;;  %vm1044_vm5 = vcmask 1045504   ;;  %vm12435_vm9 = vmneg %vm991_vm0 }
  0x37   : > { %s13361_s5 = smov (!%p958_p6, %s11465_s5), 1  ;;  %vm1046_vm6 = vcmask 1046528   ;;  %s13337_s8 = sld [smem:[#allocation21_spill]]  ;;  %vm11313_vm10 = vmmov 1  }
  0x38   : > { %s10304_s7 = sshll.u32 %s13361_s5, 5  ;;  %s13339_s16 = sld [smem:[#allocation19_spill]]  ;;  %vm12462_vm11 = vmpackc.low %vm11313_vm10, %vm12435_vm9 }
  0x39   : > { %s13340_s9 = sld [smem:[#allocation20_spill]]  ;;  %s10306_s3 = sshll.u32 %s13361_s5, 4 }
  0x3a   : > { %s13347_s4 = sld [smem:[#allocation25_spill]]  ;;  %s10308_s12 = sshll.u32 %s13361_s5, 2 }
  0x3b   : > { %v7420_v0 = vld [vmem:[%s13335_s11 + $0x70] sm:$0xf]  ;;  %v10324_v1 = vld [vmem:[%s13335_s11 + $0x74] sm:$0xf0]  ;;  %v7412_v9 = vld [vmem:[%s13335_s11 + $0x60] sm:$0xf] }
  0x3c   : > { %v7484_v2 = vld [vmem:[%s13335_s11 + $0xf0] sm:$0xf]  ;;  %v7421_v3 = vor.u32 %v10324_v1, %v7420_v0  ;;  %v10340_v4 = vld [vmem:[%s13335_s11 + $0xf4] sm:$0xf0]  ;;  %v10322_v10 = vld [vmem:[%s13335_s11 + $0x64] sm:$0xf0]  ;;  %s962_s1 = scalar_lea.vmem %s13336_s2, %s10304_s7 }
  0x3d   : > { %v7548_v5 = vld [vmem:[%s13335_s11 + $0x170] sm:$0xf]  ;;  %v10356_v6 = vld [vmem:[%s13335_s11 + $0x174] sm:$0xf0]  ;;  %v7485_v7 = vor.u32 %v10340_v4, %v7484_v2  ;;  %v7476_v11 = vld [vmem:[%s13335_s11 + $0xe0] sm:$0xf]  ;;  %v7413_v12 = vor.u32 %v10322_v10, %v7412_v9  ;;  %s13338_s0 = smov %s13337_s8 }
  0x3e   : > { %v7549_v8 = vor.u32 %v10356_v6, %v7548_v5  ;;  %1387 = vmatpush.bf16.msra.mxu0 %v7421_v3  ;;  %v10338_v13 = vld [vmem:[%s13335_s11 + $0xe4] sm:$0xf0]  ;;  %v7540_v14 = vld [vmem:[%s13335_s11 + $0x160] sm:$0xf]  ;;  %v7404_v18 = vld [vmem:[%s13335_s11 + $0x50] sm:$0xf] }
  0x3f   : > { %v10354_v15 = vld [vmem:[%s13335_s11 + $0x164] sm:$0xf0]  ;;  %1401 = vmatpush.bf16.msra.mxu1 %v7485_v7  ;;  %v7477_v16 = vor.u32 %v10338_v13, %v7476_v11  ;;  %v10320_v19 = vld [vmem:[%s13335_s11 + $0x54] sm:$0xf0]  ;;  %v7468_v20 = vld [vmem:[%s13335_s11 + $0xd0] sm:$0xf] }
  0x40   : > { %1415 = vmatpush.bf16.msra.mxu2 %v7549_v8  ;;  %v7541_v17 = vor.u32 %v10354_v15, %v7540_v14  ;;  %v10336_v21 = vld [vmem:[%s13335_s11 + $0xd4] sm:$0xf0]  ;;  %v7532_v22 = vld [vmem:[%s13335_s11 + $0x150] sm:$0xf]  ;;  %v7405_v24 = vor.u32 %v10320_v19, %v7404_v18  ;;  %v7396_v25 = vld [vmem:[%s13335_s11 + $0x40] sm:$0xf] }
  0x41   : > { %v10352_v23 = vld [vmem:[%s13335_s11 + $0x154] sm:$0xf0]  ;;  %v10318_v26 = vld [vmem:[%s13335_s11 + $0x44] sm:$0xf0]  ;;  %v7469_v27 = vor.u32 %v10336_v21, %v7468_v20  ;;  %v7460_v29 = vld [vmem:[%s13335_s11 + $0xc0] sm:$0xf] }
  0x42   : > { %1388 = vmatpush.bf16.msra.mxu0 %v7413_v12  ;;  %v7533_v28 = vor.u32 %v10352_v23, %v7532_v22  ;;  %v10323_v30 = vld [vmem:[%s13335_s11 + $0x74] sm:$0xf]  ;;  %v7422_v31 = vld [vmem:[%s13335_s11 + $0x78] sm:$0xf0]  ;;  %v10334_v32 = vld [vmem:[%s13335_s11 + $0xc4] sm:$0xf0]  ;;  %v7397_v38 = vor.u32 %v10318_v26, %v7396_v25 }
  0x43   : > { %1402 = vmatpush.bf16.msra.mxu1 %v7477_v16  ;;  %v7524_v33 = vld [vmem:[%s13335_s11 + $0x140] sm:$0xf]  ;;  %v10350_v34 = vld [vmem:[%s13335_s11 + $0x144] sm:$0xf0]  ;;  %v7425_v35 = vor.u32 %v10323_v30, %v7422_v31  ;;  %v7388_v36 = vld [vmem:[%s13335_s11 + $0x30] sm:$0xf]  ;;  %v7461_v42 = vor.u32 %v10334_v32, %v7460_v29 }
  0x44   : > { %1416 = vmatpush.bf16.msra.mxu2 %v7541_v17  ;;  %v10321_v37 = vld [vmem:[%s13335_s11 + $0x64] sm:$0xf]  ;;  %v10316_v39 = vld [vmem:[%s13335_s11 + $0x34] sm:$0xf0]  ;;  %v7452_v40 = vld [vmem:[%s13335_s11 + $0xb0] sm:$0xf]  ;;  %v7525_v43 = vor.u32 %v10350_v34, %v7524_v33 }
  0x45   : > { %1429 = vmatpush.bf16.msra.mxu3 %v7425_v35  ;;  %v7414_v41 = vld [vmem:[%s13335_s11 + $0x68] sm:$0xf0]  ;;  %v10332_v44 = vld [vmem:[%s13335_s11 + $0xb4] sm:$0xf0]  ;;  %v7516_v45 = vld [vmem:[%s13335_s11 + $0x130] sm:$0xf]  ;;  %v7389_v56 = vor.u32 %v10316_v39, %v7388_v36 }
  0x46   : > { %1389 = vmatpush.bf16.msra.mxu0 %v7405_v24  ;;  %v10348_v46 = vld [vmem:[%s13335_s11 + $0x134] sm:$0xf0]  ;;  %v7417_v47 = vor.u32 %v10321_v37, %v7414_v41  ;;  %v11642_v48 = vld [vmem:[%s13335_s11 + $0x20] sm:$0xf]  ;;  %v11647_v49 = vld [vmem:[%s13335_s11 + $0x24] sm:$0xf0]  ;;  %v7453_v0 = vor.u32 %v10332_v44, %v7452_v40 }
  0x47   : > { %1403 = vmatpush.bf16.msra.mxu1 %v7469_v27  ;;  %v10319_v50 = vld [vmem:[%s13335_s11 + $0x54] sm:$0xf]  ;;  %v7406_v51 = vld [vmem:[%s13335_s11 + $0x58] sm:$0xf0]  ;;  %v11658_v52 = vld [vmem:[%s13335_s11 + $0xa0] sm:$0xf]  ;;  %v7517_v1 = vor.u32 %v10348_v46, %v7516_v45  ;;  %v7381_v8 = vor.u32 %v11647_v49, %v11642_v48 }
  0x48   : > { %1417 = vmatpush.bf16.msra.mxu2 %v7533_v28  ;;  %v11663_v53 = vld [vmem:[%s13335_s11 + $0xa4] sm:$0xf0]  ;;  %v11668_v54 = vld [vmem:[%s13335_s11 + $0x120] sm:$0xf]  ;;  %v7409_v57 = vor.u32 %v10319_v50, %v7406_v51  ;;  %v11678_v58 = vld [vmem:[%s13335_s11 + $0x10] sm:$0xf] }
  0x49   : > { %v11673_v55 = vld [vmem:[%s13335_s11 + $0x124] sm:$0xf0]  ;;  %1430 = vmatpush.bf16.msra.mxu3 %v7417_v47  ;;  %v11683_v59 = vld [vmem:[%s13335_s11 + $0x14] sm:$0xf0]  ;;  %v11688_v60 = vld [vmem:[%s13335_s11 + $0x90] sm:$0xf]  ;;  %v7445_v12 = vor.u32 %v11663_v53, %v11658_v52 }
  0x4a   : > { %1390 = vmatpush.bf16.msra.mxu0 %v7397_v38  ;;  %v11693_v61 = vld [vmem:[%s13335_s11 + $0x94] sm:$0xf0]  ;;  %v11698_v62 = vld [vmem:[%s13335_s11 + $0x110] sm:$0xf]  ;;  %v10317_v2 = vld [vmem:[%s13335_s11 + $0x44] sm:$0xf]  ;;  %v7509_v13 = vor.u32 %v11673_v55, %v11668_v54  ;;  %v7373_v18 = vor.u32 %v11683_v59, %v11678_v58 }
  0x4b   : > { %v11703_v63 = vld [vmem:[%s13335_s11 + $0x114] sm:$0xf0]  ;;  %1404 = vmatpush.bf16.msra.mxu1 %v7461_v42  ;;  %v7398_v3 = vld [vmem:[%s13335_s11 + $0x48] sm:$0xf0]  ;;  %v11714_v4 = vld [vmem:[%s13335_s11] sm:$0xf]  ;;  %v7437_v19 = vor.u32 %v11693_v61, %v11688_v60 }
  0x4c   : > { %1418 = vmatpush.bf16.msra.mxu2 %v7525_v43  ;;  %v11719_v5 = vld [vmem:[%s13335_s11 + $0x4] sm:$0xf0]  ;;  %v11724_v6 = vld [vmem:[%s13335_s11 + $0x80] sm:$0xf]  ;;  %v10315_v11 = vld [vmem:[%s13335_s11 + $0x34] sm:$0xf]  ;;  %v7401_v14 = vor.u32 %v10317_v2, %v7398_v3  ;;  %v7501_v20 = vor.u32 %v11703_v63, %v11698_v62 }
  0x4d   : > { %v11729_v7 = vld [vmem:[%s13335_s11 + $0x84] sm:$0xf0]  ;;  %v11741_v9 = vld [vmem:[%s13335_s11 + $0x100] sm:$0xf]  ;;  %1431 = vmatpush.bf16.msra.mxu3 %v7409_v57  ;;  %v7390_v15 = vld [vmem:[%s13335_s11 + $0x38] sm:$0xf0]  ;;  %v7365_v24 = vor.u32 %v11719_v5, %v11714_v4 }
  0x4e   : > { %v11746_v10 = vld [vmem:[%s13335_s11 + $0x104] sm:$0xf0]  ;;  %1391 = vmatpush.bf16.msra.mxu0 %v7389_v56  ;;  %v11761_v16 = vld [vmem:[%s13335_s11 + $0xf4] sm:$0xf]  ;;  %v11766_v17 = vld [vmem:[%s13335_s11 + $0xf8] sm:$0xf0]  ;;  %v7429_v25 = vor.u32 %v11729_v7, %v11724_v6  ;;  %v7393_v31 = vor.u32 %v10315_v11, %v7390_v15 }
  0x4f   : > { %1405 = vmatpush.bf16.msra.mxu1 %v7453_v0  ;;  %v11777_v21 = vld [vmem:[%s13335_s11 + $0x174] sm:$0xf]  ;;  %v11782_v22 = vld [vmem:[%s13335_s11 + $0x178] sm:$0xf0]  ;;  %v983_v23 = vld [vmem:[%s962_s1] sm:$0xff]  ;;  %v7493_v26 = vor.u32 %v11746_v10, %v11741_v9  ;;  %v7489_v35 = vor.u32 %v11761_v16, %v11766_v17  ;;  %s13345_s2 = sld [smem:[#allocation22_spill]] }
  0x50   : > { %1419 = vmatpush.bf16.msra.mxu2 %v7517_v1  ;;  %v984_v27 = vld [vmem:[%s962_s1 + $0x8] sm:$0xff]  ;;  %v985_v28 = vld [vmem:[%s962_s1 + $0x10] sm:$0xff]  ;;  %v986_v29 = vld [vmem:[%s962_s1 + $0x18] sm:$0xff]  ;;  %v992_v30 = vrot.slane %v983_v23, 7  ;;  %v7553_v36 = vor.u32 %v11777_v21, %v11782_v22  ;;  %s13346_s1 = sld [smem:[#allocation23_spill]] }
  0x51   : > { %v993_v32 = vrot.slane %v984_v27, 7  ;;  %v995_v33 = vrot.slane %v985_v28, 7  ;;  %v997_v34 = vrot.slane %v986_v29, 7  ;;  %1432 = vmatpush.bf16.msra.mxu3 %v7401_v14  ;;  %v10337_v14 = vld [vmem:[%s13335_s11 + $0xe4] sm:$0xf]  ;;  %s13357_s10 = sld [smem:[#allocation31_spill]] }
  0x52   : > { %1392 = vmatpush.bf16.msra.mxu0 %v7381_v8  ;;  %v11795_v37 = vsel %vm991_vm0, 0.0, %v992_v30  ;;  %v7542_v21 = vld [vmem:[%s13335_s11 + $0x168] sm:$0xf0]  ;;  %s13358_s30 = sld [smem:[#allocation32_spill]] }
  0x53   : > { %1406 = vmatpush.bf16.msra.mxu1 %v7445_v12  ;;  %v11798_v38 = vsel %vm991_vm0, %v992_v30, %v993_v32  ;;  %v11801_v39 = vsel %vm991_vm0, %v993_v32, %v995_v33  ;;  %v11804_v40 = vsel %vm991_vm0, %v995_v33, %v997_v34  ;;  %v1005_v41 = vsel %vm991_vm0, %v997_v34, 0.0  ;;  %v10313_v12 = vld [vmem:[%s13335_s11 + $0x24] sm:$0xf]  ;;  %v10311_v30 = vld [vmem:[%s13335_s11 + $0x14] sm:$0xf] }
  0x54   : > { %1420 = vmatpush.bf16.msra.mxu2 %v7509_v13  ;;  %v11808_v42 = vrot.slane %v11795_v37, 2  ;;  %v11811_v43 = vrot.slane %v11795_v37, 3  ;;  %v11814_v44 = vrot.slane %v11798_v38, 5  ;;  %v11817_v45 = vrot.slane %v11798_v38, 6  ;;  %v7382_v13 = vld [vmem:[%s13335_s11 + $0x28] sm:$0xf0] }
  0x55   : > { %v11820_v46 = vrot.slane %v11798_v38, 7  ;;  %v1021_v47 = vrot.slane %v11801_v39, 1  ;;  %v1023_v48 = vrot.slane %v11801_v39, 2  ;;  %v11825_v49 = vrot.slane %v11801_v39, 3  ;;  %1433 = vmatpush.bf16.msra.mxu3 %v7393_v31  ;;  %v7374_v31 = vld [vmem:[%s13335_s11 + $0x18] sm:$0xf0] }
  0x56   : > { %1393 = vmatpush.bf16.msra.mxu0 %v7373_v18  ;;  %v11828_v50 = vrot.slane %v11804_v40, 5  ;;  %v11831_v51 = vrot.slane %v11804_v40, 6  ;;  %v11834_v52 = vrot.slane %v11804_v40, 7  ;;  %v1055_v53 = vrot.slane %v11795_v37, 4  ;;  %v10335_v32 = vld [vmem:[%s13335_s11 + $0xd4] sm:$0xf] }
  0x57   : > { %1407 = vmatpush.bf16.msra.mxu1 %v7437_v19  ;;  %v1048_v54 = vsel %vm991_vm0, %v11801_v39, %v1021_v47  ;;  %v1057_v55 = vrot.slane %v11801_v39, 4  ;;  %v1066_v56 = vsel %vm991_vm0, %v1021_v47, %v1023_v48  ;;  %v1074_v57 = vrot.slane %v1005_v41, 1  ;;  %v7478_v19 = vld [vmem:[%s13335_s11 + $0xe8] sm:$0xf0]  ;;  %v7470_v41 = vld [vmem:[%s13335_s11 + $0xd8] sm:$0xf0] }
  0x58   : > { %1421 = vmatpush.bf16.msra.mxu2 %v7501_v20  ;;  %v1076_v58 = vsel %vm991_vm0, %v11808_v42, %v11811_v43  ;;  %v1083_v59 = vsel %vm991_vm0, %v1023_v48, %v11825_v49  ;;  %v1007_v60 = vrot.slane %v11795_v37, 1  ;;  %v1013_v61 = vrot.slane %v11798_v38, 4  ;;  %v10353_v20 = vld [vmem:[%s13335_s11 + $0x164] sm:$0xf] }
  0x59   : > { %v1077_v62 = vsel %vm1036_vm1, %v1076_v58, %v1055_v53  ;;  %v1084_v63 = vsel %vm1036_vm1, %v1083_v59, %v1057_v55  ;;  %v1027_v0 = vrot.slane %v11804_v40, 4  ;;  %v1049_v1 = vsel %vm1036_vm1, %v1048_v54, %v1023_v48  ;;  %v7534_v48 = vld [vmem:[%s13335_s11 + $0x158] sm:$0xf0] }
  0x5a   : > { %1394 = vmatpush.bf16.msra.mxu0 %v7365_v24  ;;  %v1078_v2 = vsel %vm1038_vm2, %v1077_v62, %v11814_v44  ;;  %v1085_v3 = vsel %vm1038_vm2, %v1084_v63, %v11828_v50  ;;  %v1035_v4 = vsel %vm991_vm0, %v11795_v37, %v1007_v60  ;;  %v1050_v5 = vsel %vm1038_vm2, %v1049_v1, %v11825_v49  ;;  %v10309_v63 = vld [vmem:[%s13335_s11 + $0x4] sm:$0xf] }
  0x5b   : > { %1408 = vmatpush.bf16.msra.mxu1 %v7429_v25  ;;  %v1079_v6 = vsel %vm1040_vm3, %v1078_v2, %v11817_v45  ;;  %v1086_v7 = vsel %vm1040_vm3, %v1085_v3, %v11831_v51  ;;  %v1037_v8 = vsel %vm1036_vm1, %v1035_v4, %v11808_v42  ;;  %v1051_v18 = vsel %vm1040_vm3, %v1050_v5, %v1027_v0  ;;  %v7612_v5 = vld [vmem:[%s13337_s8 + $0x70] sm:$0xf]  ;;  %s13348_s8 = sld [smem:[#allocation26_spill]] }
  0x5c   : > { %1422 = vmatpush.bf16.msra.mxu2 %v7493_v26  ;;  %v1080_v9 = vsel %vm1042_vm4, %v1079_v6, %v11820_v46  ;;  %v1087_v10 = vsel %vm1042_vm4, %v1086_v7, %v11834_v52  ;;  %v1039_v11 = vsel %vm1038_vm2, %v1037_v8, %v11811_v43  ;;  %v1052_v25 = vsel %vm1042_vm4, %v1051_v18, %v11828_v50  ;;  %v10347_v7 = vld [vmem:[%s13335_s11 + $0x134] sm:$0xf]  ;;  %v7510_v18 = vld [vmem:[%s13335_s11 + $0x128] sm:$0xf0] }
  0x5d   : > { %v1081_v15 = vsel %vm1044_vm5, %v1080_v9, %v11798_v38  ;;  %v1088_v16 = vsel %vm1044_vm5, %v1087_v10, %v11804_v40  ;;  %v1041_v17 = vsel %vm1040_vm3, %v1039_v11, %v1013_v61  ;;  %v1053_v28 = vsel %vm1044_vm5, %v1052_v25, %v11831_v51  ;;  %v7518_v9 = vld [vmem:[%s13335_s11 + $0x138] sm:$0xf0]  ;;  %v10370_v10 = vld [vmem:[%s13338_s0 + $0x64] sm:$0xf0]  ;;  %v10343_v25 = vld [vmem:[%s13335_s11 + $0x114] sm:$0xf] }
  0x5e   : > { %1443 = vmatpush.bf16.msrb.mxu0 %v7489_v35  ;;  %v1082_v22 = vsel %vm1046_vm6, %v1081_v15, %v1021_v47  ;;  %v1089_v23 = vsel %vm1046_vm6, %v1088_v16, %v1074_v57  ;;  %v1043_v24 = vsel %vm1042_vm4, %v1041_v17, %v11814_v44  ;;  %v7385_v29 = vor.u32 %v10313_v12, %v7382_v13  ;;  %v10351_v47 = vld [vmem:[%s13335_s11 + $0x154] sm:$0xf]  ;;  %v7446_v15 = vld [vmem:[%s13335_s11 + $0xa8] sm:$0xf0]  ;;  %v10345_v16 = vld [vmem:[%s13335_s11 + $0x124] sm:$0xf] }
  0x5f   : > { %1457 = vmatpush.bf16.msrb.mxu1 %v7553_v36  ;;  %v11906_v26 = vpack.c.bf16 %v1089_v23, %v1082_v22  ;;  %v1045_v27 = vsel %vm1044_vm5, %v1043_v24, %v11817_v45  ;;  %v1054_v34 = vsel %vm1046_vm6, %v1053_v28, %v11834_v52  ;;  %v7481_v35 = vor.u32 %v10337_v14, %v7478_v19  ;;  %v10329_v14 = vld [vmem:[%s13335_s11 + $0xa4] sm:$0xf]  ;;  %v7596_v19 = vld [vmem:[%s13338_s0 + $0x50] sm:$0xf]  ;;  %v10327_v22 = vld [vmem:[%s13335_s11 + $0x94] sm:$0xf] }
  0x60   : > { %v1047_v33 = vsel %vm1046_vm6, %v1045_v27, %v11820_v46  ;;  %v7545_v36 = vor.u32 %v10353_v20, %v7542_v21  ;;  %1434 = vmatpush.bf16.msra.mxu3 %v7385_v29  ;;  %v1059_v57 = vsel %vm991_vm0, %v1007_v60, %v11808_v42  ;;  %v1067_v58 = vsel %vm1036_vm1, %v1066_v56, %v11825_v49  ;;  %v7366_v42 = vld [vmem:[%s13335_s11 + $0x8] sm:$0xf0]  ;;  %v10368_v20 = vld [vmem:[%s13338_s0 + $0x54] sm:$0xf0]  ;;  %v7438_v23 = vld [vmem:[%s13335_s11 + $0x98] sm:$0xf0] }
  0x61   : > { %1423 = vmatmul.bf16.vlgmr.msra.gmra.mxu2 %v11906_v26  ;;  %v1090_v54 = vpack.c.bf16 %v1054_v34, %v1047_v33  ;;  %v1060_v59 = vsel %vm1036_vm1, %v1059_v57, %v11811_v43  ;;  %v1068_v61 = vsel %vm1038_vm2, %v1067_v58, %v1057_v55  ;;  %v7377_v62 = vor.u32 %v10311_v30, %v7374_v31  ;;  %v10333_v55 = vld [vmem:[%s13335_s11 + $0xc4] sm:$0xf]  ;;  %v7462_v60 = vld [vmem:[%s13335_s11 + $0xc8] sm:$0xf0]  ;;  %v7502_v27 = vld [vmem:[%s13335_s11 + $0x118] sm:$0xf0] }
  0x62   : > { %1444 = vmatpush.bf16.msrb.mxu0 %v7481_v35  ;;  %v1061_v49 = vsel %vm1038_vm2, %v1060_v59, %v1055_v53  ;;  %v1069_v43 = vsel %vm1040_vm3, %v1068_v61, %v11828_v50  ;;  %v7473_v39 = vor.u32 %v10335_v32, %v7470_v41  ;;  %v7537_v56 = vor.u32 %v10351_v47, %v7534_v48  ;;  %v10349_v50 = vld [vmem:[%s13335_s11 + $0x144] sm:$0xf]  ;;  %v7526_v53 = vld [vmem:[%s13335_s11 + $0x148] sm:$0xf0]  ;;  %v7676_v29 = vld [vmem:[%s13338_s0 + $0xf0] sm:$0xf] }
  0x63   : > { %1458 = vmatpush.bf16.msrb.mxu1 %v7545_v36  ;;  %1395 = vmatmul.bf16.vlgmr.msra.gmra.mxu0 %v1090_v54  ;;  %v1062_v0 = vsel %vm1040_vm3, %v1061_v49, %v11814_v44  ;;  %v1070_v37 = vsel %vm1042_vm4, %v1069_v43, %v11831_v51  ;;  %v7369_v3 = vor.u32 %v10309_v63, %v7366_v42  ;;  %v7588_v30 = vld [vmem:[%s13338_s0 + $0x40] sm:$0xf]  ;;  %v10366_v31 = vld [vmem:[%s13338_s0 + $0x44] sm:$0xf0]  ;;  %v10388_v32 = vld [vmem:[%s13338_s0 + $0xf4] sm:$0xf0] }
  0x64   : > { %v1063_v1 = vsel %vm1042_vm4, %v1062_v0, %v11817_v45  ;;  %v1071_v2 = vsel %vm1044_vm5, %v1070_v37, %v11834_v52  ;;  %1435 = vmatpush.bf16.msra.mxu3 %v7377_v62  ;;  %v7465_v4 = vor.u32 %v10333_v55, %v7462_v60  ;;  %v10372_v45 = vld [vmem:[%s13338_s0 + $0x74] sm:$0xf0]  ;;  %v7529_v6 = vor.u32 %v10349_v50, %v7526_v53  ;;  %v10325_v35 = vld [vmem:[%s13335_s11 + $0x84] sm:$0xf]  ;;  %v7430_v36 = vld [vmem:[%s13335_s11 + $0x88] sm:$0xf0] }
  0x65   : > { %v1064_v44 = vsel %vm1044_vm5, %v1063_v1, %v11820_v46  ;;  %v1072_v51 = vsel %vm1046_vm6, %v1071_v2, %v11804_v40  ;;  %v10331_v46 = vld [vmem:[%s13335_s11 + $0xb4] sm:$0xf]  ;;  %v7454_v40 = vld [vmem:[%s13335_s11 + $0xb8] sm:$0xf0]  ;;  %v7613_v11 = vor.u32 %v10372_v45, %v7612_v5  ;;  %v7521_v13 = vor.u32 %v10347_v7, %v7518_v9  ;;  %v10341_v41 = vld [vmem:[%s13335_s11 + $0x104] sm:$0xf] }
  0x66   : > { %1445 = vmatpush.bf16.msrb.mxu0 %v7473_v39  ;;  %v1065_v52 = vsel %vm1046_vm6, %v1064_v44, %v11798_v38  ;;  %v7604_v38 = vld [vmem:[%s13338_s0 + $0x60] sm:$0xf]  ;;  %v7457_v12 = vor.u32 %v10331_v46, %v7454_v40  ;;  %v7449_v21 = vor.u32 %v10329_v14, %v7446_v15  ;;  %v7513_v24 = vor.u32 %v10345_v16, %v7510_v18  ;;  %v7494_v48 = vld [vmem:[%s13335_s11 + $0x108] sm:$0xf0]  ;;  %v10404_v57 = vld [vmem:[%s13338_s0 + $0x174] sm:$0xf0] }
  0x67   : > { %1459 = vmatpush.bf16.msrb.mxu1 %v7537_v56  ;;  %v11996_v8 = vpack.c.bf16 %v1072_v51, %v1065_v52  ;;  %2129 = vmatpush.bf16.msrb.mxu2 %v7613_v11  ;;  %v7605_v17 = vor.u32 %v10370_v10, %v7604_v38  ;;  %v7597_v28 = vor.u32 %v10368_v20, %v7596_v19  ;;  %v7580_v59 = vld [vmem:[%s13338_s0 + $0x30] sm:$0xf]  ;;  %v7668_v61 = vld [vmem:[%s13338_s0 + $0xe0] sm:$0xf]  ;;  %v10386_v62 = vld [vmem:[%s13338_s0 + $0xe4] sm:$0xf0] }
  0x68   : > { %1436 = vmatpush.bf16.msra.mxu3 %v7369_v3  ;;  %v7677_v33 = vor.u32 %v10388_v32, %v7676_v29  ;;  %v7441_v34 = vor.u32 %v10327_v22, %v7438_v23  ;;  %v7505_v47 = vor.u32 %v10343_v25, %v7502_v27  ;;  %v7589_v58 = vor.u32 %v10366_v31, %v7588_v30  ;;  %v10364_v63 = vld [vmem:[%s13338_s0 + $0x34] sm:$0xf0]  ;;  %v7804_v42 = vld [vmem:[%s13338_s0 + $0x1f0] sm:$0xf]  ;;  %v7732_v60 = vld [vmem:[%s13338_s0 + $0x160] sm:$0xf] }
  0x69   : > { %1409 = vmatmul.bf16.vlgmr.msra.gmra.mxu1 %v11996_v8  ;;  %v10420_v49 = vld [vmem:[%s13338_s0 + $0x1f4] sm:$0xf0]  ;;  %v7669_v43 = vor.u32 %v10386_v62, %v7668_v61  ;;  %v7433_v39 = vor.u32 %v10325_v35, %v7430_v36  ;;  %v7497_v56 = vor.u32 %v10341_v41, %v7494_v48  ;;  %v10402_v0 = vld [vmem:[%s13338_s0 + $0x164] sm:$0xf0]  ;;  %v7581_v37 = vor.u32 %v10364_v63, %v7580_v59  ;;  %v7572_v50 = vld [vmem:[%s13338_s0 + $0x20] sm:$0xf] }
  0x6a   : > { %1446 = vmatpush.bf16.msrb.mxu0 %v7465_v4  ;;  %v7805_v53 = vor.u32 %v10420_v49, %v7804_v42  ;;  %v7660_v1 = vld [vmem:[%s13338_s0 + $0xd0] sm:$0xf]  ;;  %v10384_v2 = vld [vmem:[%s13338_s0 + $0xd4] sm:$0xf0]  ;;  %v10362_v3 = vld [vmem:[%s13338_s0 + $0x24] sm:$0xf0]  ;;  %v7733_v5 = vor.u32 %v10402_v0, %v7732_v60 }
  0x6b   : > { %1460 = vmatpush.bf16.msrb.mxu1 %v7529_v6  ;;  %1437 = vmatmul.bf16.vlgmr.msra.gmra.mxu3 %v1090_v54  ;;  %v7740_v54 = vld [vmem:[%s13338_s0 + $0x170] sm:$0xf]  ;;  %v7796_v44 = vld [vmem:[%s13338_s0 + $0x1e0] sm:$0xf]  ;;  %v10418_v51 = vld [vmem:[%s13338_s0 + $0x1e4] sm:$0xf0]  ;;  %v7661_v4 = vor.u32 %v10384_v2, %v7660_v1  ;;  %v7573_v6 = vor.u32 %v10362_v3, %v7572_v50 }
  0x6c   : > { %2130 = vmatpush.bf16.msrb.mxu2 %v7605_v17  ;;  %2143 = vmatpush.bf16.msrb.mxu3 %v7677_v33  ;;  %v7741_v55 = vor.u32 %v10404_v57, %v7740_v54  ;;  %v7724_v45 = vld [vmem:[%s13338_s0 + $0x150] sm:$0xf]  ;;  %v10400_v52 = vld [vmem:[%s13338_s0 + $0x154] sm:$0xf0]  ;;  %v7797_v46 = vor.u32 %v10418_v51, %v7796_v44  ;;  %v7716_v38 = vld [vmem:[%s13338_s0 + $0x140] sm:$0xf] }
  0x6d   : > { %v7564_v40 = vld [vmem:[%s13338_s0 + $0x10] sm:$0xf]  ;;  %v10360_v7 = vld [vmem:[%s13338_s0 + $0x14] sm:$0xf0]  ;;  %v7725_v9 = vor.u32 %v10400_v52, %v7724_v45  ;;  %v7556_v11 = vld [vmem:[%s13338_s0] sm:$0xf] }
  0x6e   : > { %1447 = vmatpush.bf16.msrb.mxu0 %v7457_v12  ;;  %v7565_v10 = vor.u32 %v10360_v7, %v7564_v40  ;;  %v7868_v12 = vld [vmem:[%s13338_s0 + $0x270] sm:$0xf]  ;;  %v10396_v16 = vld [vmem:[%s13338_s0 + $0x134] sm:$0xf0]  ;;  %v7860_v19 = vld [vmem:[%s13338_s0 + $0x260] sm:$0xf] }
  0x6f   : > { %1461 = vmatpush.bf16.msrb.mxu1 %v7521_v13  ;;  %v10436_v13 = vld [vmem:[%s13338_s0 + $0x274] sm:$0xf0]  ;;  %v7708_v15 = vld [vmem:[%s13338_s0 + $0x130] sm:$0xf]  ;;  %v10434_v20 = vld [vmem:[%s13338_s0 + $0x264] sm:$0xf0] }
  0x70   : > { %2131 = vmatpush.bf16.msrb.mxu2 %v7597_v28  ;;  %2144 = vmatpush.bf16.msrb.mxu3 %v7669_v43  ;;  %v7869_v18 = vor.u32 %v10436_v13, %v7868_v12  ;;  %v7700_v22 = vld [vmem:[%s13338_s0 + $0x120] sm:$0xf]  ;;  %v10394_v23 = vld [vmem:[%s13338_s0 + $0x124] sm:$0xf0]  ;;  %v7692_v27 = vld [vmem:[%s13338_s0 + $0x110] sm:$0xf] }
  0x71   : > { %v7701_v25 = vor.u32 %v10394_v23, %v7700_v22  ;;  %v10392_v28 = vld [vmem:[%s13338_s0 + $0x114] sm:$0xf0]  ;;  %v7684_v30 = vld [vmem:[%s13338_s0 + $0x100] sm:$0xf]  ;;  %v10390_v31 = vld [vmem:[%s13338_s0 + $0x104] sm:$0xf0] }
  0x72   : > { %1448 = vmatpush.bf16.msrb.mxu0 %v7449_v21  ;;  %v7709_v21 = vor.u32 %v10396_v16, %v7708_v15  ;;  %v7693_v29 = vor.u32 %v10392_v28, %v7692_v27  ;;  %v10371_v32 = vld [vmem:[%s13338_s0 + $0x74] sm:$0xf]  ;;  %v7614_v33 = vld [vmem:[%s13338_s0 + $0x78] sm:$0xf0]  ;;  %v7788_v36 = vld [vmem:[%s13338_s0 + $0x1d0] sm:$0xf] }
  0x73   : > { %1462 = vmatpush.bf16.msrb.mxu1 %v7513_v24  ;;  %v7861_v24 = vor.u32 %v10434_v20, %v7860_v19  ;;  %v7617_v35 = vor.u32 %v10371_v32, %v7614_v33  ;;  %v10416_v41 = vld [vmem:[%s13338_s0 + $0x1d4] sm:$0xf0]  ;;  %v7606_v54 = vld [vmem:[%s13338_s0 + $0x68] sm:$0xf0]  ;;  %v7652_v57 = vld [vmem:[%s13338_s0 + $0xc0] sm:$0xf] }
  0x74   : > { %2132 = vmatpush.bf16.msrb.mxu2 %v7589_v58  ;;  %2145 = vmatpush.bf16.msrb.mxu3 %v7661_v4  ;;  %v7789_v48 = vor.u32 %v10416_v41, %v7788_v36  ;;  %v10382_v58 = vld [vmem:[%s13338_s0 + $0xc4] sm:$0xf0]  ;;  %v7852_v62 = vld [vmem:[%s13338_s0 + $0x250] sm:$0xf]  ;;  %v10432_v63 = vld [vmem:[%s13338_s0 + $0x254] sm:$0xf0] }
  0x75   : > { %v7653_v61 = vor.u32 %v10382_v58, %v7652_v57  ;;  %v7853_v42 = vor.u32 %v10432_v63, %v7852_v62  ;;  %v7780_v49 = vld [vmem:[%s13338_s0 + $0x1c0] sm:$0xf]  ;;  %v10414_v43 = vld [vmem:[%s13338_s0 + $0x1c4] sm:$0xf0]  ;;  %v7644_v60 = vld [vmem:[%s13338_s0 + $0xb0] sm:$0xf] }
  0x76   : > { %1449 = vmatpush.bf16.msrb.mxu0 %v7441_v34  ;;  %v7685_v34 = vor.u32 %v10390_v31, %v7684_v30  ;;  %v10380_v0 = vld [vmem:[%s13338_s0 + $0xb4] sm:$0xf0]  ;;  %v10430_v1 = vld [vmem:[%s13338_s0 + $0x244] sm:$0xf0]  ;;  %v7772_v3 = vld [vmem:[%s13338_s0 + $0x1b0] sm:$0xf] }
  0x77   : > { %1463 = vmatpush.bf16.msrb.mxu1 %v7505_v47  ;;  %v10369_v47 = vld [vmem:[%s13338_s0 + $0x64] sm:$0xf]  ;;  %v7645_v50 = vor.u32 %v10380_v0, %v7644_v60  ;;  %v10412_v44 = vld [vmem:[%s13338_s0 + $0x1b4] sm:$0xf0]  ;;  %v7636_v52 = vld [vmem:[%s13338_s0 + $0xa0] sm:$0xf] }
  0x78   : > { %2133 = vmatpush.bf16.msrb.mxu2 %v7581_v37  ;;  %v7609_v59 = vor.u32 %v10369_v47, %v7606_v54  ;;  %2146 = vmatpush.bf16.msrb.mxu3 %v7653_v61  ;;  %v7773_v51 = vor.u32 %v10412_v44, %v7772_v3  ;;  %v10365_v4 = vld [vmem:[%s13338_s0 + $0x44] sm:$0xf]  ;;  %v10428_v7 = vld [vmem:[%s13338_s0 + $0x234] sm:$0xf0]  ;;  %v7628_v12 = vld [vmem:[%s13338_s0 + $0x90] sm:$0xf] }
  0x79   : > { %v10376_v13 = vld [vmem:[%s13338_s0 + $0x94] sm:$0xf0]  ;;  %v7828_v16 = vld [vmem:[%s13338_s0 + $0x220] sm:$0xf]  ;;  %v7756_v19 = vld [vmem:[%s13338_s0 + $0x190] sm:$0xf] }
  0x7a   : > { %1450 = vmatpush.bf16.msrb.mxu0 %v7433_v39  ;;  %v10367_v39 = vld [vmem:[%s13338_s0 + $0x54] sm:$0xf]  ;;  %v7629_v15 = vor.u32 %v10376_v13, %v7628_v12  ;;  %v10408_v20 = vld [vmem:[%s13338_s0 + $0x194] sm:$0xf0]  ;;  %v7574_v23 = vld [vmem:[%s13338_s0 + $0x28] sm:$0xf0] }
  0x7b   : > { %1464 = vmatpush.bf16.msrb.mxu1 %v7497_v56  ;;  %v7781_v56 = vor.u32 %v10414_v43, %v7780_v49  ;;  %v7757_v22 = vor.u32 %v10408_v20, %v7756_v19  ;;  %v10424_v30 = vld [vmem:[%s13338_s0 + $0x214] sm:$0xf0]  ;;  %v7932_v31 = vld [vmem:[%s13338_s0 + $0x2f0] sm:$0xf]  ;;  %v10406_v36 = vld [vmem:[%s13338_s0 + $0x184] sm:$0xf0] }
  0x7c   : > { %2134 = vmatpush.bf16.msrb.mxu2 %v7573_v6  ;;  %2147 = vmatpush.bf16.msrb.mxu3 %v7645_v50  ;;  %v10378_v6 = vld [vmem:[%s13338_s0 + $0xa4] sm:$0xf0]  ;;  %v10452_v33 = vld [vmem:[%s13338_s0 + $0x2f4] sm:$0xf0]  ;;  %v10359_v41 = vld [vmem:[%s13338_s0 + $0x14] sm:$0xf] }
  0x7d   : > { %1451 = vmatmul.bf16.vlgmr.msrb.gmra.mxu0 %v11996_v8  ;;  %v10398_v8 = vld [vmem:[%s13338_s0 + $0x144] sm:$0xf0]  ;;  %v7637_v40 = vor.u32 %v10378_v6, %v7636_v52  ;;  %v7812_v57 = vld [vmem:[%s13338_s0 + $0x200] sm:$0xf]  ;;  %v10387_v61 = vld [vmem:[%s13338_s0 + $0xf4] sm:$0xf] }
  0x7e   : > { %2157 = vmatpush.bf16.msra.mxu0 %v7741_v55  ;;  %1465 = vmatmul.bf16.vlgmr.msrb.gmra.mxu1 %v11906_v26  ;;  %v10358_v26 = vld [vmem:[%s13338_s0 + $0x4] sm:$0xf0]  ;;  %v7717_v14 = vor.u32 %v10398_v8, %v7716_v38  ;;  %v7598_v55 = vld [vmem:[%s13338_s0 + $0x58] sm:$0xf0]  ;;  %v7764_v38 = vld [vmem:[%s13338_s0 + $0x1a0] sm:$0xf] }
  0x7f   : > { %2171 = vmatpush.bf16.msra.mxu1 %v7805_v53  ;;  %v7557_v17 = vor.u32 %v10358_v26, %v7556_v11  ;;  %v7601_v37 = vor.u32 %v10367_v39, %v7598_v55  ;;  %v7844_v53 = vld [vmem:[%s13338_s0 + $0x240] sm:$0xf]  ;;  %v10410_v8 = vld [vmem:[%s13338_s0 + $0x1a4] sm:$0xf0]  ;;  %v7582_v26 = vld [vmem:[%s13338_s0 + $0x38] sm:$0xf0] }
  0x80   : > { %2135 = vmatpush.bf16.msrb.mxu2 %v7565_v10  ;;  %v7845_v2 = vor.u32 %v10430_v1, %v7844_v53  ;;  %v10363_v10 = vld [vmem:[%s13338_s0 + $0x34] sm:$0xf]  ;;  %2148 = vmatpush.bf16.msrb.mxu3 %v7637_v40  ;;  %v7765_v11 = vor.u32 %v10410_v8, %v7764_v38  ;;  %v10422_v58 = vld [vmem:[%s13338_s0 + $0x204] sm:$0xf0]  ;;  %v7678_v62 = vld [vmem:[%s13338_s0 + $0xf8] sm:$0xf0] }
  0x81   : > { %v7681_v63 = vor.u32 %v10387_v61, %v7678_v62  ;;  %v10450_v49 = vld [vmem:[%s13338_s0 + $0x2e4] sm:$0xf0]  ;;  %v12337_v43 = vld [vmem:[%s13339_s16] sm:$0x3]  ;;  %v7558_v55 = vld [vmem:[%s13338_s0 + $0x8] sm:$0xf0]  ;;  %s12741_s16 = scalar_lea.vmem %s13306_s25, %s10304_s7  ;;  %s12978_s7 = scalar_lea.vmem %s13307_s26, %s10306_s3 }
  0x82   : > { %2158 = vmatpush.bf16.msra.mxu0 %v7733_v5  ;;  %v7590_v5 = vld [vmem:[%s13338_s0 + $0x48] sm:$0xf0]  ;;  %v10385_v60 = vld [vmem:[%s13338_s0 + $0xe4] sm:$0xf]  ;;  %v1143_v53 = vperm.slane %v12337_v43, 0 }
  0x83   : > { %2172 = vmatpush.bf16.msra.mxu1 %v7797_v46  ;;  %v7593_v45 = vor.u32 %v10365_v4, %v7590_v5  ;;  %v7836_v46 = vld [vmem:[%s13338_s0 + $0x230] sm:$0xf]  ;;  %v7670_v0 = vld [vmem:[%s13338_s0 + $0xe8] sm:$0xf0]  ;;  %v10448_v3 = vld [vmem:[%s13338_s0 + $0x2d4] sm:$0xf0] }
  0x84   : > { %2136 = vmatpush.bf16.msrb.mxu2 %v7557_v17  ;;  %v10426_v17 = vld [vmem:[%s13338_s0 + $0x224] sm:$0xf0]  ;;  %2149 = vmatpush.bf16.msrb.mxu3 %v7629_v15  ;;  %v7673_v50 = vor.u32 %v10385_v60, %v7670_v0  ;;  %v7662_v4 = vld [vmem:[%s13338_s0 + $0xd8] sm:$0xf0]  ;;  %v7654_v38 = vld [vmem:[%s13338_s0 + $0xc8] sm:$0xf0] }
  0x85   : > { %v10446_v52 = vld [vmem:[%s13338_s0 + $0x2c4] sm:$0xf0]  ;;  %v7892_v20 = vld [vmem:[%s13338_s0 + $0x2a0] sm:$0xf]  ;;  %v10403_v0 = vld [vmem:[%s13338_s0 + $0x174] sm:$0xf] }
  0x86   : > { %2159 = vmatpush.bf16.msra.mxu0 %v7725_v9  ;;  %v7837_v9 = vor.u32 %v10428_v7, %v7836_v46  ;;  %v12373_v7 = vld [vmem:[%s13340_s9] sm:$0x3]  ;;  %v10438_v62 = vld [vmem:[%s13338_s0 + $0x284] sm:$0xf0]  ;;  %s10307_s9 = sshll.u32 %s13361_s5, 3 }
  0x87   : > { %2173 = vmatpush.bf16.msra.mxu1 %v7789_v48  ;;  %v7566_v48 = vld [vmem:[%s13338_s0 + $0x18] sm:$0xf0]  ;;  %v1477_v13 = vperm.slane %v12373_v7, 0  ;;  %s977_s3 = scalar_lea.vmem %s13308_s27, %s10307_s9 }
  0x88   : > { %2185 = vmatpush.bf16.msra.mxu2 %v7869_v18  ;;  %v7829_v18 = vor.u32 %v10426_v17, %v7828_v16  ;;  %v7569_v54 = vor.u32 %v10359_v41, %v7566_v48  ;;  %v10379_v17 = vld [vmem:[%s13338_s0 + $0xb4] sm:$0xf]  ;;  %v7630_v48 = vld [vmem:[%s13338_s0 + $0x98] sm:$0xf0] }
  0x8a   : > { %2160 = vmatpush.bf16.msra.mxu0 %v7717_v14  ;;  %v7585_v14 = vor.u32 %v10363_v10, %v7582_v26  ;;  %v10444_v26 = vld [vmem:[%s13338_s0 + $0x2b4] sm:$0xf0] }
  0x8b   : > { %2174 = vmatpush.bf16.msra.mxu1 %v7781_v56  ;;  %v10357_v56 = vld [vmem:[%s13338_s0 + $0x4] sm:$0xf] }
  0x8c   : > { %2186 = vmatpush.bf16.msra.mxu2 %v7861_v24  ;;  %v7620_v24 = vld [vmem:[%s13338_s0 + $0x80] sm:$0xf] }
  0x8e   : > { %2161 = vmatpush.bf16.msra.mxu0 %v7709_v21  ;;  %v10361_v21 = vld [vmem:[%s13338_s0 + $0x24] sm:$0xf] }
  0x8f   : > { %2175 = vmatpush.bf16.msra.mxu1 %v7773_v51  ;;  %v7577_v27 = vor.u32 %v10361_v21, %v7574_v23  ;;  %v10383_v51 = vld [vmem:[%s13338_s0 + $0xd4] sm:$0xf]  ;;  %v10442_v21 = vld [vmem:[%s13338_s0 + $0x2a4] sm:$0xf0] }
  0x90   : > { %2187 = vmatpush.bf16.msra.mxu2 %v7853_v42  ;;  %v7924_v42 = vld [vmem:[%s13338_s0 + $0x2e0] sm:$0xf]  ;;  %v7665_v5 = vor.u32 %v10383_v51, %v7662_v4 }
  0x91   : > { %v7925_v39 = vor.u32 %v10450_v49, %v7924_v42 }
  0x92   : > { %2162 = vmatpush.bf16.msra.mxu0 %v7701_v25  ;;  %v10374_v25 = vld [vmem:[%s13338_s0 + $0x84] sm:$0xf0] }
  0x93   : > { %2176 = vmatpush.bf16.msra.mxu1 %v7765_v11  ;;  %v7621_v28 = vor.u32 %v10374_v25, %v7620_v24  ;;  %v7900_v11 = vld [vmem:[%s13338_s0 + $0x2b0] sm:$0xf]  ;;  %v7893_v24 = vor.u32 %v10442_v21, %v7892_v20 }
  0x94   : > { %2188 = vmatpush.bf16.msra.mxu2 %v7845_v2  ;;  %v7916_v2 = vld [vmem:[%s13338_s0 + $0x2d0] sm:$0xf] }
  0x95   : > { %2150 = vmatpush.bf16.msrb.mxu3 %v7621_v28  ;;  %v7917_v44 = vor.u32 %v10448_v3, %v7916_v2  ;;  %v7638_v28 = vld [vmem:[%s13338_s0 + $0xa8] sm:$0xf0]  ;;  %v10435_v3 = vld [vmem:[%s13338_s0 + $0x274] sm:$0xf] }
  0x96   : > { %2163 = vmatpush.bf16.msra.mxu0 %v7693_v29  ;;  %v7820_v29 = vld [vmem:[%s13338_s0 + $0x210] sm:$0xf] }
  0x97   : > { %2177 = vmatpush.bf16.msra.mxu1 %v7757_v22  ;;  %v7821_v32 = vor.u32 %v10424_v30, %v7820_v29 }
  0x98   : > { %2189 = vmatpush.bf16.msra.mxu2 %v7837_v9  ;;  %v10381_v9 = vld [vmem:[%s13338_s0 + $0xc4] sm:$0xf] }
  0x99   : > { %v7657_v10 = vor.u32 %v10381_v9, %v7654_v38  ;;  %v1478_v9 = vperm.slane %v12373_v7, 1  ;;  %v10401_v38 = vld [vmem:[%s13338_s0 + $0x164] sm:$0xf] }
  0x9a   : > { %2164 = vmatpush.bf16.msra.mxu0 %v7685_v34  ;;  %v7933_v34 = vor.u32 %v10452_v33, %v7932_v31 }
  0x9c   : > { %2190 = vmatpush.bf16.msra.mxu2 %v7829_v18  ;;  %2199 = vmatpush.bf16.msra.mxu3 %v7933_v34  ;;  %v7646_v18 = vld [vmem:[%s13338_s0 + $0xb8] sm:$0xf0]  ;;  %v10440_v34 = vld [vmem:[%s13338_s0 + $0x294] sm:$0xf0] }
  0x9d   : > { %v7649_v19 = vor.u32 %v10379_v17, %v7646_v18  ;;  %v10399_v18 = vld [vmem:[%s13338_s0 + $0x154] sm:$0xf] }
  0x9e   : > { %2213 = vmatpush.bf16.msrb.mxu0 %v7617_v35  ;;  %v7748_v35 = vld [vmem:[%s13338_s0 + $0x180] sm:$0xf] }
  0x9f   : > { %v7749_v47 = vor.u32 %v10406_v36, %v7748_v35 }
  0xa0   : > { %2191 = vmatpush.bf16.msra.mxu2 %v7821_v32  ;;  %2200 = vmatpush.bf16.msra.mxu3 %v7925_v39  ;;  %v7884_v32 = vld [vmem:[%s13338_s0 + $0x290] sm:$0xf]  ;;  %v7622_v39 = vld [vmem:[%s13338_s0 + $0x88] sm:$0xf0] }
  0xa1   : > { %2178 = vmatpush.bf16.msra.mxu1 %v7749_v47  ;;  %v7885_v36 = vor.u32 %v10440_v34, %v7884_v32  ;;  %v10375_v47 = vld [vmem:[%s13338_s0 + $0x94] sm:$0xf] }
  0xa2   : > { %2214 = vmatpush.bf16.msrb.mxu0 %v7609_v59  ;;  %v7813_v59 = vor.u32 %v10422_v58, %v7812_v57  ;;  %v7633_v57 = vor.u32 %v10375_v47, %v7630_v48  ;;  %v7876_v58 = vld [vmem:[%s13338_s0 + $0x280] sm:$0xf]  ;;  %v7846_v47 = vld [vmem:[%s13338_s0 + $0x248] sm:$0xf0] }
  0xa3   : > { %v7877_v42 = vor.u32 %v10438_v62, %v7876_v58  ;;  %v10395_v58 = vld [vmem:[%s13338_s0 + $0x134] sm:$0xf] }
  0xa4   : > { %2192 = vmatpush.bf16.msra.mxu2 %v7813_v59  ;;  %2201 = vmatpush.bf16.msra.mxu3 %v7917_v44  ;;  %v7870_v44 = vld [vmem:[%s13338_s0 + $0x278] sm:$0xf0] }
  0xa5   : > { %2227 = vmatpush.bf16.msrb.mxu1 %v7681_v63 }
  0xa6   : > { %2215 = vmatpush.bf16.msrb.mxu0 %v7601_v37  ;;  %v7561_v37 = vor.u32 %v10357_v56, %v7558_v55 }
  0xa9   : > { %2228 = vmatpush.bf16.msrb.mxu1 %v7673_v50 }
  0xaa   : > { %2216 = vmatpush.bf16.msrb.mxu0 %v7593_v45  ;;  %v7908_v45 = vld [vmem:[%s13338_s0 + $0x2c0] sm:$0xf] }
  0xab   : > { %v7909_v46 = vor.u32 %v10446_v52, %v7908_v45 }
  0xad   : > { %2229 = vmatpush.bf16.msrb.mxu1 %v7665_v5  ;;  %2202 = vmatpush.bf16.msra.mxu3 %v7909_v46 }
  0xae   : > { %2217 = vmatpush.bf16.msrb.mxu0 %v7585_v14  ;;  %v7901_v14 = vor.u32 %v10444_v26, %v7900_v11  ;;  %v7873_v26 = vor.u32 %v10435_v3, %v7870_v44 }
  0xb1   : > { %2230 = vmatpush.bf16.msrb.mxu1 %v7657_v10  ;;  %2203 = vmatpush.bf16.msra.mxu3 %v7901_v14  ;;  %v7862_v14 = vld [vmem:[%s13338_s0 + $0x268] sm:$0xf0] }
  0xb2   : > { %2218 = vmatpush.bf16.msrb.mxu0 %v7577_v27  ;;  %v10377_v27 = vld [vmem:[%s13338_s0 + $0xa4] sm:$0xf] }
  0xb3   : > { %v7641_v31 = vor.u32 %v10377_v27, %v7638_v28 }
  0xb5   : > { %2231 = vmatpush.bf16.msrb.mxu1 %v7649_v19  ;;  %2204 = vmatpush.bf16.msra.mxu3 %v7893_v24  ;;  %v7726_v19 = vld [vmem:[%s13338_s0 + $0x158] sm:$0xf0] }
  0xb6   : > { %2219 = vmatpush.bf16.msrb.mxu0 %v7569_v54  ;;  %v1144_v54 = vperm.slane %v12337_v43, 1  ;;  %v10373_v43 = vld [vmem:[%s13338_s0 + $0x84] sm:$0xf]  ;;  %v7729_v24 = vor.u32 %v10399_v18, %v7726_v19  ;;  %v7926_v19 = vld [vmem:[%s13338_s0 + $0x2e8] sm:$0xf0] }
  0xb7   : > { %v7625_v50 = vor.u32 %v10373_v43, %v7622_v39  ;;  %v7838_v43 = vld [vmem:[%s13338_s0 + $0x238] sm:$0xf0]  ;;  %v10449_v18 = vld [vmem:[%s13338_s0 + $0x2e4] sm:$0xf] }
  0xb9   : > { %2232 = vmatpush.bf16.msrb.mxu1 %v7641_v31  ;;  %2205 = vmatpush.bf16.msra.mxu3 %v7885_v36 }
  0xba   : > { %2220 = vmatpush.bf16.msrb.mxu0 %v7561_v37  ;;  %v7742_v37 = vld [vmem:[%s13338_s0 + $0x178] sm:$0xf0] }
  0xbb   : > { %v7745_v45 = vor.u32 %v10403_v0, %v7742_v37  ;;  %v10419_v0 = vld [vmem:[%s13338_s0 + $0x1f4] sm:$0xf]  ;;  %v7806_v37 = vld [vmem:[%s13338_s0 + $0x1f8] sm:$0xf0] }
  0xbd   : > { %2233 = vmatpush.bf16.msrb.mxu1 %v7633_v57  ;;  %2206 = vmatpush.bf16.msra.mxu3 %v7877_v42 }
  0xc1   : > { %2234 = vmatpush.bf16.msrb.mxu1 %v7625_v50 }
  0xe0   : > { %v1396_v1 = vpop.f32.mrf.mxu0 }
  0xe1   : > { %v1397_v6 = vadd.f32 %v1396_v1, %v1143_v53 }
  0xe4   : > { %v1424_v40 = vpop.f32.mrf.mxu2 }
  0xe6   : > { %v1410_v8 = vpop.f32.mrf.mxu1 }
  0xe7   : > { %v1411_v12 = vadd.f32 %v1410_v8, %v1397_v6  ;;  %v7734_v8 = vld [vmem:[%s13338_s0 + $0x168] sm:$0xf0] }
  0xe8   : > { %v1398_v15 = vpop.f32.mrf.mxu0 }
  0xe9   : > { %v1425_v16 = vadd.f32 %v1424_v40, %v1411_v12  ;;  %v1399_v23 = vadd.f32 %v1398_v15, %v1143_v53 }
  0xeb   : > { %vm1471_vm7 = vcmp.ge.f32.partialorder %v1425_v16, 0.0  ;;  %v1481_v22 = vmul.f32 %v1477_v13, %v1425_v16 }
  0xec   : > { %v1426_v30 = vpop.f32.mrf.mxu2 }
  0xed   : > { %v1485_v25 = vsel %vm1471_vm7, %v1425_v16, %v1481_v22  ;;  %v7737_v16 = vor.u32 %v10401_v38, %v7734_v8  ;;  %v10431_v22 = vld [vmem:[%s13338_s0 + $0x254] sm:$0xf]  ;;  %v7809_v38 = vor.u32 %v10419_v0, %v7806_v37  ;;  %v7902_v0 = vld [vmem:[%s13338_s0 + $0x2b8] sm:$0xf0] }
  0xee   : > { %v1412_v29 = vpop.f32.mrf.mxu1  ;;  %v1493_v35 = vrot.slane %v1485_v25, 7  ;;  %v1438_v61 = vpop.f32.mrf.mxu3 }
  0xef   : > { %v1413_v33 = vadd.f32 %v1412_v29, %v1399_v23  ;;  %v1439_v55 = vadd.f32 %v1438_v61, %v1144_v54  ;;  %v7854_v23 = vld [vmem:[%s13338_s0 + $0x258] sm:$0xf0]  ;;  %v10397_v29 = vld [vmem:[%s13338_s0 + $0x144] sm:$0xf] }
  0xf0   : > { %v12426_v63 = vsel %vm991_vm0, 0.0, %v1493_v35 }
  0xf1   : > { %v1427_v41 = vadd.f32 %v1426_v30, %v1413_v33  ;;  %v1513_v53 = vrot.slane %v12426_v63, 1  ;;  %v7718_v30 = vld [vmem:[%s13338_s0 + $0x148] sm:$0xf0]  ;;  %v1527_v31 = vrot.slane %v12426_v63, 2 }
  0xf3   : > { %vm1473_vm8 = vcmp.ge.f32.partialorder %v1427_v41, 0.0  ;;  %v1483_v59 = vmul.f32 %v1477_v13, %v1427_v41  ;;  %v10433_v13 = vld [vmem:[%s13338_s0 + $0x264] sm:$0xf] }
  0xf4   : > { %v7865_v20 = vor.u32 %v10433_v13, %v7862_v14  ;;  %v7694_v13 = vld [vmem:[%s13338_s0 + $0x118] sm:$0xf0] }
  0xf5   : > { %v1487_v49 = vsel %vm1473_vm8, %v1427_v41, %v1483_v59  ;;  %v10429_v41 = vld [vmem:[%s13338_s0 + $0x244] sm:$0xf]  ;;  %v7710_v59 = vld [vmem:[%s13338_s0 + $0x138] sm:$0xf0] }
  0xf6   : > { %v1495_v56 = vrot.slane %v1487_v49, 7  ;;  %v1440_v15 = vpop.f32.mrf.mxu3  ;;  %v7849_v63 = vor.u32 %v10429_v41, %v7846_v47  ;;  %v10427_v49 = vld [vmem:[%s13338_s0 + $0x234] sm:$0xf]  ;;  %v10413_v41 = vld [vmem:[%s13338_s0 + $0x1c4] sm:$0xf] }
  0xf7   : > { %v1441_v21 = vadd.f32 %v1440_v15, %v1144_v54  ;;  %v7721_v54 = vor.u32 %v10397_v29, %v7718_v30  ;;  %v7841_v44 = vor.u32 %v10427_v49, %v7838_v43  ;;  %v7929_v29 = vor.u32 %v10449_v18, %v7926_v19  ;;  %v7782_v47 = vld [vmem:[%s13338_s0 + $0x1c8] sm:$0xf0]  ;;  %v7774_v49 = vld [vmem:[%s13338_s0 + $0x1b8] sm:$0xf0]  ;;  %v8004_v18 = vld [vmem:[#allocation2 + $0x60] sm:$0xf] }
  0xf8   : > { %v12447_v1 = vsel %vm991_vm0, %v1495_v56, 0.0  ;;  %v12450_v2 = vsel %vm991_vm0, %v1493_v35, %v1495_v56  ;;  %v10466_v19 = vld [vmem:[#allocation2 + $0x64] sm:$0xf0] }
  0xf9   : > { %v1519_v51 = vrot.slane %v12447_v1, 1  ;;  %v1514_v4 = vrot.slane %v12450_v2, 1  ;;  %v12467_v6 = vpack.c.bf16 %v12450_v2, %v1493_v35  ;;  %v1533_v32 = vrot.slane %v12447_v1, 2  ;;  %v7702_v1 = vld [vmem:[%s13338_s0 + $0x128] sm:$0xf0] }
  0xfa   : > { %v1452_v52 = vpop.f32.mrf.mxu0  ;;  %v1528_v33 = vrot.slane %v12450_v2, 2  ;;  %v7857_v35 = vor.u32 %v10431_v22, %v7854_v23  ;;  %v10425_v2 = vld [vmem:[%s13338_s0 + $0x224] sm:$0xf] }
  0xfb   : > { %v1453_v46 = vadd.f32 %v1452_v52, %v1439_v55  ;;  %v1466_v40 = vpop.f32.mrf.mxu1  ;;  %v1515_v10 = vsel %vm1046_vm6, %v1513_v53, %v1514_v4  ;;  %v1520_v11 = vsel %vm1046_vm6, %v1514_v4, %v1519_v51  ;;  %7941 = vmatmul.msk.bf16.vlgmr.msrb.gmra.mxu2 %vm12462_vm11, %v12467_v6  ;;  %v7713_v55 = vor.u32 %v10395_v58, %v7710_v59  ;;  %v10393_v53 = vld [vmem:[%s13338_s0 + $0x124] sm:$0xf]  ;;  %v10451_v4 = vld [vmem:[%s13338_s0 + $0x2f4] sm:$0xf] }
  0xfc   : > { %v12481_v12 = vpack.c.bf16 %v1520_v11, %v1515_v10  ;;  %2241 = vmatpush.bf16.msrb.mxu2 %v7745_v45  ;;  %v1529_v61 = vsel %vm1044_vm5, %v1527_v31, %v1528_v33  ;;  %v1534_v62 = vsel %vm1044_vm5, %v1528_v33, %v1533_v32  ;;  %v7934_v45 = vld [vmem:[%s13338_s0 + $0x2f8] sm:$0xf0]  ;;  %v7705_v8 = vor.u32 %v10393_v53, %v7702_v1  ;;  %v10417_v11 = vld [vmem:[%s13338_s0 + $0x1e4] sm:$0xf]  ;;  %v10447_v31 = vld [vmem:[%s13338_s0 + $0x2d4] sm:$0xf] }
  0xfd   : > { %v1467_v7 = vadd.f32 %v1466_v40, %v1453_v46  ;;  %v12540_v50 = vpack.c.bf16 %v1534_v62, %v1529_v61  ;;  %v7830_v40 = vld [vmem:[%s13338_s0 + $0x228] sm:$0xf0]  ;;  %v7918_v32 = vld [vmem:[%s13338_s0 + $0x2d8] sm:$0xf0]  ;;  %v10421_v33 = vld [vmem:[%s13338_s0 + $0x204] sm:$0xf] }
  0xfe   : > { %2165 = vmatmul.bf16.vlgmr.msra.gmra.mxu0 %v12481_v12  ;;  %v10445_v59 = vld [vmem:[%s13338_s0 + $0x2c4] sm:$0xf]  ;;  %v7910_v61 = vld [vmem:[%s13338_s0 + $0x2c8] sm:$0xf0] }
  0xff   : > { %v1482_v17 = vmul.f32 %v1478_v9, %v1467_v7  ;;  %vm1472_vm12 = vcmp.ge.f32.partialorder %v1467_v7, 0.0  ;;  %2269 = vmatpush.bf16.msra.mxu0 %v7873_v26  ;;  %v7798_v26 = vld [vmem:[%s13338_s0 + $0x1e8] sm:$0xf0]  ;;  %v10409_v1 = vld [vmem:[%s13338_s0 + $0x1a4] sm:$0xf] }
 0x100   : > { %2242 = vmatpush.bf16.msrb.mxu2 %v7737_v16  ;;  %v7937_v16 = vor.u32 %v10451_v4, %v7934_v45  ;;  %v7801_v22 = vor.u32 %v10417_v11, %v7798_v26  ;;  %v7758_v4 = vld [vmem:[%s13338_s0 + $0x198] sm:$0xf0] }
 0x101   : > { %v1486_v27 = vsel %vm1472_vm12, %v1467_v7, %v1482_v17  ;;  %v10391_v7 = vld [vmem:[%s13338_s0 + $0x114] sm:$0xf]  ;;  %v7833_v17 = vor.u32 %v10425_v2, %v7830_v40  ;;  %v7766_v2 = vld [vmem:[%s13338_s0 + $0x1a8] sm:$0xf0]  ;;  %v10405_v40 = vld [vmem:[%s13338_s0 + $0x184] sm:$0xf] }
 0x102   : > { %v1454_v25 = vpop.f32.mrf.mxu0  ;;  %v1494_v48 = vrot.slane %v1486_v27, 7  ;;  %v7697_v23 = vor.u32 %v10391_v7, %v7694_v13  ;;  %v10389_v27 = vld [vmem:[%s13338_s0 + $0x104] sm:$0xf]  ;;  %v8012_v7 = vld [vmem:[#allocation2 + $0x70] sm:$0xf] }
 0x103   : > { %v1455_v28 = vadd.f32 %v1454_v25, %v1441_v21  ;;  %2270 = vmatpush.bf16.msra.mxu0 %v7865_v20  ;;  %v1468_v34 = vpop.f32.mrf.mxu1  ;;  %v10423_v20 = vld [vmem:[%s13338_s0 + $0x214] sm:$0xf]  ;;  %v7822_v21 = vld [vmem:[%s13338_s0 + $0x218] sm:$0xf0]  ;;  %v10468_v13 = vld [vmem:[#allocation2 + $0x74] sm:$0xf0] }
 0x104   : > { %2243 = vmatpush.bf16.msrb.mxu2 %v7729_v24  ;;  %v12532_v39 = vsel %vm991_vm0, 0.0, %v1494_v48  ;;  %v10415_v24 = vld [vmem:[%s13338_s0 + $0x1d4] sm:$0xf]  ;;  %v7790_v25 = vld [vmem:[%s13338_s0 + $0x1d8] sm:$0xf0]  ;;  %v7825_v30 = vor.u32 %v10423_v20, %v7822_v21  ;;  %v8005_v21 = vor.u32 %v10466_v19, %v8004_v18 }
 0x105   : > { %v1469_v36 = vadd.f32 %v1468_v34, %v1455_v28  ;;  %v1516_v52 = vrot.slane %v12532_v39, 1  ;;  %v7686_v28 = vld [vmem:[%s13338_s0 + $0x108] sm:$0xf0]  ;;  %v1530_v62 = vrot.slane %v12532_v39, 2  ;;  %v10443_v39 = vld [vmem:[%s13338_s0 + $0x2b4] sm:$0xf] }
 0x106   : > { %v7814_v34 = vld [vmem:[%s13338_s0 + $0x208] sm:$0xf0]  ;;  %v8132_v20 = vld [vmem:[#allocation2 + $0x160] sm:$0xf]  ;;  %v8014_v18 = vld [vmem:[#allocation2 + $0x78] sm:$0xf0] }
 0x107   : > { %vm1474_vm13 = vcmp.ge.f32.partialorder %v1469_v36, 0.0  ;;  %v1484_v57 = vmul.f32 %v1478_v9, %v1469_v36  ;;  %2271 = vmatpush.bf16.msra.mxu0 %v7857_v35  ;;  %v7793_v35 = vor.u32 %v10415_v24, %v7790_v25  ;;  %v7817_v58 = vor.u32 %v10421_v33, %v7814_v34  ;;  %v7996_v24 = vld [vmem:[#allocation2 + $0x50] sm:$0xf]  ;;  %v10464_v25 = vld [vmem:[#allocation2 + $0x54] sm:$0xf0] }
 0x108   : > { %2244 = vmatpush.bf16.msrb.mxu2 %v7721_v54  ;;  %v10494_v34 = vld [vmem:[#allocation2 + $0x144] sm:$0xf0] }
 0x109   : > { %v1488_v42 = vsel %vm1474_vm13, %v1469_v36, %v1484_v57  ;;  %v7689_v36 = vor.u32 %v10389_v27, %v7686_v28  ;;  %v7921_v57 = vor.u32 %v10447_v31, %v7918_v32  ;;  %v7997_v27 = vor.u32 %v10464_v25, %v7996_v24  ;;  %v10496_v28 = vld [vmem:[#allocation2 + $0x154] sm:$0xf0]  ;;  %v10462_v31 = vld [vmem:[#allocation2 + $0x44] sm:$0xf0]  ;;  %v8116_v32 = vld [vmem:[#allocation2 + $0x140] sm:$0xf] }
 0x10a   : > { %v1497_v56 = vrot.slane %v1488_v42, 7  ;;  %v10411_v42 = vld [vmem:[%s13338_s0 + $0x1b4] sm:$0xf]  ;;  %v8180_v24 = vld [vmem:[#allocation2 + $0x1c0] sm:$0xf]  ;;  %vm13077_vm13 = vmpackc.low %vm1042_vm4, %vm1042_vm4 }
 0x10b   : > { %2272 = vmatpush.bf16.msra.mxu0 %v7849_v63  ;;  %2193 = vmatmul.bf16.vlgmr.msra.gmra.mxu2 %v12540_v50  ;;  %v7785_v63 = vor.u32 %v10413_v41, %v7782_v47  ;;  %v7777_v37 = vor.u32 %v10411_v42, %v7774_v49  ;;  %v10460_v41 = vld [vmem:[#allocation2 + $0x34] sm:$0xf0]  ;;  %v8108_v47 = vld [vmem:[#allocation2 + $0x130] sm:$0xf]  ;;  %v8100_v42 = vld [vmem:[#allocation2 + $0x120] sm:$0xf] }
 0x10c   : > { %v12552_v3 = vsel %vm991_vm0, %v1497_v56, 0.0  ;;  %v12555_v51 = vsel %vm991_vm0, %v1494_v48, %v1497_v56  ;;  %2245 = vmatpush.bf16.msrb.mxu2 %v7713_v55  ;;  %v7913_v55 = vor.u32 %v10445_v59, %v7910_v61  ;;  %v10458_v59 = vld [vmem:[#allocation2 + $0x24] sm:$0xf0]  ;;  %v8076_v61 = vld [vmem:[#allocation2 + $0xf0] sm:$0xf] }
 0x10d   : > { %v1521_v46 = vrot.slane %v12552_v3, 1  ;;  %v1517_v9 = vrot.slane %v12555_v51, 1  ;;  %v12571_v10 = vpack.c.bf16 %v12555_v51, %v1494_v48  ;;  %v1535_v48 = vrot.slane %v12552_v3, 2  ;;  %v10490_v49 = vld [vmem:[#allocation2 + $0x124] sm:$0xf0] }
 0x10e   : > { %7949 = vmatmul.msk.bf16.vlgmr.msrb.gmra.mxu0 %vm12462_vm11, %v12467_v6  ;;  %v1531_v54 = vrot.slane %v12555_v51, 2  ;;  %v7905_v3 = vor.u32 %v10443_v39, %v7902_v0  ;;  %v7769_v51 = vor.u32 %v10409_v1, %v7766_v2  ;;  %v10516_v39 = vld [vmem:[#allocation2 + $0x1f4] sm:$0xf0]  ;;  %v8068_v1 = vld [vmem:[#allocation2 + $0xe0] sm:$0xf] }
 0x10f   : > { %v1518_v14 = vsel %vm1046_vm6, %v1516_v52, %v1517_v9  ;;  %v1522_v15 = vsel %vm1046_vm6, %v1517_v9, %v1521_v46  ;;  %2273 = vmatpush.bf16.msra.mxu0 %v7841_v44  ;;  %7945 = vmatmul.msk.bf16.vlgmr.msrb.gmra.mxu3 %vm12462_vm11, %v12571_v10  ;;  %v7894_v44 = vld [vmem:[%s13338_s0 + $0x2a8] sm:$0xf0]  ;;  %v10439_v52 = vld [vmem:[%s13338_s0 + $0x294] sm:$0xf]  ;;  %v7886_v46 = vld [vmem:[%s13338_s0 + $0x298] sm:$0xf0] }
 0x110   : > { %v12593_v6 = vpack.c.bf16 %v1522_v15, %v1518_v14  ;;  %2255 = vmatpush.bf16.msrb.mxu3 %v7809_v38  ;;  %2246 = vmatpush.bf16.msrb.mxu2 %v7705_v8  ;;  %v1532_v43 = vsel %vm1044_vm5, %v1530_v62, %v1531_v54  ;;  %v1536_v56 = vsel %vm1044_vm5, %v1531_v54, %v1535_v48  ;;  %v7750_v9 = vld [vmem:[%s13338_s0 + $0x188] sm:$0xf0]  ;;  %v10437_v8 = vld [vmem:[%s13338_s0 + $0x284] sm:$0xf]  ;;  %v8140_v14 = vld [vmem:[#allocation2 + $0x170] sm:$0xf] }
 0x111   : > { %v1546_v53 = vpack.c.bf16 %v1536_v56, %v1532_v43  ;;  %v7889_v38 = vor.u32 %v10439_v52, %v7886_v46  ;;  %v7753_v11 = vor.u32 %v10405_v40, %v7750_v9  ;;  %v8013_v15 = vor.u32 %v10468_v13, %v8012_v7  ;;  %v10492_v54 = vld [vmem:[#allocation2 + $0x134] sm:$0xf0]  ;;  %v7956_v46 = vld [vmem:[#allocation2] sm:$0xf]  ;;  %v8060_v40 = vld [vmem:[#allocation2 + $0xd0] sm:$0xf] }
 0x112   : > { %2179 = vmatmul.bf16.vlgmr.msra.gmra.mxu1 %v12593_v6  ;;  %v8101_v56 = vor.u32 %v10490_v49, %v8100_v42  ;;  %v8188_v7 = vld [vmem:[#allocation2 + $0x1d0] sm:$0xf]  ;;  %v10512_v13 = vld [vmem:[#allocation2 + $0x1d4] sm:$0xf0]  ;;  %v8036_v49 = vld [vmem:[#allocation2 + $0xa0] sm:$0xf] }
 0x113   : > { %2283 = vmatpush.bf16.msra.mxu1 %v7937_v16  ;;  %2274 = vmatpush.bf16.msra.mxu0 %v7833_v17  ;;  %v10500_v16 = vld [vmem:[#allocation2 + $0x174] sm:$0xf0] }
 0x114   : > { %2256 = vmatpush.bf16.msrb.mxu3 %v7801_v22  ;;  %2247 = vmatpush.bf16.msrb.mxu2 %v7697_v23  ;;  %v8141_v17 = vor.u32 %v10500_v16, %v8140_v14  ;;  %v10498_v22 = vld [vmem:[#allocation2 + $0x164] sm:$0xf0]  ;;  %v8268_v14 = vld [vmem:[#allocation2 + $0x270] sm:$0xf]  ;;  %v10532_v16 = vld [vmem:[#allocation2 + $0x274] sm:$0xf0] }
 0x115   : > { %v8133_v23 = vor.u32 %v10498_v22, %v8132_v20  ;;  %v8269_v20 = vor.u32 %v10532_v16, %v8268_v14  ;;  %v8052_v22 = vld [vmem:[#allocation2 + $0xc0] sm:$0xf] }
 0x116   : > { %v8020_v16 = vld [vmem:[#allocation2 + $0x80] sm:$0xf] }
 0x117   : > { %2284 = vmatpush.bf16.msra.mxu1 %v7929_v29  ;;  %2275 = vmatpush.bf16.msra.mxu0 %v7825_v30  ;;  %v7988_v30 = vld [vmem:[#allocation2 + $0x40] sm:$0xf] }
 0x118   : > { %2257 = vmatpush.bf16.msrb.mxu3 %v7793_v35  ;;  %2248 = vmatpush.bf16.msrb.mxu2 %v7689_v36  ;;  %v7989_v33 = vor.u32 %v10462_v31, %v7988_v30  ;;  %v8117_v35 = vor.u32 %v10494_v34, %v8116_v32  ;;  %v7980_v36 = vld [vmem:[#allocation2 + $0x30] sm:$0xf]  ;;  %v10465_v31 = vld [vmem:[#allocation2 + $0x64] sm:$0xf]  ;;  %v8006_v32 = vld [vmem:[#allocation2 + $0x68] sm:$0xf0] }
 0x119   : > { %v7981_v48 = vor.u32 %v10460_v41, %v7980_v36  ;;  %v8044_v34 = vld [vmem:[#allocation2 + $0xb0] sm:$0xf] }
 0x11a   : > { %v8172_v36 = vld [vmem:[#allocation2 + $0x1b0] sm:$0xf] }
 0x11b   : > { %2285 = vmatpush.bf16.msra.mxu1 %v7921_v57  ;;  %2276 = vmatpush.bf16.msra.mxu0 %v7817_v58  ;;  %v8109_v57 = vor.u32 %v10492_v54, %v8108_v47  ;;  %v7972_v58 = vld [vmem:[#allocation2 + $0x20] sm:$0xf]  ;;  %v8252_v54 = vld [vmem:[#allocation2 + $0x250] sm:$0xf] }
 0x11c   : > { %2249 = vmatmul.bf16.vlgmr.msrb.gmra.mxu2 %v12481_v12  ;;  %2258 = vmatpush.bf16.msrb.mxu3 %v7785_v63  ;;  %v10441_v12 = vld [vmem:[%s13338_s0 + $0x2a4] sm:$0xf]  ;;  %v7973_v62 = vor.u32 %v10458_v59, %v7972_v58  ;;  %v10484_v63 = vld [vmem:[#allocation2 + $0xf4] sm:$0xf0] }
 0x11d   : > { %v7897_v45 = vor.u32 %v10441_v12, %v7894_v44  ;;  %3009 = vmatpush.bf16.msra.mxu2 %v8013_v15  ;;  %v8077_v43 = vor.u32 %v10484_v63, %v8076_v61  ;;  %v8092_v12 = vld [vmem:[#allocation2 + $0x110] sm:$0xf]  ;;  %v10488_v44 = vld [vmem:[#allocation2 + $0x114] sm:$0xf0]  ;;  %v8189_v15 = vor.u32 %v10512_v13, %v8188_v7  ;;  %v10463_v61 = vld [vmem:[#allocation2 + $0x54] sm:$0xf] }
 0x11e   : > { %2277 = vmatmul.bf16.vlgmr.msra.gmra.mxu0 %v12540_v50  ;;  %v10407_v50 = vld [vmem:[%s13338_s0 + $0x194] sm:$0xf]  ;;  %v12710_v63 = vld [vmem:[%s13345_s2] sm:$0x3]  ;;  %v7982_v7 = vld [vmem:[#allocation2 + $0x38] sm:$0xf0] }
 0x11f   : > { %2286 = vmatpush.bf16.msra.mxu1 %v7913_v55  ;;  %2207 = vmatmul.bf16.vlgmr.msra.gmra.mxu3 %v1546_v53  ;;  %v7761_v5 = vor.u32 %v10407_v50, %v7758_v4  ;;  %v8204_v55 = vld [vmem:[#allocation2 + $0x1f0] sm:$0xf]  ;;  %v8093_v50 = vor.u32 %v10488_v44, %v8092_v12  ;;  %v8196_v4 = vld [vmem:[#allocation2 + $0x1e0] sm:$0xf]  ;;  %v10461_v44 = vld [vmem:[#allocation2 + $0x44] sm:$0xf] }
 0x120   : > { %2259 = vmatpush.bf16.msrb.mxu3 %v7777_v37  ;;  %3035 = vmatpush.bf16.msrb.mxu0 %v8141_v17  ;;  %v8205_v0 = vor.u32 %v10516_v39, %v8204_v55  ;;  %v7964_v37 = vld [vmem:[#allocation2 + $0x10] sm:$0xf]  ;;  %v10467_v17 = vld [vmem:[#allocation2 + $0x74] sm:$0xf]  ;;  %s13351_s2 = sld [smem:[#allocation28_spill]] }
 0x121   : > { %3010 = vmatpush.bf16.msra.mxu2 %v8005_v21  ;;  %v8017_v21 = vor.u32 %v10467_v17, %v8014_v18  ;;  %v10470_v17 = vld [vmem:[#allocation2 + $0x84] sm:$0xf0]  ;;  %v8148_v18 = vld [vmem:[#allocation2 + $0x180] sm:$0xf] }
 0x122   : > { %7953 = vmatmul.msk.bf16.vlgmr.msrb.gmra.mxu1 %vm12462_vm11, %v12571_v10  ;;  %v7878_v10 = vld [vmem:[%s13338_s0 + $0x288] sm:$0xf0]  ;;  %vm12899_vm11 = vmpackc.low %vm12435_vm9, %vm12435_vm9 }
 0x123   : > { %2287 = vmatpush.bf16.msra.mxu1 %v7905_v3  ;;  %v7881_v26 = vor.u32 %v10437_v8, %v7878_v10  ;;  %v10482_v3 = vld [vmem:[#allocation2 + $0xe4] sm:$0xf0]  ;;  %v8084_v8 = vld [vmem:[#allocation2 + $0x100] sm:$0xf] }
 0x124   : > { %2260 = vmatpush.bf16.msrb.mxu3 %v7769_v51  ;;  %3036 = vmatpush.bf16.msrb.mxu0 %v8133_v23  ;;  %v8069_v51 = vor.u32 %v10482_v3, %v8068_v1  ;;  %v10486_v10 = vld [vmem:[#allocation2 + $0x104] sm:$0xf0]  ;;  %v1645_v1 = vperm.slane %v12710_v63, 0 }
 0x125   : > { %3011 = vmatpush.bf16.msra.mxu2 %v7997_v27  ;;  %v10478_v23 = vld [vmem:[#allocation2 + $0xc4] sm:$0xf0]  ;;  %v8260_v27 = vld [vmem:[#allocation2 + $0x260] sm:$0xf] }
 0x126   : > { %v8053_v25 = vor.u32 %v10478_v23, %v8052_v22  ;;  %v8228_v22 = vld [vmem:[#allocation2 + $0x220] sm:$0xf]  ;;  %v10522_v23 = vld [vmem:[#allocation2 + $0x224] sm:$0xf0] }
 0x127   : > { %2288 = vmatpush.bf16.msra.mxu1 %v7897_v45  ;;  %v10514_v45 = vld [vmem:[#allocation2 + $0x1e4] sm:$0xf0] }
 0x128   : > { %2261 = vmatpush.bf16.msrb.mxu3 %v7761_v5  ;;  %v8197_v52 = vor.u32 %v10514_v45, %v8196_v4  ;;  %v10454_v5 = vld [vmem:[#allocation2 + $0x4] sm:$0xf0]  ;;  %v8028_v4 = vld [vmem:[#allocation2 + $0x90] sm:$0xf]  ;;  %v10472_v45 = vld [vmem:[#allocation2 + $0x94] sm:$0xf0] }
 0x129   : > { %3012 = vmatpush.bf16.msra.mxu2 %v7989_v33  ;;  %v7957_v9 = vor.u32 %v10454_v5, %v7956_v46  ;;  %v8009_v33 = vor.u32 %v10465_v31, %v8006_v32  ;;  %v8029_v5 = vor.u32 %v10472_v45, %v8028_v4  ;;  %v10483_v31 = vld [vmem:[#allocation2 + $0xf4] sm:$0xf]  ;;  %v8078_v32 = vld [vmem:[#allocation2 + $0xf8] sm:$0xf0]  ;;  %v7958_v4 = vld [vmem:[#allocation2 + $0x8] sm:$0xf0] }
 0x12b   : > { %2289 = vmatpush.bf16.msra.mxu1 %v7889_v38  ;;  %v10480_v38 = vld [vmem:[#allocation2 + $0xd4] sm:$0xf0] }
 0x12c   : > { %2262 = vmatpush.bf16.msrb.mxu3 %v7753_v11  ;;  %v8061_v11 = vor.u32 %v10480_v38, %v8060_v40  ;;  %v10504_v40 = vld [vmem:[#allocation2 + $0x194] sm:$0xf0] }
 0x12d   : > { %3013 = vmatpush.bf16.msra.mxu2 %v7981_v48  ;;  %v10508_v48 = vld [vmem:[#allocation2 + $0x1b4] sm:$0xf0] }
 0x12e   : > { %v8173_v58 = vor.u32 %v10508_v48, %v8172_v36  ;;  %v10524_v38 = vld [vmem:[#allocation2 + $0x234] sm:$0xf0]  ;;  %v8081_v36 = vor.u32 %v10483_v31, %v8078_v32  ;;  %v8220_v48 = vld [vmem:[#allocation2 + $0x210] sm:$0xf]  ;;  %v8292_v31 = vld [vmem:[#allocation2 + $0x2a0] sm:$0xf] }
 0x12f   : > { %2290 = vmatpush.bf16.msra.mxu1 %v7881_v26  ;;  %2263 = vmatmul.bf16.vlgmr.msrb.gmra.mxu3 %v12593_v6  ;;  %v8124_v6 = vld [vmem:[#allocation2 + $0x150] sm:$0xf]  ;;  %v8085_v26 = vor.u32 %v10486_v10, %v8084_v8  ;;  %v10538_v32 = vld [vmem:[#allocation2 + $0x2a4] sm:$0xf0] }
 0x130   : > { %v8125_v29 = vor.u32 %v10496_v28, %v8124_v6  ;;  %3022 = vmatpush.bf16.msra.mxu3 %v8077_v43  ;;  %v10510_v6 = vld [vmem:[#allocation2 + $0x1c4] sm:$0xf0] }
 0x131   : > { %3014 = vmatpush.bf16.msra.mxu2 %v7973_v62  ;;  %v10530_v28 = vld [vmem:[#allocation2 + $0x264] sm:$0xf0]  ;;  %v7998_v62 = vld [vmem:[#allocation2 + $0x58] sm:$0xf0] }
 0x132   : > { %2291 = vmatmul.bf16.vlgmr.msra.gmra.mxu1 %v1546_v53  ;;  %3037 = vmatpush.bf16.msrb.mxu0 %v8125_v29  ;;  %v10456_v53 = vld [vmem:[#allocation2 + $0x14] sm:$0xf0]  ;;  %v8181_v29 = vor.u32 %v10510_v6, %v8180_v24  ;;  %v8261_v30 = vor.u32 %v10530_v28, %v8260_v27  ;;  %v8001_v42 = vor.u32 %v10463_v61, %v7998_v62  ;;  %v10474_v43 = vld [vmem:[#allocation2 + $0xa4] sm:$0xf0]  ;;  %v8332_v6 = vld [vmem:[#allocation2 + $0x2f0] sm:$0xf] }
 0x133   : > { %3048 = vmatpush.bf16.msrb.mxu1 %v8205_v0  ;;  %v7965_v2 = vor.u32 %v10456_v53, %v7964_v37  ;;  %v8037_v39 = vor.u32 %v10474_v43, %v8036_v49  ;;  %v10506_v0 = vld [vmem:[#allocation2 + $0x1a4] sm:$0xf0]  ;;  %v8244_v37 = vld [vmem:[#allocation2 + $0x240] sm:$0xf]  ;;  %v10548_v27 = vld [vmem:[#allocation2 + $0x2f4] sm:$0xf0] }
 0x134   : > { %3023 = vmatpush.bf16.msra.mxu3 %v8069_v51  ;;  %v10526_v53 = vld [vmem:[#allocation2 + $0x244] sm:$0xf0]  ;;  %v7990_v51 = vld [vmem:[#allocation2 + $0x48] sm:$0xf0]  ;;  %v10457_v28 = vld [vmem:[#allocation2 + $0x24] sm:$0xf] }
 0x135   : > { %3015 = vmatpush.bf16.msra.mxu2 %v7965_v2  ;;  %v8245_v12 = vor.u32 %v10526_v53, %v8244_v37  ;;  %v10455_v61 = vld [vmem:[#allocation2 + $0x14] sm:$0xf]  ;;  %v7966_v62 = vld [vmem:[#allocation2 + $0x18] sm:$0xf0]  ;;  %v10481_v43 = vld [vmem:[#allocation2 + $0xe4] sm:$0xf] }
 0x136   : > { %3038 = vmatpush.bf16.msrb.mxu0 %v8117_v35  ;;  %v10476_v35 = vld [vmem:[#allocation2 + $0xb4] sm:$0xf0]  ;;  %v7969_v49 = vor.u32 %v10455_v61, %v7966_v62 }
 0x137   : > { %3049 = vmatpush.bf16.msrb.mxu1 %v8197_v52  ;;  %v8045_v47 = vor.u32 %v10476_v35, %v8044_v34  ;;  %v8156_v52 = vld [vmem:[#allocation2 + $0x190] sm:$0xf] }
 0x138   : > { %3024 = vmatpush.bf16.msra.mxu3 %v8061_v11  ;;  %v8157_v10 = vor.u32 %v10504_v40, %v8156_v52  ;;  %v10479_v52 = vld [vmem:[#allocation2 + $0xd4] sm:$0xf] }
 0x139   : > { %3016 = vmatpush.bf16.msra.mxu2 %v7957_v9  ;;  %v8236_v9 = vld [vmem:[#allocation2 + $0x230] sm:$0xf] }
 0x13a   : > { %3039 = vmatpush.bf16.msrb.mxu0 %v8109_v57  ;;  %v10528_v57 = vld [vmem:[#allocation2 + $0x254] sm:$0xf0]  ;;  %v8237_v11 = vor.u32 %v10524_v38, %v8236_v9 }
 0x13b   : > { %3050 = vmatpush.bf16.msrb.mxu1 %v8189_v15  ;;  %v8253_v59 = vor.u32 %v10528_v57, %v8252_v54  ;;  %v10520_v54 = vld [vmem:[#allocation2 + $0x214] sm:$0xf0]  ;;  %v8324_v57 = vld [vmem:[#allocation2 + $0x2e0] sm:$0xf] }
 0x13c   : > { %3025 = vmatpush.bf16.msra.mxu3 %v8053_v25  ;;  %v8229_v25 = vor.u32 %v10522_v23, %v8228_v22  ;;  %v10540_v22 = vld [vmem:[#allocation2 + $0x2b4] sm:$0xf0]  ;;  %v10475_v23 = vld [vmem:[#allocation2 + $0xb4] sm:$0xf] }
 0x13d   : > { %3061 = vmatpush.bf16.msrb.mxu2 %v8269_v20  ;;  %v8021_v20 = vor.u32 %v10470_v17, %v8020_v16  ;;  %v8054_v17 = vld [vmem:[#allocation2 + $0xc8] sm:$0xf0] }
 0x13e   : > { %3040 = vmatpush.bf16.msrb.mxu0 %v8101_v56  ;;  %v8164_v56 = vld [vmem:[#allocation2 + $0x1a0] sm:$0xf] }
 0x13f   : > { %3051 = vmatpush.bf16.msrb.mxu1 %v8181_v29  ;;  %v8165_v3 = vor.u32 %v10506_v0, %v8164_v56  ;;  %v8333_v29 = vor.u32 %v10548_v27, %v8332_v6  ;;  %v8070_v56 = vld [vmem:[#allocation2 + $0xe8] sm:$0xf0]  ;;  %v12732_v0 = vld [vmem:[%s13346_s1] sm:$0x3]  ;;  %v8046_v27 = vld [vmem:[#allocation2 + $0xb8] sm:$0xf0] }
 0x140   : > { %3026 = vmatpush.bf16.msra.mxu3 %v8045_v47  ;;  %v8073_v37 = vor.u32 %v10481_v43, %v8070_v56  ;;  %v2303_v9 = vperm.slane %v12732_v0, 0  ;;  %v8030_v43 = vld [vmem:[#allocation2 + $0x98] sm:$0xf0]  ;;  %s13352_s1 = sld [smem:[#allocation29_spill]] }
 0x141   : > { %3062 = vmatpush.bf16.msrb.mxu2 %v8261_v30  ;;  %v7974_v30 = vld [vmem:[#allocation2 + $0x28] sm:$0xf0] }
 0x142   : > { %3041 = vmatpush.bf16.msrb.mxu0 %v8093_v50  ;;  %v7993_v50 = vor.u32 %v10461_v44, %v7990_v51  ;;  %v7977_v35 = vor.u32 %v10457_v28, %v7974_v30  ;;  %v10518_v44 = vld [vmem:[#allocation2 + $0x204] sm:$0xf0]  ;;  %v8316_v51 = vld [vmem:[#allocation2 + $0x2d0] sm:$0xf]  ;;  %v8049_v30 = vor.u32 %v10475_v23, %v8046_v27 }
 0x143   : > { %3052 = vmatpush.bf16.msrb.mxu1 %v8173_v58  ;;  %v8221_v58 = vor.u32 %v10520_v54, %v8220_v48 }
 0x144   : > { %3027 = vmatpush.bf16.msra.mxu3 %v8037_v39 }
 0x145   : > { %3063 = vmatpush.bf16.msrb.mxu2 %v8253_v59  ;;  %v10546_v59 = vld [vmem:[#allocation2 + $0x2e4] sm:$0xf0] }
 0x146   : > { %3042 = vmatpush.bf16.msrb.mxu0 %v8085_v26  ;;  %v10459_v26 = vld [vmem:[#allocation2 + $0x34] sm:$0xf] }
 0x147   : > { %3053 = vmatpush.bf16.msrb.mxu1 %v8165_v3  ;;  %v7985_v14 = vor.u32 %v10459_v26, %v7982_v7  ;;  %v10542_v26 = vld [vmem:[#allocation2 + $0x2c4] sm:$0xf0]  ;;  %v10477_v7 = vld [vmem:[#allocation2 + $0xc4] sm:$0xf] }
 0x148   : > { %3028 = vmatpush.bf16.msra.mxu3 %v8029_v5 }
 0x149   : > { %3064 = vmatpush.bf16.msrb.mxu2 %v8245_v12  ;;  %v8212_v12 = vld [vmem:[#allocation2 + $0x200] sm:$0xf] }
 0x14a   : > { %3087 = vmatpush.bf16.msra.mxu0 %v8017_v21  ;;  %v10502_v21 = vld [vmem:[#allocation2 + $0x184] sm:$0xf0] }
 0x14b   : > { %3054 = vmatpush.bf16.msrb.mxu1 %v8157_v10  ;;  %v8149_v24 = vor.u32 %v10502_v21, %v8148_v18  ;;  %v8057_v18 = vor.u32 %v10477_v7, %v8054_v17  ;;  %v8300_v21 = vld [vmem:[#allocation2 + $0x2b0] sm:$0xf] }
 0x14c   : > { %3029 = vmatpush.bf16.msra.mxu3 %v8021_v20  ;;  %v8301_v6 = vor.u32 %v10540_v22, %v8300_v21 }
 0x14d   : > { %3065 = vmatpush.bf16.msrb.mxu2 %v8237_v11  ;;  %v8308_v11 = vld [vmem:[#allocation2 + $0x2c0] sm:$0xf] }
 0x14e   : > { %3088 = vmatpush.bf16.msra.mxu0 %v8009_v33  ;;  %v8309_v16 = vor.u32 %v10542_v26, %v8308_v11 }
 0x14f   : > { %3055 = vmatpush.bf16.msrb.mxu1 %v8149_v24  ;;  %v1646_v24 = vperm.slane %v12710_v63, 1 }
 0x150   : > { %3074 = vmatpush.bf16.msrb.mxu3 %v8333_v29 }
 0x151   : > { %3066 = vmatpush.bf16.msrb.mxu2 %v8229_v25 }
 0x152   : > { %3089 = vmatpush.bf16.msra.mxu0 %v8001_v42 }
 0x153   : > { %3100 = vmatpush.bf16.msra.mxu1 %v8081_v36  ;;  %v8293_v36 = vor.u32 %v10538_v32, %v8292_v31 }
 0x155   : > { %3067 = vmatpush.bf16.msrb.mxu2 %v8221_v58 }
 0x156   : > { %3090 = vmatpush.bf16.msra.mxu0 %v7993_v50  ;;  %v10453_v50 = vld [vmem:[#allocation2 + $0x4] sm:$0xf] }
 0x157   : > { %3101 = vmatpush.bf16.msra.mxu1 %v8073_v37  ;;  %v7961_v45 = vor.u32 %v10453_v50, %v7958_v4  ;;  %v10469_v50 = vld [vmem:[#allocation2 + $0x84] sm:$0xf]  ;;  %v8022_v4 = vld [vmem:[#allocation2 + $0x88] sm:$0xf0] }
 0x158   : > { %v8025_v7 = vor.u32 %v10469_v50, %v8022_v4  ;;  %v10527_v50 = vld [vmem:[#allocation2 + $0x254] sm:$0xf]  ;;  %v8254_v4 = vld [vmem:[#allocation2 + $0x258] sm:$0xf0] }
 0x15a   : > { %3091 = vmatpush.bf16.msra.mxu0 %v7985_v14 }
 0x15e   : > { %3092 = vmatpush.bf16.msra.mxu0 %v7977_v35 }
 0x162   : > { %3093 = vmatpush.bf16.msra.mxu0 %v7969_v49  ;;  %v10471_v49 = vld [vmem:[#allocation2 + $0x94] sm:$0xf] }
 0x166   : > { %3094 = vmatpush.bf16.msra.mxu0 %v7961_v45 }
 0x17b   : > { %v12705_v41 = vpop.f32.mrf.mxu0 }
 0x17e   : > { %v12703_v19 = vpop.f32.mrf.mxu2 }
 0x17f   : > { %v2139_v8 = vadd.f32 %v12703_v19, %v1645_v1 }
 0x183   : > { %v12720_v13 = vpop.f32.mrf.mxu0 }
 0x186   : > { %v12715_v2 = vpop.f32.mrf.mxu2 }
 0x187   : > { %v2141_v42 = vadd.f32 %v12715_v2, %v1645_v1  ;;  %v8213_v1 = vor.u32 %v10518_v44, %v8212_v12  ;;  %v10544_v2 = vld [vmem:[#allocation2 + $0x2d4] sm:$0xf0]  ;;  %v8033_v12 = vor.u32 %v10471_v49, %v8030_v43  ;;  %v8276_v44 = vld [vmem:[#allocation2 + $0x280] sm:$0xf]  ;;  %v10529_v49 = vld [vmem:[#allocation2 + $0x264] sm:$0xf] }
 0x188   : > { %v8262_v43 = vld [vmem:[#allocation2 + $0x268] sm:$0xf0] }
 0x189   : > { %3068 = vmatpush.bf16.msrb.mxu2 %v8213_v1 }
 0x18b   : > { %v2222_v53 = vpop.f32.mrf.mxu0 }
 0x18c   : > { %v2223_v63 = vadd.f32 %v2222_v53, %v1646_v24 }
 0x18e   : > { %v2194_v33 = vpop.f32.mrf.mxu2 }
 0x18f   : > { %v12712_v55 = vpop.f32.mrf.mxu1 }
 0x192   : > { %v2152_v46 = vpop.f32.mrf.mxu3 }
 0x193   : > { %v2153_v15 = vadd.f32 %v2152_v46, %v2139_v8  ;;  %v8062_v46 = vld [vmem:[#allocation2 + $0xd8] sm:$0xf0]  ;;  %v2224_v28 = vpop.f32.mrf.mxu0 }
 0x194   : > { %v8065_v38 = vor.u32 %v10479_v52, %v8062_v46 }
 0x195   : > { %v2167_v34 = vadd.f32 %v12705_v41, %v2153_v15  ;;  %v8325_v41 = vor.u32 %v10546_v59, %v8324_v57 }
 0x196   : > { %v2196_v14 = vpop.f32.mrf.mxu2  ;;  %3102 = vmatpush.bf16.msra.mxu1 %v8065_v38 }
 0x197   : > { %v12722_v19 = vpop.f32.mrf.mxu1  ;;  %v2181_v39 = vadd.f32 %v12712_v55, %v2167_v34  ;;  %3075 = vmatpush.bf16.msrb.mxu3 %v8325_v41  ;;  %v8317_v55 = vor.u32 %v10544_v2, %v8316_v51  ;;  %v10536_v41 = vld [vmem:[#allocation2 + $0x294] sm:$0xf0]  ;;  %v10534_v51 = vld [vmem:[#allocation2 + $0x284] sm:$0xf0] }
 0x199   : > { %v2195_v40 = vadd.f32 %v2194_v33, %v2181_v39  ;;  %v10473_v33 = vld [vmem:[#allocation2 + $0xa4] sm:$0xf] }
 0x19a   : > { %v2154_v47 = vpop.f32.mrf.mxu3  ;;  %3103 = vmatpush.bf16.msra.mxu1 %v8057_v18  ;;  %v10499_v18 = vld [vmem:[#allocation2 + $0x174] sm:$0xf] }
 0x19b   : > { %v2155_v3 = vadd.f32 %v2154_v47, %v2141_v42  ;;  %3076 = vmatpush.bf16.msrb.mxu3 %v8317_v55  ;;  %v8038_v47 = vld [vmem:[#allocation2 + $0xa8] sm:$0xf0]  ;;  %v8284_v42 = vld [vmem:[#allocation2 + $0x290] sm:$0xf]  ;;  %v2225_v55 = vadd.f32 %v2224_v28, %v1646_v24  ;;  %v2278_v45 = vpop.f32.mrf.mxu0 }
 0x19c   : > { %v8041_v59 = vor.u32 %v10473_v33, %v8038_v47  ;;  %v8285_v37 = vor.u32 %v10536_v41, %v8284_v42  ;;  %v8134_v41 = vld [vmem:[#allocation2 + $0x168] sm:$0xf0] }
 0x19d   : > { %v2169_v8 = vadd.f32 %v12720_v13, %v2155_v3 }
 0x19e   : > { %3104 = vmatpush.bf16.msra.mxu1 %v8049_v30  ;;  %v8270_v30 = vld [vmem:[#allocation2 + $0x278] sm:$0xf0] }
 0x19f   : > { %v2236_v5 = vpop.f32.mrf.mxu1  ;;  %v2183_v20 = vadd.f32 %v12722_v19, %v2169_v8  ;;  %3077 = vmatpush.bf16.msrb.mxu3 %v8309_v16  ;;  %v2250_v61 = vpop.f32.mrf.mxu2 }
 0x1a0   : > { %v2237_v62 = vadd.f32 %v2236_v5, %v2223_v63  ;;  %v8277_v5 = vor.u32 %v10534_v51, %v8276_v44 }
 0x1a1   : > { %v2197_v19 = vadd.f32 %v2196_v14, %v2183_v20 }
 0x1a2   : > { %v2208_v10 = vpop.f32.mrf.mxu3  ;;  %3105 = vmatpush.bf16.msra.mxu1 %v8041_v59  ;;  %v2251_v2 = vadd.f32 %v2250_v61, %v2237_v62 }
 0x1a3   : > { %v2209_v15 = vadd.f32 %v2208_v10, %v2195_v40  ;;  %3078 = vmatpush.bf16.msrb.mxu3 %v8301_v6  ;;  %v2304_v40 = vperm.slane %v12732_v0, 1 }
 0x1a5   : > { %vm2297_vm14 = vcmp.ge.f32.partialorder %v2209_v15, 0.0  ;;  %v2307_v13 = vmul.f32 %v2303_v9, %v2209_v15 }
 0x1a6   : > { %3106 = vmatpush.bf16.msra.mxu1 %v8033_v12  ;;  %v8126_v12 = vld [vmem:[#allocation2 + $0x158] sm:$0xf0] }
 0x1a7   : > { %v2311_v25 = vsel %vm2297_vm14, %v2209_v15, %v2307_v13  ;;  %v2238_v48 = vpop.f32.mrf.mxu1  ;;  %3079 = vmatpush.bf16.msrb.mxu3 %v8293_v36  ;;  %v8142_v13 = vld [vmem:[#allocation2 + $0x178] sm:$0xf0]  ;;  %v2252_v24 = vpop.f32.mrf.mxu2 }
 0x1a8   : > { %2315 = vst [vmem:[%s12741_s16] sm:$0xff] %v2311_v25  ;;  %v2323_v29 = vrot.slane %v2311_v25, 7  ;;  %v2239_v11 = vadd.f32 %v2238_v48, %v2225_v55 }
 0x1aa   : > { %v12747_v34 = vsel %vm991_vm0, 0.0, %v2323_v29  ;;  %v2210_v35 = vpop.f32.mrf.mxu3  ;;  %v2253_v31 = vadd.f32 %v2252_v24, %v2239_v11  ;;  %3107 = vmatpush.bf16.msra.mxu1 %v8025_v7  ;;  %v10493_v7 = vld [vmem:[#allocation2 + $0x144] sm:$0xf] }
 0x1ab   : > { %v2341_v54 = vrot.slane %v12747_v34, 1  ;;  %v2345_v57 = vrot.slane %v12747_v34, 2  ;;  %v2211_v58 = vadd.f32 %v2210_v35, %v2197_v19  ;;  %v2349_v56 = vrot.slane %v12747_v34, 3  ;;  %3080 = vmatpush.bf16.msrb.mxu3 %v8285_v37 }
 0x1ac   : > { %v2383_v10 = vrot.slane %v12747_v34, 4 }
 0x1ad   : > { %vm2299_vm15 = vcmp.ge.f32.partialorder %v2211_v58, 0.0  ;;  %v2309_v39 = vmul.f32 %v2303_v9, %v2211_v58  ;;  %v2369_v53 = vsel %vm991_vm0, %v12747_v34, %v2341_v54  ;;  %v2387_v3 = vsel %vm991_vm0, %v2341_v54, %v2345_v57 }
 0x1ae   : > { %v2371_v9 = vsel %vm1036_vm1, %v2369_v53, %v2345_v57  ;;  %v2389_v38 = vsel %vm1036_vm1, %v2387_v3, %v2349_v56  ;;  %v2407_v20 = vsel %vm991_vm0, %v2345_v57, %v2349_v56  ;;  %v8145_v34 = vor.u32 %v10499_v18, %v8142_v13  ;;  %v10495_v3 = vld [vmem:[#allocation2 + $0x154] sm:$0xf]  ;;  %v10525_v18 = vld [vmem:[#allocation2 + $0x244] sm:$0xf]  ;;  %v8246_v13 = vld [vmem:[#allocation2 + $0x248] sm:$0xf0] }
 0x1af   : > { %v12755_v1 = vsel %vm2299_vm15, %v2211_v58, %v2309_v39  ;;  %v2292_v14 = vpop.f32.mrf.mxu1  ;;  %v2373_v22 = vsel %vm1038_vm2, %v2371_v9, %v2349_v56  ;;  %v2391_v23 = vsel %vm1038_vm2, %v2389_v38, %v2383_v10  ;;  %3081 = vmatpush.bf16.msrb.mxu3 %v8277_v5  ;;  %v2409_v47 = vsel %vm1036_vm1, %v2407_v20, %v2383_v10  ;;  %v10497_v58 = vld [vmem:[#allocation2 + $0x164] sm:$0xf]  ;;  %v2280_v56 = vpop.f32.mrf.mxu0 }
 0x1b0   : > { %2317 = vst [vmem:[%s12741_s16 + $0x10] sm:$0xff] %v12755_v1  ;;  %v2325_v52 = vrot.slane %v12755_v1, 7  ;;  %v8137_v51 = vor.u32 %v10497_v58, %v8134_v41  ;;  %v8129_v38 = vor.u32 %v10495_v3, %v8126_v12  ;;  %v10491_v1 = vld [vmem:[#allocation2 + $0x134] sm:$0xf]  ;;  %v8249_v24 = vor.u32 %v10525_v18, %v8246_v13  ;;  %v8230_v58 = vld [vmem:[#allocation2 + $0x228] sm:$0xf0] }
 0x1b1   : > { %v10485_v18 = vld [vmem:[#allocation2 + $0x104] sm:$0xf]  ;;  %v8086_v13 = vld [vmem:[#allocation2 + $0x108] sm:$0xf0] }
 0x1b2   : > { %v2264_v46 = vpop.f32.mrf.mxu3  ;;  %v12767_v26 = vsel %vm991_vm0, %v2323_v29, %v2325_v52  ;;  %v10531_v29 = vld [vmem:[#allocation2 + $0x274] sm:$0xf] }
 0x1b3   : > { %v2265_v8 = vadd.f32 %v2264_v46, %v2251_v2  ;;  %v2353_v16 = vrot.slane %v12767_v26, 4  ;;  %v2357_v17 = vrot.slane %v12767_v26, 5  ;;  %v2361_v21 = vrot.slane %v12767_v26, 6 }
 0x1b4   : > { %v2365_v6 = vrot.slane %v12767_v26, 7  ;;  %v8273_v57 = vor.u32 %v10531_v29, %v8270_v30  ;;  %v8265_v2 = vor.u32 %v10529_v49, %v8262_v43  ;;  %v10547_v43 = vld [vmem:[#allocation2 + $0x2f4] sm:$0xf] }
 0x1b5   : > { %v2279_v15 = vadd.f32 %v2278_v45, %v2265_v8  ;;  %v2375_v27 = vsel %vm1040_vm3, %v2373_v22, %v2353_v16  ;;  %v2393_v28 = vsel %vm1040_vm3, %v2391_v23, %v2357_v17  ;;  %v2411_v37 = vsel %vm1038_vm2, %v2409_v47, %v2357_v17  ;;  %v8110_v23 = vld [vmem:[#allocation2 + $0x138] sm:$0xf0] }
 0x1b6   : > { %v2377_v32 = vsel %vm1042_vm4, %v2375_v27, %v2357_v17  ;;  %v2395_v33 = vsel %vm1042_vm4, %v2393_v28, %v2361_v21  ;;  %v2413_v5 = vsel %vm1040_vm3, %v2411_v37, %v2361_v21  ;;  %v8257_v8 = vor.u32 %v10527_v50, %v8254_v4 }
 0x1b7   : > { %v2293_v25 = vadd.f32 %v2292_v14, %v2279_v15  ;;  %v2379_v35 = vsel %vm1044_vm5, %v2377_v32, %v2361_v21  ;;  %v2397_v36 = vsel %vm1044_vm5, %v2395_v33, %v2365_v6  ;;  %v2294_v46 = vpop.f32.mrf.mxu1  ;;  %v8118_v14 = vld [vmem:[#allocation2 + $0x148] sm:$0xf0]  ;;  %v2415_v15 = vsel %vm1042_vm4, %v2413_v5, %v2365_v6  ;;  %v10513_v5 = vld [vmem:[#allocation2 + $0x1e4] sm:$0xf] }
 0x1b8   : > { %v2381_v48 = vsel %vm1046_vm6, %v2379_v35, %v2365_v6  ;;  %v2399_v54 = vsel %vm1046_vm6, %v2397_v36, %v12767_v26  ;;  %v2337_v16 = vsel %vm991_vm0, %v2325_v52, 0.0  ;;  %v2417_v22 = vsel %vm1044_vm5, %v2415_v15, %v12767_v26  ;;  %v8238_v6 = vld [vmem:[#allocation2 + $0x238] sm:$0xf0]  ;;  %v10489_v26 = vld [vmem:[#allocation2 + $0x124] sm:$0xf] }
 0x1b9   : > { %vm2298_vm7 = vcmp.ge.f32.partialorder %v2293_v25, 0.0  ;;  %v2308_v19 = vmul.f32 %v2304_v40, %v2293_v25  ;;  %v12788_v62 = vpack.c.bf16 %v2381_v48, %v2381_v48  ;;  %v12790_v42 = vpack.c.bf16 %v2399_v54, %v2399_v54  ;;  %v10515_v35 = vld [vmem:[#allocation2 + $0x1f4] sm:$0xf]  ;;  %v8206_v54 = vld [vmem:[#allocation2 + $0x1f8] sm:$0xf0] }
 0x1ba   : > { %v2266_v63 = vpop.f32.mrf.mxu3  ;;  %v2403_v52 = vrot.slane %v2337_v16, 1  ;;  %v8113_v36 = vor.u32 %v10491_v1, %v8110_v23  ;;  %v8190_v1 = vld [vmem:[#allocation2 + $0x1d8] sm:$0xf0]  ;;  %v10543_v23 = vld [vmem:[#allocation2 + $0x2d4] sm:$0xf] }
 0x1bb   : > { %v2312_v59 = vsel %vm2298_vm7, %v2293_v25, %v2308_v19  ;;  %v2267_v61 = vadd.f32 %v2266_v63, %v2253_v31  ;;  %3017 = vmatmul.bf16.vlgmr.msra.gmra.mxu2 %v12788_v62  ;;  %3043 = vmatmul.bf16.vlgmr.msrb.gmra.mxu0 %v12790_v42  ;;  %v10523_v25 = vld [vmem:[#allocation2 + $0x234] sm:$0xf]  ;;  %v8102_v31 = vld [vmem:[#allocation2 + $0x128] sm:$0xf0] }
 0x1bc   : > { %2316 = vst [vmem:[%s12741_s16 + $0x8] sm:$0xff] %v2312_v59  ;;  %v2324_v39 = vrot.slane %v2312_v59, 7  ;;  %3113 = vmatpush.bf16.msra.mxu2 %v8145_v34  ;;  %3139 = vmatpush.bf16.msrb.mxu0 %v8273_v57  ;;  %v2419_v32 = vsel %vm1046_vm6, %v2417_v22, %v2403_v52  ;;  %v8241_v47 = vor.u32 %v10523_v25, %v8238_v6  ;;  %v10521_v57 = vld [vmem:[#allocation2 + $0x224] sm:$0xf]  ;;  %v8318_v52 = vld [vmem:[#allocation2 + $0x2d8] sm:$0xf0] }
 0x1bd   : > { %v2281_v53 = vadd.f32 %v2280_v56, %v2267_v61  ;;  %v8105_v49 = vor.u32 %v10489_v26, %v8102_v31  ;;  %v8334_v56 = vld [vmem:[#allocation2 + $0x2f8] sm:$0xf0]  ;;  %v10517_v25 = vld [vmem:[#allocation2 + $0x204] sm:$0xf]  ;;  %v8214_v6 = vld [vmem:[#allocation2 + $0x208] sm:$0xf0] }
 0x1be   : > { %v12797_v44 = vsel %vm991_vm0, 0.0, %v2324_v39  ;;  %v10596_v26 = vld [vmem:[#allocation4 + $0x174] sm:$0xf0] }
 0x1bf   : > { %v2342_v55 = vrot.slane %v12797_v44, 1  ;;  %v2346_v45 = vrot.slane %v12797_v44, 2  ;;  %v2295_v9 = vadd.f32 %v2294_v46, %v2281_v53  ;;  %v2350_v10 = vrot.slane %v12797_v44, 3  ;;  %v10487_v46 = vld [vmem:[#allocation2 + $0x114] sm:$0xf] }
 0x1c0   : > { %3114 = vmatpush.bf16.msra.mxu2 %v8137_v51  ;;  %3140 = vmatpush.bf16.msrb.mxu0 %v8265_v2  ;;  %v2384_v29 = vrot.slane %v12797_v44, 4  ;;  %v8209_v51 = vor.u32 %v10515_v35, %v8206_v54  ;;  %v8233_v2 = vor.u32 %v10521_v57, %v8230_v58  ;;  %v8217_v35 = vor.u32 %v10517_v25, %v8214_v6  ;;  %v8364_v25 = vld [vmem:[#allocation4 + $0x30] sm:$0xf]  ;;  %v10556_v6 = vld [vmem:[#allocation4 + $0x34] sm:$0xf0] }
 0x1c1   : > { %vm2300_vm8 = vcmp.ge.f32.partialorder %v2295_v9, 0.0  ;;  %v2310_v11 = vmul.f32 %v2304_v40, %v2295_v9  ;;  %v2370_v17 = vsel %vm991_vm0, %v12797_v44, %v2342_v55  ;;  %v2388_v20 = vsel %vm991_vm0, %v2342_v55, %v2346_v45 }
 0x1c2   : > { %v8121_v40 = vor.u32 %v10493_v7, %v8118_v14  ;;  %v2372_v27 = vsel %vm1036_vm1, %v2370_v17, %v2346_v45  ;;  %v2390_v28 = vsel %vm1036_vm1, %v2388_v20, %v2350_v10  ;;  %v2408_v3 = vsel %vm991_vm0, %v2346_v45, %v2350_v10  ;;  %v10519_v7 = vld [vmem:[#allocation2 + $0x214] sm:$0xf]  ;;  %v8222_v14 = vld [vmem:[#allocation2 + $0x218] sm:$0xf0] }
 0x1c3   : > { %v12812_v21 = vsel %vm2300_vm8, %v2295_v9, %v2310_v11  ;;  %v2374_v63 = vsel %vm1038_vm2, %v2372_v27, %v2350_v10  ;;  %v2392_v48 = vsel %vm1038_vm2, %v2390_v28, %v2384_v29  ;;  %v8337_v55 = vor.u32 %v10547_v43, %v8334_v56  ;;  %v8326_v10 = vld [vmem:[#allocation2 + $0x2e8] sm:$0xf0]  ;;  %v10511_v20 = vld [vmem:[#allocation2 + $0x1d4] sm:$0xf]  ;;  %v8396_v27 = vld [vmem:[#allocation4 + $0x70] sm:$0xf] }
 0x1c4   : > { %2318 = vst [vmem:[%s12741_s16 + $0x18] sm:$0xff] %v12812_v21  ;;  %v2327_v0 = vrot.slane %v12812_v21, 7  ;;  %3115 = vmatpush.bf16.msra.mxu2 %v8129_v38  ;;  %3141 = vmatpush.bf16.msrb.mxu0 %v8257_v8  ;;  %v8198_v38 = vld [vmem:[#allocation2 + $0x1e8] sm:$0xf0]  ;;  %v10545_v8 = vld [vmem:[#allocation2 + $0x2e4] sm:$0xf]  ;;  %v2410_v11 = vsel %vm1036_vm1, %v2408_v3, %v2384_v29  ;;  %v8225_v22 = vor.u32 %v10519_v7, %v8222_v14 }
 0x1c5   : > { %v8201_v16 = vor.u32 %v10513_v5, %v8198_v38  ;;  %v8329_v17 = vor.u32 %v10545_v8, %v8326_v10  ;;  %v10564_v28 = vld [vmem:[#allocation4 + $0x74] sm:$0xf0]  ;;  %v8524_v29 = vld [vmem:[#allocation4 + $0x170] sm:$0xf]  ;;  %v8193_v31 = vor.u32 %v10511_v20, %v8190_v1  ;;  %v10507_v21 = vld [vmem:[#allocation2 + $0x1b4] sm:$0xf] }
 0x1c6   : > { %v12825_v30 = vsel %vm991_vm0, %v2324_v39, %v2327_v0  ;;  %v12836_v39 = vpack.c.bf16 %v2419_v32, %v2419_v32  ;;  %v8321_v32 = vor.u32 %v10543_v23, %v8318_v52  ;;  %v8397_v54 = vor.u32 %v10564_v28, %v8396_v27  ;;  %v8174_v56 = vld [vmem:[#allocation2 + $0x1b8] sm:$0xf0]  ;;  %v10533_v7 = vld [vmem:[#allocation2 + $0x284] sm:$0xf]  ;;  %v8278_v14 = vld [vmem:[#allocation2 + $0x288] sm:$0xf0] }
 0x1c7   : > { %v2354_v33 = vrot.slane %v12825_v30, 4  ;;  %v2358_v34 = vrot.slane %v12825_v30, 5  ;;  %v2362_v19 = vrot.slane %v12825_v30, 6  ;;  %v2366_v59 = vrot.slane %v12825_v30, 7  ;;  %v8158_v5 = vld [vmem:[#allocation2 + $0x198] sm:$0xf0] }
 0x1c8   : > { %3116 = vmatpush.bf16.msra.mxu2 %v8121_v40  ;;  %3142 = vmatpush.bf16.msrb.mxu0 %v8249_v24  ;;  %v8525_v57 = vor.u32 %v10596_v26, %v8524_v29  ;;  %v8286_v38 = vld [vmem:[#allocation2 + $0x298] sm:$0xf0]  ;;  %v10594_v20 = vld [vmem:[#allocation4 + $0x164] sm:$0xf0]  ;;  %v8508_v23 = vld [vmem:[#allocation4 + $0x150] sm:$0xf] }
 0x1c9   : > { %v2376_v61 = vsel %vm1040_vm3, %v2374_v63, %v2354_v33  ;;  %v2394_v41 = vsel %vm1040_vm3, %v2392_v48, %v2358_v34  ;;  %v2412_v15 = vsel %vm1038_vm2, %v2410_v11, %v2358_v34  ;;  %v10541_v63 = vld [vmem:[#allocation2 + $0x2c4] sm:$0xf]  ;;  %v8310_v48 = vld [vmem:[#allocation2 + $0x2c8] sm:$0xf0]  ;;  %v10558_v1 = vld [vmem:[#allocation4 + $0x44] sm:$0xf0] }
 0x1ca   : > { %v2378_v37 = vsel %vm1042_vm4, %v2376_v61, %v2358_v34  ;;  %v2396_v53 = vsel %vm1042_vm4, %v2394_v41, %v2362_v19  ;;  %v2414_v24 = vsel %vm1040_vm3, %v2412_v15, %v2362_v19  ;;  %v8089_v34 = vor.u32 %v10485_v18, %v8086_v13  ;;  %v8388_v61 = vld [vmem:[#allocation4 + $0x60] sm:$0xf]  ;;  %v10562_v41 = vld [vmem:[#allocation4 + $0x64] sm:$0xf0]  ;;  %v10501_v11 = vld [vmem:[#allocation2 + $0x184] sm:$0xf] }
 0x1cb   : > { %v2380_v12 = vsel %vm1044_vm5, %v2378_v37, %v2362_v19  ;;  %v2398_v44 = vsel %vm1044_vm5, %v2396_v53, %v2366_v59  ;;  %3069 = vmatmul.bf16.vlgmr.msrb.gmra.mxu2 %v12836_v39  ;;  %3095 = vmatmul.bf16.vlgmr.msra.gmra.mxu0 %v12788_v62  ;;  %v8094_v62 = vld [vmem:[#allocation2 + $0x118] sm:$0xf0]  ;;  %v2416_v33 = vsel %vm1042_vm4, %v2414_v24, %v2366_v59  ;;  %v2338_v19 = vsel %vm991_vm0, %v2327_v0, 0.0  ;;  %v10539_v37 = vld [vmem:[#allocation2 + $0x2b4] sm:$0xf] }
 0x1cc   : > { %v2382_v50 = vsel %vm1046_vm6, %v2380_v12, %v2366_v59  ;;  %v2400_v4 = vsel %vm1046_vm6, %v2398_v44, %v12825_v30  ;;  %3117 = vmatpush.bf16.msra.mxu2 %v8113_v36  ;;  %3143 = vmatpush.bf16.msrb.mxu0 %v8241_v47  ;;  %v8097_v40 = vor.u32 %v10487_v46, %v8094_v62  ;;  %v10509_v36 = vld [vmem:[#allocation2 + $0x1c4] sm:$0xf]  ;;  %v8182_v47 = vld [vmem:[#allocation2 + $0x1c8] sm:$0xf0]  ;;  %v2404_v59 = vrot.slane %v2338_v19, 1 }
 0x1cd   : > { %v12848_v45 = vpack.c.bf16 %v2382_v50, %v2382_v50  ;;  %v12850_v9 = vpack.c.bf16 %v2400_v4, %v2400_v4  ;;  %v2418_v58 = vsel %vm1044_vm5, %v2416_v33, %v12825_v30  ;;  %v8313_v43 = vor.u32 %v10541_v63, %v8310_v48  ;;  %v8302_v53 = vld [vmem:[#allocation2 + $0x2b8] sm:$0xf0]  ;;  %v10537_v50 = vld [vmem:[#allocation2 + $0x2a4] sm:$0xf]  ;;  %v8294_v4 = vld [vmem:[#allocation2 + $0x2a8] sm:$0xf0] }
 0x1ce   : > { %v2420_v0 = vsel %vm1046_vm6, %v2418_v58, %v2404_v59  ;;  %v8389_v3 = vor.u32 %v10562_v41, %v8388_v61  ;;  %v8177_v12 = vor.u32 %v10507_v21, %v8174_v56  ;;  %v8305_v44 = vor.u32 %v10539_v37, %v8302_v53  ;;  %v8150_v62 = vld [vmem:[#allocation2 + $0x188] sm:$0xf0]  ;;  %v8516_v18 = vld [vmem:[#allocation4 + $0x160] sm:$0xf]  ;;  %v10592_v24 = vld [vmem:[#allocation4 + $0x154] sm:$0xf0] }
 0x1cf   : > { %3030 = vmatmul.bf16.vlgmr.msra.gmra.mxu3 %v12848_v45  ;;  %3056 = vmatmul.bf16.vlgmr.msrb.gmra.mxu1 %v12850_v9  ;;  %v2426_v30 = vpack.c.bf16 %v2420_v0, %v2420_v0  ;;  %v8297_v46 = vor.u32 %v10537_v50, %v8294_v4  ;;  %v8153_v15 = vor.u32 %v10501_v11, %v8150_v62  ;;  %v8500_v28 = vld [vmem:[#allocation4 + $0x140] sm:$0xf]  ;;  %v10590_v29 = vld [vmem:[#allocation4 + $0x144] sm:$0xf0]  ;;  %v8460_v33 = vld [vmem:[#allocation4 + $0xf0] sm:$0xf] }
 0x1d0   : > { %3126 = vmatpush.bf16.msra.mxu3 %v8209_v51  ;;  %3152 = vmatpush.bf16.msrb.mxu1 %v8337_v55  ;;  %v10505_v51 = vld [vmem:[#allocation2 + $0x1a4] sm:$0xf]  ;;  %v8509_v27 = vor.u32 %v10592_v24, %v8508_v23  ;;  %v8501_v26 = vor.u32 %v10590_v29, %v8500_v28  ;;  %v10588_v19 = vld [vmem:[#allocation4 + $0x134] sm:$0xf0]  ;;  %v8348_v48 = vld [vmem:[#allocation4 + $0x10] sm:$0xf] }
 0x1d1   : > { %3118 = vmatpush.bf16.msra.mxu2 %v8105_v49  ;;  %3144 = vmatpush.bf16.msrb.mxu0 %v8233_v2  ;;  %v8185_v49 = vor.u32 %v10509_v36, %v8182_v47  ;;  %v8166_v2 = vld [vmem:[#allocation2 + $0x1a8] sm:$0xf0]  ;;  %v8492_v36 = vld [vmem:[#allocation4 + $0x130] sm:$0xf]  ;;  %v10578_v61 = vld [vmem:[#allocation4 + $0xe4] sm:$0xf0] }
 0x1d2   : > { %v8169_v55 = vor.u32 %v10505_v51, %v8166_v2  ;;  %v8493_v63 = vor.u32 %v10588_v19, %v8492_v36  ;;  %v8484_v41 = vld [vmem:[#allocation4 + $0x120] sm:$0xf]  ;;  %v10586_v59 = vld [vmem:[#allocation4 + $0x124] sm:$0xf0]  ;;  %v8588_v21 = vld [vmem:[#allocation4 + $0x1f0] sm:$0xf] }
 0x1d3   : > { %v10612_v0 = vld [vmem:[#allocation4 + $0x1f4] sm:$0xf0]  ;;  %v8340_v37 = vld [vmem:[#allocation4] sm:$0xf]  ;;  %v10550_v53 = vld [vmem:[#allocation4 + $0x4] sm:$0xf0] }
 0x1d4   : > { %3127 = vmatpush.bf16.msra.mxu3 %v8201_v16  ;;  %3153 = vmatpush.bf16.msrb.mxu1 %v8329_v17  ;;  %v8380_v16 = vld [vmem:[#allocation4 + $0x50] sm:$0xf]  ;;  %v10560_v17 = vld [vmem:[#allocation4 + $0x54] sm:$0xf0]  ;;  %v8589_v56 = vor.u32 %v10612_v0, %v8588_v21  ;;  %v8580_v4 = vld [vmem:[#allocation4 + $0x1e0] sm:$0xf] }
 0x1d5   : > { %3119 = vmatpush.bf16.msra.mxu2 %v8097_v40  ;;  %3145 = vmatpush.bf16.msrb.mxu0 %v8225_v22  ;;  %v8381_v13 = vor.u32 %v10560_v17, %v8380_v16  ;;  %v8517_v40 = vor.u32 %v10594_v20, %v8516_v18  ;;  %v8372_v22 = vld [vmem:[#allocation4 + $0x40] sm:$0xf]  ;;  %v10584_v51 = vld [vmem:[#allocation4 + $0x114] sm:$0xf0]  ;;  %v10582_v62 = vld [vmem:[#allocation4 + $0x104] sm:$0xf0] }
 0x1d6   : > { %v8373_v52 = vor.u32 %v10558_v1, %v8372_v22  ;;  %v8644_v16 = vld [vmem:[#allocation4 + $0x260] sm:$0xf]  ;;  %v10626_v17 = vld [vmem:[#allocation4 + $0x264] sm:$0xf0]  ;;  %v10563_v18 = vld [vmem:[#allocation4 + $0x74] sm:$0xf] }
 0x1d7   : > { %v8398_v20 = vld [vmem:[#allocation4 + $0x78] sm:$0xf0]  ;;  %v10572_v22 = vld [vmem:[#allocation4 + $0xb4] sm:$0xf0]  ;;  %v8564_v24 = vld [vmem:[#allocation4 + $0x1c0] sm:$0xf] }
 0x1d8   : > { %3128 = vmatpush.bf16.msra.mxu3 %v8193_v31  ;;  %3154 = vmatpush.bf16.msrb.mxu1 %v8321_v32  ;;  %v8356_v31 = vld [vmem:[#allocation4 + $0x20] sm:$0xf]  ;;  %v10554_v32 = vld [vmem:[#allocation4 + $0x24] sm:$0xf0]  ;;  %v8401_v23 = vor.u32 %v10563_v18, %v8398_v20  ;;  %v10624_v28 = vld [vmem:[#allocation4 + $0x254] sm:$0xf0] }
 0x1d9   : > { %3120 = vmatpush.bf16.msra.mxu2 %v8089_v34  ;;  %3146 = vmatpush.bf16.msrb.mxu0 %v8217_v35  ;;  %v8357_v34 = vor.u32 %v10554_v32, %v8356_v31  ;;  %v10580_v35 = vld [vmem:[#allocation4 + $0xf4] sm:$0xf0]  ;;  %v10561_v29 = vld [vmem:[#allocation4 + $0x64] sm:$0xf]  ;;  %v8420_v32 = vld [vmem:[#allocation4 + $0xa0] sm:$0xf] }
 0x1da   : > { %v8461_v47 = vor.u32 %v10580_v35, %v8460_v33  ;;  %v10570_v33 = vld [vmem:[#allocation4 + $0xa4] sm:$0xf0]  ;;  %v10604_v36 = vld [vmem:[#allocation4 + $0x1b4] sm:$0xf0]  ;;  %v8604_v18 = vld [vmem:[#allocation4 + $0x210] sm:$0xf] }
 0x1db   : > { %v8421_v35 = vor.u32 %v10570_v33, %v8420_v32  ;;  %v10602_v0 = vld [vmem:[#allocation4 + $0x1a4] sm:$0xf0]  ;;  %v8708_v20 = vld [vmem:[#allocation4 + $0x2e0] sm:$0xf]  ;;  %v8700_v32 = vld [vmem:[#allocation4 + $0x2d0] sm:$0xf] }
 0x1dc   : > { %3121 = vmatmul.bf16.vlgmr.msra.gmra.mxu2 %v12790_v42  ;;  %3147 = vmatmul.bf16.vlgmr.msrb.gmra.mxu0 %v12836_v39  ;;  %v10503_v42 = vld [vmem:[#allocation2 + $0x194] sm:$0xf] }
 0x1dd   : > { %3795 = vmatpush.bf16.msrb.mxu2 %v8397_v54  ;;  %3821 = vmatpush.bf16.msra.mxu0 %v8525_v57  ;;  %v10535_v39 = vld [vmem:[#allocation2 + $0x294] sm:$0xf]  ;;  %v8161_v8 = vor.u32 %v10503_v42, %v8158_v5  ;;  %v10552_v54 = vld [vmem:[#allocation4 + $0x14] sm:$0xf0]  ;;  %v8452_v57 = vld [vmem:[#allocation4 + $0xe0] sm:$0xf] }
 0x1de   : > { %3129 = vmatpush.bf16.msra.mxu3 %v8185_v49  ;;  %3155 = vmatpush.bf16.msrb.mxu1 %v8313_v43  ;;  %v8289_v10 = vor.u32 %v10535_v39, %v8286_v38  ;;  %v8349_v58 = vor.u32 %v10552_v54, %v8348_v48  ;;  %v8453_v49 = vor.u32 %v10578_v61, %v8452_v57  ;;  %v10628_v5 = vld [vmem:[#allocation4 + $0x274] sm:$0xf0]  ;;  %v8436_v38 = vld [vmem:[#allocation4 + $0xc0] sm:$0xf]  ;;  %v10559_v48 = vld [vmem:[#allocation4 + $0x54] sm:$0xf] }
 0x1df   : > { %3082 = vmatmul.bf16.vlgmr.msrb.gmra.mxu3 %v2426_v30  ;;  %3108 = vmatmul.bf16.vlgmr.msra.gmra.mxu1 %v12848_v45  ;;  %v8281_v45 = vor.u32 %v10533_v7, %v8278_v14  ;;  %v8485_v43 = vor.u32 %v10586_v59, %v8484_v41  ;;  %v8572_v7 = vld [vmem:[#allocation4 + $0x1d0] sm:$0xf]  ;;  %v10608_v14 = vld [vmem:[#allocation4 + $0x1d4] sm:$0xf0]  ;;  %v8382_v57 = vld [vmem:[#allocation4 + $0x58] sm:$0xf0] }
 0x1e0   : > { %v8385_v61 = vor.u32 %v10559_v48, %v8382_v57  ;;  %v8412_v41 = vld [vmem:[#allocation4 + $0x90] sm:$0xf]  ;;  %v10568_v59 = vld [vmem:[#allocation4 + $0x94] sm:$0xf0]  ;;  %v8454_v57 = vld [vmem:[#allocation4 + $0xe8] sm:$0xf0] }
 0x1e1   : > { %3796 = vmatpush.bf16.msrb.mxu2 %v8389_v3  ;;  %3822 = vmatpush.bf16.msra.mxu0 %v8517_v40  ;;  %v8444_v3 = vld [vmem:[#allocation4 + $0xd0] sm:$0xf]  ;;  %v8413_v21 = vor.u32 %v10568_v59, %v8412_v41  ;;  %v8692_v41 = vld [vmem:[#allocation4 + $0x2c0] sm:$0xf]  ;;  %v10638_v59 = vld [vmem:[#allocation4 + $0x2c4] sm:$0xf0] }
 0x1e2   : > { %3130 = vmatpush.bf16.msra.mxu3 %v8177_v12  ;;  %3156 = vmatpush.bf16.msrb.mxu1 %v8305_v44  ;;  %v10576_v12 = vld [vmem:[#allocation4 + $0xd4] sm:$0xf0]  ;;  %v8476_v44 = vld [vmem:[#allocation4 + $0x110] sm:$0xf] }
 0x1e3   : > { %v8445_v2 = vor.u32 %v10576_v12, %v8444_v3  ;;  %v8477_v50 = vor.u32 %v10584_v51, %v8476_v44  ;;  %v8428_v40 = vld [vmem:[#allocation4 + $0xb0] sm:$0xf]  ;;  %v8374_v12 = vld [vmem:[#allocation4 + $0x48] sm:$0xf0]  ;;  %v8404_v51 = vld [vmem:[#allocation4 + $0x80] sm:$0xf] }
 0x1e5   : > { %3797 = vmatpush.bf16.msrb.mxu2 %v8381_v13  ;;  %3823 = vmatpush.bf16.msra.mxu0 %v8509_v27  ;;  %v8645_v13 = vor.u32 %v10626_v17, %v8644_v16  ;;  %v10598_v16 = vld [vmem:[#allocation4 + $0x184] sm:$0xf0] }
 0x1e6   : > { %3131 = vmatpush.bf16.msra.mxu3 %v8169_v55  ;;  %3157 = vmatpush.bf16.msrb.mxu1 %v8297_v46  ;;  %v10610_v55 = vld [vmem:[#allocation4 + $0x1e4] sm:$0xf0]  ;;  %v8652_v46 = vld [vmem:[#allocation4 + $0x270] sm:$0xf] }
 0x1e7   : > { %v8581_v42 = vor.u32 %v10610_v55, %v8580_v4  ;;  %v8653_v39 = vor.u32 %v10628_v5, %v8652_v46  ;;  %v8540_v4 = vld [vmem:[#allocation4 + $0x190] sm:$0xf]  ;;  %v10600_v55 = vld [vmem:[#allocation4 + $0x194] sm:$0xf0]  ;;  %v8612_v5 = vld [vmem:[#allocation4 + $0x220] sm:$0xf] }
 0x1e9   : > { %3798 = vmatpush.bf16.msrb.mxu2 %v8373_v52  ;;  %3824 = vmatpush.bf16.msra.mxu0 %v8501_v26  ;;  %v8429_v52 = vor.u32 %v10572_v22, %v8428_v40  ;;  %v10642_v22 = vld [vmem:[#allocation4 + $0x2e4] sm:$0xf0] }
 0x1ea   : > { %3132 = vmatpush.bf16.msra.mxu3 %v8161_v8  ;;  %3158 = vmatpush.bf16.msrb.mxu1 %v8289_v10  ;;  %v10574_v8 = vld [vmem:[#allocation4 + $0xc4] sm:$0xf0]  ;;  %v8468_v10 = vld [vmem:[#allocation4 + $0x100] sm:$0xf] }
 0x1eb   : > { %v8437_v11 = vor.u32 %v10574_v8, %v8436_v38  ;;  %v8716_v38 = vld [vmem:[#allocation4 + $0x2f0] sm:$0xf] }
 0x1ed   : > { %3825 = vmatpush.bf16.msra.mxu0 %v8493_v63  ;;  %v10622_v63 = vld [vmem:[#allocation4 + $0x244] sm:$0xf0] }
 0x1ee   : > { %3133 = vmatpush.bf16.msra.mxu3 %v8153_v15  ;;  %3159 = vmatpush.bf16.msrb.mxu1 %v8281_v45  ;;  %v8469_v15 = vor.u32 %v10582_v62, %v8468_v10  ;;  %v8573_v45 = vor.u32 %v10608_v14, %v8572_v7  ;;  %v10644_v10 = vld [vmem:[#allocation4 + $0x2f4] sm:$0xf0]  ;;  %v8366_v62 = vld [vmem:[#allocation4 + $0x38] sm:$0xf0] }
 0x1ef   : > { %v8717_v14 = vor.u32 %v10644_v10, %v8716_v38  ;;  %v10634_v10 = vld [vmem:[#allocation4 + $0x2a4] sm:$0xf0] }
 0x1f1   : > { %3134 = vmatmul.bf16.vlgmr.msra.gmra.mxu3 %v12850_v9  ;;  %3160 = vmatmul.bf16.vlgmr.msrb.gmra.mxu1 %v2426_v30  ;;  %v8365_v9 = vor.u32 %v10556_v6, %v8364_v25  ;;  %v8341_v30 = vor.u32 %v10550_v53, %v8340_v37  ;;  %v10606_v25 = vld [vmem:[#allocation4 + $0x1c4] sm:$0xf0]  ;;  %v8636_v6 = vld [vmem:[#allocation4 + $0x250] sm:$0xf]  ;;  %v10620_v37 = vld [vmem:[#allocation4 + $0x234] sm:$0xf0] }
 0x1f2   : > { %3808 = vmatpush.bf16.msrb.mxu3 %v8461_v47  ;;  %3826 = vmatpush.bf16.msra.mxu0 %v8485_v43  ;;  %v8565_v27 = vor.u32 %v10606_v25, %v8564_v24  ;;  %v8637_v26 = vor.u32 %v10624_v28, %v8636_v6  ;;  %v8628_v47 = vld [vmem:[#allocation4 + $0x240] sm:$0xf]  ;;  %v8709_v6 = vor.u32 %v10642_v22, %v8708_v20  ;;  %v10579_v28 = vld [vmem:[#allocation4 + $0xf4] sm:$0xf]  ;;  %v8422_v20 = vld [vmem:[#allocation4 + $0xa8] sm:$0xf0] }
 0x1f3   : > { %3799 = vmatpush.bf16.msrb.mxu2 %v8365_v9  ;;  %3834 = vmatpush.bf16.msra.mxu1 %v8589_v56  ;;  %v8390_v9 = vld [vmem:[#allocation4 + $0x68] sm:$0xf0]  ;;  %v8629_v54 = vor.u32 %v10622_v63, %v8628_v47  ;;  %v8620_v56 = vld [vmem:[#allocation4 + $0x230] sm:$0xf]  ;;  %v12877_v24 = vld [vmem:[%s13347_s4] sm:$0x3] }
 0x1f4   : > { %v8393_v31 = vor.u32 %v10561_v29, %v8390_v9  ;;  %v8621_v3 = vor.u32 %v10620_v37, %v8620_v56  ;;  %v8462_v29 = vld [vmem:[#allocation4 + $0xf8] sm:$0xf0] }
 0x1f5   : > { %v8465_v9 = vor.u32 %v10579_v28, %v8462_v29  ;;  %v8446_v37 = vld [vmem:[#allocation4 + $0xd8] sm:$0xf0]  ;;  %v8660_v28 = vld [vmem:[#allocation4 + $0x280] sm:$0xf]  ;;  %v10630_v29 = vld [vmem:[#allocation4 + $0x284] sm:$0xf0] }
 0x1f6   : > { %3809 = vmatpush.bf16.msrb.mxu3 %v8453_v49  ;;  %3827 = vmatpush.bf16.msra.mxu0 %v8477_v50  ;;  %v8548_v49 = vld [vmem:[#allocation4 + $0x1a0] sm:$0xf] }
 0x1f7   : > { %3800 = vmatpush.bf16.msrb.mxu2 %v8357_v34  ;;  %3835 = vmatpush.bf16.msra.mxu1 %v8581_v42  ;;  %v8556_v34 = vld [vmem:[#allocation4 + $0x1b0] sm:$0xf]  ;;  %v8549_v53 = vor.u32 %v10602_v0, %v8548_v49  ;;  %v8541_v42 = vor.u32 %v10600_v55, %v8540_v4  ;;  %v10575_v0 = vld [vmem:[#allocation4 + $0xd4] sm:$0xf]  ;;  %v10573_v4 = vld [vmem:[#allocation4 + $0xc4] sm:$0xf] }
 0x1f8   : > { %v8557_v19 = vor.u32 %v10604_v36, %v8556_v34  ;;  %v10640_v34 = vld [vmem:[#allocation4 + $0x2d4] sm:$0xf0]  ;;  %v8350_v36 = vld [vmem:[#allocation4 + $0x18] sm:$0xf0] }
 0x1f9   : > { %v8701_v63 = vor.u32 %v10640_v34, %v8700_v32  ;;  %v8661_v32 = vor.u32 %v10630_v29, %v8660_v28 }
 0x1fa   : > { %3810 = vmatpush.bf16.msrb.mxu3 %v8445_v2  ;;  %3828 = vmatpush.bf16.msra.mxu0 %v8469_v15  ;;  %v10566_v2 = vld [vmem:[#allocation4 + $0x84] sm:$0xf0] }
 0x1fb   : > { %3801 = vmatpush.bf16.msrb.mxu2 %v8349_v58  ;;  %3836 = vmatpush.bf16.msra.mxu1 %v8573_v45  ;;  %v8405_v50 = vor.u32 %v10566_v2, %v8404_v51  ;;  %v8532_v45 = vld [vmem:[#allocation4 + $0x180] sm:$0xf]  ;;  %v8684_v2 = vld [vmem:[#allocation4 + $0x2b0] sm:$0xf] }
 0x1fc   : > { %v8533_v17 = vor.u32 %v10598_v16, %v8532_v45  ;;  %v12889_v45 = vld [vmem:[%s13348_s8] sm:$0x3] }
 0x1fe   : > { %3811 = vmatpush.bf16.msrb.mxu3 %v8437_v11  ;;  %3873 = vmatpush.bf16.msrb.mxu0 %v8401_v23  ;;  %v10555_v11 = vld [vmem:[#allocation4 + $0x34] sm:$0xf]  ;;  %v10553_v23 = vld [vmem:[#allocation4 + $0x24] sm:$0xf] }
 0x1ff   : > { %3802 = vmatpush.bf16.msrb.mxu2 %v8341_v30  ;;  %3837 = vmatpush.bf16.msra.mxu1 %v8565_v27  ;;  %v10557_v30 = vld [vmem:[#allocation4 + $0x44] sm:$0xf]  ;;  %v8369_v15 = vor.u32 %v10555_v11, %v8366_v62  ;;  %v10571_v11 = vld [vmem:[#allocation4 + $0xb4] sm:$0xf] }
 0x200   : > { %v8377_v44 = vor.u32 %v10557_v30, %v8374_v12 }
 0x202   : > { %3812 = vmatpush.bf16.msrb.mxu3 %v8429_v52  ;;  %3874 = vmatpush.bf16.msrb.mxu0 %v8393_v31  ;;  %v8358_v52 = vld [vmem:[#allocation4 + $0x28] sm:$0xf0]  ;;  %v10614_v31 = vld [vmem:[#allocation4 + $0x204] sm:$0xf0] }
 0x203   : > { %3847 = vmatpush.bf16.msra.mxu2 %v8653_v39  ;;  %3838 = vmatpush.bf16.msra.mxu1 %v8557_v19  ;;  %v10618_v39 = vld [vmem:[#allocation4 + $0x224] sm:$0xf0]  ;;  %v8361_v27 = vor.u32 %v10553_v23, %v8358_v52  ;;  %v2525_v19 = vperm.slane %v12877_v24, 0  ;;  %v3169_v23 = vperm.slane %v12889_v45, 0 }
 0x204   : > { %v8613_v8 = vor.u32 %v10618_v39, %v8612_v5 }
 0x206   : > { %3813 = vmatpush.bf16.msrb.mxu3 %v8421_v35  ;;  %3875 = vmatpush.bf16.msrb.mxu0 %v8385_v61  ;;  %v10551_v35 = vld [vmem:[#allocation4 + $0x14] sm:$0xf] }
 0x207   : > { %3848 = vmatpush.bf16.msra.mxu2 %v8645_v13  ;;  %3839 = vmatpush.bf16.msra.mxu1 %v8549_v53  ;;  %v10616_v13 = vld [vmem:[#allocation4 + $0x214] sm:$0xf0]  ;;  %v8353_v48 = vor.u32 %v10551_v35, %v8350_v36  ;;  %v10565_v36 = vld [vmem:[#allocation4 + $0x84] sm:$0xf] }
 0x208   : > { %v8605_v40 = vor.u32 %v10616_v13, %v8604_v18  ;;  %v10632_v18 = vld [vmem:[#allocation4 + $0x294] sm:$0xf0]  ;;  %v10569_v13 = vld [vmem:[#allocation4 + $0xa4] sm:$0xf] }
 0x209   : > { %v8425_v52 = vor.u32 %v10569_v13, %v8422_v20 }
 0x20a   : > { %3814 = vmatpush.bf16.msrb.mxu3 %v8413_v21  ;;  %3876 = vmatpush.bf16.msrb.mxu0 %v8377_v44  ;;  %v8342_v21 = vld [vmem:[#allocation4 + $0x8] sm:$0xf0]  ;;  %v8449_v44 = vor.u32 %v10575_v0, %v8446_v37 }
 0x20b   : > { %3849 = vmatpush.bf16.msra.mxu2 %v8637_v26  ;;  %3840 = vmatpush.bf16.msra.mxu1 %v8541_v42  ;;  %v8596_v26 = vld [vmem:[#allocation4 + $0x200] sm:$0xf]  ;;  %v8438_v42 = vld [vmem:[#allocation4 + $0xc8] sm:$0xf0] }
 0x20c   : > { %v8597_v33 = vor.u32 %v10614_v31, %v8596_v26  ;;  %v8441_v5 = vor.u32 %v10573_v4, %v8438_v42  ;;  %v8414_v31 = vld [vmem:[#allocation4 + $0x98] sm:$0xf0]  ;;  %v10591_v4 = vld [vmem:[#allocation4 + $0x154] sm:$0xf] }
 0x20d   : > { %v8510_v42 = vld [vmem:[#allocation4 + $0x158] sm:$0xf0] }
 0x20e   : > { %3815 = vmatpush.bf16.msrb.mxu3 %v8405_v50  ;;  %3877 = vmatpush.bf16.msrb.mxu0 %v8369_v15  ;;  %v10636_v50 = vld [vmem:[#allocation4 + $0x2b4] sm:$0xf0] }
 0x20f   : > { %3850 = vmatpush.bf16.msra.mxu2 %v8629_v54  ;;  %3841 = vmatpush.bf16.msra.mxu1 %v8533_v17  ;;  %v10577_v54 = vld [vmem:[#allocation4 + $0xe4] sm:$0xf] }
 0x210   : > { %v8457_v61 = vor.u32 %v10577_v54, %v8454_v57 }
 0x212   : > { %3860 = vmatpush.bf16.msra.mxu3 %v8717_v14  ;;  %3878 = vmatpush.bf16.msrb.mxu0 %v8361_v27  ;;  %v8430_v14 = vld [vmem:[#allocation4 + $0xb8] sm:$0xf0] }
 0x213   : > { %3851 = vmatpush.bf16.msra.mxu2 %v8621_v3  ;;  %3886 = vmatpush.bf16.msrb.mxu1 %v8465_v9  ;;  %v8693_v3 = vor.u32 %v10638_v59, %v8692_v41  ;;  %v8433_v16 = vor.u32 %v10571_v11, %v8430_v14  ;;  %v10567_v9 = vld [vmem:[#allocation4 + $0x94] sm:$0xf]  ;;  %v8502_v11 = vld [vmem:[#allocation4 + $0x148] sm:$0xf0]  ;;  %v8638_v14 = vld [vmem:[#allocation4 + $0x258] sm:$0xf0] }
 0x214   : > { %v8417_v34 = vor.u32 %v10567_v9, %v8414_v31  ;;  %v10585_v31 = vld [vmem:[#allocation4 + $0x124] sm:$0xf]  ;;  %v8792_v59 = vld [vmem:[#allocation6 + $0x60] sm:$0xf] }
 0x216   : > { %3861 = vmatpush.bf16.msra.mxu3 %v8709_v6  ;;  %3879 = vmatpush.bf16.msrb.mxu0 %v8353_v48  ;;  %v8526_v48 = vld [vmem:[#allocation4 + $0x178] sm:$0xf0] }
 0x217   : > { %3852 = vmatpush.bf16.msra.mxu2 %v8613_v8  ;;  %3887 = vmatpush.bf16.msrb.mxu1 %v8457_v61  ;;  %v8676_v8 = vld [vmem:[#allocation4 + $0x2a0] sm:$0xf] }
 0x218   : > { %v8677_v62 = vor.u32 %v10634_v10, %v8676_v8  ;;  %v10589_v8 = vld [vmem:[#allocation4 + $0x144] sm:$0xf] }
 0x219   : > { %v8505_v20 = vor.u32 %v10589_v8, %v8502_v11  ;;  %v8710_v8 = vld [vmem:[#allocation4 + $0x2e8] sm:$0xf0]  ;;  %v10605_v11 = vld [vmem:[#allocation4 + $0x1c4] sm:$0xf] }
 0x21a   : > { %3862 = vmatpush.bf16.msra.mxu3 %v8701_v63  ;;  %v10595_v63 = vld [vmem:[#allocation4 + $0x174] sm:$0xf] }
 0x21b   : > { %3853 = vmatpush.bf16.msra.mxu2 %v8605_v40  ;;  %3888 = vmatpush.bf16.msrb.mxu1 %v8449_v44 }
 0x21e   : > { %3863 = vmatpush.bf16.msra.mxu3 %v8693_v3  ;;  %v8654_v3 = vld [vmem:[#allocation4 + $0x278] sm:$0xf0] }
 0x21f   : > { %3854 = vmatpush.bf16.msra.mxu2 %v8597_v33  ;;  %3889 = vmatpush.bf16.msrb.mxu1 %v8441_v5  ;;  %v10625_v5 = vld [vmem:[#allocation4 + $0x264] sm:$0xf] }
 0x223   : > { %3890 = vmatpush.bf16.msrb.mxu1 %v8433_v16 }
 0x227   : > { %3891 = vmatpush.bf16.msrb.mxu1 %v8425_v52 }
 0x22b   : > { %3892 = vmatpush.bf16.msrb.mxu1 %v8417_v34 }
 0x238   : > { %v12868_v1 = vpop.f32.mrf.mxu0 }
 0x23e   : > { %v12870_v58 = vpop.f32.mrf.mxu2 }
 0x23f   : > { %v3019_v53 = vadd.f32 %v12870_v58, %v2525_v19  ;;  %v8406_v19 = vld [vmem:[#allocation4 + $0x88] sm:$0xf0] }
 0x240   : > { %v3046_v43 = vpop.f32.mrf.mxu0  ;;  %v8409_v41 = vor.u32 %v10565_v36, %v8406_v19  ;;  %v8622_v36 = vld [vmem:[#allocation4 + $0x238] sm:$0xf0] }
 0x241   : > { %v10549_v43 = vld [vmem:[#allocation4 + $0x4] sm:$0xf] }
 0x242   : > { %v8345_v30 = vor.u32 %v10549_v43, %v8342_v21  ;;  %v10593_v43 = vld [vmem:[#allocation4 + $0x164] sm:$0xf]  ;;  %v8518_v21 = vld [vmem:[#allocation4 + $0x168] sm:$0xf0]  ;;  %3893 = vmatpush.bf16.msrb.mxu1 %v8409_v41 }
 0x243   : > { %v10609_v41 = vld [vmem:[#allocation4 + $0x1e4] sm:$0xf] }
 0x244   : > { %3880 = vmatpush.bf16.msrb.mxu0 %v8345_v30 }
 0x246   : > { %v3020_v46 = vpop.f32.mrf.mxu2 }
 0x247   : > { %v8685_v46 = vor.u32 %v10636_v50, %v8684_v2  ;;  %v8521_v2 = vor.u32 %v10593_v43, %v8518_v21 }
 0x248   : > { %v12872_v7 = vpop.f32.mrf.mxu0 }
 0x249   : > { %3864 = vmatpush.bf16.msra.mxu3 %v8685_v46 }
 0x24c   : > { %v12879_v25 = vpop.f32.mrf.mxu1 }
 0x24d   : > { %3865 = vmatpush.bf16.msra.mxu3 %v8677_v62  ;;  %v10623_v62 = vld [vmem:[#allocation4 + $0x254] sm:$0xf] }
 0x24e   : > { %v3070_v47 = vpop.f32.mrf.mxu2 }
 0x250   : > { %v3098_v49 = vpop.f32.mrf.mxu0 }
 0x251   : > { %v8529_v49 = vor.u32 %v10595_v63, %v8526_v48 }
 0x252   : > { %v3031_v56 = vpop.f32.mrf.mxu3 }
 0x253   : > { %v3032_v51 = vadd.f32 %v3031_v56, %v3019_v53  ;;  %v10627_v53 = vld [vmem:[#allocation4 + $0x274] sm:$0xf] }
 0x254   : > { %v3059_v12 = vpop.f32.mrf.mxu1  ;;  %v8657_v50 = vor.u32 %v10627_v53, %v8654_v3 }
 0x255   : > { %v3045_v58 = vadd.f32 %v12868_v1, %v3032_v51  ;;  %v8668_v1 = vld [vmem:[#allocation4 + $0x290] sm:$0xf] }
 0x256   : > { %v3072_v55 = vpop.f32.mrf.mxu2  ;;  %v8669_v22 = vor.u32 %v10632_v18, %v8668_v1  ;;  %v3170_v18 = vperm.slane %v12889_v45, 1 }
 0x257   : > { %v3058_v17 = vadd.f32 %v12879_v25, %v3045_v58  ;;  %v8646_v58 = vld [vmem:[#allocation4 + $0x268] sm:$0xf0] }
 0x258   : > { %3866 = vmatpush.bf16.msra.mxu3 %v8669_v22  ;;  %v8641_v22 = vor.u32 %v10623_v62, %v8638_v14  ;;  %v8566_v62 = vld [vmem:[#allocation4 + $0x1c8] sm:$0xf0] }
 0x259   : > { %v12884_v39 = vpop.f32.mrf.mxu0  ;;  %v3071_v27 = vadd.f32 %v3070_v47, %v3058_v17  ;;  %v2526_v47 = vperm.slane %v12877_v24, 1 }
 0x25a   : > { %v3033_v38 = vpop.f32.mrf.mxu3 }
 0x25b   : > { %v3097_v60 = vadd.f32 %v12872_v7, %v2526_v47  ;;  %v8513_v7 = vor.u32 %v10591_v4, %v8510_v42  ;;  %v8649_v38 = vor.u32 %v10625_v5, %v8646_v58  ;;  %v8470_v4 = vld [vmem:[#allocation4 + $0x108] sm:$0xf0]  ;;  %v8574_v5 = vld [vmem:[#allocation4 + $0x1d8] sm:$0xf0]  ;;  %v10615_v58 = vld [vmem:[#allocation4 + $0x214] sm:$0xf] }
 0x25c   : > { %v3109_v15 = vpop.f32.mrf.mxu1  ;;  %3867 = vmatpush.bf16.msra.mxu3 %v8661_v32  ;;  %v8486_v32 = vld [vmem:[#allocation4 + $0x128] sm:$0xf0] }
 0x25d   : > { %v3110_v55 = vadd.f32 %v3109_v15, %v3097_v60  ;;  %v8489_v48 = vor.u32 %v10585_v31, %v8486_v32  ;;  %v8558_v31 = vld [vmem:[#allocation4 + $0x1b8] sm:$0xf0] }
 0x25f   : > { %v12892_v40 = vpop.f32.mrf.mxu2 }
 0x260   : > { %v3123_v10 = vadd.f32 %v12892_v40, %v3110_v55  ;;  %v8630_v40 = vld [vmem:[#allocation4 + $0x248] sm:$0xf0] }
 0x261   : > { %v3150_v6 = vpop.f32.mrf.mxu0 }
 0x262   : > { %v3083_v26 = vpop.f32.mrf.mxu3  ;;  %v8494_v6 = vld [vmem:[#allocation4 + $0x138] sm:$0xf0] }
 0x263   : > { %v3084_v25 = vadd.f32 %v3083_v26, %v3071_v27  ;;  %v10621_v27 = vld [vmem:[#allocation4 + $0x244] sm:$0xf] }
 0x264   : > { %v3111_v33 = vpop.f32.mrf.mxu1  ;;  %v8633_v26 = vor.u32 %v10621_v27, %v8630_v40  ;;  %v8928_v27 = vld [vmem:[#allocation6 + $0x170] sm:$0xf]  ;;  %v10692_v40 = vld [vmem:[#allocation6 + $0x174] sm:$0xf0] }
 0x265   : > { %vm3165_vm10 = vcmp.ge.f32.partialorder %v3084_v25, 0.0  ;;  %v3173_v35 = vmul.f32 %v3169_v23, %v3084_v25  ;;  %v10587_v23 = vld [vmem:[#allocation4 + $0x134] sm:$0xf] }
 0x266   : > { %v8497_v9 = vor.u32 %v10587_v23, %v8494_v6  ;;  %v10611_v33 = vld [vmem:[#allocation4 + $0x1f4] sm:$0xf] }
 0x267   : > { %v3175_v54 = vsel %vm3165_vm10, %v3084_v25, %v3173_v35  ;;  %v3124_v57 = vpop.f32.mrf.mxu2  ;;  %v8590_v35 = vld [vmem:[#allocation4 + $0x1f8] sm:$0xf0] }
 0x268   : > { %v3179_v61 = vrot.slane %v3175_v54, 7  ;;  %v10583_v54 = vld [vmem:[#allocation4 + $0x114] sm:$0xf]  ;;  %v8593_v57 = vor.u32 %v10611_v33, %v8590_v35  ;;  %v10637_v33 = vld [vmem:[#allocation4 + $0x2c4] sm:$0xf] }
 0x26a   : > { %v3183_v0 = vsel %vm991_vm0, 0.0, %v3179_v61  ;;  %v3185_v56 = vsel %vm991_vm0, %v3179_v61, 0.0  ;;  %v12905_v37 = vpack.c.bf16 %v3179_v61, %v3179_v61  ;;  %v3085_v24 = vpop.f32.mrf.mxu3  ;;  %v8478_v61 = vld [vmem:[#allocation4 + $0x118] sm:$0xf0] }
 0x26b   : > { %v3191_v30 = vrot.slane %v3183_v0, 1  ;;  %v3192_v12 = vrot.slane %v3185_v56, 1  ;;  %v3199_v16 = vrot.slane %v3183_v0, 2  ;;  %v3200_v17 = vrot.slane %v3185_v56, 2  ;;  %v10617_v56 = vld [vmem:[#allocation4 + $0x224] sm:$0xf] }
 0x26c   : > { %8726 = vmatmul.msk.bf16.vlgmr.msrb.gmra.mxu2 %vm12899_vm11, %v12905_v37  ;;  %v8614_v24 = vld [vmem:[#allocation4 + $0x228] sm:$0xf0]  ;;  %v8481_v60 = vor.u32 %v10583_v54, %v8478_v61  ;;  %v8686_v54 = vld [vmem:[#allocation4 + $0x2b8] sm:$0xf0] }
 0x26d   : > { %3899 = vmatpush.bf16.msrb.mxu2 %v8529_v49  ;;  %v3193_v51 = vsel %vm1046_vm6, %v3191_v30, %v3192_v12  ;;  %v3201_v28 = vsel %vm1044_vm5, %v3199_v16, %v3200_v17  ;;  %v8582_v49 = vld [vmem:[#allocation4 + $0x1e8] sm:$0xf0]  ;;  %v10643_v30 = vld [vmem:[#allocation4 + $0x2f4] sm:$0xf]  ;;  %v8718_v12 = vld [vmem:[#allocation4 + $0x2f8] sm:$0xf0] }
 0x26e   : > { %v3161_v44 = vpop.f32.mrf.mxu1  ;;  %v12912_v46 = vpack.c.bf16 %v3193_v51, %v3193_v51  ;;  %v12919_v25 = vpack.c.bf16 %v3201_v28, %v3201_v28  ;;  %v8585_v51 = vor.u32 %v10609_v41, %v8582_v49  ;;  %v8721_v42 = vor.u32 %v10643_v30, %v8718_v12  ;;  %v10613_v17 = vld [vmem:[#allocation4 + $0x204] sm:$0xf]  ;;  %v8542_v61 = vld [vmem:[#allocation4 + $0x198] sm:$0xf0]  ;;  %v8678_v49 = vld [vmem:[#allocation4 + $0x2a8] sm:$0xf0] }
 0x26f   : > { %v8569_v28 = vor.u32 %v10605_v11, %v8566_v62  ;;  %v10633_v41 = vld [vmem:[#allocation4 + $0x2a4] sm:$0xf]  ;;  %v10686_v62 = vld [vmem:[#allocation6 + $0x144] sm:$0xf0] }
 0x270   : > { %3829 = vmatmul.bf16.vlgmr.msra.gmra.mxu0 %v12912_v46  ;;  %v10629_v12 = vld [vmem:[#allocation4 + $0x284] sm:$0xf] }
 0x271   : > { %3900 = vmatpush.bf16.msrb.mxu2 %v8521_v2  ;;  %3925 = vmatpush.bf16.msra.mxu0 %v8657_v50  ;;  %v8617_v2 = vor.u32 %v10617_v56, %v8614_v24  ;;  %v10581_v50 = vld [vmem:[#allocation4 + $0x104] sm:$0xf]  ;;  %v8534_v24 = vld [vmem:[#allocation4 + $0x188] sm:$0xf0] }
 0x272   : > { %v10597_v56 = vld [vmem:[#allocation4 + $0x184] sm:$0xf] }
 0x274   : > { %v3135_v15 = vpop.f32.mrf.mxu3 }
 0x275   : > { %v3136_v1 = vadd.f32 %v3135_v15, %v3123_v10  ;;  %3901 = vmatpush.bf16.msrb.mxu2 %v8513_v7  ;;  %3926 = vmatpush.bf16.msra.mxu0 %v8649_v38  ;;  %v8606_v7 = vld [vmem:[#allocation4 + $0x218] sm:$0xf0]  ;;  %v10641_v38 = vld [vmem:[#allocation4 + $0x2e4] sm:$0xf]  ;;  %v8473_v10 = vor.u32 %v10581_v50, %v8470_v4  ;;  %v8800_v15 = vld [vmem:[#allocation6 + $0x70] sm:$0xf] }
 0x276   : > { %v3163_v13 = vpop.f32.mrf.mxu1  ;;  %v8609_v16 = vor.u32 %v10615_v58, %v8606_v7  ;;  %v10690_v50 = vld [vmem:[#allocation6 + $0x164] sm:$0xf0]  ;;  %v10688_v7 = vld [vmem:[#allocation6 + $0x154] sm:$0xf0] }
 0x277   : > { %v3149_v52 = vadd.f32 %v12884_v39, %v3136_v1  ;;  %v10619_v39 = vld [vmem:[#allocation4 + $0x234] sm:$0xf]  ;;  %v10660_v1 = vld [vmem:[#allocation6 + $0x74] sm:$0xf0]  ;;  %v8598_v13 = vld [vmem:[#allocation4 + $0x208] sm:$0xf0] }
 0x278   : > { %v8625_v47 = vor.u32 %v10619_v39, %v8622_v36  ;;  %v8801_v23 = vor.u32 %v10660_v1, %v8800_v15  ;;  %v8896_v15 = vld [vmem:[#allocation6 + $0x130] sm:$0xf] }
 0x279   : > { %v3162_v29 = vadd.f32 %v3161_v44, %v3149_v52  ;;  %3902 = vmatpush.bf16.msrb.mxu2 %v8505_v20  ;;  %3927 = vmatpush.bf16.msra.mxu0 %v8641_v22  ;;  %v10639_v20 = vld [vmem:[#allocation4 + $0x2d4] sm:$0xf]  ;;  %v8702_v22 = vld [vmem:[#allocation4 + $0x2d8] sm:$0xf0] }
 0x27b   : > { %vm3166_vm9 = vcmp.ge.f32.partialorder %v3162_v29, 0.0  ;;  %v3174_v45 = vmul.f32 %v3170_v18, %v3162_v29  ;;  %v8713_v18 = vor.u32 %v10641_v38, %v8710_v8  ;;  %v8776_v8 = vld [vmem:[#allocation6 + $0x40] sm:$0xf] }
 0x27c   : > { %v3137_v34 = vpop.f32.mrf.mxu3  ;;  %3855 = vmatmul.bf16.vlgmr.msra.gmra.mxu2 %v12919_v25 }
 0x27d   : > { %v3176_v19 = vsel %vm3166_vm9, %v3162_v29, %v3174_v45  ;;  %3903 = vmatpush.bf16.msrb.mxu2 %v8497_v9  ;;  %3928 = vmatpush.bf16.msra.mxu0 %v8633_v26  ;;  %v8601_v29 = vor.u32 %v10613_v17, %v8598_v13  ;;  %v8705_v9 = vor.u32 %v10639_v20, %v8702_v22  ;;  %v10603_v26 = vld [vmem:[#allocation4 + $0x1b4] sm:$0xf]  ;;  %v8694_v34 = vld [vmem:[#allocation4 + $0x2c8] sm:$0xf0]  ;;  %v10652_v17 = vld [vmem:[#allocation6 + $0x34] sm:$0xf0] }
 0x27e   : > { %v3180_v63 = vrot.slane %v3176_v19, 7  ;;  %v8929_v45 = vor.u32 %v10692_v40, %v8928_v27  ;;  %v8561_v35 = vor.u32 %v10603_v26, %v8558_v31  ;;  %v8697_v36 = vor.u32 %v10637_v33, %v8694_v34  ;;  %v10601_v19 = vld [vmem:[#allocation4 + $0x1a4] sm:$0xf]  ;;  %v8760_v20 = vld [vmem:[#allocation6 + $0x20] sm:$0xf] }
 0x27f   : > { %v10650_v22 = vld [vmem:[#allocation6 + $0x24] sm:$0xf0]  ;;  %v8888_v27 = vld [vmem:[#allocation6 + $0x120] sm:$0xf]  ;;  %v10708_v26 = vld [vmem:[#allocation6 + $0x1f4] sm:$0xf0] }
 0x280   : > { %v12922_v43 = vpack.c.bf16 %v3180_v63, %v3180_v63  ;;  %v12925_v21 = vsel %vm991_vm0, 0.0, %v3180_v63  ;;  %v3186_v0 = vsel %vm991_vm0, %v3180_v63, 0.0  ;;  %8736 = vmatmul.msk.bf16.vlgmr.msrb.gmra.mxu0 %vm12899_vm11, %v12905_v37  ;;  %v10607_v37 = vld [vmem:[#allocation4 + $0x1d4] sm:$0xf]  ;;  %v8550_v63 = vld [vmem:[#allocation4 + $0x1a8] sm:$0xf0] }
 0x281   : > { %v3194_v53 = vrot.slane %v12925_v21, 1  ;;  %v3195_v3 = vrot.slane %v3186_v0, 1  ;;  %3904 = vmatpush.bf16.msrb.mxu2 %v8489_v48  ;;  %3929 = vmatpush.bf16.msra.mxu0 %v8625_v47  ;;  %v8577_v14 = vor.u32 %v10607_v37, %v8574_v5  ;;  %v3202_v52 = vrot.slane %v12925_v21, 2  ;;  %v10635_v48 = vld [vmem:[#allocation4 + $0x2b4] sm:$0xf] }
 0x282   : > { %8731 = vmatmul.msk.bf16.vlgmr.msrb.gmra.mxu3 %vm12899_vm11, %v12922_v43  ;;  %v3203_v6 = vrot.slane %v3186_v0, 2  ;;  %v10599_v47 = vld [vmem:[#allocation4 + $0x194] sm:$0xf]  ;;  %v8681_v0 = vor.u32 %v10633_v41, %v8678_v49  ;;  %v8784_v37 = vld [vmem:[#allocation6 + $0x50] sm:$0xf] }
 0x283   : > { %3912 = vmatpush.bf16.msrb.mxu3 %v8593_v57  ;;  %v3196_v44 = vsel %vm1046_vm6, %v3194_v53, %v3195_v3  ;;  %v8689_v57 = vor.u32 %v10635_v48, %v8686_v54  ;;  %v8545_v21 = vor.u32 %v10599_v47, %v8542_v61  ;;  %v10631_v53 = vld [vmem:[#allocation4 + $0x294] sm:$0xf]  ;;  %v8537_v3 = vor.u32 %v10597_v56, %v8534_v24  ;;  %v8912_v5 = vld [vmem:[#allocation6 + $0x150] sm:$0xf]  ;;  %v10682_v40 = vld [vmem:[#allocation6 + $0x124] sm:$0xf0] }
 0x284   : > { %v12936_v55 = vpack.c.bf16 %v3196_v44, %v3196_v44  ;;  %v3204_v32 = vsel %vm1044_vm5, %v3202_v52, %v3203_v6  ;;  %v8913_v38 = vor.u32 %v10688_v7, %v8912_v5  ;;  %v8761_v52 = vor.u32 %v10650_v22, %v8760_v20  ;;  %v10676_v6 = vld [vmem:[#allocation6 + $0xf4] sm:$0xf0]  ;;  %v8856_v33 = vld [vmem:[#allocation6 + $0xe0] sm:$0xf]  ;;  %v10706_v54 = vld [vmem:[#allocation6 + $0x1e4] sm:$0xf0] }
 0x285   : > { %3905 = vmatpush.bf16.msrb.mxu2 %v8481_v60  ;;  %3930 = vmatpush.bf16.msra.mxu0 %v8617_v2  ;;  %v3212_v39 = vpack.c.bf16 %v3204_v32, %v3204_v32  ;;  %v8662_v60 = vld [vmem:[#allocation4 + $0x288] sm:$0xf0]  ;;  %v10648_v32 = vld [vmem:[#allocation6 + $0x14] sm:$0xf0]  ;;  %v8984_v48 = vld [vmem:[#allocation6 + $0x1e0] sm:$0xf] }
 0x286   : > { %3842 = vmatmul.bf16.vlgmr.msra.gmra.mxu1 %v12936_v55  ;;  %v8665_v44 = vor.u32 %v10629_v12, %v8662_v60  ;;  %v10646_v47 = vld [vmem:[#allocation6 + $0x4] sm:$0xf0]  ;;  %v8848_v61 = vld [vmem:[#allocation6 + $0xd0] sm:$0xf]  ;;  %v10672_v49 = vld [vmem:[#allocation6 + $0xd4] sm:$0xf0] }
 0x287   : > { %3913 = vmatpush.bf16.msrb.mxu3 %v8585_v51  ;;  %3938 = vmatpush.bf16.msra.mxu1 %v8721_v42  ;;  %v8920_v51 = vld [vmem:[#allocation6 + $0x160] sm:$0xf]  ;;  %v10656_v42 = vld [vmem:[#allocation6 + $0x54] sm:$0xf0]  ;;  %v8849_v56 = vor.u32 %v10672_v49, %v8848_v61  ;;  %v10659_v60 = vld [vmem:[#allocation6 + $0x74] sm:$0xf] }
 0x288   : > { %v8921_v4 = vor.u32 %v10690_v50, %v8920_v51  ;;  %v8785_v58 = vor.u32 %v10656_v42, %v8784_v37  ;;  %v10724_v12 = vld [vmem:[#allocation6 + $0x274] sm:$0xf0]  ;;  %v8840_v51 = vld [vmem:[#allocation6 + $0xc0] sm:$0xf]  ;;  %v10702_v37 = vld [vmem:[#allocation6 + $0x1c4] sm:$0xf0] }
 0x289   : > { %3906 = vmatpush.bf16.msrb.mxu2 %v8473_v10  ;;  %3931 = vmatpush.bf16.msra.mxu0 %v8609_v16  ;;  %v8904_v10 = vld [vmem:[#allocation6 + $0x140] sm:$0xf]  ;;  %v8768_v16 = vld [vmem:[#allocation6 + $0x30] sm:$0xf]  ;;  %v10722_v5 = vld [vmem:[#allocation6 + $0x264] sm:$0xf0] }
 0x28a   : > { %v8769_v1 = vor.u32 %v10652_v17, %v8768_v16  ;;  %v8968_v50 = vld [vmem:[#allocation6 + $0x1c0] sm:$0xf]  ;;  %v10655_v20 = vld [vmem:[#allocation6 + $0x54] sm:$0xf]  ;;  %v8786_v22 = vld [vmem:[#allocation6 + $0x58] sm:$0xf0] }
 0x28b   : > { %3914 = vmatpush.bf16.msrb.mxu3 %v8577_v14  ;;  %3939 = vmatpush.bf16.msra.mxu1 %v8713_v18  ;;  %v8905_v14 = vor.u32 %v10686_v62, %v8904_v10  ;;  %v10684_v18 = vld [vmem:[#allocation6 + $0x134] sm:$0xf0]  ;;  %v9048_v42 = vld [vmem:[#allocation6 + $0x260] sm:$0xf]  ;;  %v8969_v7 = vor.u32 %v10702_v37, %v8968_v50  ;;  %v8770_v49 = vld [vmem:[#allocation6 + $0x38] sm:$0xf0] }
 0x28c   : > { %3907 = vmatmul.bf16.vlgmr.msrb.gmra.mxu2 %v12912_v46  ;;  %v8553_v46 = vor.u32 %v10601_v19, %v8550_v63  ;;  %v8897_v13 = vor.u32 %v10684_v18, %v8896_v15  ;;  %v10668_v62 = vld [vmem:[#allocation6 + $0xb4] sm:$0xf0]  ;;  %v10649_v50 = vld [vmem:[#allocation6 + $0x24] sm:$0xf] }
 0x28d   : > { %4605 = vmatpush.bf16.msra.mxu2 %v8801_v23  ;;  %3932 = vmatpush.bf16.msra.mxu0 %v8601_v29  ;;  %v8864_v23 = vld [vmem:[#allocation6 + $0xf0] sm:$0xf]  ;;  %v8889_v29 = vor.u32 %v10682_v40, %v8888_v27  ;;  %v10700_v15 = vld [vmem:[#allocation6 + $0x1b4] sm:$0xf0]  ;;  %v10666_v27 = vld [vmem:[#allocation6 + $0xa4] sm:$0xf0] }
 0x28e   : > { %v10720_v18 = vld [vmem:[#allocation6 + $0x254] sm:$0xf0]  ;;  %v8952_v40 = vld [vmem:[#allocation6 + $0x1a0] sm:$0xf] }
 0x28f   : > { %3915 = vmatpush.bf16.msrb.mxu3 %v8569_v28  ;;  %3940 = vmatpush.bf16.msra.mxu1 %v8705_v9  ;;  %v8865_v28 = vor.u32 %v10676_v6, %v8864_v23  ;;  %v8992_v9 = vld [vmem:[#allocation6 + $0x1f0] sm:$0xf]  ;;  %v8824_v6 = vld [vmem:[#allocation6 + $0xa0] sm:$0xf]  ;;  %v10716_v61 = vld [vmem:[#allocation6 + $0x234] sm:$0xf0] }
 0x290   : > { %3933 = vmatmul.bf16.vlgmr.msra.gmra.mxu0 %v12919_v25  ;;  %v8670_v25 = vld [vmem:[#allocation4 + $0x298] sm:$0xf0]  ;;  %v8993_v31 = vor.u32 %v10708_v26, %v8992_v9 }
 0x291   : > { %4631 = vmatpush.bf16.msrb.mxu0 %v8929_v45  ;;  %v8673_v30 = vor.u32 %v10631_v53, %v8670_v25  ;;  %v8752_v45 = vld [vmem:[#allocation6 + $0x10] sm:$0xf]  ;;  %v10704_v25 = vld [vmem:[#allocation6 + $0x1d4] sm:$0xf0] }
 0x292   : > { %3868 = vmatmul.bf16.vlgmr.msra.gmra.mxu3 %v3212_v39  ;;  %v8753_v34 = vor.u32 %v10648_v32, %v8752_v45  ;;  %v8976_v53 = vld [vmem:[#allocation6 + $0x1d0] sm:$0xf]  ;;  %v10718_v45 = vld [vmem:[#allocation6 + $0x244] sm:$0xf0]  ;;  %v10653_v32 = vld [vmem:[#allocation6 + $0x44] sm:$0xf] }
 0x293   : > { %3916 = vmatpush.bf16.msrb.mxu3 %v8561_v35  ;;  %3941 = vmatpush.bf16.msra.mxu1 %v8697_v36  ;;  %v10674_v35 = vld [vmem:[#allocation6 + $0xe4] sm:$0xf0]  ;;  %v10680_v36 = vld [vmem:[#allocation6 + $0x114] sm:$0xf0] }
 0x294   : > { %v8857_v19 = vor.u32 %v10674_v35, %v8856_v33 }
 0x295   : > { %4632 = vmatpush.bf16.msrb.mxu0 %v8921_v4 }
 0x296   : > { %8741 = vmatmul.msk.bf16.vlgmr.msrb.gmra.mxu1 %vm12899_vm11, %v12922_v43  ;;  %v10658_v43 = vld [vmem:[#allocation6 + $0x64] sm:$0xf0] }
 0x297   : > { %3917 = vmatpush.bf16.msrb.mxu3 %v8553_v46  ;;  %3942 = vmatpush.bf16.msra.mxu1 %v8689_v57  ;;  %v8793_v2 = vor.u32 %v10658_v43, %v8792_v59  ;;  %v8985_v46 = vor.u32 %v10706_v54, %v8984_v48  ;;  %v8744_v57 = vld [vmem:[#allocation6] sm:$0xf]  ;;  %v8944_v54 = vld [vmem:[#allocation6 + $0x190] sm:$0xf] }
 0x298   : > { %v8745_v41 = vor.u32 %v10646_v47, %v8744_v57  ;;  %v9024_v57 = vld [vmem:[#allocation6 + $0x230] sm:$0xf] }
 0x299   : > { %4606 = vmatpush.bf16.msra.mxu2 %v8793_v2  ;;  %4633 = vmatpush.bf16.msrb.mxu0 %v8913_v38  ;;  %v10670_v2 = vld [vmem:[#allocation6 + $0xc4] sm:$0xf0]  ;;  %v9049_v38 = vor.u32 %v10722_v5, %v9048_v42  ;;  %v8762_v42 = vld [vmem:[#allocation6 + $0x28] sm:$0xf0]  ;;  %v10675_v5 = vld [vmem:[#allocation6 + $0xf4] sm:$0xf] }
 0x29a   : > { %v8841_v4 = vor.u32 %v10670_v2, %v8840_v51  ;;  %v9120_v51 = vld [vmem:[#allocation6 + $0x2f0] sm:$0xf]  ;;  %v10740_v2 = vld [vmem:[#allocation6 + $0x2f4] sm:$0xf0] }
 0x29b   : > { %3918 = vmatpush.bf16.msrb.mxu3 %v8545_v21  ;;  %3943 = vmatpush.bf16.msra.mxu1 %v8681_v0  ;;  %v8872_v21 = vld [vmem:[#allocation6 + $0x100] sm:$0xf]  ;;  %v10678_v0 = vld [vmem:[#allocation6 + $0x104] sm:$0xf0]  ;;  %v9121_v37 = vor.u32 %v10740_v2, %v9120_v51  ;;  %v8826_v2 = vld [vmem:[#allocation6 + $0xa8] sm:$0xf0] }
 0x29c   : > { %v8873_v24 = vor.u32 %v10678_v0, %v8872_v21  ;;  %v9025_v0 = vor.u32 %v10716_v61, %v9024_v57 }
 0x29d   : > { %4607 = vmatpush.bf16.msra.mxu2 %v8785_v58  ;;  %4634 = vmatpush.bf16.msrb.mxu0 %v8905_v14  ;;  %v8960_v14 = vld [vmem:[#allocation6 + $0x1b0] sm:$0xf] }
 0x29f   : > { %3919 = vmatpush.bf16.msrb.mxu3 %v8537_v3  ;;  %3944 = vmatpush.bf16.msra.mxu1 %v8673_v30  ;;  %v9056_v3 = vld [vmem:[#allocation6 + $0x270] sm:$0xf]  ;;  %v8977_v30 = vor.u32 %v10704_v25, %v8976_v53  ;;  %v10662_v53 = vld [vmem:[#allocation6 + $0x84] sm:$0xf0]  ;;  %v8936_v25 = vld [vmem:[#allocation6 + $0x180] sm:$0xf] }
 0x2a0   : > { %v9057_v59 = vor.u32 %v10724_v12, %v9056_v3  ;;  %v10694_v12 = vld [vmem:[#allocation6 + $0x184] sm:$0xf0] }
 0x2a1   : > { %4635 = vmatpush.bf16.msrb.mxu0 %v8897_v13  ;;  %v8961_v13 = vor.u32 %v10700_v15, %v8960_v14  ;;  %v10738_v14 = vld [vmem:[#allocation6 + $0x2e4] sm:$0xf0]  ;;  %v8754_v15 = vld [vmem:[#allocation6 + $0x18] sm:$0xf0] }
 0x2a2   : > { %3920 = vmatmul.bf16.vlgmr.msrb.gmra.mxu3 %v12936_v55  ;;  %v10654_v55 = vld [vmem:[#allocation6 + $0x44] sm:$0xf0] }
 0x2a3   : > { %3945 = vmatpush.bf16.msra.mxu1 %v8665_v44  ;;  %v8777_v11 = vor.u32 %v10654_v55, %v8776_v8  ;;  %4618 = vmatpush.bf16.msra.mxu3 %v8865_v28  ;;  %v8802_v44 = vld [vmem:[#allocation6 + $0x78] sm:$0xf0]  ;;  %v10657_v8 = vld [vmem:[#allocation6 + $0x64] sm:$0xf]  ;;  %v8794_v55 = vld [vmem:[#allocation6 + $0x68] sm:$0xf0]  ;;  %v8825_v28 = vor.u32 %v10666_v27, %v8824_v6 }
 0x2a4   : > { %v8805_v43 = vor.u32 %v10659_v60, %v8802_v44  ;;  %v8797_v10 = vor.u32 %v10657_v8, %v8794_v55  ;;  %v9016_v60 = vld [vmem:[#allocation6 + $0x220] sm:$0xf]  ;;  %v10714_v44 = vld [vmem:[#allocation6 + $0x224] sm:$0xf0]  ;;  %v9008_v55 = vld [vmem:[#allocation6 + $0x210] sm:$0xf] }
 0x2a5   : > { %4608 = vmatpush.bf16.msra.mxu2 %v8777_v11  ;;  %4636 = vmatpush.bf16.msrb.mxu0 %v8889_v29  ;;  %v8832_v11 = vld [vmem:[#allocation6 + $0xb0] sm:$0xf]  ;;  %v10698_v29 = vld [vmem:[#allocation6 + $0x1a4] sm:$0xf0] }
 0x2a6   : > { %3946 = vmatmul.bf16.vlgmr.msra.gmra.mxu1 %v3212_v39  ;;  %v8880_v39 = vld [vmem:[#allocation6 + $0x110] sm:$0xf]  ;;  %v8833_v17 = vor.u32 %v10668_v62, %v8832_v11  ;;  %v8953_v26 = vor.u32 %v10698_v29, %v8952_v40  ;;  %v9112_v11 = vld [vmem:[#allocation6 + $0x2e0] sm:$0xf] }
 0x2a7   : > { %4644 = vmatpush.bf16.msrb.mxu1 %v8993_v31  ;;  %v8881_v63 = vor.u32 %v10680_v36, %v8880_v39  ;;  %4619 = vmatpush.bf16.msra.mxu3 %v8857_v19  ;;  %v9032_v31 = vld [vmem:[#allocation6 + $0x240] sm:$0xf]  ;;  %v8816_v19 = vld [vmem:[#allocation6 + $0x90] sm:$0xf] }
 0x2a8   : > { %v9033_v33 = vor.u32 %v10718_v45, %v9032_v31  ;;  %v12954_v36 = vld [vmem:[%s13351_s2] sm:$0x3]  ;;  %v9104_v29 = vld [vmem:[#allocation6 + $0x2d0] sm:$0xf]  ;;  %v10645_v31 = vld [vmem:[#allocation6 + $0x4] sm:$0xf] }
 0x2a9   : > { %4609 = vmatpush.bf16.msra.mxu2 %v8769_v1  ;;  %4637 = vmatpush.bf16.msrb.mxu0 %v8881_v63  ;;  %v9040_v1 = vld [vmem:[#allocation6 + $0x250] sm:$0xf]  ;;  %v10664_v63 = vld [vmem:[#allocation6 + $0x94] sm:$0xf0]  ;;  %v3311_v21 = vperm.slane %v12954_v36, 0 }
 0x2aa   : > { %v9041_v23 = vor.u32 %v10720_v18, %v9040_v1  ;;  %v8817_v48 = vor.u32 %v10664_v63, %v8816_v19  ;;  %v9113_v18 = vor.u32 %v10738_v14, %v9112_v11  ;;  %v9000_v40 = vld [vmem:[#allocation6 + $0x200] sm:$0xf]  ;;  %v8746_v45 = vld [vmem:[#allocation6 + $0x8] sm:$0xf0]  ;;  %v8850_v19 = vld [vmem:[#allocation6 + $0xd8] sm:$0xf0] }
 0x2ab   : > { %4645 = vmatpush.bf16.msrb.mxu1 %v8985_v46  ;;  %4620 = vmatpush.bf16.msra.mxu3 %v8849_v56  ;;  %v10696_v46 = vld [vmem:[#allocation6 + $0x194] sm:$0xf0] }
 0x2ac   : > { %v8945_v47 = vor.u32 %v10696_v46, %v8944_v54  ;;  %v10669_v54 = vld [vmem:[#allocation6 + $0xc4] sm:$0xf] }
 0x2ad   : > { %4610 = vmatpush.bf16.msra.mxu2 %v8761_v52  ;;  %4638 = vmatpush.bf16.msrb.mxu0 %v8873_v24  ;;  %v8789_v52 = vor.u32 %v10655_v20, %v8786_v22  ;;  %v8808_v24 = vld [vmem:[#allocation6 + $0x80] sm:$0xf]  ;;  %v10673_v20 = vld [vmem:[#allocation6 + $0xe4] sm:$0xf]  ;;  %v8858_v22 = vld [vmem:[#allocation6 + $0xe8] sm:$0xf0] }
 0x2af   : > { %4646 = vmatpush.bf16.msrb.mxu1 %v8977_v30  ;;  %4621 = vmatpush.bf16.msra.mxu3 %v8841_v4  ;;  %v8809_v30 = vor.u32 %v10662_v53, %v8808_v24 }
 0x2b1   : > { %4611 = vmatpush.bf16.msra.mxu2 %v8753_v34  ;;  %4683 = vmatpush.bf16.msra.mxu0 %v8805_v43  ;;  %v8778_v34 = vld [vmem:[#allocation6 + $0x48] sm:$0xf0]  ;;  %v9017_v43 = vor.u32 %v10714_v44, %v9016_v60  ;;  %v12970_v60 = vld [vmem:[%s13352_s1] sm:$0x3]  ;;  %s982_s1 = scalar_lea.vmem %s13358_s30, %s10308_s12 }
 0x2b2   : > { %v8781_v39 = vor.u32 %v10653_v32, %v8778_v34  ;;  %v9080_v44 = vld [vmem:[#allocation6 + $0x2a0] sm:$0xf] }
 0x2b3   : > { %4647 = vmatpush.bf16.msrb.mxu1 %v8969_v7  ;;  %4622 = vmatpush.bf16.msra.mxu3 %v8833_v17  ;;  %v8866_v7 = vld [vmem:[#allocation6 + $0xf8] sm:$0xf0]  ;;  %v10647_v17 = vld [vmem:[#allocation6 + $0x14] sm:$0xf] }
 0x2b4   : > { %v8869_v8 = vor.u32 %v10675_v5, %v8866_v7  ;;  %v3955_v5 = vperm.slane %v12970_v60, 0 }
 0x2b5   : > { %4612 = vmatpush.bf16.msra.mxu2 %v8745_v41  ;;  %4684 = vmatpush.bf16.msra.mxu0 %v8797_v10  ;;  %v10651_v41 = vld [vmem:[#allocation6 + $0x34] sm:$0xf]  ;;  %v10712_v10 = vld [vmem:[#allocation6 + $0x214] sm:$0xf0] }
 0x2b6   : > { %v8773_v56 = vor.u32 %v10651_v41, %v8770_v49  ;;  %v9009_v62 = vor.u32 %v10712_v10, %v9008_v55  ;;  %v10663_v55 = vld [vmem:[#allocation6 + $0x94] sm:$0xf] }
 0x2b7   : > { %4648 = vmatpush.bf16.msrb.mxu1 %v8961_v13  ;;  %4623 = vmatpush.bf16.msra.mxu3 %v8825_v28  ;;  %v8757_v13 = vor.u32 %v10647_v17, %v8754_v15  ;;  %v10710_v28 = vld [vmem:[#allocation6 + $0x204] sm:$0xf0] }
 0x2b9   : > { %4657 = vmatpush.bf16.msrb.mxu2 %v9057_v59  ;;  %4685 = vmatpush.bf16.msra.mxu0 %v8789_v52  ;;  %v8937_v59 = vor.u32 %v10694_v12, %v8936_v25  ;;  %v8834_v25 = vld [vmem:[#allocation6 + $0xb8] sm:$0xf0] }
 0x2bb   : > { %4649 = vmatpush.bf16.msrb.mxu1 %v8953_v26  ;;  %4624 = vmatpush.bf16.msra.mxu3 %v8817_v48  ;;  %v10736_v26 = vld [vmem:[#allocation6 + $0x2d4] sm:$0xf0]  ;;  %v10734_v48 = vld [vmem:[#allocation6 + $0x2c4] sm:$0xf0] }
 0x2bc   : > { %v9105_v34 = vor.u32 %v10736_v26, %v9104_v29 }
 0x2bd   : > { %4658 = vmatpush.bf16.msrb.mxu2 %v9049_v38  ;;  %4686 = vmatpush.bf16.msra.mxu0 %v8781_v39  ;;  %v8765_v38 = vor.u32 %v10649_v50, %v8762_v42  ;;  %v10671_v39 = vld [vmem:[#allocation6 + $0xd4] sm:$0xf] }
 0x2be   : > { %v8853_v63 = vor.u32 %v10671_v39, %v8850_v19 }
 0x2bf   : > { %4650 = vmatpush.bf16.msrb.mxu1 %v8945_v47  ;;  %4625 = vmatpush.bf16.msra.mxu3 %v8809_v30  ;;  %v8842_v47 = vld [vmem:[#allocation6 + $0xc8] sm:$0xf0] }
 0x2c0   : > { %v8845_v41 = vor.u32 %v10669_v54, %v8842_v47  ;;  %v10689_v47 = vld [vmem:[#allocation6 + $0x164] sm:$0xf] }
 0x2c1   : > { %4659 = vmatpush.bf16.msrb.mxu2 %v9041_v23  ;;  %4687 = vmatpush.bf16.msra.mxu0 %v8773_v56  ;;  %v8861_v23 = vor.u32 %v10673_v20, %v8858_v22  ;;  %v10667_v56 = vld [vmem:[#allocation6 + $0xb4] sm:$0xf]  ;;  %v3312_v20 = vperm.slane %v12954_v36, 1  ;;  %v8930_v36 = vld [vmem:[#allocation6 + $0x178] sm:$0xf0] }
 0x2c3   : > { %4651 = vmatpush.bf16.msrb.mxu1 %v8937_v59  ;;  %4670 = vmatpush.bf16.msrb.mxu3 %v9121_v37  ;;  %v10730_v59 = vld [vmem:[#allocation6 + $0x2a4] sm:$0xf0] }
 0x2c4   : > { %v9081_v51 = vor.u32 %v10730_v59, %v9080_v44  ;;  %v10687_v59 = vld [vmem:[#allocation6 + $0x154] sm:$0xf] }
 0x2c5   : > { %4660 = vmatpush.bf16.msrb.mxu2 %v9033_v33  ;;  %4688 = vmatpush.bf16.msra.mxu0 %v8765_v38  ;;  %v9072_v38 = vld [vmem:[#allocation6 + $0x290] sm:$0xf] }
 0x2c7   : > { %4696 = vmatpush.bf16.msra.mxu1 %v8869_v8  ;;  %4671 = vmatpush.bf16.msrb.mxu3 %v9113_v18  ;;  %v10728_v8 = vld [vmem:[#allocation6 + $0x294] sm:$0xf0]  ;;  %v10726_v18 = vld [vmem:[#allocation6 + $0x284] sm:$0xf0] }
 0x2c8   : > { %v9073_v11 = vor.u32 %v10728_v8, %v9072_v38  ;;  %v8906_v38 = vld [vmem:[#allocation6 + $0x148] sm:$0xf0] }
 0x2c9   : > { %4661 = vmatpush.bf16.msrb.mxu2 %v9025_v0  ;;  %4689 = vmatpush.bf16.msra.mxu0 %v8757_v13  ;;  %v10732_v0 = vld [vmem:[#allocation6 + $0x2b4] sm:$0xf0]  ;;  %v10661_v13 = vld [vmem:[#allocation6 + $0x84] sm:$0xf] }
 0x2cb   : > { %4697 = vmatpush.bf16.msra.mxu1 %v8861_v23  ;;  %4672 = vmatpush.bf16.msrb.mxu3 %v9105_v34  ;;  %v9058_v34 = vld [vmem:[#allocation6 + $0x278] sm:$0xf0] }
 0x2cd   : > { %4662 = vmatpush.bf16.msrb.mxu2 %v9017_v43  ;;  %v10665_v43 = vld [vmem:[#allocation6 + $0xa4] sm:$0xf] }
 0x2ce   : > { %v8829_v37 = vor.u32 %v10665_v43, %v8826_v2  ;;  %v8914_v43 = vld [vmem:[#allocation6 + $0x158] sm:$0xf0] }
 0x2cf   : > { %4698 = vmatpush.bf16.msra.mxu1 %v8853_v63  ;;  %v9042_v2 = vld [vmem:[#allocation6 + $0x258] sm:$0xf0] }
 0x2d1   : > { %4663 = vmatpush.bf16.msrb.mxu2 %v9009_v62  ;;  %v8818_v62 = vld [vmem:[#allocation6 + $0x98] sm:$0xf0] }
 0x2d2   : > { %v8821_v17 = vor.u32 %v10663_v55, %v8818_v62 }
 0x2d3   : > { %4699 = vmatpush.bf16.msra.mxu1 %v8845_v41 }
 0x2ed   : > { %v12947_v58 = vpop.f32.mrf.mxu0 }
 0x2ef   : > { %v12949_v16 = vpop.f32.mrf.mxu2 }
 0x2f0   : > { %v3805_v6 = vadd.f32 %v12949_v16, %v3311_v21  ;;  %v9096_v16 = vld [vmem:[#allocation6 + $0x2c0] sm:$0xf]  ;;  %v9088_v21 = vld [vmem:[#allocation6 + $0x2b0] sm:$0xf] }
 0x2f1   : > { %v9097_v57 = vor.u32 %v10734_v48, %v9096_v16  ;;  %v9089_v53 = vor.u32 %v10732_v0, %v9088_v21  ;;  %v10721_v21 = vld [vmem:[#allocation6 + $0x264] sm:$0xf]  ;;  %v9050_v0 = vld [vmem:[#allocation6 + $0x268] sm:$0xf0] }
 0x2f2   : > { %v9053_v44 = vor.u32 %v10721_v21, %v9050_v0  ;;  %v8882_v21 = vld [vmem:[#allocation6 + $0x118] sm:$0xf0] }
 0x2f3   : > { %4673 = vmatpush.bf16.msrb.mxu3 %v9097_v57 }
 0x2f5   : > { %v3832_v9 = vpop.f32.mrf.mxu0 }
 0x2f6   : > { %v9001_v9 = vor.u32 %v10710_v28, %v9000_v40 }
 0x2f7   : > { %v3806_v35 = vpop.f32.mrf.mxu2  ;;  %4674 = vmatpush.bf16.msrb.mxu3 %v9089_v53 }
 0x2f8   : > { %v8749_v35 = vor.u32 %v10645_v31, %v8746_v45  ;;  %4664 = vmatpush.bf16.msrb.mxu2 %v9001_v9 }
 0x2fa   : > { %4690 = vmatpush.bf16.msra.mxu0 %v8749_v35 }
 0x2fb   : > { %4675 = vmatpush.bf16.msrb.mxu3 %v9081_v51  ;;  %v10719_v51 = vld [vmem:[#allocation6 + $0x254] sm:$0xf] }
 0x2fd   : > { %v12957_v3 = vpop.f32.mrf.mxu0 }
 0x2fe   : > { %v3883_v9 = vadd.f32 %v12957_v3, %v3312_v20 }
 0x2ff   : > { %v12959_v4 = vpop.f32.mrf.mxu2  ;;  %4676 = vmatpush.bf16.msrb.mxu3 %v9073_v11  ;;  %v9034_v11 = vld [vmem:[#allocation6 + $0x248] sm:$0xf0] }
 0x303   : > { %v3843_v1 = vpop.f32.mrf.mxu1 }
 0x305   : > { %v3817_v52 = vpop.f32.mrf.mxu3  ;;  %v3884_v27 = vpop.f32.mrf.mxu0 }
 0x306   : > { %v3818_v32 = vadd.f32 %v3817_v52, %v3805_v6  ;;  %v8810_v52 = vld [vmem:[#allocation6 + $0x88] sm:$0xf0] }
 0x307   : > { %v3858_v33 = vpop.f32.mrf.mxu2  ;;  %v8813_v40 = vor.u32 %v10661_v13, %v8810_v52  ;;  %v8898_v13 = vld [vmem:[#allocation6 + $0x138] sm:$0xf0] }
 0x308   : > { %v3831_v61 = vadd.f32 %v12947_v58, %v3818_v32  ;;  %v8837_v58 = vor.u32 %v10667_v56, %v8834_v25  ;;  %v10691_v32 = vld [vmem:[#allocation6 + $0x174] sm:$0xf] }
 0x309   : > { %v10723_v33 = vld [vmem:[#allocation6 + $0x274] sm:$0xf] }
 0x30a   : > { %v3844_v12 = vadd.f32 %v3843_v1, %v3831_v61  ;;  %4700 = vmatpush.bf16.msra.mxu1 %v8837_v58  ;;  %v9064_v1 = vld [vmem:[#allocation6 + $0x280] sm:$0xf]  ;;  %v9061_v57 = vor.u32 %v10723_v33, %v9058_v34  ;;  %v10713_v33 = vld [vmem:[#allocation6 + $0x224] sm:$0xf]  ;;  %v9018_v34 = vld [vmem:[#allocation6 + $0x228] sm:$0xf0] }
 0x30b   : > { %v3845_v46 = vpop.f32.mrf.mxu1  ;;  %v9065_v23 = vor.u32 %v10726_v18, %v9064_v1  ;;  %v10683_v18 = vld [vmem:[#allocation6 + $0x134] sm:$0xf] }
 0x30c   : > { %v3857_v42 = vadd.f32 %v12959_v4, %v3844_v12  ;;  %v8933_v46 = vor.u32 %v10691_v32, %v8930_v36  ;;  %v8994_v36 = vld [vmem:[#allocation6 + $0x1f8] sm:$0xf0] }
 0x30d   : > { %v3819_v49 = vpop.f32.mrf.mxu3  ;;  %v12963_v24 = vpop.f32.mrf.mxu0  ;;  %4677 = vmatpush.bf16.msrb.mxu3 %v9065_v23  ;;  %v9026_v23 = vld [vmem:[#allocation6 + $0x238] sm:$0xf0] }
 0x30e   : > { %4701 = vmatpush.bf16.msra.mxu1 %v8829_v37  ;;  %v8922_v49 = vld [vmem:[#allocation6 + $0x168] sm:$0xf0] }
 0x30f   : > { %v12965_v30 = vpop.f32.mrf.mxu2  ;;  %v8925_v58 = vor.u32 %v10689_v47, %v8922_v49  ;;  %v10679_v49 = vld [vmem:[#allocation6 + $0x114] sm:$0xf] }
 0x312   : > { %4702 = vmatpush.bf16.msra.mxu1 %v8821_v17 }
 0x313   : > { %v3895_v50 = vpop.f32.mrf.mxu1 }
 0x314   : > { %v3896_v35 = vadd.f32 %v3895_v50, %v3883_v9  ;;  %v3956_v50 = vperm.slane %v12970_v60, 1 }
 0x315   : > { %v3869_v7 = vpop.f32.mrf.mxu3  ;;  %v3936_v14 = vpop.f32.mrf.mxu0 }
 0x316   : > { %v3870_v10 = vadd.f32 %v3869_v7, %v3857_v42  ;;  %4703 = vmatpush.bf16.msra.mxu1 %v8813_v40  ;;  %v3909_v53 = vadd.f32 %v12965_v30, %v3896_v35  ;;  %v8917_v42 = vor.u32 %v10687_v59, %v8914_v43  ;;  %v10685_v7 = vld [vmem:[#allocation6 + $0x144] sm:$0xf]  ;;  %v9114_v43 = vld [vmem:[#allocation6 + $0x2e8] sm:$0xf0] }
 0x317   : > { %v3910_v15 = vpop.f32.mrf.mxu2  ;;  %v10681_v40 = vld [vmem:[#allocation6 + $0x124] sm:$0xf] }
 0x318   : > { %vm3951_vm5 = vcmp.ge.f32.partialorder %v3870_v10, 0.0  ;;  %v3959_v4 = vmul.f32 %v3955_v5, %v3870_v10  ;;  %v9045_v5 = vor.u32 %v10719_v51, %v9042_v2  ;;  %v8909_v15 = vor.u32 %v10685_v7, %v8906_v38  ;;  %v10737_v59 = vld [vmem:[#allocation6 + $0x2e4] sm:$0xf]  ;;  %v8978_v7 = vld [vmem:[#allocation6 + $0x1d8] sm:$0xf0] }
 0x319   : > { %v8885_v51 = vor.u32 %v10679_v49, %v8882_v21  ;;  %v10709_v38 = vld [vmem:[#allocation6 + $0x204] sm:$0xf]  ;;  %v8938_v21 = vld [vmem:[#allocation6 + $0x188] sm:$0xf0] }
 0x31a   : > { %v3961_v22 = vsel %vm3951_vm5, %v3870_v10, %v3959_v4  ;;  %v10717_v10 = vld [vmem:[#allocation6 + $0x244] sm:$0xf] }
 0x31b   : > { %3963 = vst [vmem:[%s12978_s7] sm:$0xff] %v3961_v22  ;;  %v3967_v6 = vrot.slane %v3961_v22, 7  ;;  %v3897_v27 = vpop.f32.mrf.mxu1  ;;  %v9037_v1 = vor.u32 %v10717_v10, %v9034_v11  ;;  %v10715_v22 = vld [vmem:[#allocation6 + $0x234] sm:$0xf]  ;;  %v9106_v10 = vld [vmem:[#allocation6 + $0x2d8] sm:$0xf0] }
 0x31c   : > { %v8901_v27 = vor.u32 %v10683_v18, %v8898_v13  ;;  %v9184_v11 = vld [vmem:[#allocation7 + $0x70] sm:$0xf]  ;;  %v10693_v49 = vld [vmem:[#allocation6 + $0x184] sm:$0xf] }
 0x31d   : > { %v3971_v28 = vsel %vm991_vm0, 0.0, %v3967_v6  ;;  %v3871_v29 = vpop.f32.mrf.mxu3  ;;  %v3973_v55 = vsel %vm991_vm0, %v3967_v6, 0.0 }
 0x31e   : > { %v3977_v26 = vrot.slane %v3971_v28, 1  ;;  %v3981_v31 = vrot.slane %v3971_v28, 2  ;;  %v3985_v45 = vrot.slane %v3971_v28, 3  ;;  %v3995_v19 = vrot.slane %v3971_v28, 4 }
 0x31f   : > { %v4007_v17 = vrot.slane %v3973_v55, 5  ;;  %v9029_v29 = vor.u32 %v10715_v22, %v9026_v23  ;;  %v10735_v55 = vld [vmem:[#allocation6 + $0x2d4] sm:$0xf]  ;;  %v10701_v22 = vld [vmem:[#allocation6 + $0x1c4] sm:$0xf] }
 0x320   : > { %v3989_v39 = vsel %vm991_vm0, %v3971_v28, %v3977_v26  ;;  %v3999_v63 = vsel %vm991_vm0, %v3977_v26, %v3981_v31  ;;  %v4011_v8 = vsel %vm991_vm0, %v3981_v31, %v3985_v45  ;;  %v8890_v28 = vld [vmem:[#allocation6 + $0x128] sm:$0xf0]  ;;  %v9109_v13 = vor.u32 %v10735_v55, %v9106_v10  ;;  %v10782_v55 = vld [vmem:[#allocation7 + $0x144] sm:$0xf0]  ;;  %v9152_v10 = vld [vmem:[#allocation7 + $0x30] sm:$0xf] }
 0x321   : > { %v3991_v16 = vsel %vm1036_vm1, %v3989_v39, %v3981_v31  ;;  %v4001_v48 = vsel %vm1036_vm1, %v3999_v63, %v3985_v45  ;;  %v10739_v63 = vld [vmem:[#allocation6 + $0x2f4] sm:$0xf]  ;;  %v8970_v23 = vld [vmem:[#allocation6 + $0x1c8] sm:$0xf0] }
 0x322   : > { %v3993_v3 = vsel %vm1038_vm2, %v3991_v16, %v3985_v45  ;;  %v4003_v54 = vsel %vm1038_vm2, %v4001_v48, %v3995_v19  ;;  %v10707_v45 = vld [vmem:[#allocation6 + $0x1f4] sm:$0xf]  ;;  %v9122_v16 = vld [vmem:[#allocation6 + $0x2f8] sm:$0xf0] }
 0x323   : > { %v12990_v61 = vpack.c.bf16 %v3993_v3, %v3993_v3  ;;  %v12992_v41 = vpack.c.bf16 %v4003_v54, %v4003_v54  ;;  %v3947_v56 = vpop.f32.mrf.mxu1  ;;  %v8893_v54 = vor.u32 %v10681_v40, %v8890_v28  ;;  %v8997_v47 = vor.u32 %v10707_v45, %v8994_v36  ;;  %v10731_v36 = vld [vmem:[#allocation6 + $0x2b4] sm:$0xf] }
 0x325   : > { %v3921_v25 = vpop.f32.mrf.mxu3  ;;  %4613 = vmatmul.bf16.vlgmr.msra.gmra.mxu2 %v12990_v61  ;;  %4639 = vmatmul.bf16.vlgmr.msrb.gmra.mxu0 %v12992_v41 }
 0x326   : > { %v3922_v12 = vadd.f32 %v3921_v25, %v3909_v53  ;;  %4709 = vmatpush.bf16.msra.mxu2 %v8933_v46  ;;  %4735 = vmatpush.bf16.msrb.mxu0 %v9061_v57  ;;  %v9125_v53 = vor.u32 %v10739_v63, %v9122_v16  ;;  %v10705_v25 = vld [vmem:[#allocation6 + $0x1e4] sm:$0xf]  ;;  %v9082_v16 = vld [vmem:[#allocation6 + $0x2a8] sm:$0xf0] }
 0x327   : > { %v10729_v63 = vld [vmem:[#allocation6 + $0x2a4] sm:$0xf] }
 0x328   : > { %v3935_v37 = vadd.f32 %v12963_v24, %v3922_v12  ;;  %v4013_v24 = vsel %vm1036_vm1, %v4011_v8, %v3995_v19  ;;  %v8986_v12 = vld [vmem:[#allocation6 + $0x1e8] sm:$0xf0] }
 0x329   : > { %v4015_v52 = vsel %vm1038_vm2, %v4013_v24, %v4007_v17  ;;  %v8989_v2 = vor.u32 %v10705_v25, %v8986_v12  ;;  %v9002_v8 = vld [vmem:[#allocation6 + $0x208] sm:$0xf0]  ;;  %v8941_v25 = vor.u32 %v10693_v49, %v8938_v21  ;;  %v9176_v12 = vld [vmem:[#allocation7 + $0x60] sm:$0xf]  ;;  %v10774_v49 = vld [vmem:[#allocation7 + $0x104] sm:$0xf0] }
 0x32a   : > { %v3948_v30 = vadd.f32 %v3947_v56, %v3935_v37  ;;  %4710 = vmatpush.bf16.msra.mxu2 %v8925_v58  ;;  %4736 = vmatpush.bf16.msrb.mxu0 %v9053_v44  ;;  %v13016_v32 = vpack.c.bf16 %v4015_v52, %v4015_v52  ;;  %v10711_v58 = vld [vmem:[#allocation6 + $0x214] sm:$0xf]  ;;  %v9010_v44 = vld [vmem:[#allocation6 + $0x218] sm:$0xf0]  ;;  %v8874_v37 = vld [vmem:[#allocation6 + $0x108] sm:$0xf0]  ;;  %v9005_v18 = vor.u32 %v10709_v38, %v9002_v8 }
 0x32b   : > { %v3949_v14 = vpop.f32.mrf.mxu1  ;;  %v10733_v52 = vld [vmem:[#allocation6 + $0x2c4] sm:$0xf]  ;;  %v10750_v38 = vld [vmem:[#allocation7 + $0x44] sm:$0xf0]  ;;  %v9288_v8 = vld [vmem:[#allocation7 + $0x140] sm:$0xf] }
 0x32c   : > { %vm3952_vm6 = vcmp.ge.f32.partialorder %v3948_v30, 0.0  ;;  %v3960_v62 = vmul.f32 %v3956_v50, %v3948_v30  ;;  %v10677_v50 = vld [vmem:[#allocation6 + $0x104] sm:$0xf]  ;;  %v9312_v14 = vld [vmem:[#allocation7 + $0x170] sm:$0xf] }
 0x32d   : > { %v3923_v60 = vpop.f32.mrf.mxu3  ;;  %v8877_v24 = vor.u32 %v10677_v50, %v8874_v37  ;;  %v9360_v21 = vld [vmem:[#allocation7 + $0x1d0] sm:$0xf] }
 0x32e   : > { %v13002_v4 = vsel %vm3952_vm6, %v3948_v30, %v3960_v62  ;;  %4711 = vmatpush.bf16.msra.mxu2 %v8917_v42  ;;  %4737 = vmatpush.bf16.msrb.mxu0 %v9045_v5  ;;  %v10703_v42 = vld [vmem:[#allocation6 + $0x1d4] sm:$0xf]  ;;  %v9013_v30 = vor.u32 %v10711_v58, %v9010_v44  ;;  %v9117_v5 = vor.u32 %v10737_v59, %v9114_v43  ;;  %v10756_v62 = vld [vmem:[#allocation7 + $0x74] sm:$0xf0]  ;;  %v10754_v58 = vld [vmem:[#allocation7 + $0x64] sm:$0xf0] }
 0x32f   : > { %3964 = vst [vmem:[%s12978_s7 + $0x8] sm:$0xff] %v13002_v4  ;;  %v3968_v20 = vrot.slane %v13002_v4, 7  ;;  %v10788_v60 = vld [vmem:[#allocation7 + $0x174] sm:$0xf0]  ;;  %v8981_v17 = vor.u32 %v10703_v42, %v8978_v7  ;;  %v9185_v40 = vor.u32 %v10756_v62, %v9184_v11  ;;  %v9304_v44 = vld [vmem:[#allocation7 + $0x160] sm:$0xf]  ;;  %v9177_v59 = vor.u32 %v10754_v58, %v9176_v12 }
 0x330   : > { %v9313_v28 = vor.u32 %v10788_v60, %v9312_v14  ;;  %v10786_v43 = vld [vmem:[#allocation7 + $0x164] sm:$0xf0]  ;;  %v9296_v42 = vld [vmem:[#allocation7 + $0x150] sm:$0xf]  ;;  %v9160_v7 = vld [vmem:[#allocation7 + $0x40] sm:$0xf]  ;;  %v9289_v62 = vor.u32 %v10782_v55, %v9288_v8 }
 0x331   : > { %v13011_v6 = vsel %vm991_vm0, 0.0, %v3968_v20  ;;  %v9305_v50 = vor.u32 %v10786_v43, %v9304_v44  ;;  %v10748_v11 = vld [vmem:[#allocation7 + $0x34] sm:$0xf0]  ;;  %v9280_v60 = vld [vmem:[#allocation7 + $0x130] sm:$0xf] }
 0x332   : > { %4712 = vmatpush.bf16.msra.mxu2 %v8909_v15  ;;  %4738 = vmatpush.bf16.msrb.mxu0 %v9037_v1  ;;  %v3978_v9 = vrot.slane %v13011_v6, 1  ;;  %v3982_v26 = vrot.slane %v13011_v6, 2  ;;  %v3986_v31 = vrot.slane %v13011_v6, 3  ;;  %v3996_v39 = vrot.slane %v13011_v6, 4  ;;  %v10755_v44 = vld [vmem:[#allocation7 + $0x74] sm:$0xf] }
 0x333   : > { %v3974_v1 = vsel %vm991_vm0, %v3968_v20, 0.0  ;;  %v9153_v14 = vor.u32 %v10748_v11, %v9152_v10  ;;  %v9432_v43 = vld [vmem:[#allocation7 + $0x260] sm:$0xf]  ;;  %v10753_v8 = vld [vmem:[#allocation7 + $0x64] sm:$0xf] }
 0x334   : > { %v3990_v35 = vsel %vm991_vm0, %v13011_v6, %v3978_v9  ;;  %v4000_v19 = vsel %vm991_vm0, %v3978_v9, %v3982_v26  ;;  %v4012_v15 = vsel %vm991_vm0, %v3982_v26, %v3986_v31  ;;  %v8973_v9 = vor.u32 %v10701_v22, %v8970_v23  ;;  %v10772_v22 = vld [vmem:[#allocation7 + $0xf4] sm:$0xf0]  ;;  %v9272_v23 = vld [vmem:[#allocation7 + $0x120] sm:$0xf]  ;;  %v9178_v55 = vld [vmem:[#allocation7 + $0x68] sm:$0xf0] }
 0x335   : > { %4665 = vmatmul.bf16.vlgmr.msrb.gmra.mxu2 %v13016_v32  ;;  %4691 = vmatmul.bf16.vlgmr.msra.gmra.mxu0 %v12990_v61  ;;  %v3992_v48 = vsel %vm1036_vm1, %v3990_v35, %v3982_v26  ;;  %v4002_v3 = vsel %vm1036_vm1, %v4000_v19, %v3986_v31  ;;  %v9021_v61 = vor.u32 %v10713_v33, %v9018_v34  ;;  %v4008_v4 = vrot.slane %v3974_v1, 5  ;;  %v10699_v26 = vld [vmem:[#allocation6 + $0x1b4] sm:$0xf]  ;;  %v9090_v33 = vld [vmem:[#allocation6 + $0x2b8] sm:$0xf0] }
 0x336   : > { %4713 = vmatpush.bf16.msra.mxu2 %v8901_v27  ;;  %4739 = vmatpush.bf16.msrb.mxu0 %v9029_v29  ;;  %v3994_v46 = vsel %vm1038_vm2, %v3992_v48, %v3986_v31  ;;  %v4004_v57 = vsel %vm1038_vm2, %v4002_v3, %v3996_v39  ;;  %v9098_v27 = vld [vmem:[#allocation6 + $0x2c8] sm:$0xf0]  ;;  %v4014_v29 = vsel %vm1036_vm1, %v4012_v15, %v3996_v39  ;;  %v8962_v31 = vld [vmem:[#allocation6 + $0x1b8] sm:$0xf0]  ;;  %v10697_v39 = vld [vmem:[#allocation6 + $0x1a4] sm:$0xf] }
 0x337   : > { %v13030_v0 = vpack.c.bf16 %v3994_v46, %v3994_v46  ;;  %v13032_v56 = vpack.c.bf16 %v4004_v57, %v4004_v57  ;;  %v9101_v20 = vor.u32 %v10733_v52, %v9098_v27  ;;  %v4016_v45 = vsel %vm1038_vm2, %v4014_v29, %v4008_v4  ;;  %v8954_v19 = vld [vmem:[#allocation6 + $0x1a8] sm:$0xf0]  ;;  %v10727_v46 = vld [vmem:[#allocation6 + $0x294] sm:$0xf]  ;;  %v9144_v15 = vld [vmem:[#allocation7 + $0x20] sm:$0xf] }
 0x338   : > { %v8965_v6 = vor.u32 %v10699_v26, %v8962_v31  ;;  %v4022_v34 = vpack.c.bf16 %v4016_v45, %v4016_v45  ;;  %v9093_v35 = vor.u32 %v10731_v36, %v9090_v33  ;;  %v8957_v48 = vor.u32 %v10697_v39, %v8954_v19  ;;  %v10746_v1 = vld [vmem:[#allocation7 + $0x24] sm:$0xf0]  ;;  %v10804_v29 = vld [vmem:[#allocation7 + $0x1f4] sm:$0xf0]  ;;  %v9136_v4 = vld [vmem:[#allocation7 + $0x10] sm:$0xf] }
 0x339   : > { %4626 = vmatmul.bf16.vlgmr.msra.gmra.mxu3 %v13030_v0  ;;  %4652 = vmatmul.bf16.vlgmr.msrb.gmra.mxu1 %v13032_v56  ;;  %v9085_v3 = vor.u32 %v10729_v63, %v9082_v16  ;;  %v10778_v52 = vld [vmem:[#allocation7 + $0x124] sm:$0xf0]  ;;  %v9240_v26 = vld [vmem:[#allocation7 + $0xe0] sm:$0xf]  ;;  %v9264_v33 = vld [vmem:[#allocation7 + $0x110] sm:$0xf] }
 0x33a   : > { %4714 = vmatpush.bf16.msra.mxu2 %v8893_v54  ;;  %4722 = vmatpush.bf16.msra.mxu3 %v8997_v47  ;;  %v10695_v54 = vld [vmem:[#allocation6 + $0x194] sm:$0xf]  ;;  %v10770_v45 = vld [vmem:[#allocation7 + $0xe4] sm:$0xf0]  ;;  %v9128_v63 = vld [vmem:[#allocation7] sm:$0xf] }
 0x33b   : > { %4740 = vmatpush.bf16.msrb.mxu0 %v9021_v61  ;;  %4748 = vmatpush.bf16.msrb.mxu1 %v9125_v53  ;;  %v10725_v61 = vld [vmem:[#allocation6 + $0x284] sm:$0xf]  ;;  %v9066_v53 = vld [vmem:[#allocation6 + $0x288] sm:$0xf0]  ;;  %v9241_v36 = vor.u32 %v10770_v45, %v9240_v26  ;;  %v10802_v39 = vld [vmem:[#allocation7 + $0x1e4] sm:$0xf0] }
 0x33c   : > { %v10742_v16 = vld [vmem:[#allocation7 + $0x4] sm:$0xf0]  ;;  %v9424_v10 = vld [vmem:[#allocation7 + $0x250] sm:$0xf]  ;;  %v10816_v11 = vld [vmem:[#allocation7 + $0x254] sm:$0xf0] }
 0x33d   : > { %v9200_v26 = vld [vmem:[#allocation7 + $0x90] sm:$0xf]  ;;  %v10749_v45 = vld [vmem:[#allocation7 + $0x44] sm:$0xf] }
 0x33e   : > { %4715 = vmatpush.bf16.msra.mxu2 %v8885_v51  ;;  %4723 = vmatpush.bf16.msra.mxu3 %v8989_v2  ;;  %v9168_v51 = vld [vmem:[#allocation7 + $0x50] sm:$0xf]  ;;  %v10752_v2 = vld [vmem:[#allocation7 + $0x54] sm:$0xf0] }
 0x33f   : > { %4741 = vmatpush.bf16.msrb.mxu0 %v9013_v30  ;;  %4749 = vmatpush.bf16.msrb.mxu1 %v9117_v5  ;;  %v9169_v37 = vor.u32 %v10752_v2, %v9168_v51  ;;  %v10784_v30 = vld [vmem:[#allocation7 + $0x154] sm:$0xf0]  ;;  %v10818_v2 = vld [vmem:[#allocation7 + $0x264] sm:$0xf0] }
 0x340   : > { %v9297_v5 = vor.u32 %v10784_v30, %v9296_v42  ;;  %v9433_v30 = vor.u32 %v10818_v2, %v9432_v43  ;;  %v9146_v43 = vld [vmem:[#allocation7 + $0x28] sm:$0xf0] }
 0x342   : > { %4716 = vmatpush.bf16.msra.mxu2 %v8877_v24  ;;  %4724 = vmatpush.bf16.msra.mxu3 %v8981_v17  ;;  %v10780_v24 = vld [vmem:[#allocation7 + $0x134] sm:$0xf0] }
 0x343   : > { %4742 = vmatpush.bf16.msrb.mxu0 %v9005_v18  ;;  %4750 = vmatpush.bf16.msrb.mxu1 %v9109_v13  ;;  %v9281_v17 = vor.u32 %v10780_v24, %v9280_v60  ;;  %v9248_v18 = vld [vmem:[#allocation7 + $0xf0] sm:$0xf]  ;;  %v9145_v13 = vor.u32 %v10746_v1, %v9144_v15  ;;  %v10796_v24 = vld [vmem:[#allocation7 + $0x1b4] sm:$0xf0]  ;;  %v9208_v15 = vld [vmem:[#allocation7 + $0xa0] sm:$0xf] }
 0x344   : > { %v9249_v27 = vor.u32 %v10772_v22, %v9248_v18  ;;  %v9344_v60 = vld [vmem:[#allocation7 + $0x1b0] sm:$0xf]  ;;  %v10762_v1 = vld [vmem:[#allocation7 + $0xa4] sm:$0xf0]  ;;  %v10751_v18 = vld [vmem:[#allocation7 + $0x54] sm:$0xf] }
 0x345   : > { %4717 = vmatmul.bf16.vlgmr.msra.gmra.mxu2 %v12992_v41  ;;  %v8946_v41 = vld [vmem:[#allocation6 + $0x198] sm:$0xf0]  ;;  %v9209_v22 = vor.u32 %v10762_v1, %v9208_v15  ;;  %v9242_v15 = vld [vmem:[#allocation7 + $0xe8] sm:$0xf0]  ;;  %v9384_v1 = vld [vmem:[#allocation7 + $0x200] sm:$0xf] }
 0x346   : > { %5381 = vmatpush.bf16.msrb.mxu2 %v9185_v40  ;;  %4743 = vmatmul.bf16.vlgmr.msrb.gmra.mxu0 %v13016_v32  ;;  %v9074_v32 = vld [vmem:[#allocation6 + $0x298] sm:$0xf0]  ;;  %v8949_v57 = vor.u32 %v10695_v54, %v8946_v41  ;;  %v9273_v40 = vor.u32 %v10778_v52, %v9272_v23  ;;  %v10768_v54 = vld [vmem:[#allocation7 + $0xd4] sm:$0xf0]  ;;  %v9440_v41 = vld [vmem:[#allocation7 + $0x270] sm:$0xf] }
 0x347   : > { %5407 = vmatpush.bf16.msra.mxu0 %v9313_v28  ;;  %4725 = vmatpush.bf16.msra.mxu3 %v8973_v9  ;;  %v9077_v47 = vor.u32 %v10727_v46, %v9074_v32  ;;  %v9376_v28 = vld [vmem:[#allocation7 + $0x1f0] sm:$0xf]  ;;  %v10820_v46 = vld [vmem:[#allocation7 + $0x274] sm:$0xf0]  ;;  %v9170_v23 = vld [vmem:[#allocation7 + $0x58] sm:$0xf0] }
 0x348   : > { %4751 = vmatpush.bf16.msrb.mxu1 %v9101_v20  ;;  %v9377_v9 = vor.u32 %v10804_v29, %v9376_v28  ;;  %v10744_v20 = vld [vmem:[#allocation7 + $0x14] sm:$0xf0]  ;;  %v9416_v52 = vld [vmem:[#allocation7 + $0x240] sm:$0xf] }
 0x349   : > { %4678 = vmatmul.bf16.vlgmr.msrb.gmra.mxu3 %v4022_v34  ;;  %4704 = vmatmul.bf16.vlgmr.msra.gmra.mxu1 %v13030_v0  ;;  %v9069_v0 = vor.u32 %v10725_v61, %v9066_v53  ;;  %v9137_v31 = vor.u32 %v10744_v20, %v9136_v4  ;;  %v10800_v53 = vld [vmem:[#allocation7 + $0x1d4] sm:$0xf0]  ;;  %v9336_v29 = vld [vmem:[#allocation7 + $0x1a0] sm:$0xf] }
 0x34a   : > { %5382 = vmatpush.bf16.msrb.mxu2 %v9177_v59  ;;  %v9361_v12 = vor.u32 %v10800_v53, %v9360_v21  ;;  %v9186_v59 = vld [vmem:[#allocation7 + $0x78] sm:$0xf0]  ;;  %v9504_v21 = vld [vmem:[#allocation7 + $0x2f0] sm:$0xf] }
 0x34b   : > { %4726 = vmatpush.bf16.msra.mxu3 %v8965_v6  ;;  %5408 = vmatpush.bf16.msra.mxu0 %v9305_v50  ;;  %v10776_v6 = vld [vmem:[#allocation7 + $0x114] sm:$0xf0]  ;;  %v9189_v51 = vor.u32 %v10755_v44, %v9186_v59  ;;  %v9352_v50 = vld [vmem:[#allocation7 + $0x1c0] sm:$0xf]  ;;  %v10745_v59 = vld [vmem:[#allocation7 + $0x24] sm:$0xf] }
 0x34c   : > { %4752 = vmatpush.bf16.msrb.mxu1 %v9093_v35  ;;  %v9265_v35 = vor.u32 %v10776_v6, %v9264_v33  ;;  %v9162_v33 = vld [vmem:[#allocation7 + $0x48] sm:$0xf0]  ;;  %v9408_v6 = vld [vmem:[#allocation7 + $0x230] sm:$0xf]  ;;  %v9149_v2 = vor.u32 %v10745_v59, %v9146_v43 }
 0x34e   : > { %5383 = vmatpush.bf16.msrb.mxu2 %v9169_v37  ;;  %v10798_v37 = vld [vmem:[#allocation7 + $0x1c4] sm:$0xf0] }
 0x34f   : > { %4727 = vmatpush.bf16.msra.mxu3 %v8957_v48  ;;  %5409 = vmatpush.bf16.msra.mxu0 %v9297_v5  ;;  %v9232_v48 = vld [vmem:[#allocation7 + $0xd0] sm:$0xf]  ;;  %v9353_v5 = vor.u32 %v10798_v37, %v9352_v50  ;;  %v9250_v50 = vld [vmem:[#allocation7 + $0xf8] sm:$0xf0] }
 0x350   : > { %4753 = vmatpush.bf16.msrb.mxu1 %v9085_v3  ;;  %v9129_v3 = vor.u32 %v10742_v16, %v9128_v63  ;;  %v9233_v32 = vor.u32 %v10768_v54, %v9232_v48  ;;  %v10792_v63 = vld [vmem:[#allocation7 + $0x194] sm:$0xf0]  ;;  %v9192_v48 = vld [vmem:[#allocation7 + $0x80] sm:$0xf]  ;;  %v9392_v37 = vld [vmem:[#allocation7 + $0x210] sm:$0xf] }
 0x353   : > { %4728 = vmatpush.bf16.msra.mxu3 %v8949_v57  ;;  %5410 = vmatpush.bf16.msra.mxu0 %v9289_v62  ;;  %v9441_v57 = vor.u32 %v10820_v46, %v9440_v41  ;;  %v9181_v62 = vor.u32 %v10753_v8, %v9178_v55  ;;  %v10747_v46 = vld [vmem:[#allocation7 + $0x34] sm:$0xf]  ;;  %v9496_v8 = vld [vmem:[#allocation7 + $0x2e0] sm:$0xf] }
 0x354   : > { %4754 = vmatpush.bf16.msrb.mxu1 %v9077_v47  ;;  %v9256_v47 = vld [vmem:[#allocation7 + $0x100] sm:$0xf] }
 0x355   : > { %v9257_v61 = vor.u32 %v10774_v49, %v9256_v47  ;;  %v9400_v47 = vld [vmem:[#allocation7 + $0x220] sm:$0xf]  ;;  %v10810_v49 = vld [vmem:[#allocation7 + $0x224] sm:$0xf0] }
 0x356   : > { %v9401_v53 = vor.u32 %v10810_v49, %v9400_v47 }
 0x357   : > { %4729 = vmatpush.bf16.msra.mxu3 %v8941_v25  ;;  %5411 = vmatpush.bf16.msra.mxu0 %v9281_v17  ;;  %v9224_v25 = vld [vmem:[#allocation7 + $0xc0] sm:$0xf]  ;;  %v9345_v17 = vor.u32 %v10796_v24, %v9344_v60 }
 0x358   : > { %4755 = vmatpush.bf16.msrb.mxu1 %v9069_v0  ;;  %v10766_v0 = vld [vmem:[#allocation7 + $0xc4] sm:$0xf0] }
 0x359   : > { %v9225_v58 = vor.u32 %v10766_v0, %v9224_v25  ;;  %v10836_v25 = vld [vmem:[#allocation7 + $0x2f4] sm:$0xf0]  ;;  %v9320_v0 = vld [vmem:[#allocation7 + $0x180] sm:$0xf] }
 0x35a   : > { %4730 = vmatmul.bf16.vlgmr.msra.gmra.mxu3 %v13032_v56  ;;  %v9161_v56 = vor.u32 %v10750_v38, %v9160_v7  ;;  %v9216_v7 = vld [vmem:[#allocation7 + $0xb0] sm:$0xf]  ;;  %v10764_v38 = vld [vmem:[#allocation7 + $0xb4] sm:$0xf0] }
 0x35b   : > { %4756 = vmatmul.bf16.vlgmr.msrb.gmra.mxu1 %v4022_v34  ;;  %5394 = vmatpush.bf16.msrb.mxu3 %v9249_v27  ;;  %v9368_v34 = vld [vmem:[#allocation7 + $0x1e0] sm:$0xf]  ;;  %v10814_v27 = vld [vmem:[#allocation7 + $0x244] sm:$0xf0] }
 0x35c   : > { %5384 = vmatpush.bf16.msrb.mxu2 %v9161_v56  ;;  %5412 = vmatpush.bf16.msra.mxu0 %v9273_v40  ;;  %v9369_v19 = vor.u32 %v10802_v39, %v9368_v34  ;;  %v9217_v56 = vor.u32 %v10764_v38, %v9216_v7  ;;  %v9173_v40 = vor.u32 %v10751_v18, %v9170_v23  ;;  %v10812_v34 = vld [vmem:[#allocation7 + $0x234] sm:$0xf0]  ;;  %v9488_v23 = vld [vmem:[#allocation7 + $0x2d0] sm:$0xf] }
 0x35d   : > { %5420 = vmatpush.bf16.msra.mxu1 %v9377_v9  ;;  %v9417_v28 = vor.u32 %v10814_v27, %v9416_v52  ;;  %v10794_v9 = vld [vmem:[#allocation7 + $0x1a4] sm:$0xf0]  ;;  %v9409_v39 = vor.u32 %v10812_v34, %v9408_v6  ;;  %v10832_v52 = vld [vmem:[#allocation7 + $0x2d4] sm:$0xf0] }
 0x35e   : > { %v9337_v20 = vor.u32 %v10794_v9, %v9336_v29  ;;  %v10741_v29 = vld [vmem:[#allocation7 + $0x4] sm:$0xf]  ;;  %v9130_v9 = vld [vmem:[#allocation7 + $0x8] sm:$0xf0] }
 0x35f   : > { %5395 = vmatpush.bf16.msrb.mxu3 %v9241_v36 }
 0x360   : > { %5385 = vmatpush.bf16.msrb.mxu2 %v9153_v14  ;;  %5413 = vmatpush.bf16.msra.mxu0 %v9265_v35  ;;  %v9425_v14 = vor.u32 %v10816_v11, %v9424_v10  ;;  %v9165_v35 = vor.u32 %v10749_v45, %v9162_v33  ;;  %v10743_v11 = vld [vmem:[#allocation7 + $0x14] sm:$0xf]  ;;  %v10830_v33 = vld [vmem:[#allocation7 + $0x2c4] sm:$0xf0] }
 0x361   : > { %5421 = vmatpush.bf16.msra.mxu1 %v9369_v19  ;;  %v9328_v19 = vld [vmem:[#allocation7 + $0x190] sm:$0xf] }
 0x362   : > { %v9329_v16 = vor.u32 %v10792_v63, %v9328_v19  ;;  %v10765_v19 = vld [vmem:[#allocation7 + $0xc4] sm:$0xf]  ;;  %v9226_v63 = vld [vmem:[#allocation7 + $0xc8] sm:$0xf0] }
 0x363   : > { %5396 = vmatpush.bf16.msrb.mxu3 %v9233_v32  ;;  %v9154_v32 = vld [vmem:[#allocation7 + $0x38] sm:$0xf0] }
 0x364   : > { %5386 = vmatpush.bf16.msrb.mxu2 %v9145_v13  ;;  %5414 = vmatpush.bf16.msra.mxu0 %v9257_v61 }
 0x365   : > { %5422 = vmatpush.bf16.msra.mxu1 %v9361_v12  ;;  %v10790_v12 = vld [vmem:[#allocation7 + $0x184] sm:$0xf0] }
 0x366   : > { %v9321_v44 = vor.u32 %v10790_v12, %v9320_v0 }
 0x367   : > { %5397 = vmatpush.bf16.msrb.mxu3 %v9225_v58  ;;  %v9505_v58 = vor.u32 %v10836_v25, %v9504_v21  ;;  %v9464_v21 = vld [vmem:[#allocation7 + $0x2a0] sm:$0xf] }
 0x368   : > { %5387 = vmatpush.bf16.msrb.mxu2 %v9137_v31  ;;  %5459 = vmatpush.bf16.msrb.mxu0 %v9189_v51  ;;  %v10760_v31 = vld [vmem:[#allocation7 + $0x94] sm:$0xf0]  ;;  %v10771_v51 = vld [vmem:[#allocation7 + $0xf4] sm:$0xf] }
 0x369   : > { %5423 = vmatpush.bf16.msra.mxu1 %v9353_v5  ;;  %v9201_v36 = vor.u32 %v10760_v31, %v9200_v26  ;;  %v13057_v5 = vld [vmem:[%s13295_s14] sm:$0x3]  ;;  %v9253_v7 = vor.u32 %v10771_v51, %v9250_v50  ;;  %v9133_v31 = vor.u32 %v10741_v29, %v9130_v9  ;;  %v9456_v51 = vld [vmem:[#allocation7 + $0x290] sm:$0xf] }
 0x36a   : > { %v4121_v60 = vperm.slane %v13057_v5, 0  ;;  %v9572_v9 = vld [vmem:[#allocation9 + $0x60] sm:$0xf] }
 0x36b   : > { %5398 = vmatpush.bf16.msrb.mxu3 %v9217_v56  ;;  %v10834_v56 = vld [vmem:[#allocation7 + $0x2e4] sm:$0xf0] }
 0x36c   : > { %5388 = vmatpush.bf16.msrb.mxu2 %v9129_v3  ;;  %5460 = vmatpush.bf16.msrb.mxu0 %v9181_v62  ;;  %v10758_v3 = vld [vmem:[#allocation7 + $0x84] sm:$0xf0]  ;;  %v9497_v10 = vor.u32 %v10834_v56, %v9496_v8  ;;  %v9138_v62 = vld [vmem:[#allocation7 + $0x18] sm:$0xf0] }
 0x36d   : > { %5424 = vmatpush.bf16.msra.mxu1 %v9345_v17  ;;  %v9193_v41 = vor.u32 %v10758_v3, %v9192_v48  ;;  %v9141_v17 = vor.u32 %v10743_v11, %v9138_v62  ;;  %v9229_v48 = vor.u32 %v10765_v19, %v9226_v63  ;;  %v9472_v3 = vld [vmem:[#allocation7 + $0x2b0] sm:$0xf] }
 0x36f   : > { %5399 = vmatpush.bf16.msrb.mxu3 %v9209_v22  ;;  %v10806_v22 = vld [vmem:[#allocation7 + $0x204] sm:$0xf0] }
 0x370   : > { %5433 = vmatpush.bf16.msra.mxu2 %v9441_v57  ;;  %5461 = vmatpush.bf16.msrb.mxu0 %v9173_v40  ;;  %v9157_v57 = vor.u32 %v10747_v46, %v9154_v32  ;;  %v9385_v40 = vor.u32 %v10806_v22, %v9384_v1 }
 0x371   : > { %5425 = vmatpush.bf16.msra.mxu1 %v9337_v20  ;;  %v9234_v20 = vld [vmem:[#allocation7 + $0xd8] sm:$0xf0] }
 0x373   : > { %5400 = vmatpush.bf16.msrb.mxu3 %v9201_v36  ;;  %v9480_v36 = vld [vmem:[#allocation7 + $0x2c0] sm:$0xf] }
 0x374   : > { %5434 = vmatpush.bf16.msra.mxu2 %v9433_v30  ;;  %5462 = vmatpush.bf16.msrb.mxu0 %v9165_v35  ;;  %v10808_v30 = vld [vmem:[#allocation7 + $0x214] sm:$0xf0]  ;;  %v9481_v34 = vor.u32 %v10830_v33, %v9480_v36  ;;  %v10785_v36 = vld [vmem:[#allocation7 + $0x164] sm:$0xf]  ;;  %v9306_v33 = vld [vmem:[#allocation7 + $0x168] sm:$0xf0] }
 0x375   : > { %5426 = vmatpush.bf16.msra.mxu1 %v9329_v16  ;;  %v9393_v38 = vor.u32 %v10808_v30, %v9392_v37  ;;  %v10759_v37 = vld [vmem:[#allocation7 + $0x94] sm:$0xf]  ;;  %v9202_v30 = vld [vmem:[#allocation7 + $0x98] sm:$0xf0]  ;;  %v9309_v63 = vor.u32 %v10785_v36, %v9306_v33 }
 0x376   : > { %v9205_v56 = vor.u32 %v10759_v37, %v9202_v30  ;;  %v9282_v37 = vld [vmem:[#allocation7 + $0x138] sm:$0xf0]  ;;  %v10807_v36 = vld [vmem:[#allocation7 + $0x214] sm:$0xf] }
 0x377   : > { %5401 = vmatpush.bf16.msrb.mxu3 %v9193_v41  ;;  %v9394_v33 = vld [vmem:[#allocation7 + $0x218] sm:$0xf0] }
 0x378   : > { %5435 = vmatpush.bf16.msra.mxu2 %v9425_v14  ;;  %5463 = vmatpush.bf16.msrb.mxu0 %v9157_v57  ;;  %v10769_v14 = vld [vmem:[#allocation7 + $0xe4] sm:$0xf]  ;;  %v9218_v57 = vld [vmem:[#allocation7 + $0xb8] sm:$0xf0] }
 0x379   : > { %5427 = vmatpush.bf16.msra.mxu1 %v9321_v44  ;;  %v9245_v18 = vor.u32 %v10769_v14, %v9242_v15  ;;  %v9210_v44 = vld [vmem:[#allocation7 + $0xa8] sm:$0xf0] }
 0x37a   : > { %v9194_v15 = vld [vmem:[#allocation7 + $0x88] sm:$0xf0] }
 0x37b   : > { %5446 = vmatpush.bf16.msra.mxu3 %v9505_v58  ;;  %v10761_v58 = vld [vmem:[#allocation7 + $0xa4] sm:$0xf] }
 0x37c   : > { %5436 = vmatpush.bf16.msra.mxu2 %v9417_v28  ;;  %5464 = vmatpush.bf16.msrb.mxu0 %v9149_v2  ;;  %v9489_v28 = vor.u32 %v10832_v52, %v9488_v23  ;;  %v9213_v43 = vor.u32 %v10761_v58, %v9210_v44  ;;  %v10824_v2 = vld [vmem:[#allocation7 + $0x294] sm:$0xf0]  ;;  %v10787_v52 = vld [vmem:[#allocation7 + $0x174] sm:$0xf] }
 0x37d   : > { %5472 = vmatpush.bf16.msrb.mxu1 %v9253_v7  ;;  %v9457_v50 = vor.u32 %v10824_v2, %v9456_v51 }
 0x37f   : > { %5447 = vmatpush.bf16.msra.mxu3 %v9497_v10  ;;  %v10822_v10 = vld [vmem:[#allocation7 + $0x284] sm:$0xf0] }
 0x380   : > { %5437 = vmatpush.bf16.msra.mxu2 %v9409_v39  ;;  %5465 = vmatpush.bf16.msrb.mxu0 %v9141_v17  ;;  %v10757_v17 = vld [vmem:[#allocation7 + $0x84] sm:$0xf] }
 0x381   : > { %5473 = vmatpush.bf16.msrb.mxu1 %v9245_v18  ;;  %v9197_v18 = vor.u32 %v10757_v17, %v9194_v15  ;;  %v10809_v17 = vld [vmem:[#allocation7 + $0x224] sm:$0xf] }
 0x383   : > { %5448 = vmatpush.bf16.msra.mxu3 %v9489_v28 }
 0x384   : > { %5438 = vmatpush.bf16.msra.mxu2 %v9401_v53  ;;  %5466 = vmatpush.bf16.msrb.mxu0 %v9133_v31  ;;  %v10826_v53 = vld [vmem:[#allocation7 + $0x2a4] sm:$0xf0] }
 0x385   : > { %v9465_v25 = vor.u32 %v10826_v53, %v9464_v21  ;;  %v10781_v21 = vld [vmem:[#allocation7 + $0x144] sm:$0xf]  ;;  %v9290_v53 = vld [vmem:[#allocation7 + $0x148] sm:$0xf0] }
 0x386   : > { %v9293_v44 = vor.u32 %v10781_v21, %v9290_v53  ;;  %v10831_v21 = vld [vmem:[#allocation7 + $0x2d4] sm:$0xf]  ;;  %v9490_v53 = vld [vmem:[#allocation7 + $0x2d8] sm:$0xf0] }
 0x387   : > { %5449 = vmatpush.bf16.msra.mxu3 %v9481_v34 }
 0x388   : > { %5439 = vmatpush.bf16.msra.mxu2 %v9393_v38 }
 0x38c   : > { %5440 = vmatpush.bf16.msra.mxu2 %v9385_v40 }
 0x3a2   : > { %v13048_v42 = vpop.f32.mrf.mxu0 }
 0x3a8   : > { %v13050_v13 = vpop.f32.mrf.mxu2 }
 0x3a9   : > { %v4615_v6 = vadd.f32 %v13050_v13, %v4121_v60  ;;  %v10763_v13 = vld [vmem:[#allocation7 + $0xb4] sm:$0xf] }
 0x3aa   : > { %v4642_v4 = vpop.f32.mrf.mxu0  ;;  %v9221_v49 = vor.u32 %v10763_v13, %v9218_v57  ;;  %v10815_v57 = vld [vmem:[#allocation7 + $0x254] sm:$0xf] }
 0x3ab   : > { %v10767_v4 = vld [vmem:[#allocation7 + $0xd4] sm:$0xf] }
 0x3ac   : > { %v9237_v45 = vor.u32 %v10767_v4, %v9234_v20  ;;  %v10819_v20 = vld [vmem:[#allocation7 + $0x274] sm:$0xf] }
 0x3ae   : > { %5474 = vmatpush.bf16.msrb.mxu1 %v9237_v45 }
 0x3b0   : > { %v4616_v54 = vpop.f32.mrf.mxu2 }
 0x3b1   : > { %v10828_v54 = vld [vmem:[#allocation7 + $0x2b4] sm:$0xf0] }
 0x3b2   : > { %v13052_v61 = vpop.f32.mrf.mxu0  ;;  %v9473_v41 = vor.u32 %v10828_v54, %v9472_v3  ;;  %5475 = vmatpush.bf16.msrb.mxu1 %v9229_v48  ;;  %v10783_v48 = vld [vmem:[#allocation7 + $0x154] sm:$0xf]  ;;  %v9298_v3 = vld [vmem:[#allocation7 + $0x158] sm:$0xf0] }
 0x3b3   : > { %v9301_v13 = vor.u32 %v10783_v48, %v9298_v3  ;;  %v9362_v48 = vld [vmem:[#allocation7 + $0x1d8] sm:$0xf0]  ;;  %v9397_v3 = vor.u32 %v10807_v36, %v9394_v33  ;;  %v9564_v33 = vld [vmem:[#allocation9 + $0x50] sm:$0xf] }
 0x3b4   : > { %5450 = vmatpush.bf16.msra.mxu3 %v9473_v41 }
 0x3b6   : > { %v4653_v55 = vpop.f32.mrf.mxu1  ;;  %5476 = vmatpush.bf16.msrb.mxu1 %v9221_v49 }
 0x3b8   : > { %v13060_v24 = vpop.f32.mrf.mxu2  ;;  %5451 = vmatpush.bf16.msra.mxu3 %v9465_v25 }
 0x3ba   : > { %v4694_v27 = vpop.f32.mrf.mxu0  ;;  %5477 = vmatpush.bf16.msrb.mxu1 %v9213_v43  ;;  %v9418_v43 = vld [vmem:[#allocation7 + $0x248] sm:$0xf0] }
 0x3bb   : > { %v9314_v27 = vld [vmem:[#allocation7 + $0x178] sm:$0xf0] }
 0x3bc   : > { %v4627_v26 = vpop.f32.mrf.mxu3  ;;  %5452 = vmatpush.bf16.msra.mxu3 %v9457_v50  ;;  %v9317_v4 = vor.u32 %v10787_v52, %v9314_v27  ;;  %v10779_v50 = vld [vmem:[#allocation7 + $0x134] sm:$0xf] }
 0x3bd   : > { %v4628_v39 = vadd.f32 %v4627_v26, %v4615_v6  ;;  %v9442_v26 = vld [vmem:[#allocation7 + $0x278] sm:$0xf0]  ;;  %v10775_v27 = vld [vmem:[#allocation7 + $0x114] sm:$0xf] }
 0x3be   : > { %v4655_v35 = vpop.f32.mrf.mxu1  ;;  %5478 = vmatpush.bf16.msrb.mxu1 %v9205_v56  ;;  %v10777_v56 = vld [vmem:[#allocation7 + $0x124] sm:$0xf] }
 0x3bf   : > { %v4641_v46 = vadd.f32 %v13048_v42, %v4628_v39  ;;  %v13069_v42 = vld [vmem:[%s13296_s15] sm:$0x3]  ;;  %v9445_v39 = vor.u32 %v10819_v20, %v9442_v26  ;;  %v9370_v20 = vld [vmem:[#allocation7 + $0x1e8] sm:$0xf0] }
 0x3c0   : > { %v4668_v16 = vpop.f32.mrf.mxu2  ;;  %v4765_v8 = vperm.slane %v13069_v42, 0  ;;  %v4766_v25 = vperm.slane %v13069_v42, 1  ;;  %v9285_v42 = vor.u32 %v10779_v50, %v9282_v37  ;;  %v9482_v50 = vld [vmem:[#allocation7 + $0x2c8] sm:$0xf0] }
 0x3c1   : > { %v4654_v12 = vadd.f32 %v4653_v55, %v4641_v46  ;;  %v9448_v55 = vld [vmem:[#allocation7 + $0x280] sm:$0xf]  ;;  %v10817_v16 = vld [vmem:[#allocation7 + $0x264] sm:$0xf] }
 0x3c2   : > { %v9449_v14 = vor.u32 %v10822_v10, %v9448_v55  ;;  %5479 = vmatpush.bf16.msrb.mxu1 %v9197_v18  ;;  %v10835_v18 = vld [vmem:[#allocation7 + $0x2f4] sm:$0xf] }
 0x3c3   : > { %v13064_v32 = vpop.f32.mrf.mxu0  ;;  %v4667_v38 = vadd.f32 %v13060_v24, %v4654_v12  ;;  %v4122_v24 = vperm.slane %v13057_v5, 1 }
 0x3c4   : > { %v4629_v47 = vpop.f32.mrf.mxu3  ;;  %5453 = vmatpush.bf16.msra.mxu3 %v9449_v14  ;;  %v9378_v14 = vld [vmem:[#allocation7 + $0x1f8] sm:$0xf0] }
 0x3c5   : > { %v4693_v5 = vadd.f32 %v13052_v61, %v4122_v24  ;;  %v9434_v61 = vld [vmem:[#allocation7 + $0x268] sm:$0xf0]  ;;  %v9426_v47 = vld [vmem:[#allocation7 + $0x258] sm:$0xf0] }
 0x3c6   : > { %v4705_v0 = vpop.f32.mrf.mxu1  ;;  %v9437_v41 = vor.u32 %v10817_v16, %v9434_v61  ;;  %v9429_v58 = vor.u32 %v10815_v57, %v9426_v47  ;;  %v9258_v16 = vld [vmem:[#allocation7 + $0x108] sm:$0xf0]  ;;  %v10799_v61 = vld [vmem:[#allocation7 + $0x1d4] sm:$0xf]  ;;  %v10805_v47 = vld [vmem:[#allocation7 + $0x204] sm:$0xf] }
 0x3c7   : > { %v4706_v34 = vadd.f32 %v4705_v0, %v4693_v5  ;;  %v9365_v57 = vor.u32 %v10799_v61, %v9362_v48  ;;  %v9684_v61 = vld [vmem:[#allocation9 + $0x140] sm:$0xf] }
 0x3c8   : > { %v4718_v59 = vpop.f32.mrf.mxu2 }
 0x3c9   : > { %v4719_v54 = vadd.f32 %v4718_v59, %v4706_v34  ;;  %v10813_v59 = vld [vmem:[#allocation7 + $0x244] sm:$0xf] }
 0x3cb   : > { %v4746_v7 = vpop.f32.mrf.mxu0 }
 0x3cc   : > { %v4679_v11 = vpop.f32.mrf.mxu3  ;;  %v9421_v7 = vor.u32 %v10813_v59, %v9418_v43  ;;  %v9493_v43 = vor.u32 %v10831_v21, %v9490_v53  ;;  %v9540_v21 = vld [vmem:[#allocation9 + $0x20] sm:$0xf]  ;;  %v10842_v53 = vld [vmem:[#allocation9 + $0x24] sm:$0xf0] }
 0x3cd   : > { %v4680_v62 = vadd.f32 %v4679_v11, %v4667_v38  ;;  %v9274_v11 = vld [vmem:[#allocation7 + $0x128] sm:$0xf0] }
 0x3ce   : > { %v4707_v60 = vpop.f32.mrf.mxu1 }
 0x3cf   : > { %vm4761_vm12 = vcmp.ge.f32.partialorder %v4680_v62, 0.0  ;;  %v4769_v1 = vmul.f32 %v4765_v8, %v4680_v62  ;;  %v10811_v8 = vld [vmem:[#allocation7 + $0x234] sm:$0xf] }
 0x3d0   : > { %v4720_v22 = vpop.f32.mrf.mxu2 }
 0x3d1   : > { %v4771_v23 = vsel %vm4761_vm12, %v4680_v62, %v4769_v1  ;;  %v10803_v62 = vld [vmem:[#allocation7 + $0x1f4] sm:$0xf]  ;;  %v9402_v1 = vld [vmem:[#allocation7 + $0x228] sm:$0xf0]  ;;  %v9506_v22 = vld [vmem:[#allocation7 + $0x2f8] sm:$0xf0] }
 0x3d2   : > { %v4775_v40 = vrot.slane %v4771_v23, 7  ;;  %v9277_v23 = vor.u32 %v10777_v56, %v9274_v11  ;;  %v9381_v52 = vor.u32 %v10803_v62, %v9378_v14  ;;  %v9405_v5 = vor.u32 %v10809_v17, %v9402_v1  ;;  %v10793_v11 = vld [vmem:[#allocation7 + $0x1a4] sm:$0xf]  ;;  %v9338_v62 = vld [vmem:[#allocation7 + $0x1a8] sm:$0xf0] }
 0x3d3   : > { %v10825_v17 = vld [vmem:[#allocation7 + $0x2a4] sm:$0xf]  ;;  %v9330_v1 = vld [vmem:[#allocation7 + $0x198] sm:$0xf0] }
 0x3d4   : > { %v4779_v28 = vsel %vm991_vm0, 0.0, %v4775_v40  ;;  %v4681_v29 = vpop.f32.mrf.mxu3  ;;  %v9266_v40 = vld [vmem:[#allocation7 + $0x118] sm:$0xf0] }
 0x3d5   : > { %v4781_v31 = vsel %vm1042_vm4, %v4779_v28, 0.0  ;;  %v13083_v45 = vpack.c.bf16 %v4779_v28, %v4779_v28  ;;  %v9269_v34 = vor.u32 %v10775_v27, %v9266_v40 }
 0x3d6   : > { %v4785_v6 = vrot.slane %v4781_v31, 1  ;;  %v4789_v51 = vrot.slane %v4781_v31, 2  ;;  %v9509_v31 = vor.u32 %v10835_v18, %v9506_v22 }
 0x3d7   : > { %9512 = vmatmul.msk.bf16.vlgmr.msrb.gmra.mxu2 %vm13077_vm13, %v13083_v45 }
 0x3d8   : > { %v4757_v35 = vpop.f32.mrf.mxu1  ;;  %v13088_v19 = vpack.c.bf16 %v4785_v6, %v4785_v6  ;;  %5485 = vmatpush.bf16.msrb.mxu2 %v9317_v4  ;;  %v13093_v55 = vpack.c.bf16 %v4789_v51, %v4789_v51  ;;  %v10801_v4 = vld [vmem:[#allocation7 + $0x1e4] sm:$0xf] }
 0x3da   : > { %5415 = vmatmul.bf16.vlgmr.msra.gmra.mxu0 %v13088_v19 }
 0x3db   : > { %5511 = vmatpush.bf16.msra.mxu0 %v9445_v39  ;;  %v10833_v39 = vld [vmem:[#allocation7 + $0x2e4] sm:$0xf] }
 0x3dc   : > { %5486 = vmatpush.bf16.msrb.mxu2 %v9309_v63  ;;  %v9498_v63 = vld [vmem:[#allocation7 + $0x2e8] sm:$0xf0] }
 0x3dd   : > { %v4731_v46 = vpop.f32.mrf.mxu3 }
 0x3de   : > { %v4732_v49 = vadd.f32 %v4731_v46, %v4719_v54  ;;  %v9501_v54 = vor.u32 %v10833_v39, %v9498_v63  ;;  %v10852_v46 = vld [vmem:[#allocation9 + $0x74] sm:$0xf0] }
 0x3df   : > { %5512 = vmatpush.bf16.msra.mxu0 %v9437_v41  ;;  %v9580_v41 = vld [vmem:[#allocation9 + $0x70] sm:$0xf]  ;;  %v10880_v63 = vld [vmem:[#allocation9 + $0x154] sm:$0xf0] }
 0x3e0   : > { %v4745_v0 = vadd.f32 %v13064_v32, %v4732_v49  ;;  %v4759_v12 = vpop.f32.mrf.mxu1  ;;  %5487 = vmatpush.bf16.msrb.mxu2 %v9301_v13  ;;  %v9410_v32 = vld [vmem:[#allocation7 + $0x238] sm:$0xf0]  ;;  %v9386_v49 = vld [vmem:[#allocation7 + $0x208] sm:$0xf0] }
 0x3e1   : > { %v9413_v15 = vor.u32 %v10811_v8, %v9410_v32  ;;  %v9581_v12 = vor.u32 %v10852_v46, %v9580_v41  ;;  %v9389_v59 = vor.u32 %v10805_v47, %v9386_v49  ;;  %v10827_v32 = vld [vmem:[#allocation7 + $0x2b4] sm:$0xf]  ;;  %v9548_v41 = vld [vmem:[#allocation9 + $0x30] sm:$0xf]  ;;  %v10844_v46 = vld [vmem:[#allocation9 + $0x34] sm:$0xf0] }
 0x3e2   : > { %v4758_v2 = vadd.f32 %v4757_v35, %v4745_v0  ;;  %v9373_v35 = vor.u32 %v10801_v4, %v9370_v20  ;;  %v9354_v0 = vld [vmem:[#allocation7 + $0x1c8] sm:$0xf0]  ;;  %v10876_v47 = vld [vmem:[#allocation9 + $0x134] sm:$0xf0] }
 0x3e3   : > { %5513 = vmatpush.bf16.msra.mxu0 %v9429_v58  ;;  %v9708_v58 = vld [vmem:[#allocation9 + $0x170] sm:$0xf]  ;;  %v9450_v4 = vld [vmem:[#allocation7 + $0x288] sm:$0xf0] }
 0x3e4   : > { %vm4762_vm14 = vcmp.ge.f32.partialorder %v4758_v2, 0.0  ;;  %v4770_v30 = vmul.f32 %v4766_v25, %v4758_v2  ;;  %5488 = vmatpush.bf16.msrb.mxu2 %v9293_v44  ;;  %v10797_v25 = vld [vmem:[#allocation7 + $0x1c4] sm:$0xf]  ;;  %v10884_v44 = vld [vmem:[#allocation9 + $0x174] sm:$0xf0] }
 0x3e5   : > { %v4733_v38 = vpop.f32.mrf.mxu3  ;;  %v9357_v51 = vor.u32 %v10797_v25, %v9354_v0  ;;  %v9644_v25 = vld [vmem:[#allocation9 + $0xf0] sm:$0xf]  ;;  %v9541_v0 = vor.u32 %v10842_v53, %v9540_v21  ;;  %v9566_v53 = vld [vmem:[#allocation9 + $0x58] sm:$0xf0] }
 0x3e6   : > { %v4772_v10 = vsel %vm4762_vm14, %v4758_v2, %v4770_v30  ;;  %v10829_v2 = vld [vmem:[#allocation7 + $0x2c4] sm:$0xf]  ;;  %v10795_v30 = vld [vmem:[#allocation7 + $0x1b4] sm:$0xf]  ;;  %v9709_v38 = vor.u32 %v10884_v44, %v9708_v58  ;;  %v9668_v58 = vld [vmem:[#allocation9 + $0x120] sm:$0xf] }
 0x3e7   : > { %v4776_v60 = vrot.slane %v4772_v10, 7  ;;  %5441 = vmatmul.bf16.vlgmr.msra.gmra.mxu2 %v13093_v55  ;;  %5514 = vmatpush.bf16.msra.mxu0 %v9421_v7  ;;  %v9346_v7 = vld [vmem:[#allocation7 + $0x1b8] sm:$0xf0]  ;;  %v10874_v44 = vld [vmem:[#allocation9 + $0x124] sm:$0xf0] }
 0x3e8   : > { %5489 = vmatpush.bf16.msrb.mxu2 %v9285_v42  ;;  %v9485_v42 = vor.u32 %v10829_v2, %v9482_v50  ;;  %v9349_v8 = vor.u32 %v10795_v30, %v9346_v7  ;;  %v9474_v10 = vld [vmem:[#allocation7 + $0x2b8] sm:$0xf0]  ;;  %v10900_v2 = vld [vmem:[#allocation9 + $0x1f4] sm:$0xf0]  ;;  %v9636_v7 = vld [vmem:[#allocation9 + $0xe0] sm:$0xf] }
 0x3e9   : > { %v4780_v24 = vsel %vm991_vm0, 0.0, %v4776_v60  ;;  %v9477_v14 = vor.u32 %v10827_v32, %v9474_v10  ;;  %v9341_v60 = vor.u32 %v10793_v11, %v9338_v62  ;;  %v10840_v30 = vld [vmem:[#allocation9 + $0x14] sm:$0xf0]  ;;  %v9764_v11 = vld [vmem:[#allocation9 + $0x1e0] sm:$0xf] }
 0x3ea   : > { %v13098_v28 = vsel %vm1042_vm4, %v4780_v24, 0.0  ;;  %v13100_v29 = vpack.c.bf16 %v4780_v24, %v4780_v24  ;;  %9518 = vmatmul.msk.bf16.vlgmr.msrb.gmra.mxu0 %vm13077_vm13, %v13083_v45  ;;  %v10773_v45 = vld [vmem:[#allocation7 + $0x104] sm:$0xf]  ;;  %v10823_v24 = vld [vmem:[#allocation7 + $0x294] sm:$0xf] }
 0x3eb   : > { %v4786_v26 = vrot.slane %v13098_v28, 1  ;;  %5515 = vmatpush.bf16.msra.mxu0 %v9413_v15  ;;  %v9261_v13 = vor.u32 %v10773_v45, %v9258_v16  ;;  %v4790_v37 = vrot.slane %v13098_v28, 2  ;;  %v10791_v15 = vld [vmem:[#allocation7 + $0x194] sm:$0xf]  ;;  %v10821_v28 = vld [vmem:[#allocation7 + $0x284] sm:$0xf] }
 0x3ec   : > { %9515 = vmatmul.msk.bf16.vlgmr.msrb.gmra.mxu3 %vm13077_vm13, %v13100_v29  ;;  %5490 = vmatpush.bf16.msrb.mxu2 %v9277_v23  ;;  %v9333_v22 = vor.u32 %v10791_v15, %v9330_v1  ;;  %v9458_v23 = vld [vmem:[#allocation7 + $0x298] sm:$0xf0]  ;;  %v9453_v20 = vor.u32 %v10821_v28, %v9450_v4  ;;  %v9556_v16 = vld [vmem:[#allocation9 + $0x40] sm:$0xf]  ;;  %v10872_v32 = vld [vmem:[#allocation9 + $0x114] sm:$0xf0] }
 0x3ed   : > { %5498 = vmatpush.bf16.msrb.mxu3 %v9381_v52  ;;  %v13109_v6 = vpack.c.bf16 %v4786_v26, %v4786_v26  ;;  %v4798_v56 = vpack.c.bf16 %v4790_v37, %v4790_v37  ;;  %v9322_v52 = vld [vmem:[#allocation7 + $0x188] sm:$0xf0]  ;;  %v9461_v27 = vor.u32 %v10823_v24, %v9458_v23  ;;  %v9700_v26 = vld [vmem:[#allocation9 + $0x160] sm:$0xf]  ;;  %v9532_v37 = vld [vmem:[#allocation9 + $0x10] sm:$0xf] }
 0x3ee   : > { %v10898_v62 = vld [vmem:[#allocation9 + $0x1e4] sm:$0xf0]  ;;  %v10864_v1 = vld [vmem:[#allocation9 + $0xd4] sm:$0xf0]  ;;  %v10851_v4 = vld [vmem:[#allocation9 + $0x74] sm:$0xf] }
 0x3ef   : > { %5428 = vmatmul.bf16.vlgmr.msra.gmra.mxu1 %v13109_v6  ;;  %5516 = vmatpush.bf16.msra.mxu0 %v9405_v5  ;;  %v10916_v28 = vld [vmem:[#allocation9 + $0x274] sm:$0xf0] }
 0x3f0   : > { %5524 = vmatpush.bf16.msra.mxu1 %v9509_v31  ;;  %5491 = vmatpush.bf16.msrb.mxu2 %v9269_v34  ;;  %v10882_v31 = vld [vmem:[#allocation9 + $0x164] sm:$0xf0]  ;;  %v10848_v34 = vld [vmem:[#allocation9 + $0x54] sm:$0xf0] }
 0x3f1   : > { %5499 = vmatpush.bf16.msrb.mxu3 %v9373_v35  ;;  %v9701_v36 = vor.u32 %v10882_v31, %v9700_v26  ;;  %v9692_v35 = vld [vmem:[#allocation9 + $0x150] sm:$0xf]  ;;  %v9565_v39 = vor.u32 %v10848_v34, %v9564_v33  ;;  %v9620_v26 = vld [vmem:[#allocation9 + $0xc0] sm:$0xf]  ;;  %v10894_v33 = vld [vmem:[#allocation9 + $0x1c4] sm:$0xf0] }
 0x3f2   : > { %v9693_v45 = vor.u32 %v10880_v63, %v9692_v35  ;;  %v9748_v31 = vld [vmem:[#allocation9 + $0x1c0] sm:$0xf]  ;;  %v10914_v35 = vld [vmem:[#allocation9 + $0x264] sm:$0xf0] }
 0x3f3   : > { %5517 = vmatpush.bf16.msra.mxu0 %v9397_v3  ;;  %v10878_v3 = vld [vmem:[#allocation9 + $0x144] sm:$0xf0]  ;;  %v9828_v34 = vld [vmem:[#allocation9 + $0x260] sm:$0xf]  ;;  %v9749_v63 = vor.u32 %v10894_v33, %v9748_v31  ;;  %v10841_v31 = vld [vmem:[#allocation9 + $0x24] sm:$0xf] }
 0x3f4   : > { %5525 = vmatpush.bf16.msra.mxu1 %v9501_v54  ;;  %5492 = vmatpush.bf16.msrb.mxu2 %v9261_v13  ;;  %v9685_v54 = vor.u32 %v10878_v3, %v9684_v61  ;;  %v9676_v13 = vld [vmem:[#allocation9 + $0x130] sm:$0xf]  ;;  %v10860_v3 = vld [vmem:[#allocation9 + $0xb4] sm:$0xf0]  ;;  %v9542_v33 = vld [vmem:[#allocation9 + $0x28] sm:$0xf0] }
 0x3f5   : > { %5500 = vmatpush.bf16.msrb.mxu3 %v9365_v57  ;;  %v9549_v57 = vor.u32 %v10844_v46, %v9548_v41  ;;  %v9677_v49 = vor.u32 %v10876_v47, %v9676_v13  ;;  %v9612_v61 = vld [vmem:[#allocation9 + $0xb0] sm:$0xf]  ;;  %v10892_v41 = vld [vmem:[#allocation9 + $0x1b4] sm:$0xf0]  ;;  %v10847_v47 = vld [vmem:[#allocation9 + $0x54] sm:$0xf] }
 0x3f6   : > { %v9613_v46 = vor.u32 %v10860_v3, %v9612_v61  ;;  %v9820_v13 = vld [vmem:[#allocation9 + $0x250] sm:$0xf]  ;;  %v9892_v61 = vld [vmem:[#allocation9 + $0x2e0] sm:$0xf]  ;;  %v10930_v3 = vld [vmem:[#allocation9 + $0x2e4] sm:$0xf0] }
 0x3f7   : > { %5493 = vmatmul.bf16.vlgmr.msrb.gmra.mxu2 %v13088_v19  ;;  %5518 = vmatpush.bf16.msra.mxu0 %v9389_v59  ;;  %v9466_v19 = vld [vmem:[#allocation7 + $0x2a8] sm:$0xf0] }
 0x3f8   : > { %6171 = vmatpush.bf16.msra.mxu2 %v9581_v12  ;;  %5526 = vmatpush.bf16.msra.mxu1 %v9493_v43  ;;  %v9469_v18 = vor.u32 %v10825_v17, %v9466_v19  ;;  %v10868_v12 = vld [vmem:[#allocation9 + $0xf4] sm:$0xf0]  ;;  %v9669_v43 = vor.u32 %v10874_v44, %v9668_v58  ;;  %v10838_v17 = vld [vmem:[#allocation9 + $0x4] sm:$0xf0]  ;;  %v9628_v19 = vld [vmem:[#allocation9 + $0xd0] sm:$0xf] }
 0x3f9   : > { %5501 = vmatpush.bf16.msrb.mxu3 %v9357_v51  ;;  %v9645_v59 = vor.u32 %v10868_v12, %v9644_v25  ;;  %v9772_v51 = vld [vmem:[#allocation9 + $0x1f0] sm:$0xf]  ;;  %v9629_v24 = vor.u32 %v10864_v1, %v9628_v19  ;;  %v9604_v12 = vld [vmem:[#allocation9 + $0xa0] sm:$0xf]  ;;  %v10858_v58 = vld [vmem:[#allocation9 + $0xa4] sm:$0xf0] }
 0x3fa   : > { %5519 = vmatmul.bf16.vlgmr.msra.gmra.mxu0 %v13093_v55  ;;  %v10789_v55 = vld [vmem:[#allocation7 + $0x184] sm:$0xf]  ;;  %v9773_v50 = vor.u32 %v10900_v2, %v9772_v51  ;;  %v9732_v44 = vld [vmem:[#allocation9 + $0x1a0] sm:$0xf]  ;;  %v10910_v2 = vld [vmem:[#allocation9 + $0x244] sm:$0xf0] }
 0x3fb   : > { %6197 = vmatpush.bf16.msrb.mxu0 %v9709_v38  ;;  %v9325_v40 = vor.u32 %v10789_v55, %v9322_v52  ;;  %v9533_v38 = vor.u32 %v10840_v30, %v9532_v37  ;;  %v9756_v55 = vld [vmem:[#allocation9 + $0x1d0] sm:$0xf]  ;;  %v10896_v52 = vld [vmem:[#allocation9 + $0x1d4] sm:$0xf0]  ;;  %v9812_v51 = vld [vmem:[#allocation9 + $0x240] sm:$0xf] }
 0x3fc   : > { %5454 = vmatmul.bf16.vlgmr.msra.gmra.mxu3 %v4798_v56  ;;  %5527 = vmatpush.bf16.msra.mxu1 %v9485_v42  ;;  %v10866_v42 = vld [vmem:[#allocation9 + $0xe4] sm:$0xf0]  ;;  %v10845_v37 = vld [vmem:[#allocation9 + $0x44] sm:$0xf]  ;;  %v9558_v30 = vld [vmem:[#allocation9 + $0x48] sm:$0xf0] }
 0x3fd   : > { %5502 = vmatpush.bf16.msrb.mxu3 %v9349_v8  ;;  %v9660_v8 = vld [vmem:[#allocation9 + $0x110] sm:$0xf]  ;;  %v10908_v19 = vld [vmem:[#allocation9 + $0x234] sm:$0xf0] }
 0x3fe   : > { %v9661_v10 = vor.u32 %v10872_v32, %v9660_v8  ;;  %v13126_v8 = vld [vmem:[%s13298_s17] sm:$0x3]  ;;  %v9596_v32 = vld [vmem:[#allocation9 + $0x90] sm:$0xf] }
 0x3ff   : > { %9521 = vmatmul.msk.bf16.vlgmr.msrb.gmra.mxu1 %vm13077_vm13, %v13100_v29  ;;  %v10850_v29 = vld [vmem:[#allocation9 + $0x64] sm:$0xf0]  ;;  %6198 = vmatpush.bf16.msrb.mxu0 %v9701_v36  ;;  %v4897_v1 = vperm.slane %v13126_v8, 0 }
 0x400   : > { %5528 = vmatpush.bf16.msra.mxu1 %v9477_v14  ;;  %v9573_v5 = vor.u32 %v10850_v29, %v9572_v9  ;;  %v9765_v14 = vor.u32 %v10898_v62, %v9764_v11  ;;  %v9724_v62 = vld [vmem:[#allocation9 + $0x190] sm:$0xf] }
 0x401   : > { %5503 = vmatpush.bf16.msrb.mxu3 %v9341_v60  ;;  %v9524_v60 = vld [vmem:[#allocation9] sm:$0xf] }
 0x402   : > { %6172 = vmatpush.bf16.msra.mxu2 %v9573_v5  ;;  %v9525_v15 = vor.u32 %v10838_v17, %v9524_v60  ;;  %v10862_v5 = vld [vmem:[#allocation9 + $0xc4] sm:$0xf0]  ;;  %v9804_v17 = vld [vmem:[#allocation9 + $0x230] sm:$0xf] }
 0x403   : > { %6199 = vmatpush.bf16.msrb.mxu0 %v9693_v45  ;;  %v9621_v36 = vor.u32 %v10862_v5, %v9620_v26  ;;  %v9829_v45 = vor.u32 %v10914_v35, %v9828_v34  ;;  %v9900_v26 = vld [vmem:[#allocation9 + $0x2f0] sm:$0xf]  ;;  %v10932_v5 = vld [vmem:[#allocation9 + $0x2f4] sm:$0xf0]  ;;  %v10867_v34 = vld [vmem:[#allocation9 + $0xf4] sm:$0xf] }
 0x404   : > { %5529 = vmatpush.bf16.msra.mxu1 %v9469_v18  ;;  %v9652_v18 = vld [vmem:[#allocation9 + $0x100] sm:$0xf]  ;;  %v9646_v35 = vld [vmem:[#allocation9 + $0xf8] sm:$0xf0] }
 0x405   : > { %5504 = vmatpush.bf16.msrb.mxu3 %v9333_v22  ;;  %v10870_v22 = vld [vmem:[#allocation9 + $0x104] sm:$0xf0] }
 0x406   : > { %6173 = vmatpush.bf16.msra.mxu2 %v9565_v39  ;;  %v9653_v23 = vor.u32 %v10870_v22, %v9652_v18  ;;  %v9805_v18 = vor.u32 %v10908_v19, %v9804_v17  ;;  %v9550_v22 = vld [vmem:[#allocation9 + $0x38] sm:$0xf0]  ;;  %v9622_v17 = vld [vmem:[#allocation9 + $0xc8] sm:$0xf0] }
 0x407   : > { %6200 = vmatpush.bf16.msrb.mxu0 %v9685_v54  ;;  %v9740_v54 = vld [vmem:[#allocation9 + $0x1b0] sm:$0xf] }
 0x408   : > { %5530 = vmatpush.bf16.msra.mxu1 %v9461_v27  ;;  %v9836_v27 = vld [vmem:[#allocation9 + $0x270] sm:$0xf]  ;;  %v9741_v21 = vor.u32 %v10892_v41, %v9740_v54  ;;  %v10839_v54 = vld [vmem:[#allocation9 + $0x14] sm:$0xf]  ;;  %v9534_v41 = vld [vmem:[#allocation9 + $0x18] sm:$0xf0] }
 0x409   : > { %5505 = vmatpush.bf16.msrb.mxu3 %v9325_v40  ;;  %v9757_v40 = vor.u32 %v10896_v52, %v9756_v55  ;;  %v9837_v9 = vor.u32 %v10916_v28, %v9836_v27  ;;  %v10854_v55 = vld [vmem:[#allocation9 + $0x84] sm:$0xf0]  ;;  %v9716_v52 = vld [vmem:[#allocation9 + $0x180] sm:$0xf] }
 0x40a   : > { %v9796_v28 = vld [vmem:[#allocation9 + $0x220] sm:$0xf] }
 0x40b   : > { %6201 = vmatpush.bf16.msrb.mxu0 %v9677_v49 }
 0x40c   : > { %5506 = vmatmul.bf16.vlgmr.msrb.gmra.mxu3 %v13109_v6  ;;  %5531 = vmatpush.bf16.msra.mxu1 %v9453_v20  ;;  %v10846_v6 = vld [vmem:[#allocation9 + $0x44] sm:$0xf0]  ;;  %v9582_v20 = vld [vmem:[#allocation9 + $0x78] sm:$0xf0] }
 0x40d   : > { %v9557_v48 = vor.u32 %v10846_v6, %v9556_v16  ;;  %6184 = vmatpush.bf16.msra.mxu3 %v9645_v59  ;;  %v9585_v29 = vor.u32 %v10851_v4, %v9582_v20  ;;  %v10849_v16 = vld [vmem:[#allocation9 + $0x64] sm:$0xf]  ;;  %v9574_v6 = vld [vmem:[#allocation9 + $0x68] sm:$0xf0]  ;;  %v9605_v59 = vor.u32 %v10858_v58, %v9604_v12  ;;  %v10906_v4 = vld [vmem:[#allocation9 + $0x224] sm:$0xf0] }
 0x40e   : > { %v10902_v12 = vld [vmem:[#allocation9 + $0x204] sm:$0xf0]  ;;  %v9884_v58 = vld [vmem:[#allocation9 + $0x2d0] sm:$0xf] }
 0x40f   : > { %5532 = vmatmul.bf16.vlgmr.msra.gmra.mxu1 %v4798_v56  ;;  %6174 = vmatpush.bf16.msra.mxu2 %v9557_v48  ;;  %v9637_v56 = vor.u32 %v10866_v42, %v9636_v7  ;;  %v9577_v48 = vor.u32 %v10849_v16, %v9574_v6  ;;  %v9561_v42 = vor.u32 %v10845_v37, %v9558_v30  ;;  %v9788_v16 = vld [vmem:[#allocation9 + $0x210] sm:$0xf]  ;;  %v10904_v6 = vld [vmem:[#allocation9 + $0x214] sm:$0xf0] }
 0x410   : > { %6202 = vmatpush.bf16.msrb.mxu0 %v9669_v43  ;;  %6210 = vmatpush.bf16.msrb.mxu1 %v9773_v50  ;;  %v10890_v43 = vld [vmem:[#allocation9 + $0x1a4] sm:$0xf0] }
 0x411   : > { %6185 = vmatpush.bf16.msra.mxu3 %v9637_v56  ;;  %v9733_v50 = vor.u32 %v10890_v43, %v9732_v44  ;;  %v10856_v56 = vld [vmem:[#allocation9 + $0x94] sm:$0xf0] }
 0x412   : > { %v9597_v11 = vor.u32 %v10856_v56, %v9596_v32  ;;  %v10928_v43 = vld [vmem:[#allocation9 + $0x2d4] sm:$0xf0] }
 0x413   : > { %6175 = vmatpush.bf16.msra.mxu2 %v9549_v57  ;;  %v10912_v57 = vld [vmem:[#allocation9 + $0x254] sm:$0xf0]  ;;  %v9885_v30 = vor.u32 %v10928_v43, %v9884_v58 }
 0x414   : > { %6203 = vmatpush.bf16.msrb.mxu0 %v9661_v10  ;;  %6211 = vmatpush.bf16.msrb.mxu1 %v9765_v14  ;;  %v9821_v25 = vor.u32 %v10912_v57, %v9820_v13  ;;  %v10888_v14 = vld [vmem:[#allocation9 + $0x194] sm:$0xf0]  ;;  %v9789_v13 = vor.u32 %v10904_v6, %v9788_v16  ;;  %v9893_v57 = vor.u32 %v10930_v3, %v9892_v61  ;;  %v9598_v61 = vld [vmem:[#allocation9 + $0x98] sm:$0xf0] }
 0x415   : > { %6186 = vmatpush.bf16.msra.mxu3 %v9629_v24  ;;  %v9725_v60 = vor.u32 %v10888_v14, %v9724_v62  ;;  %v10861_v62 = vld [vmem:[#allocation9 + $0xc4] sm:$0xf] }
 0x416   : > { %v9625_v19 = vor.u32 %v10861_v62, %v9622_v17  ;;  %v9830_v17 = vld [vmem:[#allocation9 + $0x268] sm:$0xf0] }
 0x417   : > { %6176 = vmatpush.bf16.msra.mxu2 %v9541_v0  ;;  %v9569_v0 = vor.u32 %v10847_v47, %v9566_v53  ;;  %v9537_v47 = vor.u32 %v10839_v54, %v9534_v41  ;;  %v9638_v53 = vld [vmem:[#allocation9 + $0xe8] sm:$0xf0] }
 0x418   : > { %6204 = vmatpush.bf16.msrb.mxu0 %v9653_v23  ;;  %6212 = vmatpush.bf16.msrb.mxu1 %v9757_v40  ;;  %v9588_v23 = vld [vmem:[#allocation9 + $0x80] sm:$0xf]  ;;  %v10886_v40 = vld [vmem:[#allocation9 + $0x184] sm:$0xf0] }
 0x419   : > { %6187 = vmatpush.bf16.msra.mxu3 %v9621_v36  ;;  %v9589_v27 = vor.u32 %v10854_v55, %v9588_v23  ;;  %v9901_v36 = vor.u32 %v10932_v5, %v9900_v26 }
 0x41b   : > { %6177 = vmatpush.bf16.msra.mxu2 %v9533_v38  ;;  %v9813_v38 = vor.u32 %v10910_v2, %v9812_v51  ;;  %v10837_v51 = vld [vmem:[#allocation9 + $0x4] sm:$0xf]  ;;  %v9526_v2 = vld [vmem:[#allocation9 + $0x8] sm:$0xf0] }
 0x41c   : > { %6249 = vmatpush.bf16.msra.mxu0 %v9585_v29  ;;  %6213 = vmatpush.bf16.msrb.mxu1 %v9749_v63  ;;  %v9797_v29 = vor.u32 %v10906_v4, %v9796_v28  ;;  %v9545_v63 = vor.u32 %v10841_v31, %v9542_v33  ;;  %v13140_v28 = vld [vmem:[%s13299_s18] sm:$0x3]  ;;  %v9606_v31 = vld [vmem:[#allocation9 + $0xa8] sm:$0xf0] }
 0x41d   : > { %6188 = vmatpush.bf16.msra.mxu3 %v9613_v46 }
 0x41f   : > { %6178 = vmatpush.bf16.msra.mxu2 %v9525_v15  ;;  %v10843_v15 = vld [vmem:[#allocation9 + $0x34] sm:$0xf] }
 0x420   : > { %6250 = vmatpush.bf16.msra.mxu0 %v9577_v48  ;;  %6214 = vmatpush.bf16.msrb.mxu1 %v9741_v21  ;;  %v9553_v24 = vor.u32 %v10843_v15, %v9550_v22  ;;  %v10865_v21 = vld [vmem:[#allocation9 + $0xe4] sm:$0xf]  ;;  %v10924_v22 = vld [vmem:[#allocation9 + $0x2b4] sm:$0xf0] }
 0x421   : > { %6189 = vmatpush.bf16.msra.mxu3 %v9605_v59 }
 0x423   : > { %6223 = vmatpush.bf16.msrb.mxu2 %v9837_v9  ;;  %v9717_v9 = vor.u32 %v10886_v40, %v9716_v52  ;;  %v9614_v52 = vld [vmem:[#allocation9 + $0xb8] sm:$0xf0] }
 0x424   : > { %6251 = vmatpush.bf16.msra.mxu0 %v9569_v0  ;;  %6215 = vmatpush.bf16.msrb.mxu1 %v9733_v50  ;;  %v9780_v0 = vld [vmem:[#allocation9 + $0x200] sm:$0xf] }
 0x425   : > { %6190 = vmatpush.bf16.msra.mxu3 %v9597_v11  ;;  %v9781_v37 = vor.u32 %v10902_v12, %v9780_v0  ;;  %v9876_v11 = vld [vmem:[#allocation9 + $0x2c0] sm:$0xf] }
 0x427   : > { %6224 = vmatpush.bf16.msrb.mxu2 %v9829_v45  ;;  %v9649_v45 = vor.u32 %v10867_v34, %v9646_v35  ;;  %v9852_v35 = vld [vmem:[#allocation9 + $0x290] sm:$0xf] }
 0x428   : > { %6252 = vmatpush.bf16.msra.mxu0 %v9561_v42  ;;  %6216 = vmatpush.bf16.msrb.mxu1 %v9725_v60  ;;  %v9630_v42 = vld [vmem:[#allocation9 + $0xd8] sm:$0xf0] }
 0x429   : > { %6191 = vmatpush.bf16.msra.mxu3 %v9589_v27 }
 0x42b   : > { %6225 = vmatpush.bf16.msrb.mxu2 %v9821_v25  ;;  %v9641_v25 = vor.u32 %v10865_v21, %v9638_v53  ;;  %v10853_v53 = vld [vmem:[#allocation9 + $0x84] sm:$0xf] }
 0x42c   : > { %6253 = vmatpush.bf16.msra.mxu0 %v9553_v24  ;;  %6217 = vmatpush.bf16.msrb.mxu1 %v9717_v9  ;;  %v10859_v24 = vld [vmem:[#allocation9 + $0xb4] sm:$0xf]  ;;  %v10922_v9 = vld [vmem:[#allocation9 + $0x2a4] sm:$0xf0] }
 0x42d   : > { %6236 = vmatpush.bf16.msrb.mxu3 %v9901_v36  ;;  %v9617_v27 = vor.u32 %v10859_v24, %v9614_v52  ;;  %v5541_v36 = vperm.slane %v13140_v28, 0  ;;  %v10879_v24 = vld [vmem:[#allocation9 + $0x154] sm:$0xf]  ;;  %v9694_v52 = vld [vmem:[#allocation9 + $0x158] sm:$0xf0] }
 0x42f   : > { %6226 = vmatpush.bf16.msrb.mxu2 %v9813_v38  ;;  %v10863_v38 = vld [vmem:[#allocation9 + $0xd4] sm:$0xf] }
 0x430   : > { %6254 = vmatpush.bf16.msra.mxu0 %v9545_v63  ;;  %6262 = vmatpush.bf16.msra.mxu1 %v9649_v45  ;;  %v9633_v32 = vor.u32 %v10863_v38, %v9630_v42  ;;  %v10920_v63 = vld [vmem:[#allocation9 + $0x294] sm:$0xf0]  ;;  %v10855_v45 = vld [vmem:[#allocation9 + $0x94] sm:$0xf] }
 0x431   : > { %6237 = vmatpush.bf16.msrb.mxu3 %v9893_v57  ;;  %v9853_v6 = vor.u32 %v10920_v63, %v9852_v35  ;;  %v9601_v41 = vor.u32 %v10855_v45, %v9598_v61  ;;  %v10918_v57 = vld [vmem:[#allocation9 + $0x284] sm:$0xf0]  ;;  %v9678_v61 = vld [vmem:[#allocation9 + $0x138] sm:$0xf0] }
 0x433   : > { %6227 = vmatpush.bf16.msrb.mxu2 %v9805_v18  ;;  %v9868_v18 = vld [vmem:[#allocation9 + $0x2b0] sm:$0xf] }
 0x434   : > { %6255 = vmatpush.bf16.msra.mxu0 %v9537_v47  ;;  %6263 = vmatpush.bf16.msra.mxu1 %v9641_v25  ;;  %v9869_v55 = vor.u32 %v10924_v22, %v9868_v18  ;;  %v4898_v25 = vperm.slane %v13126_v8, 1 }
 0x435   : > { %6238 = vmatpush.bf16.msrb.mxu3 %v9885_v30  ;;  %v10915_v30 = vld [vmem:[#allocation9 + $0x274] sm:$0xf] }
 0x437   : > { %6228 = vmatpush.bf16.msrb.mxu2 %v9797_v29  ;;  %v10857_v29 = vld [vmem:[#allocation9 + $0xa4] sm:$0xf] }
 0x438   : > { %6264 = vmatpush.bf16.msra.mxu1 %v9633_v32  ;;  %v9609_v33 = vor.u32 %v10857_v29, %v9606_v31  ;;  %v9697_v29 = vor.u32 %v10879_v24, %v9694_v52  ;;  %v9686_v31 = vld [vmem:[#allocation9 + $0x148] sm:$0xf0] }
 0x439   : > { %v9654_v24 = vld [vmem:[#allocation9 + $0x108] sm:$0xf0] }
 0x43b   : > { %6229 = vmatpush.bf16.msrb.mxu2 %v9789_v13  ;;  %v9844_v13 = vld [vmem:[#allocation9 + $0x280] sm:$0xf] }
 0x43c   : > { %6265 = vmatpush.bf16.msra.mxu1 %v9625_v19  ;;  %v9845_v21 = vor.u32 %v10918_v57, %v9844_v13  ;;  %v10873_v57 = vld [vmem:[#allocation9 + $0x124] sm:$0xf] }
 0x43f   : > { %6230 = vmatpush.bf16.msrb.mxu2 %v9781_v37 }
 0x440   : > { %6266 = vmatpush.bf16.msra.mxu1 %v9617_v27  ;;  %v10911_v27 = vld [vmem:[#allocation9 + $0x254] sm:$0xf] }
 0x444   : > { %6267 = vmatpush.bf16.msra.mxu1 %v9609_v33  ;;  %v9814_v33 = vld [vmem:[#allocation9 + $0x248] sm:$0xf0] }
 0x448   : > { %6268 = vmatpush.bf16.msra.mxu1 %v9601_v41 }
 0x457   : > { %v13119_v39 = vpop.f32.mrf.mxu0 }
 0x45a   : > { %v13121_v49 = vpop.f32.mrf.mxu2 }
 0x45b   : > { %v5391_v44 = vadd.f32 %v13121_v49, %v4897_v1  ;;  %v10926_v49 = vld [vmem:[#allocation9 + $0x2c4] sm:$0xf0] }
 0x45c   : > { %v9877_v60 = vor.u32 %v10926_v49, %v9876_v11  ;;  %v10881_v49 = vld [vmem:[#allocation9 + $0x164] sm:$0xf] }
 0x45e   : > { %6239 = vmatpush.bf16.msrb.mxu3 %v9877_v60  ;;  %v10913_v60 = vld [vmem:[#allocation9 + $0x264] sm:$0xf] }
 0x45f   : > { %v5418_v7 = vpop.f32.mrf.mxu0  ;;  %v9833_v22 = vor.u32 %v10913_v60, %v9830_v17  ;;  %v10903_v60 = vld [vmem:[#allocation9 + $0x214] sm:$0xf]  ;;  %v9790_v17 = vld [vmem:[#allocation9 + $0x218] sm:$0xf0] }
 0x460   : > { %v9529_v7 = vor.u32 %v10837_v51, %v9526_v2  ;;  %v10883_v51 = vld [vmem:[#allocation9 + $0x174] sm:$0xf]  ;;  %v9710_v2 = vld [vmem:[#allocation9 + $0x178] sm:$0xf0]  ;;  %v9793_v52 = vor.u32 %v10903_v60, %v9790_v17  ;;  %v10978_v60 = vld [vmem:[#allocation10 + $0x164] sm:$0xf0] }
 0x461   : > { %v9948_v17 = vld [vmem:[#allocation10 + $0x50] sm:$0xf] }
 0x462   : > { %v5392_v10 = vpop.f32.mrf.mxu2  ;;  %6256 = vmatpush.bf16.msra.mxu0 %v9529_v7  ;;  %6240 = vmatpush.bf16.msrb.mxu3 %v9869_v55  ;;  %v9838_v7 = vld [vmem:[#allocation9 + $0x278] sm:$0xf0] }
 0x463   : > { %v9841_v11 = vor.u32 %v10915_v30, %v9838_v7 }
 0x467   : > { %v13129_v20 = vpop.f32.mrf.mxu0 }
 0x46a   : > { %v13131_v48 = vpop.f32.mrf.mxu2 }
 0x46c   : > { %v5429_v46 = vpop.f32.mrf.mxu1 }
 0x46f   : > { %v5403_v59 = vpop.f32.mrf.mxu3  ;;  %v5470_v50 = vpop.f32.mrf.mxu0 }
 0x470   : > { %v5404_v56 = vadd.f32 %v5403_v59, %v5391_v44  ;;  %v5469_v50 = vadd.f32 %v13129_v20, %v4898_v25  ;;  %v9702_v20 = vld [vmem:[#allocation9 + $0x168] sm:$0xf0] }
 0x471   : > { %v9705_v18 = vor.u32 %v10881_v49, %v9702_v20  ;;  %v9766_v20 = vld [vmem:[#allocation9 + $0x1e8] sm:$0xf0] }
 0x472   : > { %v5444_v10 = vpop.f32.mrf.mxu2  ;;  %v5417_v15 = vadd.f32 %v13119_v39, %v5404_v56  ;;  %v9860_v39 = vld [vmem:[#allocation9 + $0x2a0] sm:$0xf] }
 0x473   : > { %v9861_v5 = vor.u32 %v10922_v9, %v9860_v39  ;;  %v9713_v10 = vor.u32 %v10883_v51, %v9710_v2  ;;  %v5542_v39 = vperm.slane %v13140_v28, 1  ;;  %v9798_v51 = vld [vmem:[#allocation9 + $0x228] sm:$0xf0] }
 0x474   : > { %v5431_v14 = vpop.f32.mrf.mxu1  ;;  %v5430_v40 = vadd.f32 %v5429_v46, %v5417_v15 }
 0x475   : > { %6241 = vmatpush.bf16.msrb.mxu3 %v9861_v5 }
 0x476   : > { %v5443_v34 = vadd.f32 %v13131_v48, %v5430_v40  ;;  %v9590_v48 = vld [vmem:[#allocation9 + $0x88] sm:$0xf0]  ;;  %v9822_v40 = vld [vmem:[#allocation9 + $0x258] sm:$0xf0] }
 0x477   : > { %v5405_v1 = vpop.f32.mrf.mxu3  ;;  %v13135_v23 = vpop.f32.mrf.mxu0  ;;  %v9593_v44 = vor.u32 %v10853_v53, %v9590_v48 }
 0x479   : > { %6242 = vmatpush.bf16.msrb.mxu3 %v9853_v6  ;;  %6269 = vmatpush.bf16.msra.mxu1 %v9593_v44 }
 0x47a   : > { %v13142_v4 = vpop.f32.mrf.mxu2 }
 0x47c   : > { %v5481_v26 = vpop.f32.mrf.mxu1 }
 0x47d   : > { %6243 = vmatpush.bf16.msrb.mxu3 %v9845_v21  ;;  %v5482_v42 = vadd.f32 %v5481_v26, %v5469_v50  ;;  %v9825_v26 = vor.u32 %v10911_v27, %v9822_v40  ;;  %v10931_v50 = vld [vmem:[#allocation9 + $0x2f4] sm:$0xf]  ;;  %v9758_v40 = vld [vmem:[#allocation9 + $0x1d8] sm:$0xf0] }
 0x47f   : > { %v5455_v16 = vpop.f32.mrf.mxu3  ;;  %v5522_v54 = vpop.f32.mrf.mxu0  ;;  %v5495_v15 = vadd.f32 %v13142_v4, %v5482_v42  ;;  %v10877_v4 = vld [vmem:[#allocation9 + $0x144] sm:$0xf]  ;;  %v10871_v42 = vld [vmem:[#allocation9 + $0x114] sm:$0xf] }
 0x480   : > { %v5456_v3 = vadd.f32 %v5455_v16, %v5443_v34  ;;  %v9689_v28 = vor.u32 %v10877_v4, %v9686_v31  ;;  %v9806_v54 = vld [vmem:[#allocation9 + $0x238] sm:$0xf0]  ;;  %v9964_v4 = vld [vmem:[#allocation10 + $0x70] sm:$0xf] }
 0x481   : > { %v10092_v31 = vld [vmem:[#allocation10 + $0x170] sm:$0xf] }
 0x482   : > { %vm5537_vm15 = vcmp.ge.f32.partialorder %v5456_v3, 0.0  ;;  %v5545_v46 = vmul.f32 %v5541_v36, %v5456_v3  ;;  %v5496_v47 = vpop.f32.mrf.mxu2  ;;  %v10909_v36 = vld [vmem:[#allocation9 + $0x244] sm:$0xf] }
 0x483   : > { %v9817_v16 = vor.u32 %v10909_v36, %v9814_v33  ;;  %v9670_v47 = vld [vmem:[#allocation9 + $0x128] sm:$0xf0]  ;;  %v10980_v36 = vld [vmem:[#allocation10 + $0x174] sm:$0xf0] }
 0x484   : > { %v13147_v0 = vsel %vm5537_vm15, %v5456_v3, %v5545_v46  ;;  %v5483_v12 = vpop.f32.mrf.mxu1  ;;  %v10907_v3 = vld [vmem:[#allocation9 + $0x234] sm:$0xf]  ;;  %v9673_v30 = vor.u32 %v10873_v57, %v9670_v47 }
 0x485   : > { %v5555_v58 = vrot.slane %v13147_v0, 7  ;;  %v9809_v25 = vor.u32 %v10907_v3, %v9806_v54  ;;  %v10899_v12 = vld [vmem:[#allocation9 + $0x1f4] sm:$0xf]  ;;  %v10093_v3 = vor.u32 %v10980_v36, %v10092_v31  ;;  %v9924_v36 = vld [vmem:[#allocation10 + $0x20] sm:$0xf] }
 0x486   : > { %v10923_v47 = vld [vmem:[#allocation9 + $0x2b4] sm:$0xf] }
 0x487   : > { %v5559_v59 = vsel %vm991_vm0, 0.0, %v5555_v58  ;;  %v5457_v43 = vpop.f32.mrf.mxu3  ;;  %v9774_v58 = vld [vmem:[#allocation9 + $0x1f8] sm:$0xf0] }
 0x488   : > { %v5561_v37 = vsel %vm1042_vm4, %v5559_v59, 0.0  ;;  %v10905_v43 = vld [vmem:[#allocation9 + $0x224] sm:$0xf] }
 0x489   : > { %v5565_v8 = vrot.slane %v5561_v37, 1  ;;  %v5571_v38 = vrot.slane %v5561_v37, 2  ;;  %v5577_v34 = vrot.slane %v5561_v37, 3 }
 0x48b   : > { %v5569_v32 = vsel %vm991_vm0, %v5561_v37, %v5565_v8  ;;  %v5575_v56 = vsel %vm991_vm0, %v5565_v8, %v5571_v38  ;;  %v5581_v13 = vsel %vm991_vm0, %v5571_v38, %v5577_v34  ;;  %v9902_v37 = vld [vmem:[#allocation9 + $0x2f8] sm:$0xf0]  ;;  %v9777_v38 = vor.u32 %v10899_v12, %v9774_v58  ;;  %v10889_v12 = vld [vmem:[#allocation9 + $0x1a4] sm:$0xf]  ;;  %v9734_v58 = vld [vmem:[#allocation9 + $0x1a8] sm:$0xf0] }
 0x48c   : > { %v13155_v62 = vpack.c.bf16 %v5569_v32, %v5569_v32  ;;  %v13157_v14 = vpack.c.bf16 %v5575_v56, %v5575_v56  ;;  %v5533_v19 = vpop.f32.mrf.mxu1  ;;  %v13175_v59 = vpack.c.bf16 %v5581_v13, %v5581_v13  ;;  %v9662_v32 = vld [vmem:[#allocation9 + $0x118] sm:$0xf0]  ;;  %v9905_v49 = vor.u32 %v10931_v50, %v9902_v37  ;;  %v10919_v50 = vld [vmem:[#allocation9 + $0x294] sm:$0xf] }
 0x48d   : > { %v9742_v13 = vld [vmem:[#allocation9 + $0x1b8] sm:$0xf0] }
 0x48e   : > { %6179 = vmatmul.bf16.vlgmr.msra.gmra.mxu2 %v13155_v62  ;;  %6205 = vmatmul.bf16.vlgmr.msrb.gmra.mxu0 %v13157_v14 }
 0x48f   : > { %v5507_v1 = vpop.f32.mrf.mxu3  ;;  %6275 = vmatpush.bf16.msra.mxu2 %v9713_v10  ;;  %6301 = vmatpush.bf16.msrb.mxu0 %v9841_v11  ;;  %v9801_v11 = vor.u32 %v10905_v43, %v9798_v51  ;;  %v10921_v43 = vld [vmem:[#allocation9 + $0x2a4] sm:$0xf]  ;;  %v9862_v51 = vld [vmem:[#allocation9 + $0x2a8] sm:$0xf0] }
 0x490   : > { %v5508_v55 = vadd.f32 %v5507_v1, %v5495_v15  ;;  %v9894_v15 = vld [vmem:[#allocation9 + $0x2e8] sm:$0xf0]  ;;  %v9665_v1 = vor.u32 %v10871_v42, %v9662_v32 }
 0x491   : > { %v9846_v42 = vld [vmem:[#allocation9 + $0x288] sm:$0xf0] }
 0x492   : > { %v5521_v9 = vadd.f32 %v13135_v23, %v5508_v55  ;;  %v10875_v23 = vld [vmem:[#allocation9 + $0x134] sm:$0xf] }
 0x493   : > { %6276 = vmatpush.bf16.msra.mxu2 %v9705_v18  ;;  %6302 = vmatpush.bf16.msrb.mxu0 %v9833_v22  ;;  %v9681_v48 = vor.u32 %v10875_v23, %v9678_v61  ;;  %v10869_v22 = vld [vmem:[#allocation9 + $0x104] sm:$0xf]  ;;  %v10895_v55 = vld [vmem:[#allocation9 + $0x1d4] sm:$0xf]  ;;  %v9878_v23 = vld [vmem:[#allocation9 + $0x2c8] sm:$0xf0] }
 0x494   : > { %v5534_v5 = vadd.f32 %v5533_v19, %v5521_v9  ;;  %v5535_v35 = vpop.f32.mrf.mxu1  ;;  %v10929_v19 = vld [vmem:[#allocation9 + $0x2e4] sm:$0xf]  ;;  %v9782_v9 = vld [vmem:[#allocation9 + $0x208] sm:$0xf0]  ;;  %v9657_v33 = vor.u32 %v10869_v22, %v9654_v24  ;;  %v9761_v34 = vor.u32 %v10895_v55, %v9758_v40  ;;  %v10976_v22 = vld [vmem:[#allocation10 + $0x154] sm:$0xf0] }
 0x495   : > { %v9897_v27 = vor.u32 %v10929_v19, %v9894_v15  ;;  %v10944_v19 = vld [vmem:[#allocation10 + $0x54] sm:$0xf0]  ;;  %v9940_v55 = vld [vmem:[#allocation10 + $0x40] sm:$0xf]  ;;  %v10974_v40 = vld [vmem:[#allocation10 + $0x144] sm:$0xf0] }
 0x496   : > { %vm5538_vm7 = vcmp.ge.f32.partialorder %v5534_v5, 0.0  ;;  %v5546_v63 = vmul.f32 %v5542_v39, %v5534_v5  ;;  %v10901_v39 = vld [vmem:[#allocation9 + $0x204] sm:$0xf] }
 0x497   : > { %v5509_v45 = vpop.f32.mrf.mxu3  ;;  %6277 = vmatpush.bf16.msra.mxu2 %v9697_v29  ;;  %6303 = vmatpush.bf16.msrb.mxu0 %v9825_v26  ;;  %v10927_v29 = vld [vmem:[#allocation9 + $0x2d4] sm:$0xf]  ;;  %v9886_v26 = vld [vmem:[#allocation9 + $0x2d8] sm:$0xf0]  ;;  %v9785_v35 = vor.u32 %v10901_v39, %v9782_v9  ;;  %v9932_v39 = vld [vmem:[#allocation10 + $0x30] sm:$0xf] }
 0x498   : > { %v5548_v6 = vsel %vm5538_vm7, %v5534_v5, %v5546_v63  ;;  %v10948_v5 = vld [vmem:[#allocation10 + $0x74] sm:$0xf0]  ;;  %v9889_v63 = vor.u32 %v10927_v29, %v9886_v26  ;;  %v10893_v45 = vld [vmem:[#allocation9 + $0x1c4] sm:$0xf] }
 0x499   : > { %v5551_v41 = vrot.slane %v5548_v6, 4  ;;  %v5556_v46 = vrot.slane %v5548_v6, 7  ;;  %v9965_v61 = vor.u32 %v10948_v5, %v9964_v4  ;;  %v10940_v9 = vld [vmem:[#allocation10 + $0x34] sm:$0xf0]  ;;  %v10060_v4 = vld [vmem:[#allocation10 + $0x130] sm:$0xf] }
 0x49a   : > { %v9933_v26 = vor.u32 %v10940_v9, %v9932_v39  ;;  %v10972_v5 = vld [vmem:[#allocation10 + $0x134] sm:$0xf0]  ;;  %v10204_v39 = vld [vmem:[#allocation10 + $0x250] sm:$0xf] }
 0x49b   : > { %v5552_v21 = vsel %vm1040_vm3, %v13147_v0, %v5551_v41  ;;  %v5560_v53 = vsel %vm991_vm0, 0.0, %v5556_v46  ;;  %6278 = vmatpush.bf16.msra.mxu2 %v9689_v28  ;;  %6304 = vmatpush.bf16.msrb.mxu0 %v9817_v16  ;;  %v9750_v28 = vld [vmem:[#allocation9 + $0x1c8] sm:$0xf0]  ;;  %v10925_v16 = vld [vmem:[#allocation9 + $0x2c4] sm:$0xf]  ;;  %v10061_v31 = vor.u32 %v10972_v5, %v10060_v4 }
 0x49c   : > { %5554 = vst [vmem:[%s977_s3] sm:$0xff] %v5552_v21  ;;  %v13173_v44 = vsel %vm1042_vm4, %v5560_v53, 0.0  ;;  %v9753_v54 = vor.u32 %v10893_v45, %v9750_v28  ;;  %v9881_v41 = vor.u32 %v10925_v16, %v9878_v23  ;;  %v10891_v46 = vld [vmem:[#allocation9 + $0x1b4] sm:$0xf]  ;;  %v9870_v21 = vld [vmem:[#allocation9 + $0x2b8] sm:$0xf0]  ;;  %vm13229_vm4 = vmpackc.low %vm1038_vm2, %vm1038_vm2 }
 0x49d   : > { %v5566_v2 = vrot.slane %v13173_v44, 1  ;;  %v5572_v0 = vrot.slane %v13173_v44, 2  ;;  %v5578_v6 = vrot.slane %v13173_v44, 3  ;;  %v9745_v53 = vor.u32 %v10891_v46, %v9742_v13  ;;  %v10052_v45 = vld [vmem:[#allocation10 + $0x120] sm:$0xf] }
 0x49e   : > { %6231 = vmatmul.bf16.vlgmr.msrb.gmra.mxu2 %v13175_v59  ;;  %6257 = vmatmul.bf16.vlgmr.msra.gmra.mxu0 %v13155_v62  ;;  %v10897_v62 = vld [vmem:[#allocation9 + $0x1e4] sm:$0xf]  ;;  %v10970_v28 = vld [vmem:[#allocation10 + $0x124] sm:$0xf0]  ;;  %v10020_v46 = vld [vmem:[#allocation10 + $0xe0] sm:$0xf] }
 0x49f   : > { %6279 = vmatpush.bf16.msra.mxu2 %v9681_v48  ;;  %6305 = vmatpush.bf16.msrb.mxu0 %v9809_v25  ;;  %v5570_v7 = vsel %vm991_vm0, %v13173_v44, %v5566_v2  ;;  %v5576_v8 = vsel %vm991_vm0, %v5566_v2, %v5572_v0  ;;  %v9769_v18 = vor.u32 %v10897_v62, %v9766_v20  ;;  %v10084_v62 = vld [vmem:[#allocation10 + $0x160] sm:$0xf]  ;;  %v11008_v9 = vld [vmem:[#allocation10 + $0x254] sm:$0xf0]  ;;  %v10124_v4 = vld [vmem:[#allocation10 + $0x1b0] sm:$0xf] }
 0x4a0   : > { %v13186_v56 = vpack.c.bf16 %v5570_v7, %v5570_v7  ;;  %v13188_v10 = vpack.c.bf16 %v5576_v8, %v5576_v8  ;;  %v5582_v57 = vsel %vm991_vm0, %v5572_v0, %v5578_v6  ;;  %v9873_v25 = vor.u32 %v10923_v47, %v9870_v21  ;;  %v10887_v0 = vld [vmem:[#allocation9 + $0x194] sm:$0xf]  ;;  %v10885_v7 = vld [vmem:[#allocation9 + $0x184] sm:$0xf]  ;;  %v9718_v8 = vld [vmem:[#allocation9 + $0x188] sm:$0xf0] }
 0x4a1   : > { %v5588_v48 = vpack.c.bf16 %v5582_v57, %v5582_v57  ;;  %v9737_v44 = vor.u32 %v10889_v12, %v9734_v58  ;;  %v9865_v2 = vor.u32 %v10921_v43, %v9862_v51  ;;  %v9721_v32 = vor.u32 %v10885_v7, %v9718_v8  ;;  %v10156_v6 = vld [vmem:[#allocation10 + $0x1f0] sm:$0xf]  ;;  %v10962_v57 = vld [vmem:[#allocation10 + $0xe4] sm:$0xf0]  ;;  %v9908_v43 = vld [vmem:[#allocation10] sm:$0xf] }
 0x4a2   : > { %6192 = vmatmul.bf16.vlgmr.msra.gmra.mxu3 %v13186_v56  ;;  %6218 = vmatmul.bf16.vlgmr.msrb.gmra.mxu1 %v13188_v10  ;;  %v10085_v15 = vor.u32 %v10978_v60, %v10084_v62  ;;  %v10053_v23 = vor.u32 %v10970_v28, %v10052_v45  ;;  %v10021_v47 = vor.u32 %v10962_v57, %v10020_v46  ;;  %v10044_v21 = vld [vmem:[#allocation10 + $0x110] sm:$0xf]  ;;  %v10994_v12 = vld [vmem:[#allocation10 + $0x1e4] sm:$0xf0]  ;;  %v10947_v62 = vld [vmem:[#allocation10 + $0x74] sm:$0xf] }
 0x4a3   : > { %6280 = vmatpush.bf16.msra.mxu2 %v9673_v30  ;;  %6288 = vmatpush.bf16.msra.mxu3 %v9777_v38  ;;  %v10917_v38 = vld [vmem:[#allocation9 + $0x284] sm:$0xf]  ;;  %v10934_v51 = vld [vmem:[#allocation10 + $0x4] sm:$0xf0]  ;;  %v10140_v8 = vld [vmem:[#allocation10 + $0x1d0] sm:$0xf] }
 0x4a4   : > { %6306 = vmatpush.bf16.msrb.mxu0 %v9801_v11  ;;  %6314 = vmatpush.bf16.msrb.mxu1 %v9905_v49  ;;  %v9956_v11 = vld [vmem:[#allocation10 + $0x60] sm:$0xf]  ;;  %v10946_v49 = vld [vmem:[#allocation10 + $0x64] sm:$0xf0]  ;;  %v10988_v5 = vld [vmem:[#allocation10 + $0x1b4] sm:$0xf0] }
 0x4a5   : > { %v9957_v20 = vor.u32 %v10946_v49, %v9956_v11  ;;  %v10966_v7 = vld [vmem:[#allocation10 + $0x104] sm:$0xf0]  ;;  %v10212_v60 = vld [vmem:[#allocation10 + $0x260] sm:$0xf]  ;;  %v9950_v45 = vld [vmem:[#allocation10 + $0x58] sm:$0xf0] }
 0x4a6   : > { %v10196_v28 = vld [vmem:[#allocation10 + $0x240] sm:$0xf]  ;;  %v9980_v46 = vld [vmem:[#allocation10 + $0x90] sm:$0xf]  ;;  %v10941_v57 = vld [vmem:[#allocation10 + $0x44] sm:$0xf] }
 0x4a7   : > { %6281 = vmatpush.bf16.msra.mxu2 %v9665_v1  ;;  %6289 = vmatpush.bf16.msra.mxu3 %v9769_v18  ;;  %v9949_v1 = vor.u32 %v10944_v19, %v9948_v17  ;;  %v10076_v18 = vld [vmem:[#allocation10 + $0x150] sm:$0xf]  ;;  %v11010_v19 = vld [vmem:[#allocation10 + $0x264] sm:$0xf0] }
 0x4a8   : > { %6307 = vmatpush.bf16.msrb.mxu0 %v9793_v52  ;;  %6315 = vmatpush.bf16.msrb.mxu1 %v9897_v27  ;;  %v10077_v24 = vor.u32 %v10976_v22, %v10076_v18  ;;  %v10942_v52 = vld [vmem:[#allocation10 + $0x44] sm:$0xf0]  ;;  %v10068_v27 = vld [vmem:[#allocation10 + $0x140] sm:$0xf]  ;;  %v10213_v22 = vor.u32 %v11010_v19, %v10212_v60  ;;  %v9926_v60 = vld [vmem:[#allocation10 + $0x28] sm:$0xf0] }
 0x4a9   : > { %v10069_v29 = vor.u32 %v10974_v40, %v10068_v27  ;;  %v10945_v27 = vld [vmem:[#allocation10 + $0x64] sm:$0xf]  ;;  %v9958_v40 = vld [vmem:[#allocation10 + $0x68] sm:$0xf0] }
 0x4ab   : > { %6282 = vmatpush.bf16.msra.mxu2 %v9657_v33  ;;  %6290 = vmatpush.bf16.msra.mxu3 %v9761_v34  ;;  %v10938_v33 = vld [vmem:[#allocation10 + $0x24] sm:$0xf0]  ;;  %v10028_v34 = vld [vmem:[#allocation10 + $0xf0] sm:$0xf] }
 0x4ac   : > { %6308 = vmatpush.bf16.msrb.mxu0 %v9785_v35  ;;  %6316 = vmatpush.bf16.msrb.mxu1 %v9889_v63  ;;  %v9925_v35 = vor.u32 %v10938_v33, %v9924_v36  ;;  %v10964_v63 = vld [vmem:[#allocation10 + $0xf4] sm:$0xf0]  ;;  %v9988_v36 = vld [vmem:[#allocation10 + $0xa0] sm:$0xf]  ;;  %v10954_v33 = vld [vmem:[#allocation10 + $0xa4] sm:$0xf0] }
 0x4ad   : > { %v10029_v16 = vor.u32 %v10964_v63, %v10028_v34  ;;  %v10943_v34 = vld [vmem:[#allocation10 + $0x54] sm:$0xf]  ;;  %v9989_v63 = vor.u32 %v10954_v33, %v9988_v36  ;;  %v10022_v36 = vld [vmem:[#allocation10 + $0xe8] sm:$0xf0]  ;;  %v10164_v33 = vld [vmem:[#allocation10 + $0x200] sm:$0xf] }
 0x4ae   : > { %6283 = vmatmul.bf16.vlgmr.msra.gmra.mxu2 %v13157_v14  ;;  %v9726_v14 = vld [vmem:[#allocation9 + $0x198] sm:$0xf0] }
 0x4af   : > { %6947 = vmatpush.bf16.msrb.mxu2 %v9965_v61  ;;  %6309 = vmatmul.bf16.vlgmr.msrb.gmra.mxu0 %v13175_v59  ;;  %v9854_v59 = vld [vmem:[#allocation9 + $0x298] sm:$0xf0]  ;;  %v9729_v37 = vor.u32 %v10887_v0, %v9726_v14  ;;  %v10996_v61 = vld [vmem:[#allocation10 + $0x1f4] sm:$0xf0]  ;;  %v10220_v14 = vld [vmem:[#allocation10 + $0x270] sm:$0xf] }
 0x4b0   : > { %6973 = vmatpush.bf16.msra.mxu0 %v10093_v3  ;;  %6291 = vmatpush.bf16.msra.mxu3 %v9753_v54  ;;  %v9857_v30 = vor.u32 %v10919_v50, %v9854_v59  ;;  %v10157_v3 = vor.u32 %v10996_v61, %v10156_v6  ;;  %v9916_v54 = vld [vmem:[#allocation10 + $0x10] sm:$0xf]  ;;  %v10960_v0 = vld [vmem:[#allocation10 + $0xd4] sm:$0xf0]  ;;  %v10116_v61 = vld [vmem:[#allocation10 + $0x1a0] sm:$0xf] }
 0x4b1   : > { %6317 = vmatpush.bf16.msrb.mxu1 %v9881_v41  ;;  %v10936_v41 = vld [vmem:[#allocation10 + $0x14] sm:$0xf0] }
 0x4b2   : > { %6244 = vmatmul.bf16.vlgmr.msrb.gmra.mxu3 %v5588_v48  ;;  %6270 = vmatmul.bf16.vlgmr.msra.gmra.mxu1 %v13186_v56  ;;  %v9849_v56 = vor.u32 %v10917_v38, %v9846_v42  ;;  %v9917_v13 = vor.u32 %v10936_v41, %v9916_v54  ;;  %v11012_v50 = vld [vmem:[#allocation10 + $0x274] sm:$0xf0] }
 0x4b3   : > { %6948 = vmatpush.bf16.msrb.mxu2 %v9957_v20  ;;  %v10992_v42 = vld [vmem:[#allocation10 + $0x1d4] sm:$0xf0]  ;;  %v9966_v20 = vld [vmem:[#allocation10 + $0x78] sm:$0xf0] }
 0x4b4   : > { %6292 = vmatpush.bf16.msra.mxu3 %v9745_v53  ;;  %6974 = vmatpush.bf16.msra.mxu0 %v10085_v15  ;;  %v10968_v53 = vld [vmem:[#allocation10 + $0x114] sm:$0xf0]  ;;  %v10141_v11 = vor.u32 %v10992_v42, %v10140_v8  ;;  %v9969_v17 = vor.u32 %v10947_v62, %v9966_v20  ;;  %v10132_v15 = vld [vmem:[#allocation10 + $0x1c0] sm:$0xf]  ;;  %v10284_v8 = vld [vmem:[#allocation10 + $0x2f0] sm:$0xf] }
 0x4b5   : > { %6318 = vmatpush.bf16.msrb.mxu1 %v9873_v25  ;;  %v10045_v25 = vor.u32 %v10968_v53, %v10044_v21  ;;  %v9942_v21 = vld [vmem:[#allocation10 + $0x48] sm:$0xf0]  ;;  %v10188_v53 = vld [vmem:[#allocation10 + $0x230] sm:$0xf]  ;;  %v10937_v20 = vld [vmem:[#allocation10 + $0x24] sm:$0xf] }
 0x4b6   : > { %v9929_v19 = vor.u32 %v10937_v20, %v9926_v60 }
 0x4b7   : > { %6949 = vmatpush.bf16.msrb.mxu2 %v9949_v1  ;;  %v10990_v1 = vld [vmem:[#allocation10 + $0x1c4] sm:$0xf0] }
 0x4b8   : > { %6293 = vmatpush.bf16.msra.mxu3 %v9737_v44  ;;  %6975 = vmatpush.bf16.msra.mxu0 %v10077_v24  ;;  %v10012_v44 = vld [vmem:[#allocation10 + $0xd0] sm:$0xf]  ;;  %v10133_v24 = vor.u32 %v10990_v1, %v10132_v15  ;;  %v10030_v15 = vld [vmem:[#allocation10 + $0xf8] sm:$0xf0] }
 0x4b9   : > { %6319 = vmatpush.bf16.msrb.mxu1 %v9865_v2  ;;  %v9909_v2 = vor.u32 %v10934_v51, %v9908_v43  ;;  %v10013_v59 = vor.u32 %v10960_v0, %v10012_v44  ;;  %v10984_v43 = vld [vmem:[#allocation10 + $0x194] sm:$0xf0]  ;;  %v9972_v44 = vld [vmem:[#allocation10 + $0x80] sm:$0xf]  ;;  %v10172_v1 = vld [vmem:[#allocation10 + $0x210] sm:$0xf] }
 0x4bc   : > { %6294 = vmatpush.bf16.msra.mxu3 %v9729_v37  ;;  %6976 = vmatpush.bf16.msra.mxu0 %v10069_v29  ;;  %v10221_v37 = vor.u32 %v11012_v50, %v10220_v14  ;;  %v9961_v29 = vor.u32 %v10945_v27, %v9958_v40  ;;  %v10939_v50 = vld [vmem:[#allocation10 + $0x34] sm:$0xf]  ;;  %v10276_v27 = vld [vmem:[#allocation10 + $0x2e0] sm:$0xf] }
 0x4bd   : > { %6320 = vmatpush.bf16.msrb.mxu1 %v9857_v30  ;;  %v10036_v30 = vld [vmem:[#allocation10 + $0x100] sm:$0xf] }
 0x4be   : > { %v10037_v38 = vor.u32 %v10966_v7, %v10036_v30  ;;  %v10180_v30 = vld [vmem:[#allocation10 + $0x220] sm:$0xf]  ;;  %v11002_v7 = vld [vmem:[#allocation10 + $0x224] sm:$0xf0] }
 0x4bf   : > { %v10181_v42 = vor.u32 %v11002_v7, %v10180_v30 }
 0x4c0   : > { %6295 = vmatpush.bf16.msra.mxu3 %v9721_v32  ;;  %6977 = vmatpush.bf16.msra.mxu0 %v10061_v31  ;;  %v10004_v32 = vld [vmem:[#allocation10 + $0xc0] sm:$0xf]  ;;  %v10125_v31 = vor.u32 %v10988_v5, %v10124_v4 }
 0x4c1   : > { %6321 = vmatpush.bf16.msrb.mxu1 %v9849_v56  ;;  %v10958_v56 = vld [vmem:[#allocation10 + $0xc4] sm:$0xf0] }
 0x4c2   : > { %v10005_v49 = vor.u32 %v10958_v56, %v10004_v32  ;;  %v11028_v32 = vld [vmem:[#allocation10 + $0x2f4] sm:$0xf0]  ;;  %v10100_v56 = vld [vmem:[#allocation10 + $0x180] sm:$0xf] }
 0x4c3   : > { %6296 = vmatmul.bf16.vlgmr.msra.gmra.mxu3 %v13188_v10  ;;  %v9941_v10 = vor.u32 %v10942_v52, %v9940_v55  ;;  %v9996_v55 = vld [vmem:[#allocation10 + $0xb0] sm:$0xf]  ;;  %v10956_v52 = vld [vmem:[#allocation10 + $0xb4] sm:$0xf0] }
 0x4c4   : > { %6322 = vmatmul.bf16.vlgmr.msrb.gmra.mxu1 %v5588_v48  ;;  %6960 = vmatpush.bf16.msrb.mxu3 %v10029_v16  ;;  %v10148_v48 = vld [vmem:[#allocation10 + $0x1e0] sm:$0xf]  ;;  %v11006_v16 = vld [vmem:[#allocation10 + $0x244] sm:$0xf0] }
 0x4c5   : > { %6950 = vmatpush.bf16.msrb.mxu2 %v9941_v10  ;;  %6978 = vmatpush.bf16.msra.mxu0 %v10053_v23  ;;  %v10149_v58 = vor.u32 %v10994_v12, %v10148_v48  ;;  %v9997_v10 = vor.u32 %v10956_v52, %v9996_v55  ;;  %v9953_v23 = vor.u32 %v10943_v34, %v9950_v45  ;;  %v11004_v48 = vld [vmem:[#allocation10 + $0x234] sm:$0xf0]  ;;  %v10268_v45 = vld [vmem:[#allocation10 + $0x2d0] sm:$0xf] }
 0x4c6   : > { %6986 = vmatpush.bf16.msra.mxu1 %v10157_v3  ;;  %v10197_v6 = vor.u32 %v11006_v16, %v10196_v28  ;;  %v10986_v3 = vld [vmem:[#allocation10 + $0x1a4] sm:$0xf0]  ;;  %v10189_v12 = vor.u32 %v11004_v48, %v10188_v53  ;;  %v11024_v28 = vld [vmem:[#allocation10 + $0x2d4] sm:$0xf0] }
 0x4c7   : > { %v10117_v41 = vor.u32 %v10986_v3, %v10116_v61  ;;  %v10933_v61 = vld [vmem:[#allocation10 + $0x4] sm:$0xf]  ;;  %v9910_v3 = vld [vmem:[#allocation10 + $0x8] sm:$0xf0] }
 0x4c8   : > { %6961 = vmatpush.bf16.msrb.mxu3 %v10021_v47 }
 0x4c9   : > { %6951 = vmatpush.bf16.msrb.mxu2 %v9933_v26  ;;  %6979 = vmatpush.bf16.msra.mxu0 %v10045_v25  ;;  %v10205_v26 = vor.u32 %v11008_v9, %v10204_v39  ;;  %v9945_v25 = vor.u32 %v10941_v57, %v9942_v21  ;;  %v10935_v9 = vld [vmem:[#allocation10 + $0x14] sm:$0xf]  ;;  %v11022_v21 = vld [vmem:[#allocation10 + $0x2c4] sm:$0xf0] }
 0x4ca   : > { %6987 = vmatpush.bf16.msra.mxu1 %v10149_v58  ;;  %v10108_v58 = vld [vmem:[#allocation10 + $0x190] sm:$0xf] }
 0x4cb   : > { %v10109_v51 = vor.u32 %v10984_v43, %v10108_v58  ;;  %v10957_v58 = vld [vmem:[#allocation10 + $0xc4] sm:$0xf]  ;;  %v10006_v43 = vld [vmem:[#allocation10 + $0xc8] sm:$0xf0] }
 0x4cc   : > { %6962 = vmatpush.bf16.msrb.mxu3 %v10013_v59  ;;  %v9934_v59 = vld [vmem:[#allocation10 + $0x38] sm:$0xf0] }
 0x4cd   : > { %6952 = vmatpush.bf16.msrb.mxu2 %v9925_v35  ;;  %6980 = vmatpush.bf16.msra.mxu0 %v10037_v38 }
 0x4ce   : > { %6988 = vmatpush.bf16.msra.mxu1 %v10141_v11  ;;  %v10982_v11 = vld [vmem:[#allocation10 + $0x184] sm:$0xf0] }
 0x4cf   : > { %v10101_v62 = vor.u32 %v10982_v11, %v10100_v56 }
 0x4d0   : > { %6963 = vmatpush.bf16.msrb.mxu3 %v10005_v49  ;;  %v10285_v49 = vor.u32 %v11028_v32, %v10284_v8  ;;  %v10244_v8 = vld [vmem:[#allocation10 + $0x2a0] sm:$0xf] }
 0x4d1   : > { %6953 = vmatpush.bf16.msrb.mxu2 %v9917_v13  ;;  %7025 = vmatpush.bf16.msrb.mxu0 %v9969_v17  ;;  %v10952_v13 = vld [vmem:[#allocation10 + $0x94] sm:$0xf0]  ;;  %v10963_v17 = vld [vmem:[#allocation10 + $0xf4] sm:$0xf] }
 0x4d2   : > { %6989 = vmatpush.bf16.msra.mxu1 %v10133_v24  ;;  %v9981_v47 = vor.u32 %v10952_v13, %v9980_v46  ;;  %v13209_v24 = vld [vmem:[%s13301_s20] sm:$0x3]  ;;  %v10033_v55 = vor.u32 %v10963_v17, %v10030_v15  ;;  %v9913_v13 = vor.u32 %v10933_v61, %v9910_v3  ;;  %v10236_v17 = vld [vmem:[#allocation10 + $0x290] sm:$0xf] }
 0x4d3   : > { %v5687_v4 = vperm.slane %v13209_v24, 0 }
 0x4d4   : > { %6964 = vmatpush.bf16.msrb.mxu3 %v9997_v10  ;;  %v11026_v10 = vld [vmem:[#allocation10 + $0x2e4] sm:$0xf0] }
 0x4d5   : > { %6954 = vmatpush.bf16.msrb.mxu2 %v9909_v2  ;;  %7026 = vmatpush.bf16.msrb.mxu0 %v9961_v29  ;;  %v10950_v2 = vld [vmem:[#allocation10 + $0x84] sm:$0xf0]  ;;  %v10277_v39 = vor.u32 %v11026_v10, %v10276_v27  ;;  %v9918_v29 = vld [vmem:[#allocation10 + $0x18] sm:$0xf0] }
 0x4d6   : > { %6990 = vmatpush.bf16.msra.mxu1 %v10125_v31  ;;  %v9973_v14 = vor.u32 %v10950_v2, %v9972_v44  ;;  %v9921_v31 = vor.u32 %v10935_v9, %v9918_v29  ;;  %v10009_v44 = vor.u32 %v10957_v58, %v10006_v43  ;;  %v10252_v2 = vld [vmem:[#allocation10 + $0x2b0] sm:$0xf] }
 0x4d8   : > { %6965 = vmatpush.bf16.msrb.mxu3 %v9989_v63  ;;  %v10998_v63 = vld [vmem:[#allocation10 + $0x204] sm:$0xf0] }
 0x4d9   : > { %6999 = vmatpush.bf16.msra.mxu2 %v10221_v37  ;;  %7027 = vmatpush.bf16.msrb.mxu0 %v9953_v23  ;;  %v9937_v37 = vor.u32 %v10939_v50, %v9934_v59  ;;  %v10165_v23 = vor.u32 %v10998_v63, %v10164_v33 }
 0x4da   : > { %6991 = vmatpush.bf16.msra.mxu1 %v10117_v41  ;;  %v10014_v41 = vld [vmem:[#allocation10 + $0xd8] sm:$0xf0] }
 0x4dc   : > { %6966 = vmatpush.bf16.msrb.mxu3 %v9981_v47  ;;  %v10260_v47 = vld [vmem:[#allocation10 + $0x2c0] sm:$0xf] }
 0x4dd   : > { %7000 = vmatpush.bf16.msra.mxu2 %v10213_v22  ;;  %7028 = vmatpush.bf16.msrb.mxu0 %v9945_v25  ;;  %v11000_v22 = vld [vmem:[#allocation10 + $0x214] sm:$0xf0]  ;;  %v10261_v48 = vor.u32 %v11022_v21, %v10260_v47  ;;  %v10977_v47 = vld [vmem:[#allocation10 + $0x164] sm:$0xf]  ;;  %v10086_v21 = vld [vmem:[#allocation10 + $0x168] sm:$0xf0] }
 0x4de   : > { %6992 = vmatpush.bf16.msra.mxu1 %v10109_v51  ;;  %v10173_v52 = vor.u32 %v11000_v22, %v10172_v1  ;;  %v10951_v1 = vld [vmem:[#allocation10 + $0x94] sm:$0xf]  ;;  %v9982_v22 = vld [vmem:[#allocation10 + $0x98] sm:$0xf0]  ;;  %v10089_v43 = vor.u32 %v10977_v47, %v10086_v21 }
 0x4df   : > { %v9985_v10 = vor.u32 %v10951_v1, %v9982_v22  ;;  %v10062_v1 = vld [vmem:[#allocation10 + $0x138] sm:$0xf0]  ;;  %v10999_v47 = vld [vmem:[#allocation10 + $0x214] sm:$0xf] }
 0x4e0   : > { %6967 = vmatpush.bf16.msrb.mxu3 %v9973_v14  ;;  %v10174_v21 = vld [vmem:[#allocation10 + $0x218] sm:$0xf0] }
 0x4e1   : > { %7001 = vmatpush.bf16.msra.mxu2 %v10205_v26  ;;  %7029 = vmatpush.bf16.msrb.mxu0 %v9937_v37  ;;  %v10961_v26 = vld [vmem:[#allocation10 + $0xe4] sm:$0xf]  ;;  %v9998_v37 = vld [vmem:[#allocation10 + $0xb8] sm:$0xf0] }
 0x4e2   : > { %6993 = vmatpush.bf16.msra.mxu1 %v10101_v62  ;;  %v10025_v34 = vor.u32 %v10961_v26, %v10022_v36  ;;  %v9990_v62 = vld [vmem:[#allocation10 + $0xa8] sm:$0xf0] }
 0x4e3   : > { %v9974_v36 = vld [vmem:[#allocation10 + $0x88] sm:$0xf0] }
 0x4e4   : > { %7012 = vmatpush.bf16.msra.mxu3 %v10285_v49  ;;  %v10953_v49 = vld [vmem:[#allocation10 + $0xa4] sm:$0xf] }
 0x4e5   : > { %7002 = vmatpush.bf16.msra.mxu2 %v10197_v6  ;;  %7030 = vmatpush.bf16.msrb.mxu0 %v9929_v19  ;;  %v10269_v6 = vor.u32 %v11024_v28, %v10268_v45  ;;  %v9993_v60 = vor.u32 %v10953_v49, %v9990_v62  ;;  %v11016_v19 = vld [vmem:[#allocation10 + $0x294] sm:$0xf0]  ;;  %v10979_v28 = vld [vmem:[#allocation10 + $0x174] sm:$0xf] }
 0x4e6   : > { %7038 = vmatpush.bf16.msrb.mxu1 %v10033_v55  ;;  %v10237_v15 = vor.u32 %v11016_v19, %v10236_v17 }
 0x4e8   : > { %7013 = vmatpush.bf16.msra.mxu3 %v10277_v39  ;;  %v11014_v39 = vld [vmem:[#allocation10 + $0x284] sm:$0xf0] }
 0x4e9   : > { %7003 = vmatpush.bf16.msra.mxu2 %v10189_v12  ;;  %7031 = vmatpush.bf16.msrb.mxu0 %v9921_v31  ;;  %v10949_v31 = vld [vmem:[#allocation10 + $0x84] sm:$0xf] }
 0x4ea   : > { %7039 = vmatpush.bf16.msrb.mxu1 %v10025_v34  ;;  %v9977_v34 = vor.u32 %v10949_v31, %v9974_v36  ;;  %v11001_v31 = vld [vmem:[#allocation10 + $0x224] sm:$0xf] }
 0x4ec   : > { %7014 = vmatpush.bf16.msra.mxu3 %v10269_v6 }
 0x4ed   : > { %7004 = vmatpush.bf16.msra.mxu2 %v10181_v42  ;;  %7032 = vmatpush.bf16.msrb.mxu0 %v9913_v13  ;;  %v11018_v42 = vld [vmem:[#allocation10 + $0x2a4] sm:$0xf0] }
 0x4ee   : > { %v10245_v32 = vor.u32 %v11018_v42, %v10244_v8  ;;  %v10973_v8 = vld [vmem:[#allocation10 + $0x144] sm:$0xf]  ;;  %v10070_v42 = vld [vmem:[#allocation10 + $0x148] sm:$0xf0] }
 0x4ef   : > { %v10073_v62 = vor.u32 %v10973_v8, %v10070_v42  ;;  %v10989_v8 = vld [vmem:[#allocation10 + $0x1c4] sm:$0xf]  ;;  %v10134_v42 = vld [vmem:[#allocation10 + $0x1c8] sm:$0xf0] }
 0x4f0   : > { %7015 = vmatpush.bf16.msra.mxu3 %v10261_v48 }
 0x4f1   : > { %7005 = vmatpush.bf16.msra.mxu2 %v10173_v52 }
 0x4f5   : > { %7006 = vmatpush.bf16.msra.mxu2 %v10165_v23 }
 0x50b   : > { %v13200_v18 = vpop.f32.mrf.mxu0 }
 0x511   : > { %v13202_v35 = vpop.f32.mrf.mxu2 }
 0x512   : > { %v6181_v53 = vadd.f32 %v13202_v35, %v5687_v4  ;;  %v10955_v35 = vld [vmem:[#allocation10 + $0xb4] sm:$0xf] }
 0x513   : > { %v6208_v54 = vpop.f32.mrf.mxu0  ;;  %v10001_v7 = vor.u32 %v10955_v35, %v9998_v37  ;;  %v11007_v37 = vld [vmem:[#allocation10 + $0x254] sm:$0xf] }
 0x514   : > { %v10959_v54 = vld [vmem:[#allocation10 + $0xd4] sm:$0xf] }
 0x515   : > { %v10017_v57 = vor.u32 %v10959_v54, %v10014_v41  ;;  %v11011_v41 = vld [vmem:[#allocation10 + $0x274] sm:$0xf] }
 0x517   : > { %7040 = vmatpush.bf16.msrb.mxu1 %v10017_v57 }
 0x519   : > { %v6182_v0 = vpop.f32.mrf.mxu2 }
 0x51a   : > { %v11020_v0 = vld [vmem:[#allocation10 + $0x2b4] sm:$0xf0] }
 0x51b   : > { %v13204_v38 = vpop.f32.mrf.mxu0  ;;  %v10253_v14 = vor.u32 %v11020_v0, %v10252_v2  ;;  %7041 = vmatpush.bf16.msrb.mxu1 %v10009_v44  ;;  %v10975_v44 = vld [vmem:[#allocation10 + $0x154] sm:$0xf]  ;;  %v10078_v2 = vld [vmem:[#allocation10 + $0x158] sm:$0xf0] }
 0x51c   : > { %v10081_v35 = vor.u32 %v10975_v44, %v10078_v2  ;;  %v10142_v44 = vld [vmem:[#allocation10 + $0x1d8] sm:$0xf0]  ;;  %v10177_v2 = vor.u32 %v10999_v47, %v10174_v21 }
 0x51d   : > { %7016 = vmatpush.bf16.msra.mxu3 %v10253_v14 }
 0x51f   : > { %v6219_v40 = vpop.f32.mrf.mxu1  ;;  %7042 = vmatpush.bf16.msrb.mxu1 %v10001_v7 }
 0x521   : > { %v13212_v5 = vpop.f32.mrf.mxu2  ;;  %7017 = vmatpush.bf16.msra.mxu3 %v10245_v32 }
 0x523   : > { %v6260_v16 = vpop.f32.mrf.mxu0  ;;  %7043 = vmatpush.bf16.msrb.mxu1 %v9993_v60  ;;  %v10198_v60 = vld [vmem:[#allocation10 + $0x248] sm:$0xf0] }
 0x524   : > { %v10094_v16 = vld [vmem:[#allocation10 + $0x178] sm:$0xf0] }
 0x525   : > { %v6193_v46 = vpop.f32.mrf.mxu3  ;;  %7018 = vmatpush.bf16.msra.mxu3 %v10237_v15  ;;  %v10097_v54 = vor.u32 %v10979_v28, %v10094_v16  ;;  %v10971_v15 = vld [vmem:[#allocation10 + $0x134] sm:$0xf] }
 0x526   : > { %v6194_v12 = vadd.f32 %v6193_v46, %v6181_v53  ;;  %v10222_v46 = vld [vmem:[#allocation10 + $0x278] sm:$0xf0]  ;;  %v10967_v16 = vld [vmem:[#allocation10 + $0x114] sm:$0xf] }
 0x527   : > { %v6221_v25 = vpop.f32.mrf.mxu1  ;;  %7044 = vmatpush.bf16.msrb.mxu1 %v9985_v10  ;;  %v10969_v10 = vld [vmem:[#allocation10 + $0x124] sm:$0xf] }
 0x528   : > { %v6207_v50 = vadd.f32 %v13200_v18, %v6194_v12  ;;  %v13221_v18 = vld [vmem:[%s13302_s21] sm:$0x3]  ;;  %v10225_v12 = vor.u32 %v11011_v41, %v10222_v46  ;;  %v10150_v41 = vld [vmem:[#allocation10 + $0x1e8] sm:$0xf0] }
 0x529   : > { %v6234_v51 = vpop.f32.mrf.mxu2  ;;  %v6331_v27 = vperm.slane %v13221_v18, 0  ;;  %v6332_v32 = vperm.slane %v13221_v18, 1  ;;  %v10065_v18 = vor.u32 %v10971_v15, %v10062_v1  ;;  %v11019_v1 = vld [vmem:[#allocation10 + $0x2b4] sm:$0xf] }
 0x52a   : > { %v6220_v11 = vadd.f32 %v6219_v40, %v6207_v50  ;;  %v10228_v40 = vld [vmem:[#allocation10 + $0x280] sm:$0xf]  ;;  %v11009_v51 = vld [vmem:[#allocation10 + $0x264] sm:$0xf] }
 0x52b   : > { %v10229_v26 = vor.u32 %v11014_v39, %v10228_v40  ;;  %7045 = vmatpush.bf16.msrb.mxu1 %v9977_v34  ;;  %v11027_v34 = vld [vmem:[#allocation10 + $0x2f4] sm:$0xf] }
 0x52c   : > { %v13216_v59 = vpop.f32.mrf.mxu0  ;;  %v6233_v52 = vadd.f32 %v13212_v5, %v6220_v11  ;;  %v5688_v5 = vperm.slane %v13209_v24, 1 }
 0x52d   : > { %v6195_v30 = vpop.f32.mrf.mxu3  ;;  %7019 = vmatpush.bf16.msra.mxu3 %v10229_v26  ;;  %v10158_v26 = vld [vmem:[#allocation10 + $0x1f8] sm:$0xf0] }
 0x52e   : > { %v6259_v24 = vadd.f32 %v13204_v38, %v5688_v5  ;;  %v10214_v38 = vld [vmem:[#allocation10 + $0x268] sm:$0xf0]  ;;  %v10206_v30 = vld [vmem:[#allocation10 + $0x258] sm:$0xf0] }
 0x52f   : > { %v6271_v56 = vpop.f32.mrf.mxu1  ;;  %v10217_v14 = vor.u32 %v11009_v51, %v10214_v38  ;;  %v10209_v49 = vor.u32 %v11007_v37, %v10206_v30  ;;  %v10965_v51 = vld [vmem:[#allocation10 + $0x104] sm:$0xf]  ;;  %v10991_v38 = vld [vmem:[#allocation10 + $0x1d4] sm:$0xf]  ;;  %v10166_v37 = vld [vmem:[#allocation10 + $0x208] sm:$0xf0] }
 0x530   : > { %v6272_v48 = vadd.f32 %v6271_v56, %v6259_v24  ;;  %v11023_v30 = vld [vmem:[#allocation10 + $0x2d4] sm:$0xf] }
 0x531   : > { %v6284_v20 = vpop.f32.mrf.mxu2 }
 0x532   : > { %v6285_v0 = vadd.f32 %v6284_v20, %v6272_v48  ;;  %v11005_v20 = vld [vmem:[#allocation10 + $0x244] sm:$0xf] }
 0x534   : > { %v6312_v55 = vpop.f32.mrf.mxu0 }
 0x535   : > { %v6245_v9 = vpop.f32.mrf.mxu3  ;;  %v10201_v55 = vor.u32 %v11005_v20, %v10198_v60  ;;  %v10987_v60 = vld [vmem:[#allocation10 + $0x1b4] sm:$0xf] }
 0x536   : > { %v6246_v29 = vadd.f32 %v6245_v9, %v6233_v52  ;;  %v10054_v9 = vld [vmem:[#allocation10 + $0x128] sm:$0xf0] }
 0x537   : > { %v6273_v4 = vpop.f32.mrf.mxu1 }
 0x538   : > { %vm6327_vm3 = vcmp.ge.f32.partialorder %v6246_v29, 0.0  ;;  %v6335_v33 = vmul.f32 %v6331_v27, %v6246_v29  ;;  %v11003_v27 = vld [vmem:[#allocation10 + $0x234] sm:$0xf] }
 0x539   : > { %v6286_v63 = vpop.f32.mrf.mxu2 }
 0x53a   : > { %v6337_v45 = vsel %vm6327_vm3, %v6246_v29, %v6335_v33  ;;  %v10995_v29 = vld [vmem:[#allocation10 + $0x1f4] sm:$0xf]  ;;  %v10182_v33 = vld [vmem:[#allocation10 + $0x228] sm:$0xf0]  ;;  %v10286_v63 = vld [vmem:[#allocation10 + $0x2f8] sm:$0xf0] }
 0x53b   : > { %v6341_v23 = vrot.slane %v6337_v45, 7  ;;  %v10057_v45 = vor.u32 %v10969_v10, %v10054_v9  ;;  %v10161_v28 = vor.u32 %v10995_v29, %v10158_v26  ;;  %v10185_v24 = vor.u32 %v11001_v31, %v10182_v33  ;;  %v11017_v10 = vld [vmem:[#allocation10 + $0x2a4] sm:$0xf]  ;;  %v10110_v9 = vld [vmem:[#allocation10 + $0x198] sm:$0xf0] }
 0x53c   : > { %v10238_v31 = vld [vmem:[#allocation10 + $0x298] sm:$0xf0] }
 0x53d   : > { %v6345_v6 = vsel %vm991_vm0, 0.0, %v6341_v23  ;;  %v6247_v61 = vpop.f32.mrf.mxu3  ;;  %v10046_v23 = vld [vmem:[#allocation10 + $0x118] sm:$0xf0] }
 0x53e   : > { %v6347_v13 = vsel %vm1038_vm2, %v6345_v6, 0.0  ;;  %v13235_v57 = vpack.c.bf16 %v6345_v6, %v6345_v6  ;;  %v10049_v48 = vor.u32 %v10967_v16, %v10046_v23 }
 0x53f   : > { %v6351_v53 = vrot.slane %v6347_v13, 1  ;;  %v6355_v17 = vrot.slane %v6347_v13, 2  ;;  %v10289_v13 = vor.u32 %v11027_v34, %v10286_v63  ;;  %v11013_v63 = vld [vmem:[#allocation10 + $0x284] sm:$0xf] }
 0x540   : > { %10292 = vmatmul.msk.bf16.vlgmr.msrb.gmra.mxu2 %vm13229_vm4, %v13235_v57 }
 0x541   : > { %v6323_v25 = vpop.f32.mrf.mxu1  ;;  %v13240_v58 = vpack.c.bf16 %v6351_v53, %v6351_v53  ;;  %7051 = vmatpush.bf16.msrb.mxu2 %v10097_v54  ;;  %v13245_v40 = vpack.c.bf16 %v6355_v17, %v6355_v17  ;;  %v10993_v54 = vld [vmem:[#allocation10 + $0x1e4] sm:$0xf]  ;;  %v10126_v17 = vld [vmem:[#allocation10 + $0x1b8] sm:$0xf0] }
 0x542   : > { %v10129_v15 = vor.u32 %v10987_v60, %v10126_v17 }
 0x543   : > { %6981 = vmatmul.bf16.vlgmr.msra.gmra.mxu0 %v13240_v58 }
 0x544   : > { %7077 = vmatpush.bf16.msra.mxu0 %v10225_v12  ;;  %v11025_v12 = vld [vmem:[#allocation10 + $0x2e4] sm:$0xf] }
 0x545   : > { %7052 = vmatpush.bf16.msrb.mxu2 %v10089_v43  ;;  %v10278_v43 = vld [vmem:[#allocation10 + $0x2e8] sm:$0xf0] }
 0x546   : > { %v6297_v50 = vpop.f32.mrf.mxu3 }
 0x547   : > { %v6298_v7 = vadd.f32 %v6297_v50, %v6285_v0  ;;  %v10281_v0 = vor.u32 %v11025_v12, %v10278_v43  ;;  %v10145_v50 = vor.u32 %v10991_v38, %v10142_v44 }
 0x548   : > { %7078 = vmatpush.bf16.msra.mxu0 %v10217_v14 }
 0x549   : > { %v6311_v56 = vadd.f32 %v13216_v59, %v6298_v7  ;;  %v6325_v11 = vpop.f32.mrf.mxu1  ;;  %7053 = vmatpush.bf16.msrb.mxu2 %v10081_v35  ;;  %v10190_v59 = vld [vmem:[#allocation10 + $0x238] sm:$0xf0]  ;;  %v10997_v35 = vld [vmem:[#allocation10 + $0x204] sm:$0xf] }
 0x54a   : > { %v10193_v36 = vor.u32 %v11003_v27, %v10190_v59  ;;  %v10270_v7 = vld [vmem:[#allocation10 + $0x2d8] sm:$0xf0]  ;;  %v10137_v11 = vor.u32 %v10989_v8, %v10134_v42  ;;  %v7105_v42 = vld [vmem:[%s13357_s10] sm:$0x3] }
 0x54b   : > { %v6324_v19 = vadd.f32 %v6323_v25, %v6311_v56  ;;  %v10153_v25 = vor.u32 %v10993_v54, %v10150_v41  ;;  %v10273_v56 = vor.u32 %v11023_v30, %v10270_v7 }
 0x54c   : > { %7079 = vmatpush.bf16.msra.mxu0 %v10209_v49  ;;  %v11021_v49 = vld [vmem:[#allocation10 + $0x2c4] sm:$0xf] }
 0x54d   : > { %vm6328_vm8 = vcmp.ge.f32.partialorder %v6324_v19, 0.0  ;;  %v6336_v22 = vmul.f32 %v6332_v32, %v6324_v19  ;;  %7054 = vmatpush.bf16.msrb.mxu2 %v10073_v62  ;;  %v10169_v32 = vor.u32 %v10997_v35, %v10166_v37  ;;  %v10262_v62 = vld [vmem:[#allocation10 + $0x2c8] sm:$0xf0] }
 0x54e   : > { %v6299_v52 = vpop.f32.mrf.mxu3 }
 0x54f   : > { %v6338_v39 = vsel %vm6328_vm8, %v6324_v19, %v6336_v22  ;;  %v10265_v19 = vor.u32 %v11021_v49, %v10262_v62  ;;  %v10985_v52 = vld [vmem:[#allocation10 + $0x1a4] sm:$0xf]  ;;  %v7107_v62 = vperm.slane %v7105_v42, 0 }
 0x550   : > { %v6342_v4 = vrot.slane %v6338_v39, 7  ;;  %7007 = vmatmul.bf16.vlgmr.msra.gmra.mxu2 %v13245_v40  ;;  %7080 = vmatpush.bf16.msra.mxu0 %v10201_v55  ;;  %v10254_v55 = vld [vmem:[#allocation10 + $0x2b8] sm:$0xf0]  ;;  %v10246_v39 = vld [vmem:[#allocation10 + $0x2a8] sm:$0xf0] }
 0x551   : > { %7055 = vmatpush.bf16.msrb.mxu2 %v10065_v18  ;;  %v10118_v18 = vld [vmem:[#allocation10 + $0x1a8] sm:$0xf0]  ;;  %v10257_v27 = vor.u32 %v11019_v1, %v10254_v55  ;;  %v10249_v29 = vor.u32 %v11017_v10, %v10246_v39 }
 0x552   : > { %v6346_v5 = vsel %vm991_vm0, 0.0, %v6342_v4  ;;  %v10121_v59 = vor.u32 %v10985_v52, %v10118_v18  ;;  %v11015_v4 = vld [vmem:[#allocation10 + $0x294] sm:$0xf] }
 0x553   : > { %v6348_v6 = vsel %vm1038_vm2, %v6346_v5, 0.0  ;;  %v13250_v61 = vpack.c.bf16 %v6346_v5, %v6346_v5  ;;  %10298 = vmatmul.msk.bf16.vlgmr.msrb.gmra.mxu0 %vm13229_vm4, %v13235_v57  ;;  %v10038_v57 = vld [vmem:[#allocation10 + $0x108] sm:$0xf0]  ;;  %v10241_v33 = vor.u32 %v11015_v4, %v10238_v31 }
 0x554   : > { %v6352_v46 = vrot.slane %v6348_v6, 1  ;;  %7081 = vmatpush.bf16.msra.mxu0 %v10193_v36  ;;  %v10041_v14 = vor.u32 %v10965_v51, %v10038_v57  ;;  %v6356_v20 = vrot.slane %v6348_v6, 2  ;;  %v10102_v36 = vld [vmem:[#allocation10 + $0x188] sm:$0xf0] }
 0x555   : > { %10295 = vmatmul.msk.bf16.vlgmr.msrb.gmra.mxu3 %vm13229_vm4, %v13250_v61  ;;  %7056 = vmatpush.bf16.msrb.mxu2 %v10057_v45  ;;  %v10230_v5 = vld [vmem:[#allocation10 + $0x288] sm:$0xf0] }
 0x556   : > { %7064 = vmatpush.bf16.msrb.mxu3 %v10161_v28  ;;  %v13258_v53 = vpack.c.bf16 %v6352_v46, %v6352_v46  ;;  %v6364_v22 = vpack.c.bf16 %v6356_v20, %v6356_v20  ;;  %v10233_v45 = vor.u32 %v11013_v63, %v10230_v5  ;;  %v7108_v20 = vperm.slane %v7105_v42, 1 }
 0x558   : > { %6994 = vmatmul.bf16.vlgmr.msra.gmra.mxu1 %v13258_v53  ;;  %7082 = vmatpush.bf16.msra.mxu0 %v10185_v24 }
 0x559   : > { %7090 = vmatpush.bf16.msra.mxu1 %v10289_v13  ;;  %7057 = vmatpush.bf16.msrb.mxu2 %v10049_v48  ;;  %v6461_v48 = vld [vmem:[%s13304_s23] sm:$0x3] }
 0x55a   : > { %7065 = vmatpush.bf16.msrb.mxu3 %v10153_v25  ;;  %v6463_v12 = vperm.slane %v6461_v48, 0  ;;  %v6464_v44 = vperm.slane %v6461_v48, 1 }
 0x55c   : > { %7083 = vmatpush.bf16.msra.mxu0 %v10177_v2 }
 0x55d   : > { %7091 = vmatpush.bf16.msra.mxu1 %v10281_v0  ;;  %7058 = vmatpush.bf16.msrb.mxu2 %v10041_v14 }
 0x55e   : > { %7066 = vmatpush.bf16.msrb.mxu3 %v10145_v50 }
 0x560   : > { %7059 = vmatmul.bf16.vlgmr.msrb.gmra.mxu2 %v13240_v58  ;;  %7084 = vmatpush.bf16.msra.mxu0 %v10169_v32  ;;  %v10983_v58 = vld [vmem:[#allocation10 + $0x194] sm:$0xf] }
 0x561   : > { %7092 = vmatpush.bf16.msra.mxu1 %v10273_v56  ;;  %v10113_v26 = vor.u32 %v10983_v58, %v10110_v9 }
 0x562   : > { %7067 = vmatpush.bf16.msrb.mxu3 %v10137_v11 }
 0x563   : > { %7085 = vmatmul.bf16.vlgmr.msra.gmra.mxu0 %v13245_v40  ;;  %v10981_v40 = vld [vmem:[#allocation10 + $0x184] sm:$0xf] }
 0x564   : > { %v10105_v34 = vor.u32 %v10981_v40, %v10102_v36 }
 0x565   : > { %7020 = vmatmul.bf16.vlgmr.msra.gmra.mxu3 %v6364_v22  ;;  %7093 = vmatpush.bf16.msra.mxu1 %v10265_v19 }
 0x566   : > { %7068 = vmatpush.bf16.msrb.mxu3 %v10129_v15 }
 0x568   : > { %10301 = vmatmul.msk.bf16.vlgmr.msrb.gmra.mxu1 %vm13229_vm4, %v13250_v61 }
 0x569   : > { %7094 = vmatpush.bf16.msra.mxu1 %v10257_v27 }
 0x56a   : > { %7069 = vmatpush.bf16.msrb.mxu3 %v10121_v59 }
 0x56d   : > { %7095 = vmatpush.bf16.msra.mxu1 %v10249_v29 }
 0x56e   : > { %7070 = vmatpush.bf16.msrb.mxu3 %v10113_v26 }
 0x571   : > { %7096 = vmatpush.bf16.msra.mxu1 %v10241_v33 }
 0x572   : > { %7071 = vmatpush.bf16.msrb.mxu3 %v10105_v34 }
 0x575   : > { %7072 = vmatmul.bf16.vlgmr.msrb.gmra.mxu3 %v13258_v53  ;;  %7097 = vmatpush.bf16.msra.mxu1 %v10233_v45 }
 0x578   : > { %7098 = vmatmul.bf16.vlgmr.msra.gmra.mxu1 %v6364_v22 }
 0x5c0   : > { %v6982_v3 = vpop.f32.mrf.mxu0 }
 0x5c3   : > { %v6956_v28 = vpop.f32.mrf.mxu2 }
 0x5c4   : > { %v6957_v57 = vadd.f32 %v6956_v28, %v6463_v12 }
 0x5c8   : > { %v6984_v16 = vpop.f32.mrf.mxu0 }
 0x5cb   : > { %v6958_v23 = vpop.f32.mrf.mxu2 }
 0x5d0   : > { %v7034_v6 = vpop.f32.mrf.mxu0 }
 0x5d1   : > { %v7035_v50 = vadd.f32 %v7034_v6, %v6464_v44 }
 0x5d3   : > { %v7008_v61 = vpop.f32.mrf.mxu2 }
 0x5d5   : > { %v6995_v54 = vpop.f32.mrf.mxu1 }
 0x5d8   : > { %v6969_v41 = vpop.f32.mrf.mxu3  ;;  %v7036_v46 = vpop.f32.mrf.mxu0 }
 0x5d9   : > { %v6970_v2 = vadd.f32 %v6969_v41, %v6957_v57 }
 0x5db   : > { %v7010_v24 = vpop.f32.mrf.mxu2  ;;  %v6983_v35 = vadd.f32 %v6982_v3, %v6970_v2 }
 0x5dd   : > { %v6997_v13 = vpop.f32.mrf.mxu1  ;;  %v6996_v30 = vadd.f32 %v6995_v54, %v6983_v35 }
 0x5df   : > { %v7009_v56 = vadd.f32 %v7008_v61, %v6996_v30 }
 0x5e0   : > { %v6971_v47 = vpop.f32.mrf.mxu3  ;;  %v7086_v21 = vpop.f32.mrf.mxu0 }
 0x5e3   : > { %v7060_v53 = vpop.f32.mrf.mxu2 }
 0x5e5   : > { %v7047_v25 = vpop.f32.mrf.mxu1 }
 0x5e6   : > { %v7048_v37 = vadd.f32 %v7047_v25, %v7035_v50 }
 0x5e8   : > { %v7021_v43 = vpop.f32.mrf.mxu3  ;;  %v7088_v51 = vpop.f32.mrf.mxu0  ;;  %v7061_v8 = vadd.f32 %v7060_v53, %v7048_v37 }
 0x5e9   : > { %v7022_v49 = vadd.f32 %v7021_v43, %v7009_v56 }
 0x5eb   : > { %v7062_v38 = vpop.f32.mrf.mxu2  ;;  %v7111_v15 = vmul.f32 %v7107_v62, %v7022_v49  ;;  %vm7103_vm2 = vcmp.ge.f32.partialorder %v7022_v49, 0.0 }
 0x5ed   : > { %v7049_v0 = vpop.f32.mrf.mxu1  ;;  %v7113_v18 = vsel %vm7103_vm2, %v7022_v49, %v7111_v15 }
 0x5f0   : > { %v7023_v14 = vpop.f32.mrf.mxu3 }
 0x5f5   : > { %v7099_v7 = vpop.f32.mrf.mxu1 }
 0x5f8   : > { %v7073_v32 = vpop.f32.mrf.mxu3 }
 0x5f9   : > { %v7074_v11 = vadd.f32 %v7073_v32, %v7061_v8 }
 0x5fb   : > { %v7087_v60 = vadd.f32 %v7086_v21, %v7074_v11 }
 0x5fd   : > { %v7100_v17 = vadd.f32 %v7099_v7, %v7087_v60  ;;  %v7101_v19 = vpop.f32.mrf.mxu1 }
 0x5ff   : > { %vm7104_vm0 = vcmp.ge.f32.partialorder %v7100_v17, 0.0  ;;  %v7112_v1 = vmul.f32 %v7108_v20, %v7100_v17 }
 0x600   : > { %v7075_v22 = vpop.f32.mrf.mxu3 }
 0x601   : > { %v7114_v55 = vsel %vm7104_vm0, %v7100_v17, %v7112_v1 }
 0x602   : > { %v7117_v52 = vrot.slane %v7114_v55, 6 }
 0x604   : > { %v7118_v27 = vsel %vm1036_vm1, %v7113_v18, %v7117_v52 }
 0x605   : > { %7120 = vst [vmem:[%s982_s1] sm:$0xf] %v7118_v27 }
 0x606 PF: > { %s13359_s3 = sld [smem:[#allocation16_spill]] }
 0x60c   : > { %s43_s8 = sadd.s32 1, %s13359_s3  }
 0x60d   : > { %p40_p7 = scmp.ge.s32.totalorder %s43_s8, 4  }
 0x60f   :  { %42 = sbr.rel (!%p40_p7) target bundleno = 21 (0x15), region = 211 }
 0x614   :  { %7190 = vsyncpa [#allocation3], 1 }
 0x615   :  { %7192 = vsyncpa [#allocation3 + $0x1], 1 }
 0x616   :  { %7193 = vsyncpa [#allocation5], 1 }
 0x617   :  { %7194 = vsyncpa [#allocation8], 1 }
 0x618   :  { %7195 = vsyncpa [#allocation11], 1 }

</bundles_post_ra>
